<compile_context>
chip_gen: v5e
topology: v5e:2x2
jax: 0.10.0
libtpu: 0.0.40
codegen_flags: <defaults>
</compile_context>

<pallas_src>
import jax
import jax.numpy as jnp
import numpy as np
from jax.experimental import pallas as pl
from jax.experimental.pallas import tpu as pltpu

N_KEYS = 8                 # keypoints per cloud (batch * 8 * 3 inputs)
KEY_HID = 64               # KeysFeatsExtra hidden width
FEAT_DIM = 128             # per-point feature dim produced by KeysFeatsExtra
CAT_DIM = 2 * FEAT_DIM     # keysFeats channels (source feats || target feats)
TS_EXTRA = 6               # centered targetKey (3) + centered sourceKey (3)
DATA_LANES = 32            # lane-packed input slab width
HEAD_HID1 = 1024
HEAD_HID2 = 256
HEAD_PAD = 128             # lane-dense packed head output: green 0:4 | red 4:8 | ts 8:14 | zeros
GREEN_DIM = 4
RED_DIM = 4
TS_DIM = 6
BN_EPS = 1e-5

# lane layout of the packed per-row input slab
_SRC = 0                   # sourceKey                  lanes 0:3
_TGT = 3                   # targetKey                  lanes 3:6
_TGT_C = 6                 # targetKey - mean(targetKey) lanes 6:9
_SRC_C = 9                 # sourceKey - mean(sourceKey) lanes 9:12


def _chip_config():
  """Chip-conditional row tile / VMEM budget / core-parallel choice (see header notes)."""
  try:
    kind = jax.devices()[0].device_kind.lower()
  except Exception:  # pragma: no cover - CPU fallback only
    kind = ""
  if "v5 lite" in kind or "v5e" in kind or "v5lite" in kind:
    # v5e: ~5 us of MXU work per 32-sample step, so grid overhead is already <10%; the real gate
    # is the 16 MiB default scoped-VMEM limit -> raise the limit, keep TB=32.
    return dict(batch_tile=32, vmem_limit_bytes=96 * 1024 * 1024, core_parallel=False)
  if "7" in kind:
    # v7x: only 64 MiB VMEM per TensorCore -> smaller tile + budget; 2 TCs -> CORE_PARALLEL grid.
    return dict(batch_tile=64, vmem_limit_bytes=48 * 1024 * 1024, core_parallel=True)
  if "v6" in kind:
    # v6e: 128 MiB VMEM, ~1 us/step of MXU work -> big tile to amortize ~0.35 us/step overhead.
    return dict(batch_tile=128, vmem_limit_bytes=96 * 1024 * 1024, core_parallel=False)
  return dict(batch_tile=64, vmem_limit_bytes=64 * 1024 * 1024, core_parallel=False)


# ----------------------------- fused Pallas kernel -------------------------------------------

def _cat_icp_fused_kernel(
    data_ref,
    kw1_ref, kb1_ref, kw2_ref, kb2_ref,
    w1_ref, b1_ref, tw1b_ref,
    gw2_ref, gb2_ref, gw3_ref, gb3_ref,
    rw2_ref, rb2_ref, rw3_ref, rb3_ref,
    tw2_ref, tb2_ref, tw3_ref, tb3_ref,
    w4_ref, b4_ref,
    feats_ref, head_ref):
  """One row tile (tb samples * 8 keypoint rows) of the full CatIcpNet forward."""
  rows = data_ref.shape[0]
  tb = rows // N_KEYS
  f32 = jnp.float32
  bf16 = jnp.bfloat16

  data = data_ref[...].astype(bf16)                                        # (rows, 32)

  # KeysFeatsExtra for source AND target in one pass: the block-diagonal packed weights route the
  # src lanes to feature columns 0:128 and the tgt lanes to 128:256, so `feats` IS keysFeats.
  h = jnp.maximum(
      jnp.dot(data, kw1_ref[...], preferred_element_type=f32) + kb1_ref[...], 0.0)
  feats = jnp.maximum(
      jnp.dot(h.astype(bf16), kw2_ref[...], preferred_element_type=f32) + kb2_ref[...], 0.0)
  feats_ref[...] = feats.astype(feats_ref.dtype)   # the single HBM write of keysFeats
  feats_bf = feats.astype(bf16)

  def head_tail(col, extra, w2_ref_, b2_ref_, w3_ref_, b3_ref_):
    # First layer: one lane-aligned 1024-wide column chunk of the fused (256, 3072) w1, consumed
    # immediately so the full 3072-wide f32 h1 (and its ReLU'd copies) never live in VMEM.
    h1 = (jnp.dot(feats_bf, w1_ref[:, col:col + HEAD_HID1], preferred_element_type=f32)
          + b1_ref[:, col:col + HEAD_HID1])
    if extra is not None:
      h1 = h1 + extra
    h1 = jnp.maximum(h1, 0.0)
    h2 = jnp.maximum(
        jnp.dot(h1.astype(bf16), w2_ref_[...], preferred_element_type=f32) + b2_ref_[...], 0.0)
    # Dropout (eval mode) == identity.
    return jnp.maximum(
        jnp.dot(h2.astype(bf16), w3_ref_[...], preferred_element_type=f32) + b3_ref_[...], 0.0)

  h3_g = head_tail(0, None, gw2_ref, gb2_ref, gw3_ref, gb3_ref)
  h3_r = head_tail(HEAD_HID1, None, rw2_ref, rb2_ref, rw3_ref, rb3_ref)
  # Pose_Ts' 6 centered-key input channels come straight from the data slab (rows 6:12 of tw1b);
  # computed right before use so its (rows, 1024) f32 live range stays short.
  ts_extra = jnp.dot(data, tw1b_ref[...], preferred_element_type=f32)
  h3_t = head_tail(2 * HEAD_HID1, ts_extra, tw2_ref, tb2_ref, tw3_ref, tb3_ref)

  # The three 4/4/6-wide final convs fused into ONE (768, 128) matmul into disjoint lane columns.
  h3 = jnp.concatenate([h3_g, h3_r, h3_t], axis=1).astype(bf16)            # (rows, 768)
  out128 = jnp.dot(h3, w4_ref[...], preferred_element_type=f32)            # (rows, 128)

  # Per-sample max-pool over the 8 keypoints; the final-conv bias is constant per channel so
  # adding it after the max is exact and runs on (tb, 128) instead of (rows, 128).
  pooled = jnp.max(out128.reshape(tb, N_KEYS, HEAD_PAD), axis=1) + b4_ref[...]
  head_ref[...] = pooled.astype(head_ref.dtype)


# ----------------------------- parameters ----------------------------------------------------

def _init_conv(key, cin, cout):
  """PyTorch Conv1d(kernel_size=1) default init: U(-1/sqrt(cin), 1/sqrt(cin))."""
  kw, kb = jax.random.split(key)
  bound = 1.0 / (cin ** 0.5)
  w = jax.random.uniform(kw, (cout, cin), jnp.float32, -bound, bound)
  b = jax.random.uniform(kb, (cout,), jnp.float32, -bound, bound)
  return w, b


def _folded_layer(key, cin, cout, with_bn=True):
  """Conv1d(cin,cout,1) [+ BatchNorm1d(cout) eval mode] folded to (W^T (cin,cout), bias (1,cout))."""
  w, b = _init_conv(key, cin, cout)
  if with_bn:
    gamma = jnp.ones((cout,), jnp.float32)
    beta = jnp.zeros((cout,), jnp.float32)
    running_mean = jnp.zeros((cout,), jnp.float32)
    running_var = jnp.ones((cout,), jnp.float32)
    scale = gamma / jnp.sqrt(running_var + BN_EPS)
    w = w * scale[:, None]
    b = (b - running_mean) * scale + beta
  return jnp.asarray(w.T), b.reshape(1, cout)


def init_params(key):
  keys = jax.random.split(key, 14)
  keyfeats = [_folded_layer(keys[0], 3, KEY_HID),
              _folded_layer(keys[1], KEY_HID, FEAT_DIM)]

  def head(ks, cin, cout):
    return [_folded_layer(ks[0], cin, HEAD_HID1),
            _folded_layer(ks[1], HEAD_HID1, HEAD_HID2),
            _folded_layer(ks[2], HEAD_HID2, HEAD_HID2),
            _folded_layer(ks[3], HEAD_HID2, cout, with_bn=False)]

  return {"keyfeats": keyfeats,
          "rot_green": head(keys[2:6], CAT_DIM, GREEN_DIM),
          "rot_red": head(keys[6:10], CAT_DIM, RED_DIM),
          "ts": head(keys[10:14], CAT_DIM + TS_EXTRA, TS_DIM)}


def pack_params(params):
  """Repack the folded per-layer weights for the fused kernel (bf16 matmul weights, f32 biases)."""
  bf16 = jnp.bfloat16
  (kw1, kb1), (kw2, kb2) = params["keyfeats"]
  g, r, t = params["rot_green"], params["rot_red"], params["ts"]

  # KeysFeatsExtra weights, block-diagonally packed so one matmul pair processes src AND tgt:
  #   src lanes 0:3 -> hidden cols 0:64   -> feature cols 0:128
  #   tgt lanes 3:6 -> hidden cols 64:128 -> feature cols 128:256
  kw1p = jnp.zeros((DATA_LANES, 2 * KEY_HID), jnp.float32)
  kw1p = kw1p.at[_SRC:_SRC + 3, 0:KEY_HID].set(kw1)
  kw1p = kw1p.at[_TGT:_TGT + 3, KEY_HID:2 * KEY_HID].set(kw1)
  kb1p = jnp.concatenate([kb1, kb1], axis=1)                                   # (1, 128)
  kw2p = jnp.zeros((2 * KEY_HID, CAT_DIM), jnp.float32)
  kw2p = kw2p.at[0:KEY_HID, 0:FEAT_DIM].set(kw2)
  kw2p = kw2p.at[KEY_HID:2 * KEY_HID, FEAT_DIM:CAT_DIM].set(kw2)
  kb2p = jnp.concatenate([kb2, kb2], axis=1)                                   # (1, 256)

  gw1, gb1 = g[0]
  rw1, rb1 = r[0]
  tw1, tb1 = t[0]
  # Shared-input first layers fused along N (clean K=256); Pose_Ts' 6 centered-key rows split off
  # into a (32, 1024) side matmul fed from the data slab (the 262-wide contraction is never built).
  w1_all = jnp.concatenate([gw1, rw1, tw1[:CAT_DIM]], axis=1).astype(bf16)     # (256, 3072)
  b1_all = jnp.concatenate([gb1, rb1, tb1], axis=1)                            # (1, 3072) f32
  tw1b = jnp.zeros((DATA_LANES, HEAD_HID1), jnp.float32)
  tw1b = tw1b.at[_TGT_C:_TGT_C + TS_EXTRA].set(tw1[CAT_DIM:]).astype(bf16)     # (32, 1024)

  def mid(layer):
    w, b = layer
    return w.astype(bf16), b

  gw2, gb2 = mid(g[1])
  gw3, gb3 = mid(g[2])
  rw2, rb2 = mid(r[1])
  rw3, rb3 = mid(r[2])
  tw2, tb2 = mid(t[1])
  tw3, tb3 = mid(t[2])

  # Final convs vstacked into one (768, 128) weight writing disjoint lane columns of the output.
  def pad_cols(w, col):
    out = jnp.zeros((HEAD_HID2, HEAD_PAD), jnp.float32)
    return out.at[:, col:col + w.shape[1]].set(w)

  (gw4, gb4), (rw4, rb4), (tw4, tb4) = g[3], r[3], t[3]
  w4 = jnp.concatenate([pad_cols(gw4, 0),
                        pad_cols(rw4, GREEN_DIM),
                        pad_cols(tw4, GREEN_DIM + RED_DIM)], axis=0).astype(bf16)  # (768, 128)
  b4 = jnp.zeros((1, HEAD_PAD), jnp.float32)
  b4 = b4.at[:, 0:GREEN_DIM].set(gb4)
  b4 = b4.at[:, GREEN_DIM:GREEN_DIM + RED_DIM].set(rb4)
  b4 = b4.at[:, GREEN_DIM + RED_DIM:GREEN_DIM + RED_DIM + TS_DIM].set(tb4)

  return [kw1p.astype(bf16), kb1p, kw2p.astype(bf16), kb2p,
          w1_all, b1_all, tw1b,
          gw2, gb2, gw3, gb3,
          rw2, rb2, rw3, rb3,
          tw2, tb2, tw3, tb3,
          w4, b4]


# ----------------------------- forward ---------------------------------------------------------

def _postprocess(green_R_vec, red_R_vec, ts_vec, targetKey):
  p_green_R = green_R_vec[:, 1:] / (
      jnp.linalg.norm(green_R_vec[:, 1:], axis=1, keepdims=True) + 1e-6)
  p_red_R = red_R_vec[:, 1:] / (
      jnp.linalg.norm(red_R_vec[:, 1:], axis=1, keepdims=True) + 1e-6)
  f_green_R = jax.nn.sigmoid(green_R_vec[:, 0])
  f_red_R = jax.nn.sigmoid(red_R_vec[:, 0])
  T = ts_vec[:, 0:3]
  s = ts_vec[:, 3:6]
  Pred_T = T + targetKey.mean(axis=1)
  Pred_s = s
  return p_green_R, p_red_R, f_green_R, f_red_R, Pred_T, Pred_s


def cat_icp_net_forward(packed, sourceKey, targetKey, *,
                        batch_tile=None, vmem_limit_bytes=None, core_parallel=None):
  """sourceKey, targetKey: (B, 8, 3) float32.  `packed` comes from pack_params(init_params(...))."""
  cfg = _chip_config()
  if batch_tile is None:
    batch_tile = cfg["batch_tile"]
  if vmem_limit_bytes is None:
    vmem_limit_bytes = cfg["vmem_limit_bytes"]
  if core_parallel is None:
    core_parallel = cfg["core_parallel"]

  B = sourceKey.shape[0]
  tb = min(batch_tile, B)
  n_tiles = pl.cdiv(B, tb)
  B_pad = n_tiles * tb                     # batch explicitly zero-padded to a tile multiple
  rows = B_pad * N_KEYS
  rows_tile = tb * N_KEYS

  t_mean = targetKey.mean(axis=1, keepdims=True)
  s_mean = sourceKey.mean(axis=1, keepdims=True)
  # One lane-packed input slab: src 0:3 | tgt 3:6 | tgt - mean 6:9 | src - mean 9:12 | zeros.
  data = jnp.concatenate(
      [sourceKey, targetKey, targetKey - t_mean, sourceKey - s_mean,
       jnp.zeros((B, N_KEYS, DATA_LANES - 12), jnp.float32)], axis=2)
  if B_pad != B:
    data = jnp.concatenate(
        [data, jnp.zeros((B_pad - B, N_KEYS, DATA_LANES), jnp.float32)], axis=0)
  data = data.reshape(rows, DATA_LANES)

  flops_per_row = 2 * (DATA_LANES * 2 * KEY_HID + 2 * KEY_HID * CAT_DIM       # KeysFeatsExtra
                       + DATA_LANES * HEAD_HID1                               # ts side matmul
                       + CAT_DIM * 3 * HEAD_HID1                              # fused head layer 1
                       + 3 * HEAD_HID1 * HEAD_HID2                            # head layer 2
                       + 3 * HEAD_HID2 * HEAD_HID2                            # head layer 3
                       + 3 * HEAD_HID2 * HEAD_PAD)                            # fused final convs
  bytes_accessed = (data.size * 4
                    + sum(int(w.size) * w.dtype.itemsize for w in packed)
                    + rows * CAT_DIM * 4 + B_pad * HEAD_PAD * 4)

  data_spec = pl.BlockSpec((rows_tile, DATA_LANES), lambda i: (i, 0))
  # Grid-invariant weights: DMA'd once, single-buffered (saves ~3.7 MB of VMEM vs the default
  # double-buffering — the enabler for the larger chip-conditional row tiles).
  weight_specs = [pl.BlockSpec(w.shape, lambda i: (0, 0), pipeline_mode=pl.Buffered(1))
                  for w in packed]

  if core_parallel and n_tiles >= 2:
    dim_sems = (getattr(pltpu, "CORE_PARALLEL", "parallel"),)   # shard tiles across v7x's 2 TCs
  else:
    dim_sems = ("parallel",)

  feats_flat, head_out = pl.pallas_call(
      _cat_icp_fused_kernel,
      out_shape=(jax.ShapeDtypeStruct((rows, CAT_DIM), jnp.float32),
                 jax.ShapeDtypeStruct((B_pad, HEAD_PAD), jnp.float32)),
      grid=(n_tiles,),
      in_specs=[data_spec] + weight_specs,
      out_specs=(
          # TODO(synk): keysFeats could be emitted in bf16 to halve its HBM/VMEM cost if
          # downstream consumers tolerate it; kept f32 to match the original module's dtype.
          pl.BlockSpec((rows_tile, CAT_DIM), lambda i: (i, 0)),
          pl.BlockSpec((tb, HEAD_PAD), lambda i: (i, 0))),
      compiler_params=pltpu.CompilerParams(
          dimension_semantics=dim_sems, vmem_limit_bytes=vmem_limit_bytes),
      cost_estimate=pl.CostEstimate(flops=rows * flops_per_row, transcendentals=0,
                                    bytes_accessed=bytes_accessed),
  )(data, *packed)

  keysFeats = feats_flat[:B * N_KEYS].reshape(B, N_KEYS, CAT_DIM)
  head_out = head_out[:B]
  green_R_vec = head_out[:, 0:GREEN_DIM]
  red_R_vec = head_out[:, GREEN_DIM:GREEN_DIM + RED_DIM]
  ts_vec = head_out[:, GREEN_DIM + RED_DIM:GREEN_DIM + RED_DIM + TS_DIM]
  return _postprocess(green_R_vec, red_R_vec, ts_vec, targetKey) + (keysFeats,)


# ----------------------------- pure-JAX reference (same folded weights / same casting) ----------

def reference_forward(params, sourceKey, targetKey):
  bf16 = jnp.bfloat16
  f32 = jnp.float32
  (kw1, kb1), (kw2, kb2) = params["keyfeats"]

  def key_feats(x):
    h = jax.nn.relu(jnp.dot(x.astype(bf16), kw1.astype(bf16),
                            preferred_element_type=f32) + kb1)
    return jax.nn.relu(jnp.dot(h.astype(bf16), kw2.astype(bf16),
                               preferred_element_type=f32) + kb2)

  def head(x, layers):
    h = x
    for w, b in layers[:-1]:
      h = jax.nn.relu(jnp.dot(h.astype(bf16), w.astype(bf16),
                              preferred_element_type=f32) + b)
    w4, b4 = layers[-1]
    h = jnp.dot(h.astype(bf16), w4.astype(bf16), preferred_element_type=f32) + b4
    return jnp.max(h, axis=1)                       # max-pool over the 8 keypoints

  sourceFeats = key_feats(sourceKey)
  targetFeats = key_feats(targetKey)
  keysFeats = jnp.concatenate([sourceFeats, targetFeats], axis=2)
  green_R_vec = head(keysFeats, params["rot_green"])
  red_R_vec = head(keysFeats, params["rot_red"])
  t_mean = targetKey.mean(axis=1, keepdims=True)
  s_mean = sourceKey.mean(axis=1, keepdims=True)
  feat_for_ts = jnp.concatenate(
      [keysFeats, targetKey - t_mean, sourceKey - s_mean], axis=2)
  ts_vec = head(feat_for_ts, params["ts"])
  return _postprocess(green_R_vec, red_R_vec, ts_vec, targetKey) + (keysFeats,)


# ----------------------------- main -------------------------------------------------------------

if __name__ == "__main__":
  key = jax.random.PRNGKey(0)
  k_param, k_src, k_tgt = jax.random.split(key, 3)

  B = 2  # original module warns batch must be > 1 because of BatchNorm
  sourceKey = jax.random.normal(k_src, (B, N_KEYS, 3), jnp.float32)
  targetKey = jax.random.normal(k_tgt, (B, N_KEYS, 3), jnp.float32)

  params = init_params(k_param)
  packed = jax.block_until_ready(pack_params(params))   # pack once, outside the step function

  fwd = jax.jit(cat_icp_net_forward)
  outs = jax.block_until_ready(fwd(packed, sourceKey, targetKey))
  refs = jax.block_until_ready(jax.jit(reference_forward)(params, sourceKey, targetKey))

  names = ("p_green_R", "p_red_R", "f_green_R", "f_red_R", "Pred_T", "Pred_s", "keysFeats")
  expected_shapes = ((B, 3), (B, 3), (B,), (B,), (B, 3), (B, 3), (B, N_KEYS, CAT_DIM))
  for name, shape, got, ref in zip(names, expected_shapes, outs, refs):
    assert got.shape == shape, (name, got.shape, shape)
    np.testing.assert_allclose(np.asarray(got), np.asarray(ref),
                               rtol=2e-2, atol=2e-2, err_msg=name)
  print("KERNEL_OK")
</pallas_src>

<mosaic_0001>
module attributes {stable_mosaic.version = 11 : i64} {
  func.func @_cat_icp_fused_kernel(%arg0: i32, %arg1: memref<16x32xf32, #tpu.memory_space<vmem>>, %arg2: memref<32x128xbf16, #tpu.memory_space<vmem>>, %arg3: memref<1x128xf32, #tpu.memory_space<vmem>>, %arg4: memref<128x256xbf16, #tpu.memory_space<vmem>>, %arg5: memref<1x256xf32, #tpu.memory_space<vmem>>, %arg6: memref<256x3072xbf16, #tpu.memory_space<vmem>>, %arg7: memref<1x3072xf32, #tpu.memory_space<vmem>>, %arg8: memref<32x1024xbf16, #tpu.memory_space<vmem>>, %arg9: memref<1024x256xbf16, #tpu.memory_space<vmem>>, %arg10: memref<1x256xf32, #tpu.memory_space<vmem>>, %arg11: memref<256x256xbf16, #tpu.memory_space<vmem>>, %arg12: memref<1x256xf32, #tpu.memory_space<vmem>>, %arg13: memref<1024x256xbf16, #tpu.memory_space<vmem>>, %arg14: memref<1x256xf32, #tpu.memory_space<vmem>>, %arg15: memref<256x256xbf16, #tpu.memory_space<vmem>>, %arg16: memref<1x256xf32, #tpu.memory_space<vmem>>, %arg17: memref<1024x256xbf16, #tpu.memory_space<vmem>>, %arg18: memref<1x256xf32, #tpu.memory_space<vmem>>, %arg19: memref<256x256xbf16, #tpu.memory_space<vmem>>, %arg20: memref<1x256xf32, #tpu.memory_space<vmem>>, %arg21: memref<768x128xbf16, #tpu.memory_space<vmem>>, %arg22: memref<1x128xf32, #tpu.memory_space<vmem>>, %arg23: memref<16x256xf32, #tpu.memory_space<vmem>>, %arg24: memref<2x128xf32, #tpu.memory_space<vmem>>) attributes {dimension_semantics = [#tpu.dimension_semantics<parallel>], iteration_bounds = array<i64: 1>, scalar_prefetch = 0 : i64, scratch_operands = 0 : i64, tpu.core_type = #tpu.core_type<tc>, window_params = [{transform_indices = @transform_0, window_bounds = array<i64: 16, 32>}, {pipeline_mode = #tpu.pipeline_mode<synchronous>, transform_indices = @transform_1, window_bounds = array<i64: 32, 128>}, {pipeline_mode = #tpu.pipeline_mode<synchronous>, transform_indices = @transform_2, window_bounds = array<i64: 1, 128>}, {pipeline_mode = #tpu.pipeline_mode<synchronous>, transform_indices = @transform_3, window_bounds = array<i64: 128, 256>}, {pipeline_mode = #tpu.pipeline_mode<synchronous>, transform_indices = @transform_4, window_bounds = array<i64: 1, 256>}, {pipeline_mode = #tpu.pipeline_mode<synchronous>, transform_indices = @transform_5, window_bounds = array<i64: 256, 3072>}, {pipeline_mode = #tpu.pipeline_mode<synchronous>, transform_indices = @transform_6, window_bounds = array<i64: 1, 3072>}, {pipeline_mode = #tpu.pipeline_mode<synchronous>, transform_indices = @transform_7, window_bounds = array<i64: 32, 1024>}, {pipeline_mode = #tpu.pipeline_mode<synchronous>, transform_indices = @transform_8, window_bounds = array<i64: 1024, 256>}, {pipeline_mode = #tpu.pipeline_mode<synchronous>, transform_indices = @transform_9, window_bounds = array<i64: 1, 256>}, {pipeline_mode = #tpu.pipeline_mode<synchronous>, transform_indices = @transform_10, window_bounds = array<i64: 256, 256>}, {pipeline_mode = #tpu.pipeline_mode<synchronous>, transform_indices = @transform_11, window_bounds = array<i64: 1, 256>}, {pipeline_mode = #tpu.pipeline_mode<synchronous>, transform_indices = @transform_12, window_bounds = array<i64: 1024, 256>}, {pipeline_mode = #tpu.pipeline_mode<synchronous>, transform_indices = @transform_13, window_bounds = array<i64: 1, 256>}, {pipeline_mode = #tpu.pipeline_mode<synchronous>, transform_indices = @transform_14, window_bounds = array<i64: 256, 256>}, {pipeline_mode = #tpu.pipeline_mode<synchronous>, transform_indices = @transform_15, window_bounds = array<i64: 1, 256>}, {pipeline_mode = #tpu.pipeline_mode<synchronous>, transform_indices = @transform_16, window_bounds = array<i64: 1024, 256>}, {pipeline_mode = #tpu.pipeline_mode<synchronous>, transform_indices = @transform_17, window_bounds = array<i64: 1, 256>}, {pipeline_mode = #tpu.pipeline_mode<synchronous>, transform_indices = @transform_18, window_bounds = array<i64: 256, 256>}, {pipeline_mode = #tpu.pipeline_mode<synchronous>, transform_indices = @transform_19, window_bounds = array<i64: 1, 256>}, {pipeline_mode = #tpu.pipeline_mode<synchronous>, transform_indices = @transform_20, window_bounds = array<i64: 768, 128>}, {pipeline_mode = #tpu.pipeline_mode<synchronous>, transform_indices = @transform_21, window_bounds = array<i64: 1, 128>}, {transform_indices = @transform_22, window_bounds = array<i64: 16, 256>}, {transform_indices = @transform_23, window_bounds = array<i64: 2, 128>}]} {
    %c0 = arith.constant 0 : index
    %c0_0 = arith.constant 0 : index
    %0 = vector.load %arg1[%c0, %c0_0] : memref<16x32xf32, #tpu.memory_space<vmem>>, vector<16x32xf32>
    %1 = arith.truncf %0 : vector<16x32xf32> to vector<16x32xbf16>
    %c0_1 = arith.constant 0 : index
    %c0_2 = arith.constant 0 : index
    %2 = vector.load %arg2[%c0_1, %c0_2] : memref<32x128xbf16, #tpu.memory_space<vmem>>, vector<32x128xbf16>
    %cst = arith.constant dense<0.000000e+00> : vector<16x128xf32>
    %3 = tpu.matmul %1, %2, %cst {dimension_numbers = #tpu.dot_dimension_numbers<[1], [0], [0], [1], [0, 0, 1, 1], [], []>} : vector<16x32xbf16>, vector<32x128xbf16>, vector<16x128xf32> -> vector<16x128xf32>
    %c0_3 = arith.constant 0 : index
    %c0_4 = arith.constant 0 : index
    %4 = vector.load %arg3[%c0_3, %c0_4] : memref<1x128xf32, #tpu.memory_space<vmem>>, vector<1x128xf32>
    %5 = vector.broadcast %4 : vector<1x128xf32> to vector<16x128xf32>
    %6 = arith.addf %3, %5 : vector<16x128xf32>
    %cst_5 = arith.constant 0.000000e+00 : f32
    %7 = vector.broadcast %cst_5 : f32 to vector<16x128xf32>
    %8 = arith.maximumf %6, %7 : vector<16x128xf32>
    %9 = arith.truncf %8 : vector<16x128xf32> to vector<16x128xbf16>
    %c0_6 = arith.constant 0 : index
    %c0_7 = arith.constant 0 : index
    %10 = vector.load %arg4[%c0_6, %c0_7] : memref<128x256xbf16, #tpu.memory_space<vmem>>, vector<128x256xbf16>
    %cst_8 = arith.constant dense<0.000000e+00> : vector<16x256xf32>
    %11 = tpu.matmul %9, %10, %cst_8 {dimension_numbers = #tpu.dot_dimension_numbers<[1], [0], [0], [1], [0, 0, 1, 1], [], []>} : vector<16x128xbf16>, vector<128x256xbf16>, vector<16x256xf32> -> vector<16x256xf32>
    %c0_9 = arith.constant 0 : index
    %c0_10 = arith.constant 0 : index
    %12 = vector.load %arg5[%c0_9, %c0_10] : memref<1x256xf32, #tpu.memory_space<vmem>>, vector<1x256xf32>
    %13 = vector.broadcast %12 : vector<1x256xf32> to vector<16x256xf32>
    %14 = arith.addf %11, %13 : vector<16x256xf32>
    %cst_11 = arith.constant 0.000000e+00 : f32
    %15 = vector.broadcast %cst_11 : f32 to vector<16x256xf32>
    %16 = arith.maximumf %14, %15 : vector<16x256xf32>
    %c0_12 = arith.constant 0 : index
    %c0_13 = arith.constant 0 : index
    %17 = vector.load %arg23[%c0_12, %c0_13] : memref<16x256xf32, #tpu.memory_space<vmem>>, vector<16x256xf32>
    tpu.vector_store %arg23[%c0_12, %c0_13], %16 {strides = array<i32>} : memref<16x256xf32, #tpu.memory_space<vmem>>, vector<16x256xf32>,
    %18 = arith.truncf %16 : vector<16x256xf32> to vector<16x256xbf16>
    %c0_14 = arith.constant 0 : index
    %c0_15 = arith.constant 0 : index
    %19 = vector.load %arg6[%c0_14, %c0_15] : memref<256x3072xbf16, #tpu.memory_space<vmem>>, vector<256x1024xbf16>
    %cst_16 = arith.constant dense<0.000000e+00> : vector<16x1024xf32>
    %20 = tpu.matmul %18, %19, %cst_16 {dimension_numbers = #tpu.dot_dimension_numbers<[1], [0], [0], [1], [0, 0, 1, 1], [], []>} : vector<16x256xbf16>, vector<256x1024xbf16>, vector<16x1024xf32> -> vector<16x1024xf32>
    %c0_17 = arith.constant 0 : index
    %c0_18 = arith.constant 0 : index
    %21 = vector.load %arg7[%c0_17, %c0_18] : memref<1x3072xf32, #tpu.memory_space<vmem>>, vector<1x1024xf32>
    %22 = vector.broadcast %21 : vector<1x1024xf32> to vector<16x1024xf32>
    %23 = arith.addf %20, %22 : vector<16x1024xf32>
    %cst_19 = arith.constant 0.000000e+00 : f32
    %24 = vector.broadcast %cst_19 : f32 to vector<16x1024xf32>
    %25 = arith.maximumf %23, %24 : vector<16x1024xf32>
    %26 = arith.truncf %25 : vector<16x1024xf32> to vector<16x1024xbf16>
    %c0_20 = arith.constant 0 : index
    %c0_21 = arith.constant 0 : index
    %27 = vector.load %arg9[%c0_20, %c0_21] : memref<1024x256xbf16, #tpu.memory_space<vmem>>, vector<1024x256xbf16>
    %cst_22 = arith.constant dense<0.000000e+00> : vector<16x256xf32>
    %28 = tpu.matmul %26, %27, %cst_22 {dimension_numbers = #tpu.dot_dimension_numbers<[1], [0], [0], [1], [0, 0, 1, 1], [], []>} : vector<16x1024xbf16>, vector<1024x256xbf16>, vector<16x256xf32> -> vector<16x256xf32>
    %c0_23 = arith.constant 0 : index
    %c0_24 = arith.constant 0 : index
    %29 = vector.load %arg10[%c0_23, %c0_24] : memref<1x256xf32, #tpu.memory_space<vmem>>, vector<1x256xf32>
    %30 = vector.broadcast %29 : vector<1x256xf32> to vector<16x256xf32>
    %31 = arith.addf %28, %30 : vector<16x256xf32>
    %cst_25 = arith.constant 0.000000e+00 : f32
    %32 = vector.broadcast %cst_25 : f32 to vector<16x256xf32>
    %33 = arith.maximumf %31, %32 : vector<16x256xf32>
    %34 = arith.truncf %33 : vector<16x256xf32> to vector<16x256xbf16>
    %c0_26 = arith.constant 0 : index
    %c0_27 = arith.constant 0 : index
    %35 = vector.load %arg11[%c0_26, %c0_27] : memref<256x256xbf16, #tpu.memory_space<vmem>>, vector<256x256xbf16>
    %cst_28 = arith.constant dense<0.000000e+00> : vector<16x256xf32>
    %36 = tpu.matmul %34, %35, %cst_28 {dimension_numbers = #tpu.dot_dimension_numbers<[1], [0], [0], [1], [0, 0, 1, 1], [], []>} : vector<16x256xbf16>, vector<256x256xbf16>, vector<16x256xf32> -> vector<16x256xf32>
    %c0_29 = arith.constant 0 : index
    %c0_30 = arith.constant 0 : index
    %37 = vector.load %arg12[%c0_29, %c0_30] : memref<1x256xf32, #tpu.memory_space<vmem>>, vector<1x256xf32>
    %38 = vector.broadcast %37 : vector<1x256xf32> to vector<16x256xf32>
    %39 = arith.addf %36, %38 : vector<16x256xf32>
    %cst_31 = arith.constant 0.000000e+00 : f32
    %40 = vector.broadcast %cst_31 : f32 to vector<16x256xf32>
    %41 = arith.maximumf %39, %40 : vector<16x256xf32>
    %c0_32 = arith.constant 0 : index
    %c1024 = arith.constant 1024 : index
    %42 = vector.load %arg6[%c0_32, %c1024] : memref<256x3072xbf16, #tpu.memory_space<vmem>>, vector<256x1024xbf16>
    %cst_33 = arith.constant dense<0.000000e+00> : vector<16x1024xf32>
    %43 = tpu.matmul %18, %42, %cst_33 {dimension_numbers = #tpu.dot_dimension_numbers<[1], [0], [0], [1], [0, 0, 1, 1], [], []>} : vector<16x256xbf16>, vector<256x1024xbf16>, vector<16x1024xf32> -> vector<16x1024xf32>
    %c0_34 = arith.constant 0 : index
    %c1024_35 = arith.constant 1024 : index
    %44 = vector.load %arg7[%c0_34, %c1024_35] : memref<1x3072xf32, #tpu.memory_space<vmem>>, vector<1x1024xf32>
    %45 = vector.broadcast %44 : vector<1x1024xf32> to vector<16x1024xf32>
    %46 = arith.addf %43, %45 : vector<16x1024xf32>
    %cst_36 = arith.constant 0.000000e+00 : f32
    %47 = vector.broadcast %cst_36 : f32 to vector<16x1024xf32>
    %48 = arith.maximumf %46, %47 : vector<16x1024xf32>
    %49 = arith.truncf %48 : vector<16x1024xf32> to vector<16x1024xbf16>
    %c0_37 = arith.constant 0 : index
    %c0_38 = arith.constant 0 : index
    %50 = vector.load %arg13[%c0_37, %c0_38] : memref<1024x256xbf16, #tpu.memory_space<vmem>>, vector<1024x256xbf16>
    %cst_39 = arith.constant dense<0.000000e+00> : vector<16x256xf32>
    %51 = tpu.matmul %49, %50, %cst_39 {dimension_numbers = #tpu.dot_dimension_numbers<[1], [0], [0], [1], [0, 0, 1, 1], [], []>} : vector<16x1024xbf16>, vector<1024x256xbf16>, vector<16x256xf32> -> vector<16x256xf32>
    %c0_40 = arith.constant 0 : index
    %c0_41 = arith.constant 0 : index
    %52 = vector.load %arg14[%c0_40, %c0_41] : memref<1x256xf32, #tpu.memory_space<vmem>>, vector<1x256xf32>
    %53 = vector.broadcast %52 : vector<1x256xf32> to vector<16x256xf32>
    %54 = arith.addf %51, %53 : vector<16x256xf32>
    %cst_42 = arith.constant 0.000000e+00 : f32
    %55 = vector.broadcast %cst_42 : f32 to vector<16x256xf32>
    %56 = arith.maximumf %54, %55 : vector<16x256xf32>
    %57 = arith.truncf %56 : vector<16x256xf32> to vector<16x256xbf16>
    %c0_43 = arith.constant 0 : index
    %c0_44 = arith.constant 0 : index
    %58 = vector.load %arg15[%c0_43, %c0_44] : memref<256x256xbf16, #tpu.memory_space<vmem>>, vector<256x256xbf16>
    %cst_45 = arith.constant dense<0.000000e+00> : vector<16x256xf32>
    %59 = tpu.matmul %57, %58, %cst_45 {dimension_numbers = #tpu.dot_dimension_numbers<[1], [0], [0], [1], [0, 0, 1, 1], [], []>} : vector<16x256xbf16>, vector<256x256xbf16>, vector<16x256xf32> -> vector<16x256xf32>
    %c0_46 = arith.constant 0 : index
    %c0_47 = arith.constant 0 : index
    %60 = vector.load %arg16[%c0_46, %c0_47] : memref<1x256xf32, #tpu.memory_space<vmem>>, vector<1x256xf32>
    %61 = vector.broadcast %60 : vector<1x256xf32> to vector<16x256xf32>
    %62 = arith.addf %59, %61 : vector<16x256xf32>
    %cst_48 = arith.constant 0.000000e+00 : f32
    %63 = vector.broadcast %cst_48 : f32 to vector<16x256xf32>
    %64 = arith.maximumf %62, %63 : vector<16x256xf32>
    %c0_49 = arith.constant 0 : index
    %c0_50 = arith.constant 0 : index
    %65 = vector.load %arg8[%c0_49, %c0_50] : memref<32x1024xbf16, #tpu.memory_space<vmem>>, vector<32x1024xbf16>
    %cst_51 = arith.constant dense<0.000000e+00> : vector<16x1024xf32>
    %66 = tpu.matmul %1, %65, %cst_51 {dimension_numbers = #tpu.dot_dimension_numbers<[1], [0], [0], [1], [0, 0, 1, 1], [], []>} : vector<16x32xbf16>, vector<32x1024xbf16>, vector<16x1024xf32> -> vector<16x1024xf32>
    %c0_52 = arith.constant 0 : index
    %c2048 = arith.constant 2048 : index
    %67 = vector.load %arg6[%c0_52, %c2048] : memref<256x3072xbf16, #tpu.memory_space<vmem>>, vector<256x1024xbf16>
    %cst_53 = arith.constant dense<0.000000e+00> : vector<16x1024xf32>
    %68 = tpu.matmul %18, %67, %cst_53 {dimension_numbers = #tpu.dot_dimension_numbers<[1], [0], [0], [1], [0, 0, 1, 1], [], []>} : vector<16x256xbf16>, vector<256x1024xbf16>, vector<16x1024xf32> -> vector<16x1024xf32>
    %c0_54 = arith.constant 0 : index
    %c2048_55 = arith.constant 2048 : index
    %69 = vector.load %arg7[%c0_54, %c2048_55] : memref<1x3072xf32, #tpu.memory_space<vmem>>, vector<1x1024xf32>
    %70 = vector.broadcast %69 : vector<1x1024xf32> to vector<16x1024xf32>
    %71 = arith.addf %68, %70 : vector<16x1024xf32>
    %72 = arith.addf %71, %66 : vector<16x1024xf32>
    %cst_56 = arith.constant 0.000000e+00 : f32
    %73 = vector.broadcast %cst_56 : f32 to vector<16x1024xf32>
    %74 = arith.maximumf %72, %73 : vector<16x1024xf32>
    %75 = arith.truncf %74 : vector<16x1024xf32> to vector<16x1024xbf16>
    %c0_57 = arith.constant 0 : index
    %c0_58 = arith.constant 0 : index
    %76 = vector.load %arg17[%c0_57, %c0_58] : memref<1024x256xbf16, #tpu.memory_space<vmem>>, vector<1024x256xbf16>
    %cst_59 = arith.constant dense<0.000000e+00> : vector<16x256xf32>
    %77 = tpu.matmul %75, %76, %cst_59 {dimension_numbers = #tpu.dot_dimension_numbers<[1], [0], [0], [1], [0, 0, 1, 1], [], []>} : vector<16x1024xbf16>, vector<1024x256xbf16>, vector<16x256xf32> -> vector<16x256xf32>
    %c0_60 = arith.constant 0 : index
    %c0_61 = arith.constant 0 : index
    %78 = vector.load %arg18[%c0_60, %c0_61] : memref<1x256xf32, #tpu.memory_space<vmem>>, vector<1x256xf32>
    %79 = vector.broadcast %78 : vector<1x256xf32> to vector<16x256xf32>
    %80 = arith.addf %77, %79 : vector<16x256xf32>
    %cst_62 = arith.constant 0.000000e+00 : f32
    %81 = vector.broadcast %cst_62 : f32 to vector<16x256xf32>
    %82 = arith.maximumf %80, %81 : vector<16x256xf32>
    %83 = arith.truncf %82 : vector<16x256xf32> to vector<16x256xbf16>
    %c0_63 = arith.constant 0 : index
    %c0_64 = arith.constant 0 : index
    %84 = vector.load %arg19[%c0_63, %c0_64] : memref<256x256xbf16, #tpu.memory_space<vmem>>, vector<256x256xbf16>
    %cst_65 = arith.constant dense<0.000000e+00> : vector<16x256xf32>
    %85 = tpu.matmul %83, %84, %cst_65 {dimension_numbers = #tpu.dot_dimension_numbers<[1], [0], [0], [1], [0, 0, 1, 1], [], []>} : vector<16x256xbf16>, vector<256x256xbf16>, vector<16x256xf32> -> vector<16x256xf32>
    %c0_66 = arith.constant 0 : index
    %c0_67 = arith.constant 0 : index
    %86 = vector.load %arg20[%c0_66, %c0_67] : memref<1x256xf32, #tpu.memory_space<vmem>>, vector<1x256xf32>
    %87 = vector.broadcast %86 : vector<1x256xf32> to vector<16x256xf32>
    %88 = arith.addf %85, %87 : vector<16x256xf32>
    %cst_68 = arith.constant 0.000000e+00 : f32
    %89 = vector.broadcast %cst_68 : f32 to vector<16x256xf32>
    %90 = arith.maximumf %88, %89 : vector<16x256xf32>
    %91 = tpu.concatenate %41, %64, %90 in 1 : vector<16x256xf32>, vector<16x256xf32>, vector<16x256xf32> -> vector<16x768xf32>
    %92 = arith.truncf %91 : vector<16x768xf32> to vector<16x768xbf16>
    %c0_69 = arith.constant 0 : index
    %c0_70 = arith.constant 0 : index
    %93 = vector.load %arg21[%c0_69, %c0_70] : memref<768x128xbf16, #tpu.memory_space<vmem>>, vector<768x128xbf16>
    %cst_71 = arith.constant dense<0.000000e+00> : vector<16x128xf32>
    %94 = tpu.matmul %92, %93, %cst_71 {dimension_numbers = #tpu.dot_dimension_numbers<[1], [0], [0], [1], [0, 0, 1, 1], [], []>} : vector<16x768xbf16>, vector<768x128xbf16>, vector<16x128xf32> -> vector<16x128xf32>
    %95 = vector.shape_cast %94 : vector<16x128xf32> to vector<2x8x128xf32>
    %cst_72 = arith.constant dense<0xFF800000> : vector<2x128xf32>
    %96 = vector.multi_reduction <maximumf>, %95, %cst_72 [1] : vector<2x8x128xf32> to vector<2x128xf32>
    %c0_73 = arith.constant 0 : index
    %c0_74 = arith.constant 0 : index
    %97 = vector.load %arg22[%c0_73, %c0_74] : memref<1x128xf32, #tpu.memory_space<vmem>>, vector<1x128xf32>
    %98 = vector.broadcast %97 : vector<1x128xf32> to vector<2x128xf32>
    %99 = arith.addf %96, %98 : vector<2x128xf32>
    %c0_75 = arith.constant 0 : index
    %c0_76 = arith.constant 0 : index
    %100 = vector.load %arg24[%c0_75, %c0_76] : memref<2x128xf32, #tpu.memory_space<vmem>>, vector<2x128xf32>
    tpu.vector_store %arg24[%c0_75, %c0_76], %99 {strides = array<i32>} : memref<2x128xf32, #tpu.memory_space<vmem>>, vector<2x128xf32>,
    return
  }
  func.func @transform_0(%arg0: i32) -> (i32, i32) {
    %c0_i32 = arith.constant 0 : i32
    %c0_i32_0 = arith.constant 0 : i32
    return %arg0, %c0_i32 : i32, i32
  }
  func.func @transform_1(%arg0: i32) -> (i32, i32) {
    %c0_i32 = arith.constant 0 : i32
    %c0_i32_0 = arith.constant 0 : i32
    %c0_i32_1 = arith.constant 0 : i32
    return %c0_i32, %c0_i32_0 : i32, i32
  }
  func.func @transform_2(%arg0: i32) -> (i32, i32) {
    %c0_i32 = arith.constant 0 : i32
    %c0_i32_0 = arith.constant 0 : i32
    %c0_i32_1 = arith.constant 0 : i32
    return %c0_i32, %c0_i32_0 : i32, i32
  }
  func.func @transform_3(%arg0: i32) -> (i32, i32) {
    %c0_i32 = arith.constant 0 : i32
    %c0_i32_0 = arith.constant 0 : i32
    %c0_i32_1 = arith.constant 0 : i32
    return %c0_i32, %c0_i32_0 : i32, i32
  }
  func.func @transform_4(%arg0: i32) -> (i32, i32) {
    %c0_i32 = arith.constant 0 : i32
    %c0_i32_0 = arith.constant 0 : i32
    %c0_i32_1 = arith.constant 0 : i32
    return %c0_i32, %c0_i32_0 : i32, i32
  }
  func.func @transform_5(%arg0: i32) -> (i32, i32) {
    %c0_i32 = arith.constant 0 : i32
    %c0_i32_0 = arith.constant 0 : i32
    %c0_i32_1 = arith.constant 0 : i32
    return %c0_i32, %c0_i32_0 : i32, i32
  }
  func.func @transform_6(%arg0: i32) -> (i32, i32) {
    %c0_i32 = arith.constant 0 : i32
    %c0_i32_0 = arith.constant 0 : i32
    %c0_i32_1 = arith.constant 0 : i32
    return %c0_i32, %c0_i32_0 : i32, i32
  }
  func.func @transform_7(%arg0: i32) -> (i32, i32) {
    %c0_i32 = arith.constant 0 : i32
    %c0_i32_0 = arith.constant 0 : i32
    %c0_i32_1 = arith.constant 0 : i32
    return %c0_i32, %c0_i32_0 : i32, i32
  }
  func.func @transform_8(%arg0: i32) -> (i32, i32) {
    %c0_i32 = arith.constant 0 : i32
    %c0_i32_0 = arith.constant 0 : i32
    %c0_i32_1 = arith.constant 0 : i32
    return %c0_i32, %c0_i32_0 : i32, i32
  }
  func.func @transform_9(%arg0: i32) -> (i32, i32) {
    %c0_i32 = arith.constant 0 : i32
    %c0_i32_0 = arith.constant 0 : i32
    %c0_i32_1 = arith.constant 0 : i32
    return %c0_i32, %c0_i32_0 : i32, i32
  }
  func.func @transform_10(%arg0: i32) -> (i32, i32) {
    %c0_i32 = arith.constant 0 : i32
    %c0_i32_0 = arith.constant 0 : i32
    %c0_i32_1 = arith.constant 0 : i32
    return %c0_i32, %c0_i32_0 : i32, i32
  }
  func.func @transform_11(%arg0: i32) -> (i32, i32) {
    %c0_i32 = arith.constant 0 : i32
    %c0_i32_0 = arith.constant 0 : i32
    %c0_i32_1 = arith.constant 0 : i32
    return %c0_i32, %c0_i32_0 : i32, i32
  }
  func.func @transform_12(%arg0: i32) -> (i32, i32) {
    %c0_i32 = arith.constant 0 : i32
    %c0_i32_0 = arith.constant 0 : i32
    %c0_i32_1 = arith.constant 0 : i32
    return %c0_i32, %c0_i32_0 : i32, i32
  }
  func.func @transform_13(%arg0: i32) -> (i32, i32) {
    %c0_i32 = arith.constant 0 : i32
    %c0_i32_0 = arith.constant 0 : i32
    %c0_i32_1 = arith.constant 0 : i32
    return %c0_i32, %c0_i32_0 : i32, i32
  }
  func.func @transform_14(%arg0: i32) -> (i32, i32) {
    %c0_i32 = arith.constant 0 : i32
    %c0_i32_0 = arith.constant 0 : i32
    %c0_i32_1 = arith.constant 0 : i32
    return %c0_i32, %c0_i32_0 : i32, i32
  }
  func.func @transform_15(%arg0: i32) -> (i32, i32) {
    %c0_i32 = arith.constant 0 : i32
    %c0_i32_0 = arith.constant 0 : i32
    %c0_i32_1 = arith.constant 0 : i32
    return %c0_i32, %c0_i32_0 : i32, i32
  }
  func.func @transform_16(%arg0: i32) -> (i32, i32) {
    %c0_i32 = arith.constant 0 : i32
    %c0_i32_0 = arith.constant 0 : i32
    %c0_i32_1 = arith.constant 0 : i32
    return %c0_i32, %c0_i32_0 : i32, i32
  }
  func.func @transform_17(%arg0: i32) -> (i32, i32) {
    %c0_i32 = arith.constant 0 : i32
    %c0_i32_0 = arith.constant 0 : i32
    %c0_i32_1 = arith.constant 0 : i32
    return %c0_i32, %c0_i32_0 : i32, i32
  }
  func.func @transform_18(%arg0: i32) -> (i32, i32) {
    %c0_i32 = arith.constant 0 : i32
    %c0_i32_0 = arith.constant 0 : i32
    %c0_i32_1 = arith.constant 0 : i32
    return %c0_i32, %c0_i32_0 : i32, i32
  }
  func.func @transform_19(%arg0: i32) -> (i32, i32) {
    %c0_i32 = arith.constant 0 : i32
    %c0_i32_0 = arith.constant 0 : i32
    %c0_i32_1 = arith.constant 0 : i32
    return %c0_i32, %c0_i32_0 : i32, i32
  }
  func.func @transform_20(%arg0: i32) -> (i32, i32) {
    %c0_i32 = arith.constant 0 : i32
    %c0_i32_0 = arith.constant 0 : i32
    %c0_i32_1 = arith.constant 0 : i32
    return %c0_i32, %c0_i32_0 : i32, i32
  }
  func.func @transform_21(%arg0: i32) -> (i32, i32) {
    %c0_i32 = arith.constant 0 : i32
    %c0_i32_0 = arith.constant 0 : i32
    %c0_i32_1 = arith.constant 0 : i32
    return %c0_i32, %c0_i32_0 : i32, i32
  }
  func.func @transform_22(%arg0: i32) -> (i32, i32) {
    %c0_i32 = arith.constant 0 : i32
    %c0_i32_0 = arith.constant 0 : i32
    return %arg0, %c0_i32 : i32, i32
  }
  func.func @transform_23(%arg0: i32) -> (i32, i32) {
    %c0_i32 = arith.constant 0 : i32
    %c0_i32_0 = arith.constant 0 : i32
    return %arg0, %c0_i32 : i32, i32
  }
}

</mosaic_0001>

<bundles_post_ra>
// kernel: cat_icp_net_forward.1
= control target key start
LH: loop header
LB: loop body
LE: loop exit
PB: predicated region body
PF: predicated region fallthrough
CT: control target
= control target key end

     0   :  { %s14143_s0 = inlined_call_operand.vmem [shape: f32[16,32], index: 0, kind: input, shape index: {}]   ;;  %s14144_s1 = inlined_call_operand.hbm [shape: bf16[32,128], index: 1, kind: input, shape index: {}]   ;;  %s14145_s2 = inlined_call_operand.hbm [shape: f32[1,128], index: 2, kind: input, shape index: {}]   ;;  %s14146_s3 = inlined_call_operand.hbm [shape: bf16[128,256], index: 3, kind: input, shape index: {}]   ;;  %s14147_s4 = inlined_call_operand.hbm [shape: f32[1,256], index: 4, kind: input, shape index: {}]   ;;  %s14148_s5 = inlined_call_operand.hbm [shape: bf16[256,3072], index: 5, kind: input, shape index: {}]   ;;  %s14149_s6 = inlined_call_operand.hbm [shape: f32[1,3072], index: 6, kind: input, shape index: {}]   ;;  %s14150_s7 = inlined_call_operand.hbm [shape: bf16[32,1024], index: 7, kind: input, shape index: {}]   ;;  %s14151_s8 = inlined_call_operand.hbm [shape: bf16[1024,256], index: 8, kind: input, shape index: {}]   ;;  %s14152_s9 = inlined_call_operand.hbm [shape: f32[1,256], index: 9, kind: input, shape index: {}]   ;;  %s14153_s10 = inlined_call_operand.hbm [shape: bf16[256,256], index: 10, kind: input, shape index: {}]   ;;  %s14154_s11 = inlined_call_operand.hbm [shape: f32[1,256], index: 11, kind: input, shape index: {}]   ;;  %s14155_s12 = inlined_call_operand.hbm [shape: bf16[1024,256], index: 12, kind: input, shape index: {}]   ;;  %s14156_s13 = inlined_call_operand.hbm [shape: f32[1,256], index: 13, kind: input, shape index: {}]   ;;  %s14157_s14 = inlined_call_operand.hbm [shape: bf16[256,256], index: 14, kind: input, shape index: {}]   ;;  %s14158_s15 = inlined_call_operand.hbm [shape: f32[1,256], index: 15, kind: input, shape index: {}]   ;;  %s14159_s16 = inlined_call_operand.hbm [shape: bf16[1024,256], index: 16, kind: input, shape index: {}]   ;;  %s14160_s17 = inlined_call_operand.hbm [shape: f32[1,256], index: 17, kind: input, shape index: {}]   ;;  %s14161_s18 = inlined_call_operand.hbm [shape: bf16[256,256], index: 18, kind: input, shape index: {}]   ;;  %s14162_s19 = inlined_call_operand.hbm [shape: f32[1,256], index: 19, kind: input, shape index: {}]   ;;  %s14163_s20 = inlined_call_operand.hbm [shape: bf16[768,128], index: 20, kind: input, shape index: {}]   ;;  %s14164_s21 = inlined_call_operand.hbm [shape: f32[1,128], index: 21, kind: input, shape index: {}]   ;;  %s14165_s22 = inlined_call_operand.hbm [shape: f32[16,256], index: 22, kind: output, shape index: {0}]   ;;  %s14166_s23 = inlined_call_operand.vmem [shape: f32[2,128], index: 23, kind: output, shape index: {1}]  }
   0x1   :  { %14168 = sst [smem:[#allocation48_spill]] %s14143_s0 }
   0x2   :  { %14169 = sst [smem:[#allocation49_spill]] %s14144_s1 }
   0x3   :  { %14170 = sst [smem:[#allocation50_spill]] %s14145_s2 }
   0x4   :  { %14171 = sst [smem:[#allocation51_spill]] %s14146_s3 }
   0x5   :  { %14172 = sst [smem:[#allocation52_spill]] %s14147_s4 }
   0x6   :  { %14173 = sst [smem:[#allocation53_spill]] %s14148_s5 }
   0x7   :  { %14174 = sst [smem:[#allocation54_spill]] %s14149_s6 }
   0x8   :  { %14175 = sst [smem:[#allocation55_spill]] %s14150_s7 }
   0x9   :  { %14176 = sst [smem:[#allocation56_spill]] %s14165_s22 }
   0xa   :  { %14177 = sst [smem:[#allocation57_spill]] %s14166_s23 }
   0xb   :  { %29 = vsyncpa [#allocation3], 0 }
   0xc   :  { %30 = vsyncpa [#allocation6], 0 }
   0xd   :  { %31 = vsyncpa [#allocation9], 0 }
   0xe   :  { %32 = vsyncpa [#allocation12], 0 }
   0xf   :  { %33 = vsyncpa [#allocation15], 0 }
  0x10   :  { %34 = vsyncpa [#allocation18], 0 }
  0x11   :  { %35 = vsyncpa [#allocation21], 0 }
  0x12   :  { %36 = vsyncpa [#allocation24], 0 }
  0x13   :  { %37 = vsyncpa [#allocation27], 0 }
  0x14   :  { %38 = vsyncpa [#allocation30], 0 }
  0x15   :  { %39 = vsyncpa [#allocation33], 0  ;;  %s14178_s24 = sld [smem:[#allocation50_spill]] }
  0x1b   :  { %s61_s25 = sshll.u32 %s14178_s24, 4  ;;  %s62_s25 = int_to_ptr.hbm [resolvable:$true] %s61_s25 }
  0x1c   :  { %40 = vsyncpa [#allocation4], 0  ;;  %s13535_s5 = smov [#allocation5]   ;;  %s14179_s6 = sld [smem:[#allocation52_spill]] }
  0x1d   :  { %s63_s1 = sshll.u32 %s13535_s5, 4  ;;  %s13536_s7 = smov [#allocation8]   ;;  %s64_s1 = int_to_ptr.vmem [resolvable:$true] %s63_s1 }
  0x1e   :  { %66 = dma.hbm_to_vmem [thread:$0]  %s62_s25, 16, %s64_s1, [#allocation6]  }
  0x1f   :  { %s87_s28 = sshll.u32 %s13536_s7, 4  ;;  %s14180_s0 = sld [smem:[#allocation54_spill]]  ;;  %s88_s28 = int_to_ptr.vmem [resolvable:$true] %s87_s28 }
  0x20   :  { %s13537_s4 = smov [#allocation11]   ;;  %s132_s22 = sshll.u32 %s14151_s8, 4  ;;  %s133_s22 = int_to_ptr.hbm [resolvable:$true] %s132_s22 }
  0x21   :  { %s111_s30 = sshll.u32 %s13537_s4, 4  ;;  %s13538_s25 = smov [#allocation14]   ;;  %s112_s30 = int_to_ptr.vmem [resolvable:$true] %s111_s30 }
  0x22   :  { %s85_s27 = sshll.u32 %s14179_s6, 4  ;;  %s134_s1 = sshll.u32 %s13538_s25, 4  ;;  %s86_s27 = int_to_ptr.hbm [resolvable:$true] %s85_s27  ;;  %s135_s1 = int_to_ptr.vmem [resolvable:$true] %s134_s1 }
  0x23   :  { %90 = dma.hbm_to_vmem [thread:$0]  %s86_s27, 32, %s88_s28, [#allocation9]  }
  0x24   :  { %s156_s6 = sshll.u32 %s14153_s10, 4  ;;  %s13539_s7 = smov 128   ;;  %s157_s6 = int_to_ptr.hbm [resolvable:$true] %s156_s6 }
  0x25   :  { %s109_s23 = sshll.u32 %s14180_s0, 4  ;;  %s13540_s29 = smov 8   ;;  %s110_s23 = int_to_ptr.hbm [resolvable:$true] %s109_s23 }
  0x26   :  { %114 = dma.hbm_to_vmem [thread:$0]  %s110_s23, 384, %s112_s30, [#allocation12]  }
  0x27   :  { %140 = dma.hbm_to_vmem [thread:$0]  %s133_s22, 16384, %s135_s1, [#allocation15], %s13539_s7, %s13539_s7, %s13540_s29  }
  0x28   :  { %s180_s8 = sshll.u32 %s14155_s12, 4  ;;  %s13541_s23 = smov [#allocation17]   ;;  %s181_s8 = int_to_ptr.hbm [resolvable:$true] %s180_s8 }
  0x29   :  { %s158_s3 = sshll.u32 %s13541_s23, 4  ;;  %s13542_s10 = smov [#allocation20]   ;;  %s159_s3 = int_to_ptr.vmem [resolvable:$true] %s158_s3 }
  0x2a   :  { %164 = dma.hbm_to_vmem [thread:$0]  %s157_s6, 4096, %s159_s3, [#allocation18], %s13539_s7, %s13539_s7, %s13540_s29  }
  0x2b   :  { %s182_s0 = sshll.u32 %s13542_s10, 4  ;;  %s204_s24 = sshll.u32 %s14157_s14, 4  ;;  %s183_s0 = int_to_ptr.vmem [resolvable:$true] %s182_s0  ;;  %s205_s24 = int_to_ptr.hbm [resolvable:$true] %s204_s24 }
  0x2c   :  { %188 = dma.hbm_to_vmem [thread:$0]  %s181_s8, 16384, %s183_s0, [#allocation21], %s13539_s7, %s13539_s7, %s13540_s29  }
  0x2d   :  { %s228_s5 = sshll.u32 %s14159_s16, 4  ;;  %s13543_s25 = smov [#allocation23]   ;;  %s229_s5 = int_to_ptr.hbm [resolvable:$true] %s228_s5 }
  0x2e   :  { %s206_s1 = sshll.u32 %s13543_s25, 4  ;;  %s13544_s26 = smov [#allocation26]   ;;  %s207_s1 = int_to_ptr.vmem [resolvable:$true] %s206_s1 }
  0x2f   :  { %212 = dma.hbm_to_vmem [thread:$0]  %s205_s24, 4096, %s207_s1, [#allocation24], %s13539_s7, %s13539_s7, %s13540_s29  }
  0x30   :  { %s230_s14 = sshll.u32 %s13544_s26, 4  ;;  %s252_s27 = sshll.u32 %s14161_s18, 4  ;;  %s231_s14 = int_to_ptr.vmem [resolvable:$true] %s230_s14  ;;  %s253_s27 = int_to_ptr.hbm [resolvable:$true] %s252_s27 }
  0x31   :  { %236 = dma.hbm_to_vmem [thread:$0]  %s229_s5, 16384, %s231_s14, [#allocation27], %s13539_s7, %s13539_s7, %s13540_s29  }
  0x32   :  { %s13545_s16 = smov [#allocation29]   ;;  %s276_s3 = sshll.u32 %s14163_s20, 4  ;;  %s277_s3 = int_to_ptr.hbm [resolvable:$true] %s276_s3 }
  0x33   :  { %s254_s28 = sshll.u32 %s13545_s16, 4  ;;  %s13546_s10 = smov [#allocation32]   ;;  %s255_s28 = int_to_ptr.vmem [resolvable:$true] %s254_s28 }
  0x34   :  { %260 = dma.hbm_to_vmem [thread:$0]  %s253_s27, 4096, %s255_s28, [#allocation30], %s13539_s7, %s13539_s7, %s13540_s29  }
  0x35   :  { %s278_s18 = sshll.u32 %s13546_s10, 4  ;;  %s14181_s30 = sld [smem:[#allocation49_spill]]  ;;  %s279_s18 = int_to_ptr.vmem [resolvable:$true] %s278_s18 }
  0x36   :  { %s13547_s12 = smov 64   ;;  %s13548_s22 = smov 4  }
  0x37   :  { %284 = dma.hbm_to_vmem [thread:$0]  %s277_s3, 6144, %s279_s18, [#allocation33], %s13547_s12, %s13547_s12, %s13548_s22  }
  0x38   :  { %s14182_s1 = sld [smem:[#allocation51_spill]]  ;;  %s13549_s26 = smov [#allocation2]  }
  0x39   :  { %s49_s14 = sshll.u32 %s13549_s26, 4  ;;  %s13550_s2 = smov [#allocation7]   ;;  %s50_s14 = int_to_ptr.vmem [resolvable:$true] %s49_s14 }
  0x3a   :  { %s73_s6 = sshll.u32 %s13550_s2, 4  ;;  %s14183_s28 = sld [smem:[#allocation53_spill]]  ;;  %s74_s6 = int_to_ptr.vmem [resolvable:$true] %s73_s6 }
  0x3b   :  { %s47_s24 = sshll.u32 %s14181_s30, 4  ;;  %s13551_s23 = smov [#allocation10]   ;;  %s48_s24 = int_to_ptr.hbm [resolvable:$true] %s47_s24 }
  0x3c   :  { %55 = dma.hbm_to_vmem [thread:$0]  %s48_s24, 256, %s50_s14, [#allocation3], %s13547_s12, %s13547_s12, %s13548_s22  }
  0x3d   :  { %s97_s3 = sshll.u32 %s13551_s23, 4  ;;  %s14184_s0 = sld [smem:[#allocation55_spill]]  ;;  %s98_s3 = int_to_ptr.vmem [resolvable:$true] %s97_s3 }
  0x3e   :  { %s71_s20 = sshll.u32 %s14182_s1, 4  ;;  %s13552_s30 = smov 1536   ;;  %s72_s20 = int_to_ptr.hbm [resolvable:$true] %s71_s20 }
  0x3f   :  { %79 = dma.hbm_to_vmem [thread:$0]  %s72_s20, 2048, %s74_s6, [#allocation6], %s13539_s7, %s13539_s7, %s13540_s29  }
  0x40   :  { %s95_s8 = sshll.u32 %s14183_s28, 4  ;;  %s13553_s24 = smov 96   ;;  %s96_s8 = int_to_ptr.hbm [resolvable:$true] %s95_s8 }
  0x41   :  { %103 = dma.hbm_to_vmem [thread:$0]  %s96_s8, 49152, %s98_s3, [#allocation9], %s13552_s30, %s13552_s30, %s13553_s24  }
  0x42   :  { %s13554_s12 = smov [#allocation13]   ;;  %s13555_s5 = smov 512  }
  0x43   :  { %s119_s4 = sshll.u32 %s14184_s0, 4  ;;  %s121_s22 = sshll.u32 %s13554_s12, 4  ;;  %s120_s4 = int_to_ptr.hbm [resolvable:$true] %s119_s4  ;;  %s122_s22 = int_to_ptr.vmem [resolvable:$true] %s121_s22 }
  0x44   :  { %s13556_s25 = smov 32   ;;  %s146_s7 = sshll.u32 %s14152_s9, 4  ;;  %s147_s7 = int_to_ptr.hbm [resolvable:$true] %s146_s7 }
  0x45   :  { %127 = dma.hbm_to_vmem [thread:$0]  %s120_s4, 2048, %s122_s22, [#allocation12], %s13555_s5, %s13555_s5, %s13556_s25  }
  0x46   :  { %s13557_s29 = smov [#allocation16]   ;;  %s170_s6 = sshll.u32 %s14154_s11, 4  ;;  %s171_s6 = int_to_ptr.hbm [resolvable:$true] %s170_s6 }
  0x47   :  { %s148_s20 = sshll.u32 %s13557_s29, 4  ;;  %s13558_s27 = smov [#allocation19]   ;;  %s149_s20 = int_to_ptr.vmem [resolvable:$true] %s148_s20 }
  0x48   :  { %151 = dma.hbm_to_vmem [thread:$0]  %s147_s7, 32, %s149_s20, [#allocation15]  }
  0x49   :  { %s172_s16 = sshll.u32 %s13558_s27, 4  ;;  %s194_s23 = sshll.u32 %s14156_s13, 4  ;;  %s173_s16 = int_to_ptr.vmem [resolvable:$true] %s172_s16  ;;  %s195_s23 = int_to_ptr.hbm [resolvable:$true] %s194_s23 }
  0x4a   :  { %175 = dma.hbm_to_vmem [thread:$0]  %s171_s6, 32, %s173_s16, [#allocation18]  }
  0x4b   :  { %s218_s10 = sshll.u32 %s14158_s15, 4  ;;  %s13559_s18 = smov [#allocation22]   ;;  %s219_s10 = int_to_ptr.hbm [resolvable:$true] %s218_s10 }
  0x4c   :  { %s196_s0 = sshll.u32 %s13559_s18, 4  ;;  %s13560_s11 = smov [#allocation25]   ;;  %s197_s0 = int_to_ptr.vmem [resolvable:$true] %s196_s0 }
  0x4d   :  { %199 = dma.hbm_to_vmem [thread:$0]  %s195_s23, 32, %s197_s0, [#allocation21]  }
  0x4e   :  { %s220_s4 = sshll.u32 %s13560_s11, 4  ;;  %s242_s12 = sshll.u32 %s14160_s17, 4  ;;  %s221_s4 = int_to_ptr.vmem [resolvable:$true] %s220_s4  ;;  %s243_s12 = int_to_ptr.hbm [resolvable:$true] %s242_s12 }
  0x4f   :  { %223 = dma.hbm_to_vmem [thread:$0]  %s219_s10, 32, %s221_s4, [#allocation24]  }
  0x50   :  { %s266_s5 = sshll.u32 %s14162_s19, 4  ;;  %s13561_s25 = smov [#allocation28]   ;;  %s267_s5 = int_to_ptr.hbm [resolvable:$true] %s266_s5 }
  0x51   :  { %s244_s15 = sshll.u32 %s13561_s25, 4  ;;  %s13562_s1 = smov [#allocation31]   ;;  %s245_s15 = int_to_ptr.vmem [resolvable:$true] %s244_s15 }
  0x52   :  { %247 = dma.hbm_to_vmem [thread:$0]  %s243_s12, 32, %s245_s15, [#allocation27]  }
  0x53   :  { %s268_s26 = sshll.u32 %s13562_s1, 4  ;;  %s290_s20 = sshll.u32 %s14164_s21, 4  ;;  %s269_s26 = int_to_ptr.vmem [resolvable:$true] %s268_s26  ;;  %s291_s20 = int_to_ptr.hbm [resolvable:$true] %s290_s20 }
  0x54   :  { %271 = dma.hbm_to_vmem [thread:$0]  %s267_s5, 32, %s269_s26, [#allocation30]  }
  0x55   :  { %s13563_s17 = smov [#allocation34]  }
  0x56   :  { %s292_s14 = sshll.u32 %s13563_s17, 4  ;;  %s293_s14 = int_to_ptr.vmem [resolvable:$true] %s292_s14 }
  0x57   :  { %295 = dma.hbm_to_vmem [thread:$0]  %s291_s20, 16, %s293_s14, [#allocation33]  }
  0x58   :  { %13511 = dma.done.wait [#allocation3], 256  }
  0x59   :  { %13512 = vsyncadd [#allocation3], 4294967040 }
  0x5a   :  { %13513 = dma.done.wait [#allocation6], 2064  }
  0x5b   :  { %13514 = vsyncadd [#allocation6], 4294965232 }
  0x5c   :  { %13515 = dma.done.wait [#allocation9], 49184  }
  0x5d   :  { %13516 = vsyncadd [#allocation9], 4294918112 }
  0x5e   :  { %13517 = dma.done.wait [#allocation12], 2432  }
  0x5f   :  { %13518 = vsyncadd [#allocation12], 4294964864 }
  0x60   :  { %13519 = dma.done.wait [#allocation15], 16416  }
  0x61   :  { %13520 = vsyncadd [#allocation15], 4294950880 }
  0x62   :  { %13521 = dma.done.wait [#allocation18], 4128  }
  0x63   :  { %13522 = vsyncadd [#allocation18], 4294963168 }
  0x64   :  { %13523 = dma.done.wait [#allocation21], 16416  }
  0x65   :  { %13524 = vsyncadd [#allocation21], 4294950880 }
  0x66   :  { %13525 = dma.done.wait [#allocation24], 4128  }
  0x67   :  { %13526 = vsyncadd [#allocation24], 4294963168 }
  0x68   :  { %13527 = dma.done.wait [#allocation27], 16416  }
  0x69   :  { %13528 = vsyncadd [#allocation27], 4294950880 }
  0x6a   :  { %13529 = dma.done.wait [#allocation30], 4128  }
  0x6b   :  { %13530 = vsyncadd [#allocation30], 4294963168 }
  0x6c   :  { %13531 = dma.done.wait [#allocation33], 6160  }
  0x6d   :  { %13532 = vsyncadd [#allocation33], 4294961136  ;;  %v12003_v0 = vld [vmem:[#allocation2 + $0x8] sm:$0xff]  ;;  %v12002_v1 = vld [vmem:[#allocation2] sm:$0xff]  ;;  %s14185_s2 = sld [smem:[#allocation48_spill]]  ;;  %vm404_vm0 = vcmask 261120  }
  0x6e   :  { %v8276_v4 = vld [vmem:[#allocation7 + $0x70] sm:$0xf]  ;;  %v12019_v5 = vld [vmem:[#allocation7 + $0x74] sm:$0xf0]  ;;  %414 = vmatpush.bf16.msra.mxu0 %v12003_v0  ;;  %v12018_v7 = vld [vmem:[#allocation7 + $0x74] sm:$0xf] }
  0x6f   :  { %v8277_v6 = vor.u32 %v12019_v5, %v8276_v4  ;;  %v8278_v8 = vld [vmem:[#allocation7 + $0x78] sm:$0xf0]  ;;  %v8268_v9 = vld [vmem:[#allocation7 + $0x60] sm:$0xf]  ;;  %v12017_v11 = vld [vmem:[#allocation7 + $0x64] sm:$0xf0] }
  0x70   :  { %v8281_v10 = vor.u32 %v12018_v7, %v8278_v8  ;;  %v12016_v12 = vld [vmem:[#allocation7 + $0x64] sm:$0xf]  ;;  %v8270_v13 = vld [vmem:[#allocation7 + $0x68] sm:$0xf0]  ;;  %v8269_v14 = vor.u32 %v12017_v11, %v8268_v9  ;;  %v8260_v17 = vld [vmem:[#allocation7 + $0x50] sm:$0xf] }
  0x71   :  { %527 = vmatpush.bf16.msra.mxu1 %v8277_v6  ;;  %v8273_v16 = vor.u32 %v12016_v12, %v8270_v13  ;;  %v12015_v18 = vld [vmem:[#allocation7 + $0x54] sm:$0xf0]  ;;  %v12014_v19 = vld [vmem:[#allocation7 + $0x54] sm:$0xf]  ;;  %v8262_v20 = vld [vmem:[#allocation7 + $0x58] sm:$0xf0] }
  0x72   :  { %541 = vmatpush.bf16.msra.mxu2 %v8281_v10  ;;  %415 = vmatpush.bf16.msra.mxu0 %v12002_v1  ;;  %v8261_v21 = vor.u32 %v12015_v18, %v8260_v17  ;;  %v8265_v22 = vor.u32 %v12014_v19, %v8262_v20  ;;  %v8252_v23 = vld [vmem:[#allocation7 + $0x40] sm:$0xf]  ;;  %v12013_v24 = vld [vmem:[#allocation7 + $0x44] sm:$0xf0]  ;;  %v12012_v25 = vld [vmem:[#allocation7 + $0x44] sm:$0xf] }
  0x73   :  { %v381_v2 = vld [vmem:[%s14185_s2] sm:$0xff]  ;;  %v382_v3 = vld [vmem:[%s14185_s2 + $0x8] sm:$0xff]  ;;  %v8253_v27 = vor.u32 %v12013_v24, %v8252_v23  ;;  %v8236_v35 = vld [vmem:[#allocation7 + $0x20] sm:$0xf]  ;;  %s13564_s16 = smov [#allocation35]   ;;  %s14186_s9 = sld [smem:[#allocation56_spill]] }
  0x74   :  { %v13777_v15 = vpack.c.bf16 %v382_v3, %v381_v2  ;;  %v8254_v26 = vld [vmem:[#allocation7 + $0x48] sm:$0xf0]  ;;  %v8244_v29 = vld [vmem:[#allocation7 + $0x30] sm:$0xf]  ;;  %v12011_v30 = vld [vmem:[#allocation7 + $0x34] sm:$0xf0] }
  0x75   :  { %528 = vmatpush.bf16.msra.mxu1 %v8269_v14  ;;  %v8257_v28 = vor.u32 %v12012_v25, %v8254_v26  ;;  %v12010_v31 = vld [vmem:[#allocation7 + $0x34] sm:$0xf]  ;;  %v8245_v32 = vor.u32 %v12011_v30, %v8244_v29  ;;  %v8246_v33 = vld [vmem:[#allocation7 + $0x38] sm:$0xf0]  ;;  %v12009_v36 = vld [vmem:[#allocation7 + $0x24] sm:$0xf0] }
  0x76   :  { %8217 = vmatmul.msk.bf16.vlgmr.msra.gmra.mxu0 %vm404_vm0, %v13777_v15  ;;  %542 = vmatpush.bf16.msra.mxu2 %v8273_v16  ;;  %v8249_v34 = vor.u32 %v12010_v31, %v8246_v33  ;;  %v12008_v37 = vld [vmem:[#allocation7 + $0x24] sm:$0xf]  ;;  %v8237_v38 = vor.u32 %v12009_v36, %v8236_v35  ;;  %v8238_v39 = vld [vmem:[#allocation7 + $0x28] sm:$0xf0]  ;;  %v8228_v41 = vld [vmem:[#allocation7 + $0x10] sm:$0xf] }
  0x77   :  { %v8241_v40 = vor.u32 %v12008_v37, %v8238_v39  ;;  %v12007_v42 = vld [vmem:[#allocation7 + $0x14] sm:$0xf0]  ;;  %v12006_v43 = vld [vmem:[#allocation7 + $0x14] sm:$0xf]  ;;  %v8230_v45 = vld [vmem:[#allocation7 + $0x18] sm:$0xf0] }
  0x78   :  { %v8229_v44 = vor.u32 %v12007_v42, %v8228_v41  ;;  %v8233_v46 = vor.u32 %v12006_v43, %v8230_v45  ;;  %v8220_v47 = vld [vmem:[#allocation7] sm:$0xf]  ;;  %v12005_v48 = vld [vmem:[#allocation7 + $0x4] sm:$0xf0]  ;;  %v12004_v49 = vld [vmem:[#allocation7 + $0x4] sm:$0xf] }
  0x79   :  { %529 = vmatpush.bf16.msra.mxu1 %v8261_v21  ;;  %v8221_v50 = vor.u32 %v12005_v48, %v8220_v47  ;;  %v8222_v51 = vld [vmem:[#allocation7 + $0x8] sm:$0xf0]  ;;  %v8508_v53 = vld [vmem:[#allocation10 + $0x540] sm:$0xf]  ;;  %v12076_v55 = vld [vmem:[#allocation10 + $0x544] sm:$0xf] }
  0x7a   :  { %543 = vmatpush.bf16.msra.mxu2 %v8265_v22  ;;  %v8225_v52 = vor.u32 %v12004_v49, %v8222_v51  ;;  %v12080_v54 = vld [vmem:[#allocation10 + $0x59c] sm:$0xf0]  ;;  %v8510_v57 = vld [vmem:[#allocation10 + $0x5a0] sm:$0xf0]  ;;  %s8180_s28 = sshll.u32 %s13564_s16, 4  ;;  %s8182_s3 = sshll.u32 %s14186_s9, 4  ;;  %s8181_s28 = int_to_ptr.vmem [resolvable:$true] %s8180_s28  ;;  %s8183_s3 = int_to_ptr.hbm [resolvable:$true] %s8182_s3 }
  0x7b   :  { %v8509_v56 = vor.u32 %v12080_v54, %v8508_v53  ;;  %v8476_v58 = vld [vmem:[#allocation10 + $0x480] sm:$0xf]  ;;  %v8513_v60 = vor.u32 %v12076_v55, %v8510_v57  ;;  %v12068_v61 = vld [vmem:[#allocation10 + $0x484] sm:$0xf]  ;;  %s13565_s10 = smov 256   ;;  %s13566_s18 = smov 16  }
  0x7c   :  { %v12072_v59 = vld [vmem:[#allocation10 + $0x4dc] sm:$0xf0]  ;;  %v8478_v62 = vld [vmem:[#allocation10 + $0x4e0] sm:$0xf0]  ;;  %vm8172_vm1 = vcmask 1041409   ;;  %s14187_s4 = sld [smem:[#allocation57_spill]] }
  0x7d   :  { %530 = vmatpush.bf16.msra.mxu1 %v8253_v27  ;;  %v8764_v63 = vld [vmem:[#allocation10 + $0xb40] sm:$0xf]  ;;  %1351 = vmatpush.bf16.msra.mxu3 %v8509_v56  ;;  %v8477_v0 = vor.u32 %v12072_v59, %v8476_v58  ;;  %v12140_v2 = vld [vmem:[#allocation10 + $0xb44] sm:$0xf]  ;;  %v8481_v4 = vor.u32 %v12068_v61, %v8478_v62 }
  0x7e   :  { %544 = vmatpush.bf16.msra.mxu2 %v8257_v28  ;;  %v12144_v1 = vld [vmem:[#allocation10 + $0xb9c] sm:$0xf0]  ;;  %v8766_v3 = vld [vmem:[#allocation10 + $0xba0] sm:$0xf0] }
  0x7f   :  { %v8765_v5 = vor.u32 %v12144_v1, %v8764_v63  ;;  %v8769_v6 = vor.u32 %v12140_v2, %v8766_v3  ;;  %v8444_v7 = vld [vmem:[#allocation10 + $0x3c0] sm:$0xf]  ;;  %v12060_v9 = vld [vmem:[#allocation10 + $0x3c4] sm:$0xf] }
  0x80   :  { %v12064_v8 = vld [vmem:[#allocation10 + $0x41c] sm:$0xf0]  ;;  %v8446_v10 = vld [vmem:[#allocation10 + $0x420] sm:$0xf0] }
  0x81   :  { %531 = vmatpush.bf16.msra.mxu1 %v8245_v32  ;;  %v8732_v11 = vld [vmem:[#allocation10 + $0xa80] sm:$0xf]  ;;  %1365 = vmatpush.bf16.msrb.mxu0 %v8765_v5  ;;  %v12132_v14 = vld [vmem:[#allocation10 + $0xa84] sm:$0xf]  ;;  %v8445_v17 = vor.u32 %v12064_v8, %v8444_v7  ;;  %v8449_v21 = vor.u32 %v12060_v9, %v8446_v10 }
  0x82   :  { %545 = vmatpush.bf16.msra.mxu2 %v8249_v34  ;;  %v12136_v12 = vld [vmem:[#allocation10 + $0xadc] sm:$0xf0]  ;;  %v8734_v16 = vld [vmem:[#allocation10 + $0xae0] sm:$0xf0]  ;;  %1352 = vmatpush.bf16.msra.mxu3 %v8477_v0 }
  0x83   :  { %v8733_v13 = vor.u32 %v12136_v12, %v8732_v11  ;;  %v8737_v18 = vor.u32 %v12132_v14, %v8734_v16  ;;  %v8412_v19 = vld [vmem:[#allocation10 + $0x300] sm:$0xf]  ;;  %v12124_v24 = vld [vmem:[#allocation10 + $0x9c4] sm:$0xf] }
  0x84   :  { %v12056_v20 = vld [vmem:[#allocation10 + $0x35c] sm:$0xf0]  ;;  %v12052_v25 = vld [vmem:[#allocation10 + $0x304] sm:$0xf] }
  0x85   :  { %532 = vmatpush.bf16.msra.mxu1 %v8237_v38  ;;  %v8700_v22 = vld [vmem:[#allocation10 + $0x9c0] sm:$0xf]  ;;  %v8414_v26 = vld [vmem:[#allocation10 + $0x360] sm:$0xf0]  ;;  %1366 = vmatpush.bf16.msrb.mxu0 %v8733_v13  ;;  %v8413_v31 = vor.u32 %v12056_v20, %v8412_v19  ;;  %v12077_v20 = vld [vmem:[#allocation10 + $0x54c] sm:$0xf] }
  0x86   :  { %546 = vmatpush.bf16.msra.mxu2 %v8241_v40  ;;  %v12128_v23 = vld [vmem:[#allocation10 + $0xa1c] sm:$0xf0]  ;;  %v8702_v27 = vld [vmem:[#allocation10 + $0xa20] sm:$0xf0]  ;;  %1353 = vmatpush.bf16.msra.mxu3 %v8445_v17  ;;  %v8417_v35 = vor.u32 %v12052_v25, %v8414_v26  ;;  %v8516_v17 = vld [vmem:[#allocation10 + $0x548] sm:$0xf] }
  0x87   :  { %v8701_v28 = vor.u32 %v12128_v23, %v8700_v22  ;;  %v8705_v29 = vor.u32 %v12124_v24, %v8702_v27  ;;  %v8668_v30 = vld [vmem:[#allocation10 + $0x900] sm:$0xf]  ;;  %v12116_v33 = vld [vmem:[#allocation10 + $0x904] sm:$0xf] }
  0x88   :  { %v12120_v32 = vld [vmem:[#allocation10 + $0x95c] sm:$0xf0]  ;;  %v8670_v34 = vld [vmem:[#allocation10 + $0x960] sm:$0xf0] }
  0x89   :  { %533 = vmatpush.bf16.msra.mxu1 %v8229_v44  ;;  %v8380_v36 = vld [vmem:[#allocation10 + $0x240] sm:$0xf]  ;;  %v12044_v38 = vld [vmem:[#allocation10 + $0x244] sm:$0xf]  ;;  %1367 = vmatpush.bf16.msrb.mxu0 %v8701_v28  ;;  %v8669_v40 = vor.u32 %v12120_v32, %v8668_v30  ;;  %v8673_v41 = vor.u32 %v12116_v33, %v8670_v34  ;;  %v12145_v32 = vld [vmem:[#allocation10 + $0xba4] sm:$0xf0] }
  0x8a   :  { %547 = vmatpush.bf16.msra.mxu2 %v8233_v46  ;;  %v12048_v37 = vld [vmem:[#allocation10 + $0x29c] sm:$0xf0]  ;;  %v8382_v39 = vld [vmem:[#allocation10 + $0x2a0] sm:$0xf0]  ;;  %1354 = vmatpush.bf16.msra.mxu3 %v8413_v31  ;;  %v8772_v31 = vld [vmem:[#allocation10 + $0xb48] sm:$0xf] }
  0x8b   :  { %v8636_v42 = vld [vmem:[#allocation10 + $0x840] sm:$0xf]  ;;  %v8381_v43 = vor.u32 %v12048_v37, %v8380_v36  ;;  %v12108_v45 = vld [vmem:[#allocation10 + $0x844] sm:$0xf]  ;;  %v8385_v47 = vor.u32 %v12044_v38, %v8382_v39  ;;  %v8774_v36 = vld [vmem:[#allocation10 + $0xba8] sm:$0xf0] }
  0x8c   :  { %v12112_v44 = vld [vmem:[#allocation10 + $0x89c] sm:$0xf0]  ;;  %v8638_v46 = vld [vmem:[#allocation10 + $0x8a0] sm:$0xf0]  ;;  %v8484_v39 = vld [vmem:[#allocation10 + $0x488] sm:$0xf] }
  0x8d   :  { %534 = vmatpush.bf16.msra.mxu1 %v8221_v50  ;;  %v8348_v48 = vld [vmem:[#allocation10 + $0x180] sm:$0xf]  ;;  %v12036_v51 = vld [vmem:[#allocation10 + $0x184] sm:$0xf]  ;;  %1368 = vmatpush.bf16.msrb.mxu0 %v8669_v40  ;;  %v8637_v53 = vor.u32 %v12112_v44, %v8636_v42  ;;  %v8641_v54 = vor.u32 %v12108_v45, %v8638_v46  ;;  %v12073_v40 = vld [vmem:[#allocation10 + $0x4e4] sm:$0xf0]  ;;  %v8773_v45 = vor.u32 %v12145_v32, %v8772_v31 }
  0x8e   :  { %548 = vmatpush.bf16.msra.mxu2 %v8225_v52  ;;  %v12040_v49 = vld [vmem:[#allocation10 + $0x1dc] sm:$0xf0]  ;;  %v8350_v52 = vld [vmem:[#allocation10 + $0x1e0] sm:$0xf0]  ;;  %1355 = vmatpush.bf16.msra.mxu3 %v8381_v43  ;;  %v12069_v42 = vld [vmem:[#allocation10 + $0x48c] sm:$0xf] }
  0x8f   :  { %v8604_v55 = vld [vmem:[#allocation10 + $0x780] sm:$0xf]  ;;  %v8349_v56 = vor.u32 %v12040_v49, %v8348_v48  ;;  %v12100_v58 = vld [vmem:[#allocation10 + $0x784] sm:$0xf]  ;;  %v8353_v61 = vor.u32 %v12036_v51, %v8350_v52  ;;  %v8486_v43 = vld [vmem:[#allocation10 + $0x4e8] sm:$0xf0]  ;;  %v8485_v49 = vor.u32 %v12073_v40, %v8484_v39 }
  0x90   :  { %v12104_v57 = vld [vmem:[#allocation10 + $0x7dc] sm:$0xf0]  ;;  %v8606_v59 = vld [vmem:[#allocation10 + $0x7e0] sm:$0xf0]  ;;  %v12137_v48 = vld [vmem:[#allocation10 + $0xae4] sm:$0xf0]  ;;  %v8489_v52 = vor.u32 %v12069_v42, %v8486_v43 }
  0x91   :  { %1379 = vmatpush.bf16.msrb.mxu1 %v8513_v60  ;;  %v12980_v60 = vld [vmem:[#allocation5] ss:$0 sm:$0xff]  ;;  %v8316_v62 = vld [vmem:[#allocation10 + $0xc0] sm:$0xf]  ;;  %v12028_v0 = vld [vmem:[#allocation10 + $0xc4] sm:$0xf]  ;;  %1369 = vmatpush.bf16.msrb.mxu0 %v8637_v53  ;;  %v8605_v2 = vor.u32 %v12104_v57, %v8604_v55  ;;  %v8609_v3 = vor.u32 %v12100_v58, %v8606_v59 }
  0x92   :  { %1393 = vmatpush.bf16.msrb.mxu2 %v8769_v6  ;;  %v12032_v63 = vld [vmem:[#allocation10 + $0x11c] sm:$0xf0]  ;;  %v8318_v1 = vld [vmem:[#allocation10 + $0x120] sm:$0xf0]  ;;  %1356 = vmatpush.bf16.msra.mxu3 %v8349_v56  ;;  %v8742_v51 = vld [vmem:[#allocation10 + $0xae8] sm:$0xf0] }
  0x93   :  { %v8317_v5 = vor.u32 %v12032_v63, %v8316_v62  ;;  %v12096_v6 = vld [vmem:[#allocation10 + $0x71c] sm:$0xf0]  ;;  %v12092_v7 = vld [vmem:[#allocation10 + $0x6c4] sm:$0xf]  ;;  %v8321_v10 = vor.u32 %v12028_v0, %v8318_v1  ;;  %v8452_v53 = vld [vmem:[#allocation10 + $0x3c8] sm:$0xf] }
  0x94   :  { %v8574_v8 = vld [vmem:[#allocation10 + $0x720] sm:$0xf0]  ;;  %v8284_v11 = vld [vmem:[#allocation10] sm:$0xf]  ;;  %v12061_v55 = vld [vmem:[#allocation10 + $0x3cc] sm:$0xf] }
  0x95   :  { %1380 = vmatpush.bf16.msrb.mxu1 %v8481_v4  ;;  %v8572_v4 = vld [vmem:[#allocation10 + $0x6c0] sm:$0xf]  ;;  %v12020_v13 = vld [vmem:[#allocation10 + $0x4] sm:$0xf]  ;;  %1370 = vmatpush.bf16.msrb.mxu0 %v8605_v2  ;;  %v8577_v23 = vor.u32 %v12092_v7, %v8574_v8  ;;  %v8454_v56 = vld [vmem:[#allocation10 + $0x428] sm:$0xf0] }
  0x96   :  { %1394 = vmatpush.bf16.msrb.mxu2 %v8737_v18  ;;  %v12024_v12 = vld [vmem:[#allocation10 + $0x5c] sm:$0xf0]  ;;  %v8286_v16 = vld [vmem:[#allocation10 + $0x60] sm:$0xf0]  ;;  %v12081_v18 = vld [vmem:[#allocation10 + $0x5a4] sm:$0xf0]  ;;  %v8573_v22 = vor.u32 %v12096_v6, %v8572_v4  ;;  %1357 = vmatpush.bf16.msra.mxu3 %v8317_v5 }
  0x97   :  { %v8540_v24 = vld [vmem:[#allocation10 + $0x600] sm:$0xf]  ;;  %v8285_v25 = vor.u32 %v12024_v12, %v8284_v11  ;;  %v12084_v27 = vld [vmem:[#allocation10 + $0x604] sm:$0xf]  ;;  %v8289_v33 = vor.u32 %v12020_v13, %v8286_v16  ;;  %v8517_v34 = vor.u32 %v12081_v18, %v8516_v17  ;;  %v12057_v62 = vld [vmem:[#allocation10 + $0x364] sm:$0xf0] }
  0x98   :  { %v12088_v26 = vld [vmem:[#allocation10 + $0x65c] sm:$0xf0]  ;;  %v8542_v28 = vld [vmem:[#allocation10 + $0x660] sm:$0xf0]  ;;  %v12053_v63 = vld [vmem:[#allocation10 + $0x30c] sm:$0xf] }
  0x99   :  { %1381 = vmatpush.bf16.msrb.mxu1 %v8449_v21  ;;  %v8518_v21 = vld [vmem:[#allocation10 + $0x5a8] sm:$0xf0]  ;;  %1371 = vmatpush.bf16.msrb.mxu0 %v8573_v22  ;;  %v8545_v44 = vor.u32 %v12084_v27, %v8542_v28  ;;  %v12129_v4 = vld [vmem:[#allocation10 + $0xa24] sm:$0xf0] }
  0x9a   :  { %1395 = vmatpush.bf16.msrb.mxu2 %v8705_v29  ;;  %v8521_v38 = vor.u32 %v12077_v20, %v8518_v21  ;;  %1358 = vmatpush.bf16.msra.mxu3 %v8285_v25  ;;  %v8422_v0 = vld [vmem:[#allocation10 + $0x368] sm:$0xf0]  ;;  %v8676_v16 = vld [vmem:[#allocation10 + $0x908] sm:$0xf] }
  0x9b   :  { %v8425_v2 = vor.u32 %v12053_v63, %v8422_v0  ;;  %v12125_v5 = vld [vmem:[#allocation10 + $0x9cc] sm:$0xf]  ;;  %v12121_v17 = vld [vmem:[#allocation10 + $0x964] sm:$0xf0]  ;;  %v441_v0 = vld [vmem:[#allocation8] sm:$0x3] }
  0x9c   :  { %v8710_v7 = vld [vmem:[#allocation10 + $0xa28] sm:$0xf0]  ;;  %v8356_v22 = vld [vmem:[#allocation10 + $0x188] sm:$0xf] }
  0x9d   :  { %1382 = vmatpush.bf16.msrb.mxu1 %v8417_v35  ;;  %v12141_v35 = vld [vmem:[#allocation10 + $0xb4c] sm:$0xf]  ;;  %v8713_v8 = vor.u32 %v12125_v5, %v8710_v7  ;;  %v8644_v28 = vld [vmem:[#allocation10 + $0x848] sm:$0xf]  ;;  %v444_v5 = vperm.slane %v441_v0, 1 }
  0x9e   :  { %1396 = vmatpush.bf16.msrb.mxu2 %v8673_v41  ;;  %v8541_v41 = vor.u32 %v12088_v26, %v8540_v24  ;;  %v8777_v46 = vor.u32 %v12141_v35, %v8774_v36  ;;  %1407 = vmatpush.bf16.msrb.mxu3 %v8517_v34  ;;  %v12045_v11 = vld [vmem:[#allocation10 + $0x24c] sm:$0xf]  ;;  %v8324_v34 = vld [vmem:[#allocation10 + $0xc8] sm:$0xf] }
  0x9f   :  { %v8390_v13 = vld [vmem:[#allocation10 + $0x2a8] sm:$0xf0]  ;;  %v12033_v35 = vld [vmem:[#allocation10 + $0x124] sm:$0xf0] }
  0xa0   :  { %1372 = vmatpush.bf16.msrb.mxu0 %v8541_v41  ;;  %v12117_v18 = vld [vmem:[#allocation10 + $0x90c] sm:$0xf]  ;;  %v8612_v40 = vld [vmem:[#allocation10 + $0x788] sm:$0xf] }
  0xa1   :  { %1383 = vmatpush.bf16.msrb.mxu1 %v8385_v47  ;;  %v8740_v47 = vld [vmem:[#allocation10 + $0xa88] sm:$0xf]  ;;  %v8678_v20 = vld [vmem:[#allocation10 + $0x968] sm:$0xf0] }
  0xa2   :  { %1397 = vmatpush.bf16.msrb.mxu2 %v8641_v54  ;;  %v12065_v54 = vld [vmem:[#allocation10 + $0x424] sm:$0xf0]  ;;  %v8741_v57 = vor.u32 %v12137_v48, %v8740_v47  ;;  %1408 = vmatpush.bf16.msrb.mxu3 %v8485_v49  ;;  %v8681_v21 = vor.u32 %v12117_v18, %v8678_v20  ;;  %v12037_v24 = vld [vmem:[#allocation10 + $0x18c] sm:$0xf]  ;;  %v12074_v20 = vld [vmem:[#allocation10 + $0x4ec] sm:$0xf0] }
  0xa3   :  { %v8453_v59 = vor.u32 %v12065_v54, %v8452_v53  ;;  %v8358_v26 = vld [vmem:[#allocation10 + $0x1e8] sm:$0xf0]  ;;  %v12105_v41 = vld [vmem:[#allocation10 + $0x7e4] sm:$0xf0] }
  0xa4   :  { %1421 = vmatpush.bf16.msra.mxu0 %v8773_v45  ;;  %v8361_v27 = vor.u32 %v12037_v24, %v8358_v26  ;;  %v12109_v31 = vld [vmem:[#allocation10 + $0x84c] sm:$0xf]  ;;  %v8613_v43 = vor.u32 %v12105_v41, %v8612_v40  ;;  %v12025_v47 = vld [vmem:[#allocation10 + $0x64] sm:$0xf0]  ;;  %v12138_v40 = vld [vmem:[#allocation10 + $0xaec] sm:$0xf0] }
  0xa5   :  { %1384 = vmatpush.bf16.msrb.mxu1 %v8353_v61  ;;  %v8420_v61 = vld [vmem:[#allocation10 + $0x308] sm:$0xf]  ;;  %v8646_v32 = vld [vmem:[#allocation10 + $0x8a8] sm:$0xf0] }
  0xa6   :  { %1398 = vmatpush.bf16.msrb.mxu2 %v8609_v3  ;;  %1409 = vmatpush.bf16.msrb.mxu3 %v8453_v59  ;;  %v8421_v1 = vor.u32 %v12057_v62, %v8420_v61  ;;  %v8708_v3 = vld [vmem:[#allocation10 + $0x9c8] sm:$0xf]  ;;  %v12029_v36 = vld [vmem:[#allocation10 + $0xcc] sm:$0xf] }
  0xa7   :  { %v8709_v6 = vor.u32 %v12129_v4, %v8708_v3  ;;  %v12101_v42 = vld [vmem:[#allocation10 + $0x78c] sm:$0xf]  ;;  %v12097_v53 = vld [vmem:[#allocation10 + $0x724] sm:$0xf0] }
  0xa8   :  { %1422 = vmatpush.bf16.msra.mxu0 %v8741_v57  ;;  %v12021_v48 = vld [vmem:[#allocation10 + $0xc] sm:$0xf]  ;;  %v12089_v59 = vld [vmem:[#allocation10 + $0x664] sm:$0xf0] }
  0xa9   :  { %1385 = vmatpush.bf16.msrb.mxu1 %v8321_v10  ;;  %v12049_v10 = vld [vmem:[#allocation10 + $0x2a4] sm:$0xf0]  ;;  %v12093_v54 = vld [vmem:[#allocation10 + $0x6cc] sm:$0xf] }
  0xaa   :  { %1399 = vmatpush.bf16.msrb.mxu2 %v8577_v23  ;;  %1410 = vmatpush.bf16.msrb.mxu3 %v8421_v1  ;;  %v12041_v23 = vld [vmem:[#allocation10 + $0x1e4] sm:$0xf0]  ;;  %v12085_v61 = vld [vmem:[#allocation10 + $0x60c] sm:$0xf]  ;;  %v443_v1 = vperm.slane %v441_v0, 0 }
  0xab   :  { %v8357_v25 = vor.u32 %v12041_v23, %v8356_v22  ;;  %v8550_v62 = vld [vmem:[#allocation10 + $0x668] sm:$0xf0]  ;;  %v12070_v22 = vld [vmem:[#allocation10 + $0x494] sm:$0xf]  ;;  %v8684_v0 = vld [vmem:[#allocation10 + $0x910] sm:$0xf] }
  0xac   :  { %1423 = vmatpush.bf16.msra.mxu0 %v8709_v6  ;;  %v8553_v63 = vor.u32 %v12085_v61, %v8550_v62  ;;  %v8494_v23 = vld [vmem:[#allocation10 + $0x4f0] sm:$0xf0] }
  0xad   :  { %1386 = vmatpush.bf16.msrb.mxu1 %v8289_v33  ;;  %v8649_v33 = vor.u32 %v12109_v31, %v8646_v32  ;;  %v8497_v31 = vor.u32 %v12070_v22, %v8494_v23  ;;  %v8460_v32 = vld [vmem:[#allocation10 + $0x3d0] sm:$0xf]  ;;  %v8398_v61 = vld [vmem:[#allocation10 + $0x2b0] sm:$0xf0] }
  0xae   :  { %1400 = vmatpush.bf16.msrb.mxu2 %v8545_v44  ;;  %v8614_v44 = vld [vmem:[#allocation10 + $0x7e8] sm:$0xf0]  ;;  %v12030_v22 = vld [vmem:[#allocation10 + $0xd4] sm:$0xf] }
  0xaf   :  { %v8617_v45 = vor.u32 %v12101_v42, %v8614_v44  ;;  %v12134_v42 = vld [vmem:[#allocation10 + $0xa94] sm:$0xf] }
  0xb0   :  { %v8334_v23 = vld [vmem:[#allocation10 + $0x130] sm:$0xf0] }
  0xf3   :  { %v417_v50 = vpop.f32.mrf.mxu0 }
  0xf4   :  { %v418_v9 = vadd.f32 %v12980_v60, %v417_v50  ;;  %v12133_v50 = vld [vmem:[#allocation10 + $0xa8c] sm:$0xf] }
  0xf5   :  { %v8745_v58 = vor.u32 %v12133_v50, %v8742_v51  ;;  %v8294_v50 = vld [vmem:[#allocation10 + $0x68] sm:$0xf0] }
  0xf6   :  { %v422_v29 = vmax.f32 %v418_v9, 0.0  ;;  %v8388_v9 = vld [vmem:[#allocation10 + $0x248] sm:$0xf]  ;;  %v8297_v51 = vor.u32 %v12021_v48, %v8294_v50  ;;  %v12054_v48 = vld [vmem:[#allocation10 + $0x314] sm:$0xf] }
  0xf7   :  { %v8389_v12 = vor.u32 %v12049_v10, %v8388_v9  ;;  %v8524_v9 = vld [vmem:[#allocation10 + $0x550] sm:$0xf] }
  0xf8   :  { %v12082_v10 = vld [vmem:[#allocation10 + $0x5ac] sm:$0xf0] }
  0xf9   :  { %1411 = vmatpush.bf16.msrb.mxu3 %v8389_v12 }
  0xfb   :  { %v419_v14 = vpop.f32.mrf.mxu0 }
  0xfc   :  { %v420_v19 = vadd.f32 %v12980_v60, %v419_v14  ;;  %v8457_v60 = vor.u32 %v12061_v55, %v8454_v56  ;;  %v8393_v14 = vor.u32 %v12045_v11, %v8390_v13  ;;  %v8582_v56 = vld [vmem:[#allocation10 + $0x728] sm:$0xf0]  ;;  %v12078_v13 = vld [vmem:[#allocation10 + $0x554] sm:$0xf] }
  0xfd   :  { %1412 = vmatpush.bf16.msrb.mxu3 %v8357_v25  ;;  %v8585_v57 = vor.u32 %v12093_v54, %v8582_v56  ;;  %v8780_v25 = vld [vmem:[#allocation10 + $0xb50] sm:$0xf]  ;;  %v12126_v54 = vld [vmem:[#allocation10 + $0x9d4] sm:$0xf] }
  0xfe   :  { %v423_v30 = vmax.f32 %v420_v19, 0.0  ;;  %v8677_v19 = vor.u32 %v12121_v17, %v8676_v16  ;;  %v8525_v17 = vor.u32 %v12082_v10, %v8524_v9  ;;  %v8366_v9 = vld [vmem:[#allocation10 + $0x1f0] sm:$0xf0] }
 0x100   :  { %v424_v37 = vpack.c.bf16 %v423_v30, %v422_v29  ;;  %1424 = vmatpush.bf16.msra.mxu0 %v8677_v19  ;;  %v12113_v29 = vld [vmem:[#allocation10 + $0x8a4] sm:$0xf0]  ;;  %v8492_v19 = vld [vmem:[#allocation10 + $0x490] sm:$0xf] }
 0x101   :  { %v8645_v30 = vor.u32 %v12113_v29, %v8644_v28  ;;  %v12142_v28 = vld [vmem:[#allocation10 + $0xb54] sm:$0xf] }
 0x102   :  { %535 = vmatmul.bf16.vlgmr.msra.gmra.mxu1 %v424_v37  ;;  %549 = vmatmul.bf16.vlgmr.msra.gmra.mxu2 %v424_v37  ;;  %v8325_v37 = vor.u32 %v12033_v35, %v8324_v34  ;;  %v8782_v29 = vld [vmem:[#allocation10 + $0xbb0] sm:$0xf0] }
 0x103   :  { %1435 = vmatpush.bf16.msra.mxu1 %v8521_v38  ;;  %1449 = vmatpush.bf16.msra.mxu2 %v8777_v46  ;;  %v8326_v38 = vld [vmem:[#allocation10 + $0x128] sm:$0xf0]  ;;  %v8292_v46 = vld [vmem:[#allocation10 + $0x8] sm:$0xf]  ;;  %v12062_v35 = vld [vmem:[#allocation10 + $0x3d4] sm:$0xf] }
 0x104   :  { %1425 = vmatpush.bf16.msra.mxu0 %v8645_v30  ;;  %v8329_v39 = vor.u32 %v12029_v36, %v8326_v38  ;;  %1413 = vmatpush.bf16.msrb.mxu3 %v8325_v37  ;;  %v8293_v49 = vor.u32 %v12025_v47, %v8292_v46  ;;  %v8493_v30 = vor.u32 %v12074_v20, %v8492_v19  ;;  %v8462_v36 = vld [vmem:[#allocation10 + $0x430] sm:$0xf0]  ;;  %v8428_v46 = vld [vmem:[#allocation10 + $0x310] sm:$0xf] }
 0x105   :  { %v8785_v38 = vor.u32 %v12142_v28, %v8782_v29  ;;  %v12058_v47 = vld [vmem:[#allocation10 + $0x36c] sm:$0xf0]  ;;  %v12102_v28 = vld [vmem:[#allocation10 + $0x794] sm:$0xf] }
 0x106   :  { %v8429_v56 = vor.u32 %v12058_v47, %v8428_v46  ;;  %v8332_v19 = vld [vmem:[#allocation10 + $0xd0] sm:$0xf]  ;;  %v8622_v29 = vld [vmem:[#allocation10 + $0x7f0] sm:$0xf0] }
 0x107   :  { %1436 = vmatpush.bf16.msra.mxu1 %v8489_v52  ;;  %1450 = vmatpush.bf16.msra.mxu2 %v8745_v58  ;;  %v8580_v52 = vld [vmem:[#allocation10 + $0x6c8] sm:$0xf]  ;;  %v12034_v20 = vld [vmem:[#allocation10 + $0x12c] sm:$0xf0]  ;;  %v8590_v46 = vld [vmem:[#allocation10 + $0x730] sm:$0xf0] }
 0x108   :  { %1426 = vmatpush.bf16.msra.mxu0 %v8613_v43  ;;  %1414 = vmatpush.bf16.msrb.mxu3 %v8293_v49  ;;  %v8581_v55 = vor.u32 %v12097_v53, %v8580_v52  ;;  %v8548_v58 = vld [vmem:[#allocation10 + $0x608] sm:$0xf]  ;;  %v8750_v43 = vld [vmem:[#allocation10 + $0xaf0] sm:$0xf0]  ;;  %v8716_v52 = vld [vmem:[#allocation10 + $0x9d0] sm:$0xf] }
 0x109   :  { %v8430_v49 = vld [vmem:[#allocation10 + $0x370] sm:$0xf0]  ;;  %v12130_v53 = vld [vmem:[#allocation10 + $0xa2c] sm:$0xf0] }
 0x10a   :  { %v8717_v62 = vor.u32 %v12130_v53, %v8716_v52  ;;  %v12075_v52 = vld [vmem:[#allocation10 + $0x4f4] sm:$0xf0]  ;;  %v12071_v53 = vld [vmem:[#allocation10 + $0x49c] sm:$0xf] }
 0x10b   :  { %1437 = vmatpush.bf16.msra.mxu1 %v8457_v60  ;;  %1451 = vmatpush.bf16.msra.mxu2 %v8713_v8  ;;  %v8549_v60 = vor.u32 %v12089_v59, %v8548_v58  ;;  %v8396_v58 = vld [vmem:[#allocation10 + $0x250] sm:$0xf] }
 0x10c   :  { %1427 = vmatpush.bf16.msra.mxu0 %v8581_v55  ;;  %v8718_v55 = vld [vmem:[#allocation10 + $0xa30] sm:$0xf0]  ;;  %v12050_v59 = vld [vmem:[#allocation10 + $0x2ac] sm:$0xf0] }
 0x10f   :  { %1438 = vmatpush.bf16.msra.mxu1 %v8425_v2  ;;  %1452 = vmatpush.bf16.msra.mxu2 %v8681_v21 }
 0x110   :  { %1428 = vmatpush.bf16.msra.mxu0 %v8549_v60  ;;  %v12046_v60 = vld [vmem:[#allocation10 + $0x254] sm:$0xf] }
 0x113   :  { %1439 = vmatpush.bf16.msra.mxu1 %v8393_v14  ;;  %1453 = vmatpush.bf16.msra.mxu2 %v8649_v33  ;;  %v8526_v14 = vld [vmem:[#allocation10 + $0x5b0] sm:$0xf0]  ;;  %v12066_v33 = vld [vmem:[#allocation10 + $0x42c] sm:$0xf0] }
 0x114   :  { %v8529_v18 = vor.u32 %v12078_v13, %v8526_v14  ;;  %v8461_v44 = vor.u32 %v12066_v33, %v8460_v32  ;;  %v12114_v13 = vld [vmem:[#allocation10 + $0x8ac] sm:$0xf0]  ;;  %v12110_v14 = vld [vmem:[#allocation10 + $0x854] sm:$0xf] }
 0x115   :  { %v8300_v32 = vld [vmem:[#allocation10 + $0x10] sm:$0xf] }
 0x116   :  { %v12026_v33 = vld [vmem:[#allocation10 + $0x6c] sm:$0xf0] }
 0x117   :  { %1440 = vmatpush.bf16.msra.mxu1 %v8361_v27  ;;  %1454 = vmatpush.bf16.msra.mxu2 %v8617_v45  ;;  %v12146_v27 = vld [vmem:[#allocation10 + $0xbac] sm:$0xf0]  ;;  %v8465_v45 = vor.u32 %v12062_v35, %v8462_v36  ;;  %v8302_v35 = vld [vmem:[#allocation10 + $0x70] sm:$0xf0]  ;;  %v8532_v36 = vld [vmem:[#allocation10 + $0x558] sm:$0xf]  ;;  %v8301_v47 = vor.u32 %v12026_v33, %v8300_v32 }
 0x118   :  { %v8781_v37 = vor.u32 %v12146_v27, %v8780_v25  ;;  %v12106_v27 = vld [vmem:[#allocation10 + $0x7ec] sm:$0xf0]  ;;  %v12051_v32 = vld [vmem:[#allocation10 + $0x2b4] sm:$0xf0]  ;;  %v12047_v33 = vld [vmem:[#allocation10 + $0x25c] sm:$0xf] }
 0x11b   :  { %1441 = vmatpush.bf16.msra.mxu1 %v8329_v39  ;;  %1455 = vmatpush.bf16.msra.mxu2 %v8585_v57  ;;  %v8748_v39 = vld [vmem:[#allocation10 + $0xa90] sm:$0xf]  ;;  %v8433_v57 = vor.u32 %v12054_v48, %v8430_v49 }
 0x11c   :  { %v8749_v50 = vor.u32 %v12138_v40, %v8748_v39  ;;  %v8625_v39 = vor.u32 %v12102_v28, %v8622_v29  ;;  %v12079_v40 = vld [vmem:[#allocation10 + $0x55c] sm:$0xf] }
 0x11d   :  { %v8726_v28 = vld [vmem:[#allocation10 + $0xa38] sm:$0xf0] }
 0x11f   :  { %1442 = vmatpush.bf16.msra.mxu1 %v8297_v51  ;;  %1456 = vmatpush.bf16.msra.mxu2 %v8553_v63  ;;  %v8753_v51 = vor.u32 %v12134_v42, %v8750_v43  ;;  %v8721_v63 = vor.u32 %v12126_v54, %v8718_v55  ;;  %v8534_v42 = vld [vmem:[#allocation10 + $0x5b8] sm:$0xf0]  ;;  %v8588_v43 = vld [vmem:[#allocation10 + $0x6d0] sm:$0xf] }
 0x17f   :  { %v536_v2 = vpop.f32.mrf.mxu1 }
 0x180   :  { %v537_v3 = vadd.f32 %v536_v2, %v443_v1  ;;  %v12118_v2 = vld [vmem:[#allocation10 + $0x914] sm:$0xf] }
 0x182   :  { %v555_v4 = vmax.f32 %v537_v3, 0.0  ;;  %v8686_v3 = vld [vmem:[#allocation10 + $0x970] sm:$0xf0] }
 0x184   :  { %559 = vst [vmem:[#allocation35] sm:$0xff] %v555_v4 }
 0x185   :  { %v550_v6 = vpop.f32.mrf.mxu2 }
 0x186   :  { %v551_v7 = vadd.f32 %v550_v6, %v444_v5  ;;  %v8364_v6 = vld [vmem:[#allocation10 + $0x190] sm:$0xf] }
 0x187   :  { %v538_v8 = vpop.f32.mrf.mxu1 }
 0x188   :  { %v556_v11 = vmax.f32 %v551_v7, 0.0  ;;  %v539_v12 = vadd.f32 %v538_v8, %v443_v1  ;;  %v12122_v1 = vld [vmem:[#allocation10 + $0x96c] sm:$0xf0]  ;;  %v12038_v8 = vld [vmem:[#allocation10 + $0x194] sm:$0xf] }
 0x189   :  { %v12042_v7 = vld [vmem:[#allocation10 + $0x1ec] sm:$0xf0]  ;;  %v8685_v10 = vor.u32 %v12122_v1, %v8684_v0  ;;  %v8790_v0 = vld [vmem:[#allocation10 + $0xbb8] sm:$0xf0] }
 0x18a   :  { %560 = vst [vmem:[#allocation35 + $0x8] sm:$0xff] %v556_v11  ;;  %v557_v16 = vmax.f32 %v539_v12, 0.0  ;;  %v8652_v12 = vld [vmem:[#allocation10 + $0x850] sm:$0xf] }
 0x18c   :  { %561 = vst [vmem:[#allocation35 + $0x10] sm:$0xff] %v557_v16  ;;  %v13781_v21 = vpack.c.bf16 %v557_v16, %v555_v4  ;;  %v8397_v4 = vor.u32 %v12050_v59, %v8396_v58  ;;  %v8654_v16 = vld [vmem:[#allocation10 + $0x8b0] sm:$0xf0]  ;;  %v12090_v58 = vld [vmem:[#allocation10 + $0x66c] sm:$0xf0] }
 0x18d   :  { %v552_v24 = vpop.f32.mrf.mxu2  ;;  %v8657_v25 = vor.u32 %v12110_v14, %v8654_v16  ;;  %v12086_v59 = vld [vmem:[#allocation10 + $0x614] sm:$0xf]  ;;  %v8758_v14 = vld [vmem:[#allocation10 + $0xaf8] sm:$0xf0] }
 0x18e   :  { %v553_v26 = vadd.f32 %v552_v24, %v444_v5  ;;  %1359 = vmatmul.bf16.vlgmr.msra.gmra.mxu3 %v13781_v21  ;;  %1387 = vmatmul.bf16.vlgmr.msrb.gmra.mxu1 %v13781_v21  ;;  %v8401_v5 = vor.u32 %v12046_v60, %v8398_v61  ;;  %v8653_v24 = vor.u32 %v12114_v13, %v8652_v12  ;;  %v8558_v60 = vld [vmem:[#allocation10 + $0x670] sm:$0xf0]  ;;  %v8788_v61 = vld [vmem:[#allocation10 + $0xb58] sm:$0xf]  ;;  %v12135_v13 = vld [vmem:[#allocation10 + $0xa9c] sm:$0xf] }
 0x18f   :  { %1463 = vmatpush.bf16.msra.mxu3 %v8525_v17  ;;  %1491 = vmatpush.bf16.msrb.mxu1 %v8529_v18  ;;  %v8365_v17 = vor.u32 %v12042_v7, %v8364_v6  ;;  %v8369_v18 = vor.u32 %v12038_v8, %v8366_v9  ;;  %v12067_v6 = vld [vmem:[#allocation10 + $0x434] sm:$0xf0]  ;;  %v12063_v7 = vld [vmem:[#allocation10 + $0x3dc] sm:$0xf] }
 0x190   :  { %v558_v34 = vmax.f32 %v553_v26, 0.0  ;;  %v8620_v26 = vld [vmem:[#allocation10 + $0x790] sm:$0xf]  ;;  %v8470_v8 = vld [vmem:[#allocation10 + $0x438] sm:$0xf0] }
 0x191   :  { %v12139_v12 = vld [vmem:[#allocation10 + $0xaf4] sm:$0xf0] }
 0x192   :  { %562 = vst [vmem:[#allocation35 + $0x18] sm:$0xff] %v558_v34  ;;  %v13785_v41 = vpack.c.bf16 %v558_v34, %v556_v11  ;;  %v8689_v11 = vor.u32 %v12118_v2, %v8686_v3  ;;  %v12022_v34 = vld [vmem:[#allocation10 + $0x14] sm:$0xf]  ;;  %v8468_v3 = vld [vmem:[#allocation10 + $0x3d8] sm:$0xf] }
 0x193   :  { %1464 = vmatpush.bf16.msra.mxu3 %v8493_v30  ;;  %1492 = vmatpush.bf16.msrb.mxu1 %v8497_v31  ;;  %v8333_v30 = vor.u32 %v12034_v20, %v8332_v19  ;;  %v8337_v31 = vor.u32 %v12030_v22, %v8334_v23  ;;  %v8305_v48 = vor.u32 %v12022_v34, %v8302_v35  ;;  %v12059_v19 = vld [vmem:[#allocation10 + $0x374] sm:$0xf0]  ;;  %v12055_v20 = vld [vmem:[#allocation10 + $0x31c] sm:$0xf]  ;;  %8188 = dma.vmem_to_hbm [thread:$0]  %s8181_s28, 512, %s8183_s3, [#allocation4], %s13565_s10, %s13565_s10, %s13566_s18  }
 0x194   :  { %1373 = vmatmul.bf16.vlgmr.msrb.gmra.mxu0 %v13785_v41  ;;  %1401 = vmatmul.bf16.vlgmr.msrb.gmra.mxu2 %v13785_v41  ;;  %v8469_v16 = vor.u32 %v12067_v6, %v8468_v3  ;;  %v8438_v22 = vld [vmem:[#allocation10 + $0x378] sm:$0xf0] }
 0x195   :  { %1477 = vmatpush.bf16.msrb.mxu0 %v8781_v37  ;;  %1505 = vmatpush.bf16.msrb.mxu2 %v8785_v38  ;;  %v12083_v37 = vld [vmem:[#allocation10 + $0x5b4] sm:$0xf0]  ;;  %v8621_v38 = vor.u32 %v12106_v27, %v8620_v26  ;;  %v12127_v27 = vld [vmem:[#allocation10 + $0x9dc] sm:$0xf] }
 0x196   :  { %v8533_v49 = vor.u32 %v12083_v37, %v8532_v36  ;;  %v12131_v26 = vld [vmem:[#allocation10 + $0xa34] sm:$0xf0]  ;;  %v8406_v34 = vld [vmem:[#allocation10 + $0x2b8] sm:$0xf0]  ;;  %v8729_v36 = vor.u32 %v12127_v27, %v8726_v28  ;;  %v12161_v27 = vld [vmem:[#allocation14 + $0x64] sm:$0xf0] }
 0x197   :  { %1465 = vmatpush.bf16.msra.mxu3 %v8461_v44  ;;  %1493 = vmatpush.bf16.msrb.mxu1 %v8465_v45  ;;  %v12098_v44 = vld [vmem:[#allocation10 + $0x72c] sm:$0xf0]  ;;  %v12094_v45 = vld [vmem:[#allocation10 + $0x6d4] sm:$0xf]  ;;  %v8692_v37 = vld [vmem:[#allocation10 + $0x918] sm:$0xf] }
 0x198   :  { %v8589_v54 = vor.u32 %v12098_v44, %v8588_v43  ;;  %v8593_v55 = vor.u32 %v12094_v45, %v8590_v46  ;;  %v8409_v43 = vor.u32 %v12047_v33, %v8406_v34  ;;  %v8372_v44 = vld [vmem:[#allocation10 + $0x198] sm:$0xf]  ;;  %v12039_v46 = vld [vmem:[#allocation10 + $0x19c] sm:$0xf] }
 0x199   :  { %1478 = vmatpush.bf16.msrb.mxu0 %v8749_v50  ;;  %1506 = vmatpush.bf16.msrb.mxu2 %v8753_v51  ;;  %v8537_v50 = vor.u32 %v12079_v40, %v8534_v42  ;;  %v8500_v51 = vld [vmem:[#allocation10 + $0x498] sm:$0xf]  ;;  %v8694_v40 = vld [vmem:[#allocation10 + $0x978] sm:$0xf0] }
 0x19a   :  { %v8501_v1 = vor.u32 %v12075_v52, %v8500_v51  ;;  %v12043_v45 = vld [vmem:[#allocation10 + $0x1f4] sm:$0xf0]  ;;  %v12111_v52 = vld [vmem:[#allocation10 + $0x85c] sm:$0xf] }
 0x19b   :  { %1466 = vmatpush.bf16.msra.mxu3 %v8429_v56  ;;  %1494 = vmatpush.bf16.msrb.mxu1 %v8433_v57  ;;  %v8502_v56 = vld [vmem:[#allocation10 + $0x4f8] sm:$0xf0]  ;;  %v8556_v57 = vld [vmem:[#allocation10 + $0x610] sm:$0xf]  ;;  %v12115_v51 = vld [vmem:[#allocation10 + $0x8b4] sm:$0xf0] }
 0x19c   :  { %v8505_v2 = vor.u32 %v12071_v53, %v8502_v56  ;;  %v8662_v53 = vld [vmem:[#allocation10 + $0x8b8] sm:$0xf0]  ;;  %v8340_v56 = vld [vmem:[#allocation10 + $0xd8] sm:$0xf] }
 0x19d   :  { %1479 = vmatpush.bf16.msrb.mxu0 %v8717_v62  ;;  %1507 = vmatpush.bf16.msrb.mxu2 %v8721_v63  ;;  %v12147_v62 = vld [vmem:[#allocation10 + $0xbb4] sm:$0xf0]  ;;  %v12143_v63 = vld [vmem:[#allocation10 + $0xb5c] sm:$0xf] }
 0x19e   :  { %1415 = vmatmul.bf16.vlgmr.msrb.gmra.mxu3 %v13781_v21  ;;  %1443 = vmatmul.bf16.vlgmr.msra.gmra.mxu1 %v13781_v21  ;;  %v8789_v9 = vor.u32 %v12147_v62, %v8788_v61  ;;  %v8665_v61 = vor.u32 %v12111_v52, %v8662_v53  ;;  %v8628_v62 = vld [vmem:[#allocation10 + $0x798] sm:$0xf]  ;;  %v12023_v6 = vld [vmem:[#allocation10 + $0x1c] sm:$0xf]  ;;  %v12155_v52 = vld [vmem:[#allocation14 + $0x34] sm:$0xf0] }
 0x19f   :  { %1467 = vmatpush.bf16.msra.mxu3 %v8397_v4  ;;  %1495 = vmatpush.bf16.msrb.mxu1 %v8401_v5  ;;  %v8557_v4 = vor.u32 %v12090_v58, %v8556_v57  ;;  %v8561_v5 = vor.u32 %v12086_v59, %v8558_v60  ;;  %v12035_v57 = vld [vmem:[#allocation10 + $0x134] sm:$0xf0]  ;;  %v12031_v58 = vld [vmem:[#allocation10 + $0xdc] sm:$0xf] }
 0x1a0   :  { %v8342_v59 = vld [vmem:[#allocation10 + $0x138] sm:$0xf0]  ;;  %v8892_v53 = vld [vmem:[#allocation14 + $0xc0] sm:$0xf] }
 0x1a1   :  { %1480 = vmatpush.bf16.msrb.mxu0 %v8685_v10  ;;  %1508 = vmatpush.bf16.msrb.mxu2 %v8689_v11  ;;  %v8793_v10 = vor.u32 %v12143_v63, %v8790_v0  ;;  %v8756_v11 = vld [vmem:[#allocation10 + $0xa98] sm:$0xf]  ;;  %v12103_v0 = vld [vmem:[#allocation10 + $0x79c] sm:$0xf]  ;;  %v8345_v3 = vor.u32 %v12031_v58, %v8342_v59  ;;  %v12153_v58 = vld [vmem:[#allocation14 + $0x24] sm:$0xf0] }
 0x1a2   :  { %v8757_v23 = vor.u32 %v12139_v12, %v8756_v11  ;;  %v12107_v63 = vld [vmem:[#allocation10 + $0x7f4] sm:$0xf0]  ;;  %v8852_v11 = vld [vmem:[#allocation14 + $0x70] sm:$0xf]  ;;  %v12163_v12 = vld [vmem:[#allocation14 + $0x74] sm:$0xf0] }
 0x1a3   :  { %1468 = vmatpush.bf16.msra.mxu3 %v8365_v17  ;;  %1496 = vmatpush.bf16.msrb.mxu1 %v8369_v18  ;;  %v8473_v17 = vor.u32 %v12063_v7, %v8470_v8  ;;  %v8436_v18 = vld [vmem:[#allocation10 + $0x318] sm:$0xf]  ;;  %v8310_v7 = vld [vmem:[#allocation10 + $0x78] sm:$0xf0]  ;;  %v8629_v8 = vor.u32 %v12107_v63, %v8628_v62  ;;  %v8884_v59 = vld [vmem:[#allocation14 + $0xb0] sm:$0xf] }
 0x1a4   :  { %1429 = vmatmul.bf16.vlgmr.msra.gmra.mxu0 %v13785_v41  ;;  %1457 = vmatmul.bf16.vlgmr.msra.gmra.mxu2 %v13785_v41  ;;  %v8437_v29 = vor.u32 %v12059_v19, %v8436_v18  ;;  %v8313_v18 = vor.u32 %v12023_v6, %v8310_v7  ;;  %v8564_v19 = vld [vmem:[#allocation10 + $0x618] sm:$0xf]  ;;  %v8566_v28 = vld [vmem:[#allocation10 + $0x678] sm:$0xf0]  ;;  %v8804_v63 = vld [vmem:[#allocation14 + $0x10] sm:$0xf] }
 0x1a5   :  { %1481 = vmatpush.bf16.msrb.mxu0 %v8653_v24  ;;  %1509 = vmatpush.bf16.msrb.mxu2 %v8657_v25  ;;  %v8761_v24 = vor.u32 %v12135_v13, %v8758_v14  ;;  %v8724_v25 = vld [vmem:[#allocation10 + $0x9d8] sm:$0xf]  ;;  %v12095_v14 = vld [vmem:[#allocation10 + $0x6dc] sm:$0xf]  ;;  %v12149_v6 = vld [vmem:[#allocation14 + $0x4] sm:$0xf0] }
 0x1a6   :  { %v8725_v35 = vor.u32 %v12131_v26, %v8724_v25  ;;  %v12099_v13 = vld [vmem:[#allocation10 + $0x734] sm:$0xf0]  ;;  %v12087_v25 = vld [vmem:[#allocation10 + $0x61c] sm:$0xf]  ;;  %v8868_v7 = vld [vmem:[#allocation14 + $0x90] sm:$0xf] }
 0x1a7   :  { %1469 = vmatpush.bf16.msra.mxu3 %v8333_v30  ;;  %1497 = vmatpush.bf16.msrb.mxu1 %v8337_v31  ;;  %v8441_v30 = vor.u32 %v12055_v20, %v8438_v22  ;;  %v8404_v31 = vld [vmem:[#allocation10 + $0x258] sm:$0xf]  ;;  %v8853_v22 = vor.u32 %v12163_v12, %v8852_v11 }
 0x1a8   :  { %v8405_v42 = vor.u32 %v12051_v32, %v8404_v31  ;;  %v12091_v20 = vld [vmem:[#allocation10 + $0x674] sm:$0xf0]  ;;  %v8916_v31 = vld [vmem:[#allocation14 + $0xf0] sm:$0xf]  ;;  %v12179_v32 = vld [vmem:[#allocation14 + $0xf4] sm:$0xf0] }
 0x1a9   :  { %1482 = vmatpush.bf16.msrb.mxu0 %v8621_v38  ;;  %1510 = vmatpush.bf16.msrb.mxu2 %v8625_v39  ;;  %v12123_v38 = vld [vmem:[#allocation10 + $0x974] sm:$0xf0]  ;;  %v12119_v39 = vld [vmem:[#allocation10 + $0x91c] sm:$0xf] }
 0x1aa   :  { %v8844_v26 = vld [vmem:[#allocation14 + $0x60] sm:$0xf] }
 0x1ab   :  { %1470 = vmatpush.bf16.msra.mxu3 %v8301_v47  ;;  %1498 = vmatpush.bf16.msrb.mxu1 %v8305_v48  ;;  %v8374_v47 = vld [vmem:[#allocation10 + $0x1f8] sm:$0xf0]  ;;  %v8693_v48 = vor.u32 %v12123_v38, %v8692_v37  ;;  %v8845_v34 = vor.u32 %v12161_v27, %v8844_v26  ;;  %v8917_v37 = vor.u32 %v12179_v32, %v8916_v31  ;;  %v8836_v38 = vld [vmem:[#allocation14 + $0x50] sm:$0xf]  ;;  %v12225_v26 = vld [vmem:[#allocation14 + $0x264] sm:$0xf0] }
 0x1ac   :  { %v9172_v27 = vld [vmem:[#allocation14 + $0x2f0] sm:$0xf]  ;;  %v12191_v31 = vld [vmem:[#allocation14 + $0x154] sm:$0xf0] }
 0x1ad   :  { %1483 = vmatpush.bf16.msrb.mxu0 %v8589_v54  ;;  %1511 = vmatpush.bf16.msrb.mxu2 %v8593_v55  ;;  %v8373_v54 = vor.u32 %v12043_v45, %v8372_v44  ;;  %v8377_v55 = vor.u32 %v12039_v46, %v8374_v47  ;;  %v8828_v45 = vld [vmem:[#allocation14 + $0x40] sm:$0xf]  ;;  %v12157_v46 = vld [vmem:[#allocation14 + $0x44] sm:$0xf0]  ;;  %v8900_v47 = vld [vmem:[#allocation14 + $0xd0] sm:$0xf] }
 0x1ae   :  { %1471 = vmatmul.bf16.vlgmr.msra.gmra.mxu3 %v13781_v21  ;;  %1499 = vmatmul.bf16.vlgmr.msrb.gmra.mxu1 %v13781_v21 }
 0x1af   :  { %1519 = vmatpush.bf16.msrb.mxu3 %v8533_v49  ;;  %1547 = vmatpush.bf16.msra.mxu1 %v8537_v50  ;;  %v8697_v49 = vor.u32 %v12119_v39, %v8694_v40  ;;  %v8660_v50 = vld [vmem:[#allocation10 + $0x858] sm:$0xf]  ;;  %v12159_v39 = vld [vmem:[#allocation14 + $0x54] sm:$0xf0] }
 0x1b0   :  { %v8661_v60 = vor.u32 %v12115_v51, %v8660_v50  ;;  %v8908_v40 = vld [vmem:[#allocation14 + $0xe0] sm:$0xf]  ;;  %v8820_v51 = vld [vmem:[#allocation14 + $0x30] sm:$0xf] }
 0x1b1   :  { %1484 = vmatpush.bf16.msrb.mxu0 %v8557_v4  ;;  %1512 = vmatpush.bf16.msrb.mxu2 %v8561_v5  ;;  %v8308_v4 = vld [vmem:[#allocation10 + $0x18] sm:$0xf] }
 0x1b2   :  { %v12027_v5 = vld [vmem:[#allocation10 + $0x74] sm:$0xf0] }
 0x1b3   :  { %1520 = vmatpush.bf16.msrb.mxu3 %v8501_v1  ;;  %1548 = vmatpush.bf16.msra.mxu1 %v8505_v2  ;;  %v8630_v1 = vld [vmem:[#allocation10 + $0x7f8] sm:$0xf0]  ;;  %v8341_v2 = vor.u32 %v12035_v57, %v8340_v56  ;;  %v8812_v57 = vld [vmem:[#allocation14 + $0x20] sm:$0xf] }
 0x1b4   :  { %1485 = vmatmul.bf16.vlgmr.msrb.gmra.mxu0 %v13785_v41  ;;  %1513 = vmatmul.bf16.vlgmr.msrb.gmra.mxu2 %v13785_v41 }
 0x1b5   :  { %1533 = vmatpush.bf16.msra.mxu0 %v8789_v9  ;;  %1561 = vmatpush.bf16.msra.mxu2 %v8793_v10  ;;  %v8633_v9 = vor.u32 %v12103_v0, %v8630_v1  ;;  %v8596_v10 = vld [vmem:[#allocation10 + $0x6d8] sm:$0xf]  ;;  %v12151_v0 = vld [vmem:[#allocation14 + $0x14] sm:$0xf0] }
 0x1b6   :  { %v8876_v1 = vld [vmem:[#allocation14 + $0xa0] sm:$0xf] }
 0x1b7   :  { %1521 = vmatpush.bf16.msrb.mxu3 %v8469_v16  ;;  %1549 = vmatpush.bf16.msra.mxu1 %v8473_v17  ;;  %v8598_v16 = vld [vmem:[#allocation10 + $0x738] sm:$0xf0]  ;;  %v8309_v17 = vor.u32 %v12027_v5, %v8308_v4  ;;  %v8796_v5 = vld [vmem:[#allocation14] sm:$0xf] }
 0x1b8   :  { %v8797_v11 = vor.u32 %v12149_v6, %v8796_v5  ;;  %v12185_v5 = vld [vmem:[#allocation14 + $0x124] sm:$0xf0]  ;;  %v9012_v6 = vld [vmem:[#allocation14 + $0x1b0] sm:$0xf] }
 0x1b9   :  { %1534 = vmatpush.bf16.msra.mxu0 %v8757_v23  ;;  %1562 = vmatpush.bf16.msra.mxu2 %v8761_v24  ;;  %v8597_v23 = vor.u32 %v12099_v13, %v8596_v10  ;;  %v8601_v24 = vor.u32 %v12095_v14, %v8598_v16  ;;  %v12227_v10 = vld [vmem:[#allocation14 + $0x274] sm:$0xf0]  ;;  %v8860_v14 = vld [vmem:[#allocation14 + $0x80] sm:$0xf]  ;;  %v12165_v16 = vld [vmem:[#allocation14 + $0x84] sm:$0xf0] }
 0x1bb   :  { %1522 = vmatpush.bf16.msrb.mxu3 %v8437_v29  ;;  %1550 = vmatpush.bf16.msra.mxu1 %v8441_v30  ;;  %v8980_v29 = vld [vmem:[#allocation14 + $0x170] sm:$0xf]  ;;  %v12195_v30 = vld [vmem:[#allocation14 + $0x174] sm:$0xf0] }
 0x1bc   :  { %v8981_v33 = vor.u32 %v12195_v30, %v8980_v29  ;;  %v12243_v29 = vld [vmem:[#allocation14 + $0x2f4] sm:$0xf0]  ;;  %v8964_v30 = vld [vmem:[#allocation14 + $0x150] sm:$0xf] }
 0x1bd   :  { %1535 = vmatpush.bf16.msra.mxu0 %v8725_v35  ;;  %1563 = vmatpush.bf16.msra.mxu2 %v8729_v36  ;;  %v8565_v35 = vor.u32 %v12091_v20, %v8564_v19  ;;  %v8569_v36 = vor.u32 %v12087_v25, %v8566_v28  ;;  %v12193_v19 = vld [vmem:[#allocation14 + $0x164] sm:$0xf0]  ;;  %v9044_v20 = vld [vmem:[#allocation14 + $0x1f0] sm:$0xf]  ;;  %v9100_v25 = vld [vmem:[#allocation14 + $0x260] sm:$0xf]  ;;  %v9173_v32 = vor.u32 %v12243_v29, %v9172_v27 }
 0x1be   :  { %v9101_v28 = vor.u32 %v12225_v26, %v9100_v25  ;;  %v9132_v27 = vld [vmem:[#allocation14 + $0x2a0] sm:$0xf] }
 0x1bf   :  { %1523 = vmatpush.bf16.msrb.mxu3 %v8405_v42  ;;  %1551 = vmatpush.bf16.msra.mxu1 %v8409_v43  ;;  %v12177_v42 = vld [vmem:[#allocation14 + $0xe4] sm:$0xf0]  ;;  %v8837_v43 = vor.u32 %v12159_v39, %v8836_v38  ;;  %v12223_v38 = vld [vmem:[#allocation14 + $0x254] sm:$0xf0]  ;;  %v9164_v39 = vld [vmem:[#allocation14 + $0x2e0] sm:$0xf] }
 0x1c0   :  { %v8909_v44 = vor.u32 %v12177_v42, %v8908_v40  ;;  %v12241_v42 = vld [vmem:[#allocation14 + $0x2e4] sm:$0xf0] }
 0x1c1   :  { %1536 = vmatpush.bf16.msra.mxu0 %v8693_v48  ;;  %1564 = vmatpush.bf16.msra.mxu2 %v8697_v49  ;;  %v12175_v48 = vld [vmem:[#allocation14 + $0xd4] sm:$0xf0]  ;;  %v8829_v49 = vor.u32 %v12157_v46, %v8828_v45  ;;  %v12189_v45 = vld [vmem:[#allocation14 + $0x144] sm:$0xf0]  ;;  %v9028_v46 = vld [vmem:[#allocation14 + $0x1d0] sm:$0xf] }
 0x1c2   :  { %v8901_v50 = vor.u32 %v12175_v48, %v8900_v47  ;;  %v12207_v48 = vld [vmem:[#allocation14 + $0x1d4] sm:$0xf0] }
 0x1c3   :  { %1524 = vmatpush.bf16.msrb.mxu3 %v8373_v54  ;;  %1552 = vmatpush.bf16.msra.mxu1 %v8377_v55  ;;  %v12173_v54 = vld [vmem:[#allocation14 + $0xc4] sm:$0xf0]  ;;  %v8821_v55 = vor.u32 %v12155_v52, %v8820_v51  ;;  %v9029_v51 = vor.u32 %v12207_v48, %v9028_v46  ;;  %v8988_v46 = vld [vmem:[#allocation14 + $0x180] sm:$0xf] }
 0x1c4   :  { %v8893_v56 = vor.u32 %v12173_v54, %v8892_v53  ;;  %v9156_v53 = vld [vmem:[#allocation14 + $0x2d0] sm:$0xf]  ;;  %v12239_v54 = vld [vmem:[#allocation14 + $0x2d4] sm:$0xf0] }
 0x1c5   :  { %1537 = vmatpush.bf16.msra.mxu0 %v8661_v60  ;;  %1565 = vmatpush.bf16.msra.mxu2 %v8665_v61  ;;  %v12171_v60 = vld [vmem:[#allocation14 + $0xb4] sm:$0xf0]  ;;  %v8813_v61 = vor.u32 %v12153_v58, %v8812_v57  ;;  %v9020_v58 = vld [vmem:[#allocation14 + $0x1c0] sm:$0xf] }
 0x1c6   :  { %v8885_v62 = vor.u32 %v12171_v60, %v8884_v59  ;;  %v12187_v57 = vld [vmem:[#allocation14 + $0x134] sm:$0xf0]  ;;  %v12205_v60 = vld [vmem:[#allocation14 + $0x1c4] sm:$0xf0] }
 0x1c7   :  { %1525 = vmatpush.bf16.msrb.mxu3 %v8341_v2  ;;  %1553 = vmatpush.bf16.msra.mxu1 %v8345_v3  ;;  %v12169_v2 = vld [vmem:[#allocation14 + $0xa4] sm:$0xf0]  ;;  %v8805_v3 = vor.u32 %v12151_v0, %v8804_v63  ;;  %v9021_v63 = vor.u32 %v12205_v60, %v9020_v58  ;;  %v12255_v60 = vld [vmem:[#allocation14 + $0x354] sm:$0xf0] }
 0x1c8   :  { %v8877_v4 = vor.u32 %v12169_v2, %v8876_v1  ;;  %v9148_v1 = vld [vmem:[#allocation14 + $0x2c0] sm:$0xf]  ;;  %v12237_v2 = vld [vmem:[#allocation14 + $0x2c4] sm:$0xf0] }
 0x1c9   :  { %1538 = vmatpush.bf16.msra.mxu0 %v8629_v8  ;;  %1566 = vmatpush.bf16.msra.mxu2 %v8633_v9  ;;  %v12167_v8 = vld [vmem:[#allocation14 + $0x94] sm:$0xf0]  ;;  %v9108_v9 = vld [vmem:[#allocation14 + $0x270] sm:$0xf] }
 0x1ca   :  { %v8869_v12 = vor.u32 %v12167_v8, %v8868_v7  ;;  %v9109_v13 = vor.u32 %v12227_v10, %v9108_v9  ;;  %v12203_v8 = vld [vmem:[#allocation14 + $0x1b4] sm:$0xf0]  ;;  %v9068_v9 = vld [vmem:[#allocation14 + $0x220] sm:$0xf] }
 0x1cb   :  { %1526 = vmatpush.bf16.msrb.mxu3 %v8309_v17  ;;  %1554 = vmatpush.bf16.msra.mxu1 %v8313_v18  ;;  %v8972_v17 = vld [vmem:[#allocation14 + $0x160] sm:$0xf]  ;;  %v8861_v18 = vor.u32 %v12165_v16, %v8860_v14  ;;  %v9013_v10 = vor.u32 %v12203_v8, %v9012_v6  ;;  %v13801_v6 = vld [vmem:[#allocation11] sm:$0xff] }
 0x1cd   :  { %1539 = vmatpush.bf16.msra.mxu0 %v8597_v23  ;;  %1567 = vmatpush.bf16.msra.mxu2 %v8601_v24  ;;  %v8973_v23 = vor.u32 %v12193_v19, %v8972_v17  ;;  %v8932_v17 = vld [vmem:[#allocation14 + $0x110] sm:$0xf]  ;;  %v9004_v19 = vld [vmem:[#allocation14 + $0x1a0] sm:$0xf] }
 0x1ce   :  { %1527 = vmatmul.bf16.vlgmr.msrb.gmra.mxu3 %v13781_v21  ;;  %1555 = vmatmul.bf16.vlgmr.msra.gmra.mxu1 %v13781_v21 }
 0x1cf   :  { %2373 = vmatpush.bf16.msra.mxu3 %v8853_v22  ;;  %2401 = vmatpush.bf16.msrb.mxu1 %v8981_v33  ;;  %v12211_v22 = vld [vmem:[#allocation14 + $0x1f4] sm:$0xf0]  ;;  %v8965_v33 = vor.u32 %v12191_v31, %v8964_v30  ;;  %v8924_v30 = vld [vmem:[#allocation14 + $0x100] sm:$0xf]  ;;  %v12181_v31 = vld [vmem:[#allocation14 + $0x104] sm:$0xf0] }
 0x1d0   :  { %v9045_v24 = vor.u32 %v12211_v22, %v9044_v20  ;;  %v12201_v22 = vld [vmem:[#allocation14 + $0x1a4] sm:$0xf0] }
 0x1d1   :  { %1540 = vmatpush.bf16.msra.mxu0 %v8565_v35  ;;  %1568 = vmatpush.bf16.msra.mxu2 %v8569_v36  ;;  %v12209_v35 = vld [vmem:[#allocation14 + $0x1e4] sm:$0xf0]  ;;  %v9005_v25 = vor.u32 %v12201_v22, %v9004_v19  ;;  %v9196_v22 = vld [vmem:[#allocation14 + $0x320] sm:$0xf] }
 0x1d3   :  { %2374 = vmatpush.bf16.msra.mxu3 %v8845_v34  ;;  %2402 = vmatpush.bf16.msrb.mxu1 %v8973_v23  ;;  %v9036_v34 = vld [vmem:[#allocation14 + $0x1e0] sm:$0xf]  ;;  %v9060_v23 = vld [vmem:[#allocation14 + $0x210] sm:$0xf] }
 0x1d4   :  { %1541 = vmatmul.bf16.vlgmr.msra.gmra.mxu0 %v13785_v41  ;;  %1569 = vmatmul.bf16.vlgmr.msra.gmra.mxu2 %v13785_v41  ;;  %v9037_v36 = vor.u32 %v12209_v35, %v9036_v34  ;;  %v12199_v34 = vld [vmem:[#allocation14 + $0x194] sm:$0xf0]  ;;  %v9052_v35 = vld [vmem:[#allocation14 + $0x200] sm:$0xf] }
 0x1d5   :  { %2387 = vmatpush.bf16.msrb.mxu0 %v8917_v37  ;;  %2415 = vmatpush.bf16.msrb.mxu2 %v9045_v24  ;;  %v9092_v37 = vld [vmem:[#allocation14 + $0x250] sm:$0xf]  ;;  %v12215_v24 = vld [vmem:[#allocation14 + $0x214] sm:$0xf0] }
 0x1d6   :  { %v9093_v40 = vor.u32 %v12223_v38, %v9092_v37  ;;  %v9061_v26 = vor.u32 %v12215_v24, %v9060_v23  ;;  %v12249_v23 = vld [vmem:[#allocation14 + $0x324] sm:$0xf0]  ;;  %v9268_v24 = vld [vmem:[#allocation14 + $0x3b0] sm:$0xf] }
 0x1d7   :  { %2375 = vmatpush.bf16.msra.mxu3 %v8837_v43  ;;  %v9165_v43 = vor.u32 %v12241_v42, %v9164_v39  ;;  %2403 = vmatpush.bf16.msrb.mxu1 %v8965_v33  ;;  %v8925_v33 = vor.u32 %v12181_v31, %v8924_v30  ;;  %v9124_v39 = vld [vmem:[#allocation14 + $0x290] sm:$0xf] }
 0x1d8   :  { %v9236_v42 = vld [vmem:[#allocation14 + $0x370] sm:$0xf] }
 0x1d9   :  { %2388 = vmatpush.bf16.msrb.mxu0 %v8909_v44  ;;  %2416 = vmatpush.bf16.msrb.mxu2 %v9037_v36  ;;  %v8956_v44 = vld [vmem:[#allocation14 + $0x140] sm:$0xf]  ;;  %v12213_v36 = vld [vmem:[#allocation14 + $0x204] sm:$0xf0] }
 0x1da   :  { %v8957_v47 = vor.u32 %v12189_v45, %v8956_v44  ;;  %v9053_v38 = vor.u32 %v12213_v36, %v9052_v35  ;;  %v12259_v44 = vld [vmem:[#allocation14 + $0x374] sm:$0xf0]  ;;  %v9260_v35 = vld [vmem:[#allocation14 + $0x3a0] sm:$0xf] }
 0x1db   :  { %2376 = vmatpush.bf16.msra.mxu3 %v8829_v49  ;;  %v9084_v49 = vld [vmem:[#allocation14 + $0x240] sm:$0xf]  ;;  %v9237_v45 = vor.u32 %v12259_v44, %v9236_v42  ;;  %v12265_v42 = vld [vmem:[#allocation14 + $0x3a4] sm:$0xf0] }
 0x1dc   :  { %2404 = vmatpush.bf16.msrb.mxu1 %v8957_v47  ;;  %v12197_v47 = vld [vmem:[#allocation14 + $0x184] sm:$0xf0] }
 0x1dd   :  { %2389 = vmatpush.bf16.msrb.mxu0 %v8901_v50  ;;  %v12221_v50 = vld [vmem:[#allocation14 + $0x244] sm:$0xf0]  ;;  %2417 = vmatpush.bf16.msrb.mxu2 %v9029_v51  ;;  %v8989_v48 = vor.u32 %v12197_v47, %v8988_v46  ;;  %v9228_v51 = vld [vmem:[#allocation14 + $0x360] sm:$0xf] }
 0x1de   :  { %v9085_v52 = vor.u32 %v12221_v50, %v9084_v49  ;;  %v9116_v49 = vld [vmem:[#allocation14 + $0x280] sm:$0xf]  ;;  %v12229_v50 = vld [vmem:[#allocation14 + $0x284] sm:$0xf0] }
 0x1df   :  { %2377 = vmatpush.bf16.msra.mxu3 %v8821_v55  ;;  %v9157_v55 = vor.u32 %v12239_v54, %v9156_v53  ;;  %v12257_v53 = vld [vmem:[#allocation14 + $0x364] sm:$0xf0]  ;;  %v9300_v54 = vld [vmem:[#allocation14 + $0x3f0] sm:$0xf] }
 0x1e1   :  { %2390 = vmatpush.bf16.msrb.mxu0 %v8893_v56  ;;  %v8948_v56 = vld [vmem:[#allocation14 + $0x130] sm:$0xf]  ;;  %2418 = vmatpush.bf16.msrb.mxu2 %v9021_v63  ;;  %v12273_v63 = vld [vmem:[#allocation14 + $0x3e4] sm:$0xf0] }
 0x1e2   :  { %v8949_v59 = vor.u32 %v12187_v57, %v8948_v56  ;;  %v9229_v56 = vor.u32 %v12257_v53, %v9228_v51  ;;  %v9180_v53 = vld [vmem:[#allocation14 + $0x300] sm:$0xf] }
 0x1e3   :  { %2378 = vmatpush.bf16.msra.mxu3 %v8813_v61  ;;  %v9076_v61 = vld [vmem:[#allocation14 + $0x230] sm:$0xf] }
 0x1e4   :  { %2405 = vmatpush.bf16.msrb.mxu1 %v8949_v59  ;;  %v9220_v59 = vld [vmem:[#allocation14 + $0x350] sm:$0xf] }
 0x1e5   :  { %2391 = vmatpush.bf16.msrb.mxu0 %v8885_v62  ;;  %v12219_v62 = vld [vmem:[#allocation14 + $0x234] sm:$0xf0]  ;;  %2419 = vmatpush.bf16.msrb.mxu2 %v9013_v10  ;;  %v695_v10 = vperm.slane %v13801_v6, 0 }
 0x1e6   :  { %v9077_v0 = vor.u32 %v12219_v62, %v9076_v61  ;;  %v9221_v61 = vor.u32 %v12255_v60, %v9220_v59  ;;  %v9292_v62 = vld [vmem:[#allocation14 + $0x3e0] sm:$0xf]  ;;  %v8918_v59 = vld [vmem:[#allocation14 + $0xf8] sm:$0xf0] }
 0x1e7   :  { %2379 = vmatpush.bf16.msra.mxu3 %v8805_v3  ;;  %v9149_v3 = vor.u32 %v12237_v2, %v9148_v1  ;;  %v9212_v1 = vld [vmem:[#allocation14 + $0x340] sm:$0xf]  ;;  %v12253_v2 = vld [vmem:[#allocation14 + $0x344] sm:$0xf0] }
 0x1e9   :  { %2392 = vmatpush.bf16.msrb.mxu0 %v8877_v4  ;;  %v8940_v4 = vld [vmem:[#allocation14 + $0x120] sm:$0xf]  ;;  %2420 = vmatpush.bf16.msrb.mxu2 %v9005_v25  ;;  %v696_v25 = vperm.slane %v13801_v6, 1 }
 0x1ea   :  { %v8941_v7 = vor.u32 %v12185_v5, %v8940_v4  ;;  %v9213_v4 = vor.u32 %v12253_v2, %v9212_v1  ;;  %v12271_v5 = vld [vmem:[#allocation14 + $0x3d4] sm:$0xf0] }
 0x1eb   :  { %2380 = vmatpush.bf16.msra.mxu3 %v8797_v11  ;;  %v12217_v11 = vld [vmem:[#allocation14 + $0x224] sm:$0xf0] }
 0x1ec   :  { %v9069_v14 = vor.u32 %v12217_v11, %v9068_v9  ;;  %2406 = vmatpush.bf16.msrb.mxu1 %v8941_v7  ;;  %v9204_v11 = vld [vmem:[#allocation14 + $0x330] sm:$0xf] }
 0x1ed   :  { %2393 = vmatpush.bf16.msrb.mxu0 %v8869_v12  ;;  %v9140_v12 = vld [vmem:[#allocation14 + $0x2b0] sm:$0xf] }
 0x1ef   :  { %2429 = vmatpush.bf16.msrb.mxu3 %v9109_v13  ;;  %v12235_v13 = vld [vmem:[#allocation14 + $0x2b4] sm:$0xf0] }
 0x1f0   :  { %v9141_v16 = vor.u32 %v12235_v13, %v9140_v12  ;;  %v12251_v12 = vld [vmem:[#allocation14 + $0x334] sm:$0xf0]  ;;  %v9276_v13 = vld [vmem:[#allocation14 + $0x3c0] sm:$0xf] }
 0x1f1   :  { %2394 = vmatpush.bf16.msrb.mxu0 %v8861_v18  ;;  %v12183_v18 = vld [vmem:[#allocation14 + $0x114] sm:$0xf0] }
 0x1f2   :  { %v8933_v20 = vor.u32 %v12183_v18, %v8932_v17  ;;  %v12269_v17 = vld [vmem:[#allocation14 + $0x3c4] sm:$0xf0] }
 0x1f3   :  { %2430 = vmatpush.bf16.msrb.mxu3 %v9101_v28  ;;  %v12233_v28 = vld [vmem:[#allocation14 + $0x2a4] sm:$0xf0]  ;;  %v9277_v18 = vor.u32 %v12269_v17, %v9276_v13  ;;  %v8910_v13 = vld [vmem:[#allocation14 + $0xe8] sm:$0xf0]  ;;  %v698_v17 = vperm.slane %v13801_v6, 3 }
 0x1f4   :  { %v9133_v29 = vor.u32 %v12233_v28, %v9132_v27  ;;  %2407 = vmatpush.bf16.msrb.mxu1 %v8933_v20  ;;  %v12267_v27 = vld [vmem:[#allocation14 + $0x3b4] sm:$0xf0] }
 0x1f5   :  { %2443 = vmatpush.bf16.msra.mxu0 %v9173_v32  ;;  %v8996_v32 = vld [vmem:[#allocation14 + $0x190] sm:$0xf]  ;;  %v9269_v30 = vor.u32 %v12267_v27, %v9268_v24  ;;  %v8830_v24 = vld [vmem:[#allocation14 + $0x48] sm:$0xf0] }
 0x1f6   :  { %v8997_v37 = vor.u32 %v12199_v34, %v8996_v32  ;;  %v12247_v34 = vld [vmem:[#allocation14 + $0x314] sm:$0xf0] }
 0x1f7   :  { %2431 = vmatpush.bf16.msrb.mxu3 %v9093_v40  ;;  %v12231_v40 = vld [vmem:[#allocation14 + $0x294] sm:$0xf0] }
 0x1f8   :  { %2408 = vmatpush.bf16.msrb.mxu1 %v8925_v33  ;;  %2421 = vmatpush.bf16.msrb.mxu2 %v8997_v37  ;;  %v9188_v33 = vld [vmem:[#allocation14 + $0x310] sm:$0xf] }
 0x1f9   :  { %2444 = vmatpush.bf16.msra.mxu0 %v9165_v43  ;;  %v9125_v43 = vor.u32 %v12231_v40, %v9124_v39  ;;  %v8854_v39 = vld [vmem:[#allocation14 + $0x78] sm:$0xf0]  ;;  %v9189_v40 = vor.u32 %v12247_v34, %v9188_v33  ;;  %v12154_v33 = vld [vmem:[#allocation14 + $0x34] sm:$0xf] }
 0x1fb   :  { %2432 = vmatpush.bf16.msrb.mxu3 %v9085_v52  ;;  %v9117_v52 = vor.u32 %v12229_v50, %v9116_v49  ;;  %v12160_v49 = vld [vmem:[#allocation14 + $0x64] sm:$0xf]  ;;  %v8846_v50 = vld [vmem:[#allocation14 + $0x68] sm:$0xf0] }
 0x1fc   :  { %2457 = vmatpush.bf16.msra.mxu1 %v9237_v45  ;;  %2422 = vmatpush.bf16.msrb.mxu2 %v8989_v48 }
 0x1fd   :  { %2445 = vmatpush.bf16.msra.mxu0 %v9157_v55  ;;  %v12275_v55 = vld [vmem:[#allocation14 + $0x3f4] sm:$0xf0] }
 0x1fe   :  { %v9301_v57 = vor.u32 %v12275_v55, %v9300_v54  ;;  %v12245_v54 = vld [vmem:[#allocation14 + $0x304] sm:$0xf0]  ;;  %v9252_v55 = vld [vmem:[#allocation14 + $0x390] sm:$0xf] }
 0x1ff   :  { %2433 = vmatpush.bf16.msrb.mxu3 %v9077_v0  ;;  %v9293_v0 = vor.u32 %v12273_v63, %v9292_v62  ;;  %v9181_v60 = vor.u32 %v12245_v54, %v9180_v53  ;;  %v12170_v53 = vld [vmem:[#allocation14 + $0xb4] sm:$0xf]  ;;  %v8886_v54 = vld [vmem:[#allocation14 + $0xb8] sm:$0xf0] }
 0x200   :  { %2471 = vmatpush.bf16.msra.mxu2 %v9301_v57  ;;  %2458 = vmatpush.bf16.msra.mxu1 %v9229_v56 }
 0x201   :  { %2446 = vmatpush.bf16.msra.mxu0 %v9149_v3  ;;  %v9284_v3 = vld [vmem:[#allocation14 + $0x3d0] sm:$0xf] }
 0x202   :  { %v9285_v9 = vor.u32 %v12271_v5, %v9284_v3  ;;  %v697_v3 = vperm.slane %v13801_v6, 2 }
 0x203   :  { %2434 = vmatpush.bf16.msrb.mxu3 %v9069_v14 }
 0x204   :  { %2472 = vmatpush.bf16.msra.mxu2 %v9293_v0  ;;  %2459 = vmatpush.bf16.msra.mxu1 %v9221_v61  ;;  %v12263_v61 = vld [vmem:[#allocation14 + $0x394] sm:$0xf0] }
 0x205   :  { %2447 = vmatpush.bf16.msra.mxu0 %v9141_v16  ;;  %v9205_v16 = vor.u32 %v12251_v12, %v9204_v11  ;;  %v9253_v0 = vor.u32 %v12263_v61, %v9252_v55  ;;  %v8838_v11 = vld [vmem:[#allocation14 + $0x58] sm:$0xf0]  ;;  %v12176_v12 = vld [vmem:[#allocation14 + $0xe4] sm:$0xf] }
 0x206   :  { %v9046_v61 = vld [vmem:[#allocation14 + $0x1f8] sm:$0xf0] }
 0x207   :  { %2435 = vmatpush.bf16.msrb.mxu3 %v9061_v26  ;;  %v9197_v26 = vor.u32 %v12249_v23, %v9196_v22  ;;  %v12156_v22 = vld [vmem:[#allocation14 + $0x44] sm:$0xf] }
 0x208   :  { %2473 = vmatpush.bf16.msra.mxu2 %v9285_v9  ;;  %2460 = vmatpush.bf16.msra.mxu1 %v9213_v4  ;;  %v8849_v4 = vor.u32 %v12160_v49, %v8846_v50  ;;  %v12261_v9 = vld [vmem:[#allocation14 + $0x384] sm:$0xf0]  ;;  %v12152_v50 = vld [vmem:[#allocation14 + $0x24] sm:$0xf] }
 0x209   :  { %2448 = vmatpush.bf16.msra.mxu0 %v9133_v29 }
 0x20b   :  { %2436 = vmatpush.bf16.msrb.mxu3 %v9053_v38  ;;  %v1388_v58 = vpop.f32.mrf.mxu1  ;;  %v12162_v38 = vld [vmem:[#allocation14 + $0x74] sm:$0xf] }
 0x20c   :  { %2474 = vmatpush.bf16.msra.mxu2 %v9277_v18  ;;  %2461 = vmatpush.bf16.msra.mxu1 %v9205_v16  ;;  %v1389_v36 = vadd.f32 %v1388_v58, %v696_v25  ;;  %v12178_v58 = vld [vmem:[#allocation14 + $0xf4] sm:$0xf] }
 0x20d   :  { %2449 = vmatpush.bf16.msra.mxu0 %v9125_v43  ;;  %v9261_v43 = vor.u32 %v12265_v42, %v9260_v35  ;;  %v8921_v5 = vor.u32 %v12178_v58, %v8918_v59  ;;  %v8974_v59 = vld [vmem:[#allocation14 + $0x168] sm:$0xf0] }
 0x210   :  { %2475 = vmatpush.bf16.msra.mxu2 %v9269_v30  ;;  %2462 = vmatpush.bf16.msra.mxu1 %v9197_v26  ;;  %v8902_v26 = vld [vmem:[#allocation14 + $0xd8] sm:$0xf0] }
 0x211   :  { %2450 = vmatpush.bf16.msra.mxu0 %v9117_v52  ;;  %v1360_v7 = vpop.f32.mrf.mxu3  ;;  %v1374_v8 = vpop.f32.mrf.mxu0  ;;  %v8857_v52 = vor.u32 %v12162_v38, %v8854_v39  ;;  %v8894_v38 = vld [vmem:[#allocation14 + $0xc8] sm:$0xf0]  ;;  %v12194_v39 = vld [vmem:[#allocation14 + $0x174] sm:$0xf] }
 0x212   :  { %v1361_v19 = vadd.f32 %v1360_v7, %v695_v10  ;;  %v12158_v7 = vld [vmem:[#allocation14 + $0x54] sm:$0xf] }
 0x213   :  { %v1390_v14 = vpop.f32.mrf.mxu1 }
 0x214   :  { %v1375_v31 = vadd.f32 %v1374_v8, %v1361_v19  ;;  %v1391_v45 = vadd.f32 %v1390_v14, %v696_v25  ;;  %2476 = vmatpush.bf16.msra.mxu2 %v9261_v43  ;;  %2463 = vmatpush.bf16.msra.mxu1 %v9189_v40  ;;  %v9244_v8 = vld [vmem:[#allocation14 + $0x380] sm:$0xf]  ;;  %v8841_v19 = vor.u32 %v12158_v7, %v8838_v11  ;;  %v12174_v25 = vld [vmem:[#allocation14 + $0xd4] sm:$0xf]  ;;  %v8982_v40 = vld [vmem:[#allocation14 + $0x178] sm:$0xf0] }
 0x215   :  { %v9245_v14 = vor.u32 %v12261_v9, %v9244_v8  ;;  %v8985_v55 = vor.u32 %v12194_v39, %v8982_v40  ;;  %v8806_v7 = vld [vmem:[#allocation14 + $0x18] sm:$0xf0]  ;;  %v12168_v9 = vld [vmem:[#allocation14 + $0xa4] sm:$0xf]  ;;  %v8878_v11 = vld [vmem:[#allocation14 + $0xa8] sm:$0xf0] }
 0x216   :  { %v1575_v44 = vmax.f32 %v1375_v31, 0.0  ;;  %v8833_v31 = vor.u32 %v12156_v22, %v8830_v24  ;;  %v12148_v24 = vld [vmem:[#allocation14 + $0x4] sm:$0xf] }
 0x217   :  { %v1402_v20 = vpop.f32.mrf.mxu2 }
 0x218   :  { %v1403_v46 = vadd.f32 %v1402_v20, %v1389_v36  ;;  %2477 = vmatpush.bf16.msra.mxu2 %v9253_v0  ;;  %2464 = vmatpush.bf16.msra.mxu1 %v9181_v60  ;;  %v8913_v20 = vor.u32 %v12176_v12, %v8910_v13  ;;  %v8822_v36 = vld [vmem:[#allocation14 + $0x38] sm:$0xf0]  ;;  %v12210_v60 = vld [vmem:[#allocation14 + $0x1f4] sm:$0xf] }
 0x219   :  { %v1362_v28 = vpop.f32.mrf.mxu3  ;;  %v1376_v29 = vpop.f32.mrf.mxu0  ;;  %v9049_v13 = vor.u32 %v12210_v60, %v9046_v61 }
 0x21a   :  { %v1363_v32 = vadd.f32 %v1362_v28, %v695_v10  ;;  %v1576_v1 = vmax.f32 %v1403_v46, 0.0 }
 0x21b   :  { %v1444_v48 = vpop.f32.mrf.mxu1 }
 0x21c   :  { %v1377_v37 = vadd.f32 %v1376_v29, %v1363_v32  ;;  %2478 = vmatpush.bf16.msra.mxu2 %v9245_v14  ;;  %v8905_v32 = vor.u32 %v12174_v25, %v8902_v26  ;;  %v1445_v34 = vadd.f32 %v1444_v48, %v698_v17  ;;  %v12190_v14 = vld [vmem:[#allocation14 + $0x154] sm:$0xf]  ;;  %v8798_v25 = vld [vmem:[#allocation14 + $0x8] sm:$0xf0] }
 0x21d   :  { %v8801_v39 = vor.u32 %v12148_v24, %v8798_v25 }
 0x21e   :  { %v1583_v47 = vmax.f32 %v1377_v37, 0.0  ;;  %v12172_v37 = vld [vmem:[#allocation14 + $0xc4] sm:$0xf] }
 0x21f   :  { %v1404_v51 = vpop.f32.mrf.mxu2  ;;  %v8897_v49 = vor.u32 %v12172_v37, %v8894_v38 }
 0x220   :  { %v13805_v56 = vpack.c.bf16 %v1583_v47, %v1575_v44  ;;  %v1405_v57 = vadd.f32 %v1404_v51, %v1391_v45  ;;  %v8825_v47 = vor.u32 %v12154_v33, %v8822_v36  ;;  %v8814_v51 = vld [vmem:[#allocation14 + $0x28] sm:$0xf0] }
 0x221   :  { %v1416_v62 = vpop.f32.mrf.mxu3  ;;  %v1430_v63 = vpop.f32.mrf.mxu0  ;;  %v8958_v33 = vld [vmem:[#allocation14 + $0x148] sm:$0xf0] }
 0x222   :  { %v1584_v2 = vmax.f32 %v1405_v57, 0.0  ;;  %2381 = vmatmul.bf16.vlgmr.msra.gmra.mxu3 %v13805_v56  ;;  %v1417_v16 = vadd.f32 %v1416_v62, %v697_v3  ;;  %v12192_v57 = vld [vmem:[#allocation14 + $0x164] sm:$0xf] }
 0x223   :  { %2485 = vmatpush.bf16.msra.mxu3 %v8857_v52  ;;  %v1446_v23 = vpop.f32.mrf.mxu1  ;;  %v8977_v12 = vor.u32 %v12192_v57, %v8974_v59 }
 0x224   :  { %v13809_v10 = vpack.c.bf16 %v1584_v2, %v1576_v1  ;;  %v1431_v29 = vadd.f32 %v1430_v63, %v1417_v16  ;;  %v1447_v43 = vadd.f32 %v1446_v23, %v698_v17  ;;  %v699_v1 = vperm.slane %v13801_v6, 4  ;;  %v8966_v16 = vld [vmem:[#allocation14 + $0x158] sm:$0xf0]  ;;  %v12208_v17 = vld [vmem:[#allocation14 + $0x1e4] sm:$0xf] }
 0x225   :  { %v8881_v23 = vor.u32 %v12168_v9, %v8878_v11  ;;  %v9174_v9 = vld [vmem:[#allocation14 + $0x2f8] sm:$0xf0]  ;;  %v12184_v11 = vld [vmem:[#allocation14 + $0x124] sm:$0xf] }
 0x226   :  { %2395 = vmatmul.bf16.vlgmr.msrb.gmra.mxu0 %v13809_v10  ;;  %v1577_v42 = vmax.f32 %v1431_v29, 0.0  ;;  %v8969_v29 = vor.u32 %v12190_v14, %v8966_v16  ;;  %v9014_v14 = vld [vmem:[#allocation14 + $0x1b8] sm:$0xf0] }
 0x227   :  { %v1458_v18 = vpop.f32.mrf.mxu2  ;;  %2486 = vmatpush.bf16.msra.mxu3 %v8849_v4  ;;  %2499 = vmatpush.bf16.msrb.mxu0 %v8921_v5  ;;  %v8889_v4 = vor.u32 %v12170_v53, %v8886_v54  ;;  %v12150_v5 = vld [vmem:[#allocation14 + $0x14] sm:$0xf]  ;;  %v8950_v53 = vld [vmem:[#allocation14 + $0x138] sm:$0xf0]  ;;  %v12204_v54 = vld [vmem:[#allocation14 + $0x1c4] sm:$0xf] }
 0x228   :  { %v1459_v44 = vadd.f32 %v1458_v18, %v1445_v34  ;;  %v9038_v18 = vld [vmem:[#allocation14 + $0x1e8] sm:$0xf0]  ;;  %v8809_v22 = vor.u32 %v12150_v5, %v8806_v7  ;;  %v12206_v34 = vld [vmem:[#allocation14 + $0x1d4] sm:$0xf] }
 0x229   :  { %v1418_v27 = vpop.f32.mrf.mxu3  ;;  %v1432_v28 = vpop.f32.mrf.mxu0 }
 0x22a   :  { %v1419_v30 = vadd.f32 %v1418_v27, %v697_v3  ;;  %v1578_v62 = vmax.f32 %v1459_v44, 0.0  ;;  %v8817_v3 = vor.u32 %v12152_v50, %v8814_v51  ;;  %v12166_v27 = vld [vmem:[#allocation14 + $0x94] sm:$0xf] }
 0x22b   :  { %2487 = vmatpush.bf16.msra.mxu3 %v8841_v19  ;;  %2500 = vmatpush.bf16.msrb.mxu0 %v8913_v20  ;;  %v1500_v63 = vpop.f32.mrf.mxu1  ;;  %v700_v20 = vperm.slane %v13801_v6, 5  ;;  %v12186_v51 = vld [vmem:[#allocation14 + $0x134] sm:$0xf] }
 0x22c   :  { %v1433_v35 = vadd.f32 %v1432_v28, %v1419_v30  ;;  %v8870_v28 = vld [vmem:[#allocation14 + $0x98] sm:$0xf0]  ;;  %v9041_v30 = vor.u32 %v12208_v17, %v9038_v18 }
 0x22d   :  { %v8873_v40 = vor.u32 %v12166_v27, %v8870_v28  ;;  %v12182_v28 = vld [vmem:[#allocation14 + $0x114] sm:$0xf] }
 0x22e   :  { %v1585_v45 = vmax.f32 %v1433_v35, 0.0  ;;  %v9030_v35 = vld [vmem:[#allocation14 + $0x1d8] sm:$0xf0] }
 0x22f   :  { %v1460_v46 = vpop.f32.mrf.mxu2  ;;  %2488 = vmatpush.bf16.msra.mxu3 %v8833_v31  ;;  %2501 = vmatpush.bf16.msrb.mxu0 %v8905_v32  ;;  %v12188_v31 = vld [vmem:[#allocation14 + $0x144] sm:$0xf]  ;;  %v9033_v50 = vor.u32 %v12206_v34, %v9030_v35  ;;  %v9086_v35 = vld [vmem:[#allocation14 + $0x248] sm:$0xf0] }
 0x230   :  { %v13813_v52 = vpack.c.bf16 %v1585_v45, %v1577_v42  ;;  %v1461_v48 = vadd.f32 %v1460_v46, %v1447_v43  ;;  %v12226_v42 = vld [vmem:[#allocation14 + $0x274] sm:$0xf]  ;;  %v9110_v43 = vld [vmem:[#allocation14 + $0x278] sm:$0xf0]  ;;  %v12164_v46 = vld [vmem:[#allocation14 + $0x84] sm:$0xf] }
 0x231   :  { %v1472_v58 = vpop.f32.mrf.mxu3  ;;  %v1486_v2 = vpop.f32.mrf.mxu0  ;;  %v9113_v59 = vor.u32 %v12226_v42, %v9110_v43  ;;  %v12220_v34 = vld [vmem:[#allocation14 + $0x244] sm:$0xf]  ;;  %v8926_v42 = vld [vmem:[#allocation14 + $0x108] sm:$0xf0]  ;;  %v12198_v43 = vld [vmem:[#allocation14 + $0x194] sm:$0xf] }
 0x232   :  { %v1586_v0 = vmax.f32 %v1461_v48, 0.0  ;;  %2409 = vmatmul.bf16.vlgmr.msrb.gmra.mxu1 %v13813_v52  ;;  %v1473_v19 = vadd.f32 %v1472_v58, %v699_v1  ;;  %v1501_v48 = vadd.f32 %v1500_v63, %v700_v20  ;;  %v8953_v63 = vor.u32 %v12186_v51, %v8950_v53  ;;  %v9150_v53 = vld [vmem:[#allocation14 + $0x2c8] sm:$0xf0] }
 0x233   :  { %2489 = vmatpush.bf16.msra.mxu3 %v8825_v47  ;;  %2502 = vmatpush.bf16.msrb.mxu0 %v8897_v49  ;;  %v1502_v44 = vpop.f32.mrf.mxu1  ;;  %v8862_v47 = vld [vmem:[#allocation14 + $0x88] sm:$0xf0]  ;;  %v8961_v49 = vor.u32 %v12188_v31, %v8958_v33 }
 0x234   :  { %v13817_v8 = vpack.c.bf16 %v1586_v0, %v1578_v62  ;;  %2513 = vmatpush.bf16.msrb.mxu1 %v8985_v55  ;;  %v1487_v36 = vadd.f32 %v1486_v2, %v1473_v19  ;;  %v9022_v55 = vld [vmem:[#allocation14 + $0x1c8] sm:$0xf0]  ;;  %v1503_v60 = vadd.f32 %v1502_v44, %v700_v20  ;;  %v8865_v62 = vor.u32 %v12164_v46, %v8862_v47  ;;  %v12224_v2 = vld [vmem:[#allocation14 + $0x264] sm:$0xf]  ;;  %v12222_v20 = vld [vmem:[#allocation14 + $0x254] sm:$0xf] }
 0x235   :  { %v9025_v5 = vor.u32 %v12204_v54, %v9022_v55  ;;  %v9006_v31 = vld [vmem:[#allocation14 + $0x1a8] sm:$0xf0]  ;;  %v8998_v44 = vld [vmem:[#allocation14 + $0x198] sm:$0xf0]  ;;  %v12218_v47 = vld [vmem:[#allocation14 + $0x234] sm:$0xf] }
 0x236   :  { %2423 = vmatmul.bf16.vlgmr.msrb.gmra.mxu2 %v13817_v8  ;;  %v1579_v57 = vmax.f32 %v1487_v36, 0.0  ;;  %v12238_v36 = vld [vmem:[#allocation14 + $0x2d4] sm:$0xf]  ;;  %v9001_v54 = vor.u32 %v12198_v43, %v8998_v44  ;;  %v9118_v44 = vld [vmem:[#allocation14 + $0x288] sm:$0xf0] }
 0x237   :  { %2490 = vmatpush.bf16.msra.mxu3 %v8817_v3  ;;  %2503 = vmatpush.bf16.msrb.mxu0 %v8889_v4  ;;  %v1514_v26 = vpop.f32.mrf.mxu2  ;;  %v9102_v3 = vld [vmem:[#allocation14 + $0x268] sm:$0xf0]  ;;  %v12242_v4 = vld [vmem:[#allocation14 + $0x2f4] sm:$0xf] }
 0x238   :  { %2514 = vmatpush.bf16.msrb.mxu1 %v8977_v12  ;;  %2527 = vmatpush.bf16.msrb.mxu2 %v9049_v13  ;;  %v1515_v61 = vadd.f32 %v1514_v26, %v1501_v48  ;;  %v8942_v12 = vld [vmem:[#allocation14 + $0x128] sm:$0xf0]  ;;  %v12202_v13 = vld [vmem:[#allocation14 + $0x1b4] sm:$0xf]  ;;  %v9105_v18 = vor.u32 %v12224_v2, %v9102_v3  ;;  %v9177_v19 = vor.u32 %v12242_v4, %v9174_v9  ;;  %v12236_v48 = vld [vmem:[#allocation14 + $0x2c4] sm:$0xf] }
 0x239   :  { %v1474_v32 = vpop.f32.mrf.mxu3  ;;  %v1488_v38 = vpop.f32.mrf.mxu0  ;;  %v8945_v24 = vor.u32 %v12184_v11, %v8942_v12  ;;  %v9166_v26 = vld [vmem:[#allocation14 + $0x2e8] sm:$0xf0]  ;;  %v9017_v27 = vor.u32 %v12202_v13, %v9014_v14  ;;  %v12234_v3 = vld [vmem:[#allocation14 + $0x2b4] sm:$0xf]  ;;  %v9142_v4 = vld [vmem:[#allocation14 + $0x2b8] sm:$0xf0] }
 0x23a   :  { %v1475_v37 = vadd.f32 %v1474_v32, %v699_v1  ;;  %v1580_v16 = vmax.f32 %v1515_v61, 0.0  ;;  %v9070_v2 = vld [vmem:[#allocation14 + $0x228] sm:$0xf0]  ;;  %v9145_v11 = vor.u32 %v12234_v3, %v9142_v4  ;;  %v12214_v12 = vld [vmem:[#allocation14 + $0x214] sm:$0xf]  ;;  %v702_v14 = vperm.slane %v13801_v6, 7 }
 0x23b   :  { %2491 = vmatpush.bf16.msra.mxu3 %v8809_v22  ;;  %2504 = vmatpush.bf16.msrb.mxu0 %v8881_v23  ;;  %v9094_v22 = vld [vmem:[#allocation14 + $0x258] sm:$0xf0]  ;;  %v12240_v23 = vld [vmem:[#allocation14 + $0x2e4] sm:$0xf]  ;;  %v12270_v3 = vld [vmem:[#allocation14 + $0x3d4] sm:$0xf] }
 0x23c   :  { %v1489_v45 = vadd.f32 %v1488_v38, %v1475_v37  ;;  %2515 = vmatpush.bf16.msrb.mxu1 %v8969_v29  ;;  %2528 = vmatpush.bf16.msrb.mxu2 %v9041_v30  ;;  %v8934_v29 = vld [vmem:[#allocation14 + $0x118] sm:$0xf0]  ;;  %v12200_v30 = vld [vmem:[#allocation14 + $0x1a4] sm:$0xf]  ;;  %v9097_v32 = vor.u32 %v12222_v20, %v9094_v22  ;;  %v9169_v33 = vor.u32 %v12240_v23, %v9166_v26  ;;  %v9054_v23 = vld [vmem:[#allocation14 + $0x208] sm:$0xf0] }
 0x23d   :  { %v8937_v37 = vor.u32 %v12182_v28, %v8934_v29  ;;  %v9158_v38 = vld [vmem:[#allocation14 + $0x2d8] sm:$0xf0]  ;;  %v12212_v22 = vld [vmem:[#allocation14 + $0x204] sm:$0xf]  ;;  %v12230_v28 = vld [vmem:[#allocation14 + $0x294] sm:$0xf] }
 0x23e   :  { %v1587_v58 = vmax.f32 %v1489_v45, 0.0  ;;  %v9089_v45 = vor.u32 %v12220_v34, %v9086_v35  ;;  %v9161_v46 = vor.u32 %v12238_v36, %v9158_v38  ;;  %v9062_v13 = vld [vmem:[#allocation14 + $0x218] sm:$0xf0] }
 0x23f   :  { %2492 = vmatpush.bf16.msra.mxu3 %v8801_v39  ;;  %2505 = vmatpush.bf16.msrb.mxu0 %v8873_v40  ;;  %v1516_v1 = vpop.f32.mrf.mxu2  ;;  %v9009_v39 = vor.u32 %v12200_v30, %v9006_v31  ;;  %v12180_v40 = vld [vmem:[#allocation14 + $0x104] sm:$0xf]  ;;  %v12258_v31 = vld [vmem:[#allocation14 + $0x374] sm:$0xf]  ;;  %v9286_v4 = vld [vmem:[#allocation14 + $0x3d8] sm:$0xf0] }
 0x240   :  { %v13821_v0 = vpack.c.bf16 %v1587_v58, %v1579_v57  ;;  %2516 = vmatpush.bf16.msrb.mxu1 %v8961_v49  ;;  %2529 = vmatpush.bf16.msrb.mxu2 %v9033_v50  ;;  %v1517_v7 = vadd.f32 %v1516_v1, %v1503_v60  ;;  %v9078_v49 = vld [vmem:[#allocation14 + $0x238] sm:$0xf0]  ;;  %v8929_v50 = vor.u32 %v12180_v40, %v8926_v42  ;;  %v12196_v58 = vld [vmem:[#allocation14 + $0x184] sm:$0xf]  ;;  %v701_v60 = vperm.slane %v13801_v6, 6 }
 0x241   :  { %v9081_v61 = vor.u32 %v12218_v47, %v9078_v49  ;;  %v12216_v1 = vld [vmem:[#allocation14 + $0x224] sm:$0xf]  ;;  %v9126_v6 = vld [vmem:[#allocation14 + $0x298] sm:$0xf0]  ;;  %v12274_v47 = vld [vmem:[#allocation14 + $0x3f4] sm:$0xf] }
 0x242   :  { %2437 = vmatmul.bf16.vlgmr.msrb.gmra.mxu3 %v13821_v0  ;;  %v1588_v17 = vmax.f32 %v1517_v7, 0.0  ;;  %v9073_v7 = vor.u32 %v12216_v1, %v9070_v2  ;;  %v9129_v38 = vor.u32 %v12230_v28, %v9126_v6  ;;  %v12228_v40 = vld [vmem:[#allocation14 + $0x284] sm:$0xf]  ;;  %v9302_v49 = vld [vmem:[#allocation14 + $0x3f8] sm:$0xf0] }
 0x243   :  { %2541 = vmatpush.bf16.msrb.mxu3 %v9113_v59  ;;  %2506 = vmatpush.bf16.msrb.mxu0 %v8865_v62  ;;  %v8990_v59 = vld [vmem:[#allocation14 + $0x188] sm:$0xf0]  ;;  %v9153_v62 = vor.u32 %v12236_v48, %v9150_v53  ;;  %v9121_v48 = vor.u32 %v12228_v40, %v9118_v44  ;;  %v12252_v1 = vld [vmem:[#allocation14 + $0x344] sm:$0xf] }
 0x244   :  { %2517 = vmatpush.bf16.msrb.mxu1 %v8953_v63  ;;  %2530 = vmatpush.bf16.msrb.mxu2 %v9025_v5  ;;  %v13824_v25 = vpack.c.bf16 %v1588_v17, %v1580_v16  ;;  %v8993_v63 = vor.u32 %v12196_v58, %v8990_v59  ;;  %v12232_v16 = vld [vmem:[#allocation14 + $0x2a4] sm:$0xf]  ;;  %v9134_v17 = vld [vmem:[#allocation14 + $0x2a8] sm:$0xf0]  ;;  %v9222_v58 = vld [vmem:[#allocation14 + $0x358] sm:$0xf0] }
 0x245   :  { %v12272_v59 = vld [vmem:[#allocation14 + $0x3e4] sm:$0xf]  ;;  %v9214_v2 = vld [vmem:[#allocation14 + $0x348] sm:$0xf0] }
 0x246   :  { %2451 = vmatmul.bf16.vlgmr.msra.gmra.mxu0 %v13824_v25  ;;  %v9182_v28 = vld [vmem:[#allocation14 + $0x308] sm:$0xf0]  ;;  %v12288_v40 = vld [vmem:[#allocation17 + $0x64] sm:$0xf] }
 0x247   :  { %2542 = vmatpush.bf16.msrb.mxu3 %v9105_v18  ;;  %2555 = vmatpush.bf16.msra.mxu0 %v9177_v19 }
 0x248   :  { %2518 = vmatpush.bf16.msrb.mxu1 %v8945_v24  ;;  %2531 = vmatpush.bf16.msrb.mxu2 %v9017_v27  ;;  %v9137_v27 = vor.u32 %v12232_v16, %v9134_v17  ;;  %v9198_v16 = vld [vmem:[#allocation14 + $0x328] sm:$0xf0]  ;;  %v12266_v17 = vld [vmem:[#allocation14 + $0x3b4] sm:$0xf] }
 0x24b   :  { %2543 = vmatpush.bf16.msrb.mxu3 %v9097_v32  ;;  %2556 = vmatpush.bf16.msra.mxu0 %v9169_v33  ;;  %v1556_v51 = vpop.f32.mrf.mxu1  ;;  %v9238_v32 = vld [vmem:[#allocation14 + $0x378] sm:$0xf0]  ;;  %v9057_v33 = vor.u32 %v12212_v22, %v9054_v23  ;;  %v12264_v22 = vld [vmem:[#allocation14 + $0x3a4] sm:$0xf]  ;;  %v9262_v23 = vld [vmem:[#allocation14 + $0x3a8] sm:$0xf0] }
 0x24c   :  { %2519 = vmatpush.bf16.msrb.mxu1 %v8937_v37  ;;  %2532 = vmatpush.bf16.msrb.mxu2 %v9009_v39  ;;  %v1557_v29 = vadd.f32 %v1556_v51, %v702_v14  ;;  %v9241_v39 = vor.u32 %v12258_v31, %v9238_v32  ;;  %v12260_v31 = vld [vmem:[#allocation14 + $0x384] sm:$0xf]  ;;  %v9246_v32 = vld [vmem:[#allocation14 + $0x388] sm:$0xf0] }
 0x24f   :  { %2544 = vmatpush.bf16.msrb.mxu3 %v9089_v45  ;;  %2557 = vmatpush.bf16.msra.mxu0 %v9161_v46  ;;  %v12256_v45 = vld [vmem:[#allocation14 + $0x364] sm:$0xf]  ;;  %v9230_v46 = vld [vmem:[#allocation14 + $0x368] sm:$0xf0] }
 0x250   :  { %2520 = vmatpush.bf16.msrb.mxu1 %v8929_v50  ;;  %2533 = vmatpush.bf16.msrb.mxu2 %v9001_v54  ;;  %v9233_v53 = vor.u32 %v12256_v45, %v9230_v46  ;;  %v9348_v46 = vld [vmem:[#allocation17 + $0x50] sm:$0xf] }
 0x251   :  { %v1528_v55 = vpop.f32.mrf.mxu3  ;;  %v1542_v57 = vpop.f32.mrf.mxu0 }
 0x252   :  { %2493 = vmatmul.bf16.vlgmr.msra.gmra.mxu3 %v13805_v56  ;;  %v1529_v5 = vadd.f32 %v1528_v55, %v701_v60  ;;  %v9065_v56 = vor.u32 %v12214_v12, %v9062_v13  ;;  %v9305_v55 = vor.u32 %v12274_v47, %v9302_v49  ;;  %v12286_v47 = vld [vmem:[#allocation17 + $0x54] sm:$0xf] }
 0x253   :  { %2545 = vmatpush.bf16.msrb.mxu3 %v9081_v61  ;;  %2558 = vmatpush.bf16.msra.mxu0 %v9153_v62  ;;  %v1558_v24 = vpop.f32.mrf.mxu1 }
 0x254   :  { %2534 = vmatpush.bf16.msrb.mxu2 %v8993_v63  ;;  %v1543_v19 = vadd.f32 %v1542_v57, %v1529_v5  ;;  %v1559_v35 = vadd.f32 %v1558_v24, %v702_v14  ;;  %v12254_v57 = vld [vmem:[#allocation14 + $0x354] sm:$0xf]  ;;  %v9217_v63 = vor.u32 %v12252_v1, %v9214_v2  ;;  %v9289_v5 = vor.u32 %v12270_v3, %v9286_v4  ;;  %v12248_v14 = vld [vmem:[#allocation14 + $0x324] sm:$0xf]  ;;  %v12281_v4 = vld [vmem:[#allocation17 + $0x24] sm:$0xf0] }
 0x255   :  { %v9225_v61 = vor.u32 %v12254_v57, %v9222_v58  ;;  %v9342_v57 = vld [vmem:[#allocation17 + $0x48] sm:$0xf0]  ;;  %v9332_v58 = vld [vmem:[#allocation17 + $0x30] sm:$0xf]  ;;  %v9324_v3 = vld [vmem:[#allocation17 + $0x20] sm:$0xf] }
 0x256   :  { %2507 = vmatmul.bf16.vlgmr.msrb.gmra.mxu0 %v13809_v10  ;;  %v1581_v34 = vmax.f32 %v1543_v19, 0.0 }
 0x257   :  { %v1570_v9 = vpop.f32.mrf.mxu2  ;;  %2546 = vmatpush.bf16.msrb.mxu3 %v9073_v7  ;;  %2559 = vmatpush.bf16.msra.mxu0 %v9145_v11  ;;  %v12250_v7 = vld [vmem:[#allocation14 + $0x334] sm:$0xf]  ;;  %v9278_v11 = vld [vmem:[#allocation14 + $0x3c8] sm:$0xf0] }
 0x258   :  { %v1571_v36 = vadd.f32 %v1570_v9, %v1557_v29  ;;  %v12268_v9 = vld [vmem:[#allocation14 + $0x3c4] sm:$0xf]  ;;  %v12262_v29 = vld [vmem:[#allocation14 + $0x394] sm:$0xf] }
 0x259   :  { %v1530_v18 = vpop.f32.mrf.mxu3  ;;  %v1544_v26 = vpop.f32.mrf.mxu0  ;;  %v9281_v13 = vor.u32 %v12268_v9, %v9278_v11  ;;  %v12279_v9 = vld [vmem:[#allocation17 + $0x14] sm:$0xf0] }
 0x25a   :  { %v1531_v20 = vadd.f32 %v1530_v18, %v701_v60  ;;  %v1582_v50 = vmax.f32 %v1571_v36, 0.0  ;;  %v9294_v60 = vld [vmem:[#allocation14 + $0x3e8] sm:$0xf0]  ;;  %v9270_v18 = vld [vmem:[#allocation14 + $0x3b8] sm:$0xf0] }
 0x25b   :  { %2547 = vmatpush.bf16.msrb.mxu3 %v9065_v56  ;;  %2560 = vmatpush.bf16.msra.mxu0 %v9137_v27  ;;  %v9297_v62 = vor.u32 %v12272_v59, %v9294_v60  ;;  %v9273_v19 = vor.u32 %v12266_v17, %v9270_v18  ;;  %v9190_v56 = vld [vmem:[#allocation14 + $0x318] sm:$0xf0]  ;;  %v12244_v27 = vld [vmem:[#allocation14 + $0x304] sm:$0xf]  ;;  %v12277_v18 = vld [vmem:[#allocation17 + $0x4] sm:$0xf0] }
 0x25c   :  { %v1545_v30 = vadd.f32 %v1544_v26, %v1531_v20  ;;  %v12246_v20 = vld [vmem:[#allocation14 + $0x314] sm:$0xf]  ;;  %v9265_v26 = vor.u32 %v12264_v22, %v9262_v23  ;;  %v12283_v59 = vld [vmem:[#allocation17 + $0x34] sm:$0xf0]  ;;  %v9308_v17 = vld [vmem:[#allocation17] sm:$0xf] }
 0x25d   :  { %v9193_v24 = vor.u32 %v12246_v20, %v9190_v56  ;;  %v9333_v1 = vor.u32 %v12283_v59, %v9332_v58  ;;  %v9310_v20 = vld [vmem:[#allocation17 + $0x8] sm:$0xf0]  ;;  %v9660_v56 = vld [vmem:[#allocation10 + $0x560] sm:$0xf] }
 0x25e   :  { %v1589_v37 = vmax.f32 %v1545_v30, 0.0  ;;  %v9254_v30 = vld [vmem:[#allocation14 + $0x398] sm:$0xf0]  ;;  %v12368_v22 = vld [vmem:[#allocation10 + $0x5bc] sm:$0xf0] }
 0x25f   :  { %v1572_v10 = vpop.f32.mrf.mxu2  ;;  %2548 = vmatpush.bf16.msrb.mxu3 %v9057_v33  ;;  %2561 = vmatpush.bf16.msra.mxu0 %v9129_v38  ;;  %v9257_v6 = vor.u32 %v12262_v29, %v9254_v30  ;;  %v9249_v33 = vor.u32 %v12260_v31, %v9246_v32  ;;  %v12289_v38 = vld [vmem:[#allocation17 + $0x64] sm:$0xf0]  ;;  %v12307_v30 = vld [vmem:[#allocation17 + $0xf4] sm:$0xf0] }
 0x260   :  { %v13831_v42 = vpack.c.bf16 %v1589_v37, %v1581_v34  ;;  %v1573_v43 = vadd.f32 %v1572_v10, %v1559_v35  ;;  %v12291_v34 = vld [vmem:[#allocation17 + $0x74] sm:$0xf0]  ;;  %v12290_v35 = vld [vmem:[#allocation17 + $0x74] sm:$0xf]  ;;  %v9366_v37 = vld [vmem:[#allocation17 + $0x78] sm:$0xf0] }
 0x261   :  { %v9356_v10 = vld [vmem:[#allocation17 + $0x60] sm:$0xf]  ;;  %v9564_v59 = vld [vmem:[#allocation10 + $0x320] sm:$0xf] }
 0x262   :  { %v1590_v51 = vmax.f32 %v1573_v43, 0.0  ;;  %2465 = vmatmul.bf16.vlgmr.msra.gmra.mxu1 %v13831_v42  ;;  %2549 = vmatmul.bf16.vlgmr.msrb.gmra.mxu3 %v13821_v0  ;;  %v9206_v0 = vld [vmem:[#allocation14 + $0x338] sm:$0xf0]  ;;  %v9358_v43 = vld [vmem:[#allocation17 + $0x68] sm:$0xf0]  ;;  %v9357_v44 = vor.u32 %v12289_v38, %v9356_v10 }
 0x263   :  { %2569 = vmatpush.bf16.msra.mxu1 %v9241_v39  ;;  %2562 = vmatpush.bf16.msra.mxu0 %v9121_v48  ;;  %v9209_v12 = vor.u32 %v12250_v7, %v9206_v0  ;;  %v9369_v39 = vor.u32 %v12290_v35, %v9366_v37  ;;  %v9361_v45 = vor.u32 %v12288_v40, %v9358_v43  ;;  %v9340_v48 = vld [vmem:[#allocation17 + $0x40] sm:$0xf]  ;;  %v9326_v7 = vld [vmem:[#allocation17 + $0x28] sm:$0xf0]  ;;  %v9316_v0 = vld [vmem:[#allocation17 + $0x10] sm:$0xf] }
 0x264   :  { %v1598_v54 = vpack.c.bf16 %v1590_v51, %v1582_v50  ;;  %v9350_v50 = vld [vmem:[#allocation17 + $0x58] sm:$0xf0]  ;;  %v9420_v10 = vld [vmem:[#allocation17 + $0xe0] sm:$0xf]  ;;  %v12305_v38 = vld [vmem:[#allocation17 + $0xe4] sm:$0xf0] }
 0x265   :  { %v9353_v51 = vor.u32 %v12286_v47, %v9350_v50  ;;  %v9421_v40 = vor.u32 %v12305_v38, %v9420_v10  ;;  %v9422_v43 = vld [vmem:[#allocation17 + $0xe8] sm:$0xf0]  ;;  %v9412_v50 = vld [vmem:[#allocation17 + $0xd0] sm:$0xf] }
 0x266   :  { %2479 = vmatmul.bf16.vlgmr.msra.gmra.mxu2 %v1598_v54  ;;  %2563 = vmatmul.bf16.vlgmr.msra.gmra.mxu0 %v13824_v25  ;;  %v9201_v25 = vor.u32 %v12248_v14, %v9198_v16  ;;  %v9317_v14 = vor.u32 %v12279_v9, %v9316_v0  ;;  %v12348_v47 = vld [vmem:[#allocation10 + $0x3e4] sm:$0xf]  ;;  %v9532_v9 = vld [vmem:[#allocation10 + $0x260] sm:$0xf] }
 0x267   :  { %2570 = vmatpush.bf16.msra.mxu1 %v9233_v53  ;;  %2583 = vmatpush.bf16.msra.mxu2 %v9305_v55  ;;  %v12285_v53 = vld [vmem:[#allocation17 + $0x44] sm:$0xf0]  ;;  %v9406_v0 = vld [vmem:[#allocation17 + $0xc8] sm:$0xf0] }
 0x268   :  { %v9341_v55 = vor.u32 %v12285_v53, %v9340_v48  ;;  %v12303_v48 = vld [vmem:[#allocation17 + $0xd4] sm:$0xf0]  ;;  %v12302_v53 = vld [vmem:[#allocation17 + $0xd4] sm:$0xf]  ;;  %v12316_v38 = vld [vmem:[#allocation10 + $0xe4] sm:$0xf] }
 0x26b   :  { %2571 = vmatpush.bf16.msra.mxu1 %v9225_v61  ;;  %2584 = vmatpush.bf16.msra.mxu2 %v9297_v62  ;;  %v12282_v61 = vld [vmem:[#allocation17 + $0x34] sm:$0xf]  ;;  %v9334_v62 = vld [vmem:[#allocation17 + $0x38] sm:$0xf0] }
 0x26c   :  { %v9337_v2 = vor.u32 %v12282_v61, %v9334_v62  ;;  %v12340_v61 = vld [vmem:[#allocation10 + $0x324] sm:$0xf] }
 0x26f   :  { %2572 = vmatpush.bf16.msra.mxu1 %v9217_v63  ;;  %2585 = vmatpush.bf16.msra.mxu2 %v9289_v5  ;;  %v12280_v63 = vld [vmem:[#allocation17 + $0x24] sm:$0xf]  ;;  %v9325_v5 = vor.u32 %v12281_v4, %v9324_v3  ;;  %v9404_v4 = vld [vmem:[#allocation17 + $0xc0] sm:$0xf] }
 0x270   :  { %v9329_v11 = vor.u32 %v12280_v63, %v9326_v7  ;;  %v12301_v63 = vld [vmem:[#allocation17 + $0xc4] sm:$0xf0] }
 0x271   :  { %v9405_v7 = vor.u32 %v12301_v63, %v9404_v4  ;;  %v9374_v4 = vld [vmem:[#allocation17 + $0x88] sm:$0xf0]  ;;  %v9916_v63 = vld [vmem:[#allocation10 + $0xb60] sm:$0xf] }
 0x272   :  { %2521 = vmatmul.bf16.vlgmr.msrb.gmra.mxu1 %v13813_v52  ;;  %v9185_v52 = vor.u32 %v12244_v27, %v9182_v28  ;;  %v9662_v27 = vld [vmem:[#allocation10 + $0x5c0] sm:$0xf0]  ;;  %v9428_v28 = vld [vmem:[#allocation17 + $0xf0] sm:$0xf] }
 0x273   :  { %2573 = vmatpush.bf16.msra.mxu1 %v9209_v12  ;;  %2586 = vmatpush.bf16.msra.mxu2 %v9281_v13  ;;  %v12278_v12 = vld [vmem:[#allocation17 + $0x14] sm:$0xf]  ;;  %v9318_v13 = vld [vmem:[#allocation17 + $0x18] sm:$0xf0]  ;;  %v9429_v31 = vor.u32 %v12307_v30, %v9428_v28  ;;  %v9502_v30 = vld [vmem:[#allocation10 + $0x200] sm:$0xf0] }
 0x274   :  { %v9321_v16 = vor.u32 %v12278_v12, %v9318_v13 }
 0x275   :  { %2815 = vmatpush.bf16.msrb.mxu0 %v9429_v31  ;;  %v12297_v31 = vld [vmem:[#allocation17 + $0xa4] sm:$0xf0] }
 0x276   :  { %2535 = vmatmul.bf16.vlgmr.msrb.gmra.mxu2 %v13817_v8  ;;  %v9364_v8 = vld [vmem:[#allocation17 + $0x70] sm:$0xf] }
 0x277   :  { %2574 = vmatpush.bf16.msra.mxu1 %v9201_v25  ;;  %2587 = vmatpush.bf16.msra.mxu2 %v9273_v19  ;;  %v9365_v36 = vor.u32 %v12291_v34, %v9364_v8  ;;  %v12276_v25 = vld [vmem:[#allocation17 + $0x4] sm:$0xf]  ;;  %v9309_v19 = vor.u32 %v12277_v18, %v9308_v17  ;;  %v12356_v34 = vld [vmem:[#allocation10 + $0x4a4] sm:$0xf]  ;;  %v9396_v18 = vld [vmem:[#allocation17 + $0xb0] sm:$0xf] }
 0x278   :  { %v9313_v23 = vor.u32 %v12276_v25, %v9310_v20  ;;  %v12360_v8 = vld [vmem:[#allocation10 + $0x4fc] sm:$0xf0]  ;;  %v12299_v25 = vld [vmem:[#allocation17 + $0xb4] sm:$0xf0] }
 0x279   :  { %2801 = vmatpush.bf16.msra.mxu3 %v9365_v36  ;;  %v9630_v36 = vld [vmem:[#allocation10 + $0x500] sm:$0xf0]  ;;  %2816 = vmatpush.bf16.msrb.mxu0 %v9421_v40 }
 0x27a   :  { %v9633_v37 = vor.u32 %v12356_v34, %v9630_v36  ;;  %v9468_v34 = vld [vmem:[#allocation10 + $0xe0] sm:$0xf] }
 0x27b   :  { %2575 = vmatpush.bf16.msra.mxu1 %v9193_v24  ;;  %2588 = vmatpush.bf16.msra.mxu2 %v9265_v26  ;;  %v9661_v24 = vor.u32 %v12368_v22, %v9660_v56  ;;  %v12364_v26 = vld [vmem:[#allocation10 + $0x564] sm:$0xf]  ;;  %v9397_v56 = vor.u32 %v12299_v25, %v9396_v18  ;;  %v9398_v22 = vld [vmem:[#allocation17 + $0xb8] sm:$0xf0] }
 0x27c   :  { %v9665_v29 = vor.u32 %v12364_v26, %v9662_v27  ;;  %v12420_v18 = vld [vmem:[#allocation10 + $0xaa4] sm:$0xf] }
 0x27d   :  { %2802 = vmatpush.bf16.msra.mxu3 %v9357_v44  ;;  %v9596_v44 = vld [vmem:[#allocation10 + $0x3e0] sm:$0xf] }
 0x27f   :  { %2576 = vmatpush.bf16.msra.mxu1 %v9185_v52  ;;  %2589 = vmatpush.bf16.msra.mxu2 %v9257_v6  ;;  %v12306_v52 = vld [vmem:[#allocation17 + $0xf4] sm:$0xf]  ;;  %v9430_v6 = vld [vmem:[#allocation17 + $0xf8] sm:$0xf0] }
 0x280   :  { %v9433_v32 = vor.u32 %v12306_v52, %v9430_v6  ;;  %v9388_v6 = vld [vmem:[#allocation17 + $0xa0] sm:$0xf] }
 0x282   :  { %2577 = vmatmul.bf16.vlgmr.msra.gmra.mxu1 %v13831_v42  ;;  %v12287_v42 = vld [vmem:[#allocation17 + $0x54] sm:$0xf0] }
 0x283   :  { %2590 = vmatpush.bf16.msra.mxu2 %v9249_v33  ;;  %2829 = vmatpush.bf16.msrb.mxu1 %v9369_v39  ;;  %v9349_v49 = vor.u32 %v12287_v42, %v9348_v46  ;;  %v9628_v33 = vld [vmem:[#allocation10 + $0x4a0] sm:$0xf] }
 0x284   :  { %v9629_v35 = vor.u32 %v12360_v8, %v9628_v33  ;;  %v12304_v39 = vld [vmem:[#allocation17 + $0xe4] sm:$0xf]  ;;  %v9389_v33 = vor.u32 %v12297_v31, %v9388_v6  ;;  %v9390_v8 = vld [vmem:[#allocation17 + $0xa8] sm:$0xf0] }
 0x285   :  { %2803 = vmatpush.bf16.msra.mxu3 %v9349_v49  ;;  %v9425_v46 = vor.u32 %v12304_v39, %v9422_v43  ;;  %v9598_v49 = vld [vmem:[#allocation10 + $0x440] sm:$0xf0]  ;;  %v9380_v43 = vld [vmem:[#allocation17 + $0x90] sm:$0xf] }
 0x286   :  { %2591 = vmatmul.bf16.vlgmr.msra.gmra.mxu2 %v1598_v54  ;;  %v12284_v54 = vld [vmem:[#allocation17 + $0x44] sm:$0xf]  ;;  %v9470_v39 = vld [vmem:[#allocation10 + $0x140] sm:$0xf0] }
 0x287   :  { %2830 = vmatpush.bf16.msrb.mxu1 %v9361_v45  ;;  %v9345_v60 = vor.u32 %v12284_v54, %v9342_v57  ;;  %2843 = vmatpush.bf16.msrb.mxu2 %v9433_v32  ;;  %v12352_v45 = vld [vmem:[#allocation10 + $0x43c] sm:$0xf0]  ;;  %v9414_v54 = vld [vmem:[#allocation17 + $0xd8] sm:$0xf0]  ;;  %v9413_v57 = vor.u32 %v12303_v48, %v9412_v50  ;;  %v9473_v40 = vor.u32 %v12316_v38, %v9470_v39 }
 0x288   :  { %v9597_v42 = vor.u32 %v12352_v45, %v9596_v44  ;;  %v9417_v58 = vor.u32 %v12302_v53, %v9414_v54  ;;  %v12296_v32 = vld [vmem:[#allocation17 + $0xa4] sm:$0xf]  ;;  %v12295_v44 = vld [vmem:[#allocation17 + $0x94] sm:$0xf0]  ;;  %v12294_v45 = vld [vmem:[#allocation17 + $0x94] sm:$0xf] }
 0x289   :  { %2804 = vmatpush.bf16.msra.mxu3 %v9341_v55  ;;  %2817 = vmatpush.bf16.msrb.mxu0 %v9413_v57  ;;  %v12308_v53 = vld [vmem:[#allocation10 + $0x24] sm:$0xf]  ;;  %v13851_v57 = vld [vmem:[#allocation16] sm:$0x3] }
 0x28a   :  { %v9438_v54 = vld [vmem:[#allocation10 + $0x80] sm:$0xf0] }
 0x28b   :  { %2831 = vmatpush.bf16.msrb.mxu1 %v9353_v51  ;;  %v9601_v51 = vor.u32 %v12348_v47, %v9598_v49  ;;  %2844 = vmatpush.bf16.msrb.mxu2 %v9425_v46  ;;  %v9381_v46 = vor.u32 %v12295_v44, %v9380_v43  ;;  %v9436_v47 = vld [vmem:[#allocation10 + $0x20] sm:$0xf] }
 0x28c   :  { %v12312_v49 = vld [vmem:[#allocation10 + $0x7c] sm:$0xf0] }
 0x28d   :  { %2805 = vmatpush.bf16.msra.mxu3 %v9333_v1  ;;  %v9566_v1 = vld [vmem:[#allocation10 + $0x380] sm:$0xf0]  ;;  %2818 = vmatpush.bf16.msrb.mxu0 %v9405_v7  ;;  %v9437_v48 = vor.u32 %v12312_v49, %v9436_v47  ;;  %v1729_v7 = vperm.slane %v13851_v57, 0 }
 0x28f   :  { %2832 = vmatpush.bf16.msrb.mxu1 %v9345_v60  ;;  %v12344_v60 = vld [vmem:[#allocation10 + $0x37c] sm:$0xf0]  ;;  %2845 = vmatpush.bf16.msrb.mxu2 %v9417_v58 }
 0x290   :  { %v9565_v62 = vor.u32 %v12344_v60, %v9564_v59  ;;  %v9441_v60 = vor.u32 %v12308_v53, %v9438_v54 }
 0x291   :  { %2806 = vmatpush.bf16.msra.mxu3 %v9325_v5  ;;  %v12300_v5 = vld [vmem:[#allocation17 + $0xc4] sm:$0xf]  ;;  %2819 = vmatpush.bf16.msrb.mxu0 %v9397_v56  ;;  %v9886_v56 = vld [vmem:[#allocation10 + $0xb00] sm:$0xf0] }
 0x292   :  { %v9409_v12 = vor.u32 %v12300_v5, %v9406_v0  ;;  %v12432_v5 = vld [vmem:[#allocation10 + $0xbbc] sm:$0xf0] }
 0x293   :  { %2833 = vmatpush.bf16.msrb.mxu1 %v9337_v2  ;;  %v9569_v2 = vor.u32 %v12340_v61, %v9566_v1  ;;  %v9372_v61 = vld [vmem:[#allocation17 + $0x80] sm:$0xf]  ;;  %v12292_v1 = vld [vmem:[#allocation17 + $0x84] sm:$0xf] }
 0x294   :  { %2846 = vmatpush.bf16.msrb.mxu2 %v9409_v12  ;;  %v12428_v12 = vld [vmem:[#allocation10 + $0xb64] sm:$0xf] }
 0x295   :  { %2807 = vmatpush.bf16.msra.mxu3 %v9317_v14  ;;  %v12332_v14 = vld [vmem:[#allocation10 + $0x264] sm:$0xf]  ;;  %2820 = vmatpush.bf16.msrb.mxu0 %v9389_v33 }
 0x297   :  { %2834 = vmatpush.bf16.msrb.mxu1 %v9329_v11  ;;  %v12336_v11 = vld [vmem:[#allocation10 + $0x2bc] sm:$0xf0] }
 0x298   :  { %v9533_v13 = vor.u32 %v12336_v11, %v9532_v9  ;;  %v9377_v9 = vor.u32 %v12292_v1, %v9374_v4  ;;  %v9917_v11 = vor.u32 %v12432_v5, %v9916_v63 }
 0x299   :  { %2808 = vmatpush.bf16.msra.mxu3 %v9309_v19  ;;  %v12298_v19 = vld [vmem:[#allocation17 + $0xb4] sm:$0xf]  ;;  %2821 = vmatpush.bf16.msrb.mxu0 %v9381_v46 }
 0x29a   :  { %v9401_v27 = vor.u32 %v12298_v19, %v9398_v22 }
 0x29b   :  { %2835 = vmatpush.bf16.msrb.mxu1 %v9321_v16  ;;  %v9534_v16 = vld [vmem:[#allocation10 + $0x2c0] sm:$0xf0] }
 0x29c   :  { %v9537_v17 = vor.u32 %v12332_v14, %v9534_v16  ;;  %2847 = vmatpush.bf16.msrb.mxu2 %v9401_v27  ;;  %v9884_v16 = vld [vmem:[#allocation10 + $0xaa0] sm:$0xf] }
 0x29d   :  { %3647 = vmatpush.bf16.msrb.mxu3 %v9661_v24  ;;  %v12328_v24 = vld [vmem:[#allocation10 + $0x1fc] sm:$0xf0] }
 0x29f   :  { %2836 = vmatpush.bf16.msrb.mxu1 %v9313_v23  ;;  %v9500_v23 = vld [vmem:[#allocation10 + $0x1a0] sm:$0xf] }
 0x2a0   :  { %v9501_v28 = vor.u32 %v12328_v24, %v9500_v23  ;;  %v9889_v23 = vor.u32 %v12420_v18, %v9886_v56  ;;  %v9670_v18 = vld [vmem:[#allocation10 + $0x5c8] sm:$0xf0] }
 0x2a1   :  { %3648 = vmatpush.bf16.msrb.mxu3 %v9629_v35  ;;  %v12320_v35 = vld [vmem:[#allocation10 + $0x13c] sm:$0xf0] }
 0x2a2   :  { %v9469_v10 = vor.u32 %v12320_v35, %v9468_v34  ;;  %v12408_v35 = vld [vmem:[#allocation10 + $0x97c] sm:$0xf0] }
 0x2a3   :  { %3675 = vmatpush.bf16.msra.mxu1 %v9665_v29  ;;  %v13841_v3 = vpop.f32.mrf.mxu0  ;;  %v12324_v29 = vld [vmem:[#allocation10 + $0x1a4] sm:$0xf] }
 0x2a4   :  { %v9505_v52 = vor.u32 %v12324_v29, %v9502_v30  ;;  %v9852_v29 = vld [vmem:[#allocation10 + $0x9e0] sm:$0xf] }
 0x2a5   :  { %v13839_v55 = vpop.f32.mrf.mxu3  ;;  %3649 = vmatpush.bf16.msrb.mxu3 %v9597_v42  ;;  %v9382_v42 = vld [vmem:[#allocation17 + $0x98] sm:$0xf0]  ;;  %v12416_v30 = vld [vmem:[#allocation10 + $0xa3c] sm:$0xf0] }
 0x2a6   :  { %v2383_v25 = vadd.f32 %v13839_v55, %v1729_v7  ;;  %v9853_v31 = vor.u32 %v12416_v30, %v9852_v29 }
 0x2a7   :  { %3676 = vmatpush.bf16.msra.mxu1 %v9633_v37  ;;  %v9393_v37 = vor.u32 %v12296_v32, %v9390_v8  ;;  %v9854_v32 = vld [vmem:[#allocation10 + $0xa40] sm:$0xf0] }
 0x2a8   :  { %v2397_v6 = vadd.f32 %v13841_v3, %v2383_v25 }
 0x2a9   :  { %3650 = vmatpush.bf16.msrb.mxu3 %v9565_v62  ;;  %2848 = vmatpush.bf16.msrb.mxu2 %v9393_v37  ;;  %v12293_v62 = vld [vmem:[#allocation17 + $0x84] sm:$0xf0] }
 0x2aa   :  { %v12404_v37 = vld [vmem:[#allocation10 + $0x924] sm:$0xf] }
 0x2ab   :  { %3677 = vmatpush.bf16.msra.mxu1 %v9601_v51  ;;  %v13847_v36 = vpop.f32.mrf.mxu0  ;;  %v9385_v51 = vor.u32 %v12294_v45, %v9382_v42  ;;  %v12396_v42 = vld [vmem:[#allocation10 + $0x864] sm:$0xf] }
 0x2ad   :  { %3651 = vmatpush.bf16.msrb.mxu3 %v9533_v13  ;;  %v13845_v26 = vpop.f32.mrf.mxu3  ;;  %2849 = vmatpush.bf16.msrb.mxu2 %v9385_v51  ;;  %v9918_v13 = vld [vmem:[#allocation10 + $0xbc0] sm:$0xf0] }
 0x2ae   :  { %v9921_v14 = vor.u32 %v12428_v12, %v9918_v13  ;;  %v2385_v24 = vadd.f32 %v13845_v26, %v1729_v7  ;;  %v9820_v26 = vld [vmem:[#allocation10 + $0x920] sm:$0xf] }
 0x2af   :  { %3678 = vmatpush.bf16.msra.mxu1 %v9569_v2  ;;  %v13843_v20 = vpop.f32.mrf.mxu1  ;;  %v9373_v2 = vor.u32 %v12293_v62, %v9372_v61  ;;  %v9821_v39 = vor.u32 %v12408_v35, %v9820_v26  ;;  %v12384_v13 = vld [vmem:[#allocation10 + $0x73c] sm:$0xf0]  ;;  %v1730_v26 = vperm.slane %v13851_v57, 1 }
 0x2b0   :  { %v2411_v55 = vadd.f32 %v13843_v20, %v2397_v6  ;;  %v2399_v8 = vadd.f32 %v13847_v36, %v2385_v24  ;;  %v9788_v20 = vld [vmem:[#allocation10 + $0x860] sm:$0xf] }
 0x2b1   :  { %3652 = vmatpush.bf16.msrb.mxu3 %v9501_v28  ;;  %2822 = vmatpush.bf16.msrb.mxu0 %v9373_v2  ;;  %v12400_v36 = vld [vmem:[#allocation10 + $0x8bc] sm:$0xf0]  ;;  %v9758_v2 = vld [vmem:[#allocation10 + $0x800] sm:$0xf0] }
 0x2b2   :  { %2850 = vmatpush.bf16.msrb.mxu2 %v9377_v9  ;;  %v9789_v51 = vor.u32 %v12400_v36, %v9788_v20  ;;  %v9668_v9 = vld [vmem:[#allocation10 + $0x568] sm:$0xf]  ;;  %v9692_v6 = vld [vmem:[#allocation10 + $0x620] sm:$0xf] }
 0x2b3   :  { %3679 = vmatpush.bf16.msra.mxu1 %v9537_v17  ;;  %v12424_v17 = vld [vmem:[#allocation10 + $0xafc] sm:$0xf0] }
 0x2b4   :  { %v9885_v19 = vor.u32 %v12424_v17, %v9884_v16  ;;  %v12365_v17 = vld [vmem:[#allocation10 + $0x56c] sm:$0xf] }
 0x2b5   :  { %3653 = vmatpush.bf16.msrb.mxu3 %v9469_v10  ;;  %3661 = vmatpush.bf16.msra.mxu0 %v9917_v11  ;;  %v12369_v11 = vld [vmem:[#allocation10 + $0x5c4] sm:$0xf0]  ;;  %v9673_v30 = vor.u32 %v12365_v17, %v9670_v18 }
 0x2b6   :  { %3689 = vmatpush.bf16.msra.mxu2 %v9921_v14  ;;  %v12380_v14 = vld [vmem:[#allocation10 + $0x6e4] sm:$0xf]  ;;  %v9669_v29 = vor.u32 %v12369_v11, %v9668_v9 }
 0x2b7   :  { %3680 = vmatpush.bf16.msra.mxu1 %v9505_v52  ;;  %v2412_v58 = vpop.f32.mrf.mxu1  ;;  %v12412_v52 = vld [vmem:[#allocation10 + $0x9e4] sm:$0xf] }
 0x2b8   :  { %v9857_v33 = vor.u32 %v12412_v52, %v9854_v32  ;;  %v2413_v10 = vadd.f32 %v2412_v58, %v2399_v8  ;;  %v9756_v58 = vld [vmem:[#allocation10 + $0x7a0] sm:$0xf]  ;;  %v12357_v52 = vld [vmem:[#allocation10 + $0x4ac] sm:$0xf]  ;;  %v12372_v8 = vld [vmem:[#allocation10 + $0x624] sm:$0xf] }
 0x2b9   :  { %v2424_v59 = vpop.f32.mrf.mxu2  ;;  %3654 = vmatpush.bf16.msrb.mxu3 %v9437_v48  ;;  %3662 = vmatpush.bf16.msra.mxu0 %v9885_v19  ;;  %v9790_v48 = vld [vmem:[#allocation10 + $0x8c0] sm:$0xf0] }
 0x2ba   :  { %3690 = vmatpush.bf16.msra.mxu2 %v9889_v23  ;;  %v2425_v38 = vadd.f32 %v2424_v59, %v2411_v55  ;;  %v9793_v53 = vor.u32 %v12396_v42, %v9790_v48  ;;  %v12392_v59 = vld [vmem:[#allocation10 + $0x7fc] sm:$0xf0]  ;;  %v9726_v19 = vld [vmem:[#allocation10 + $0x740] sm:$0xf0]  ;;  %v9572_v42 = vld [vmem:[#allocation10 + $0x328] sm:$0xf] }
 0x2bb   :  { %3681 = vmatpush.bf16.msra.mxu1 %v9473_v40  ;;  %v9822_v40 = vld [vmem:[#allocation10 + $0x980] sm:$0xf0]  ;;  %v9757_v1 = vor.u32 %v12392_v59, %v9756_v58  ;;  %v9729_v56 = vor.u32 %v12380_v14, %v9726_v19  ;;  %v12341_v48 = vld [vmem:[#allocation10 + $0x32c] sm:$0xf] }
 0x2bc   :  { %v9825_v44 = vor.u32 %v12404_v37, %v9822_v40  ;;  %v9604_v40 = vld [vmem:[#allocation10 + $0x3e8] sm:$0xf]  ;;  %v12325_v14 = vld [vmem:[#allocation10 + $0x1ac] sm:$0xf] }
 0x2bd   :  { %3663 = vmatpush.bf16.msra.mxu0 %v9853_v31  ;;  %v12376_v31 = vld [vmem:[#allocation10 + $0x67c] sm:$0xf0] }
 0x2be   :  { %3691 = vmatpush.bf16.msra.mxu2 %v9857_v33  ;;  %v9638_v33 = vld [vmem:[#allocation10 + $0x508] sm:$0xf0]  ;;  %v9693_v55 = vor.u32 %v12376_v31, %v9692_v6 }
 0x2bf   :  { %3682 = vmatpush.bf16.msra.mxu1 %v9441_v60  ;;  %v12388_v60 = vld [vmem:[#allocation10 + $0x7a4] sm:$0xf] }
 0x2c0   :  { %v9761_v4 = vor.u32 %v12388_v60, %v9758_v2  ;;  %v12337_v2 = vld [vmem:[#allocation10 + $0x2c4] sm:$0xf0] }
 0x2c1   :  { %v2426_v28 = vpop.f32.mrf.mxu2  ;;  %3664 = vmatpush.bf16.msra.mxu0 %v9821_v39  ;;  %v9641_v39 = vor.u32 %v12357_v52, %v9638_v33  ;;  %v12313_v33 = vld [vmem:[#allocation10 + $0x84] sm:$0xf0] }
 0x2c2   :  { %v2427_v3 = vadd.f32 %v2426_v28, %v2413_v10  ;;  %3692 = vmatpush.bf16.msra.mxu2 %v9825_v44  ;;  %v12361_v28 = vld [vmem:[#allocation10 + $0x504] sm:$0xf0] }
 0x2c3   :  { %v2452_v0 = vpop.f32.mrf.mxu0  ;;  %v12353_v44 = vld [vmem:[#allocation10 + $0x444] sm:$0xf0] }
 0x2c4   :  { %v9605_v57 = vor.u32 %v12353_v44, %v9604_v40 }
 0x2c5   :  { %v13849_v50 = vpop.f32.mrf.mxu3  ;;  %3665 = vmatpush.bf16.msra.mxu0 %v9789_v51  ;;  %v12345_v51 = vld [vmem:[#allocation10 + $0x384] sm:$0xf0] }
 0x2c6   :  { %v2439_v45 = vadd.f32 %v13849_v50, %v2425_v38  ;;  %3693 = vmatpush.bf16.msra.mxu2 %v9793_v53  ;;  %v9574_v53 = vld [vmem:[#allocation10 + $0x388] sm:$0xf0] }
 0x2c8   :  { %v2453_v54 = vadd.f32 %v2452_v0, %v2439_v45  ;;  %v9724_v0 = vld [vmem:[#allocation10 + $0x6e0] sm:$0xf]  ;;  %v9606_v45 = vld [vmem:[#allocation10 + $0x448] sm:$0xf0] }
 0x2c9   :  { %3666 = vmatpush.bf16.msra.mxu0 %v9757_v1  ;;  %v9725_v25 = vor.u32 %v12384_v13, %v9724_v0  ;;  %v9508_v13 = vld [vmem:[#allocation10 + $0x1a8] sm:$0xf] }
 0x2ca   :  { %3694 = vmatpush.bf16.msra.mxu2 %v9761_v4  ;;  %v12333_v4 = vld [vmem:[#allocation10 + $0x26c] sm:$0xf] }
 0x2cb   :  { %v2454_v34 = vpop.f32.mrf.mxu0 }
 0x2cd   :  { %v2440_v27 = vpop.f32.mrf.mxu3  ;;  %3667 = vmatpush.bf16.msra.mxu0 %v9725_v25 }
 0x2ce   :  { %v2441_v47 = vadd.f32 %v2440_v27, %v2427_v3  ;;  %v9636_v27 = vld [vmem:[#allocation10 + $0x4a8] sm:$0xf]  ;;  %3695 = vmatpush.bf16.msra.mxu2 %v9729_v56  ;;  %v12349_v3 = vld [vmem:[#allocation10 + $0x3ec] sm:$0xf] }
 0x2cf   :  { %v9637_v38 = vor.u32 %v12361_v28, %v9636_v27  ;;  %v9609_v36 = vor.u32 %v12349_v3, %v9606_v45  ;;  %v12317_v27 = vld [vmem:[#allocation10 + $0xec] sm:$0xf] }
 0x2d0   :  { %v2455_v62 = vadd.f32 %v2454_v34, %v2441_v47  ;;  %v9694_v34 = vld [vmem:[#allocation10 + $0x680] sm:$0xf0]  ;;  %v9478_v28 = vld [vmem:[#allocation10 + $0x148] sm:$0xf0] }
 0x2d1   :  { %v9697_v35 = vor.u32 %v12372_v8, %v9694_v34  ;;  %3668 = vmatpush.bf16.msra.mxu0 %v9693_v55  ;;  %v9481_v31 = vor.u32 %v12317_v27, %v9478_v28  ;;  %v12309_v8 = vld [vmem:[#allocation10 + $0x2c] sm:$0xf]  ;;  %v9828_v28 = vld [vmem:[#allocation10 + $0x928] sm:$0xf] }
 0x2d2   :  { %v9446_v34 = vld [vmem:[#allocation10 + $0x88] sm:$0xf0] }
 0x2d3   :  { %v13862_v61 = vpop.f32.mrf.mxu0  ;;  %3696 = vmatpush.bf16.msra.mxu2 %v9697_v35  ;;  %v9449_v44 = vor.u32 %v12309_v8, %v9446_v34  ;;  %v9550_v8 = vld [vmem:[#allocation10 + $0x2d0] sm:$0xf0] }
 0x2d5   :  { %v13860_v49 = vpop.f32.mrf.mxu3 }
 0x2db   :  { %v2510_v37 = vpop.f32.mrf.mxu0 }
 0x2df   :  { %v2466_v22 = vpop.f32.mrf.mxu1 }
 0x2e0   :  { %v2467_v50 = vadd.f32 %v2466_v22, %v2453_v54  ;;  %v2496_v22 = vpop.f32.mrf.mxu3 }
 0x2e1   :  { %v2497_v20 = vadd.f32 %v2496_v22, %v1730_v26  ;;  %v9476_v22 = vld [vmem:[#allocation10 + $0xe8] sm:$0xf] }
 0x2e3   :  { %v2511_v58 = vadd.f32 %v2510_v37, %v2497_v20  ;;  %v2564_v1 = vpop.f32.mrf.mxu0  ;;  %v12370_v37 = vld [vmem:[#allocation10 + $0x5cc] sm:$0xf0]  ;;  %v9924_v20 = vld [vmem:[#allocation10 + $0xb68] sm:$0xf] }
 0x2e7   :  { %v2468_v43 = vpop.f32.mrf.mxu1 }
 0x2e8   :  { %v2469_v63 = vadd.f32 %v2468_v43, %v2455_v62  ;;  %v2550_v47 = vpop.f32.mrf.mxu3  ;;  %v9577_v62 = vor.u32 %v12341_v48, %v9574_v53  ;;  %v12362_v48 = vld [vmem:[#allocation10 + $0x50c] sm:$0xf0]  ;;  %v12358_v53 = vld [vmem:[#allocation10 + $0x4b4] sm:$0xf] }
 0x2e9   :  { %v2480_v46 = vpop.f32.mrf.mxu2 }
 0x2ea   :  { %v2481_v5 = vadd.f32 %v2480_v46, %v2467_v50  ;;  %v2495_v46 = vadd.f32 %v13860_v49, %v1730_v26  ;;  %v9573_v50 = vor.u32 %v12345_v51, %v9572_v42  ;;  %v9540_v49 = vld [vmem:[#allocation10 + $0x268] sm:$0xf]  ;;  %v9676_v26 = vld [vmem:[#allocation10 + $0x570] sm:$0xf]  ;;  %v12429_v42 = vld [vmem:[#allocation10 + $0xb6c] sm:$0xf] }
 0x2eb   :  { %v9541_v0 = vor.u32 %v12337_v2, %v9540_v49  ;;  %v9677_v45 = vor.u32 %v12370_v37, %v9676_v26  ;;  %v9644_v51 = vld [vmem:[#allocation10 + $0x4b0] sm:$0xf]  ;;  %v12425_v49 = vld [vmem:[#allocation10 + $0xb04] sm:$0xf0] }
 0x2ec   :  { %v2597_v23 = vmax.f32 %v2481_v5, 0.0  ;;  %v2509_v54 = vadd.f32 %v13862_v61, %v2495_v46  ;;  %v9645_v2 = vor.u32 %v12362_v48, %v9644_v51  ;;  %v12401_v37 = vld [vmem:[#allocation10 + $0x8c4] sm:$0xf0]  ;;  %v12389_v51 = vld [vmem:[#allocation10 + $0x7ac] sm:$0xf] }
 0x2ed   :  { %v9766_v48 = vld [vmem:[#allocation10 + $0x808] sm:$0xf0] }
 0x2ef   :  { %v2522_v7 = vpop.f32.mrf.mxu1 }
 0x2f0   :  { %v2523_v59 = vadd.f32 %v2522_v7, %v2509_v54  ;;  %v12329_v7 = vld [vmem:[#allocation10 + $0x204] sm:$0xf0]  ;;  %v2552_v18 = vpop.f32.mrf.mxu3  ;;  %v9646_v54 = vld [vmem:[#allocation10 + $0x510] sm:$0xf0] }
 0x2f1   :  { %v2482_v12 = vpop.f32.mrf.mxu2  ;;  %v9509_v19 = vor.u32 %v12329_v7, %v9508_v13  ;;  %v9860_v7 = vld [vmem:[#allocation10 + $0x9e8] sm:$0xf] }
 0x2f2   :  { %v2483_v16 = vadd.f32 %v2482_v12, %v2469_v63  ;;  %v9542_v63 = vld [vmem:[#allocation10 + $0x2c8] sm:$0xf0] }
 0x2f3   :  { %v9545_v61 = vor.u32 %v12333_v4, %v9542_v63  ;;  %v9649_v4 = vor.u32 %v12358_v53, %v9646_v54  ;;  %v12421_v63 = vld [vmem:[#allocation10 + $0xaac] sm:$0xf]  ;;  %v9484_v53 = vld [vmem:[#allocation10 + $0xf0] sm:$0xf] }
 0x2f4   :  { %v2599_v24 = vmax.f32 %v2483_v16, 0.0  ;;  %v9510_v16 = vld [vmem:[#allocation10 + $0x208] sm:$0xf0]  ;;  %v12322_v54 = vld [vmem:[#allocation10 + $0x14c] sm:$0xf0] }
 0x2f5   :  { %v9513_v56 = vor.u32 %v12325_v14, %v9510_v16  ;;  %v12417_v14 = vld [vmem:[#allocation10 + $0xa44] sm:$0xf0] }
 0x2f6   :  { %v2601_v32 = vpack.c.bf16 %v2599_v24, %v2597_v23  ;;  %v12321_v24 = vld [vmem:[#allocation10 + $0x144] sm:$0xf0] }
 0x2f7   :  { %v2524_v43 = vpop.f32.mrf.mxu1  ;;  %v9477_v6 = vor.u32 %v12321_v24, %v9476_v22  ;;  %v12342_v22 = vld [vmem:[#allocation10 + $0x334] sm:$0xf]  ;;  %v9861_v24 = vor.u32 %v12417_v14, %v9860_v7  ;;  %v9686_v7 = vld [vmem:[#allocation10 + $0x5d8] sm:$0xf0] }
 0x2f8   :  { %2809 = vmatmul.bf16.vlgmr.msra.gmra.mxu3 %v2601_v32  ;;  %2837 = vmatmul.bf16.vlgmr.msrb.gmra.mxu1 %v2601_v32  ;;  %v2525_v5 = vadd.f32 %v2524_v43, %v2511_v58  ;;  %v9444_v32 = vld [vmem:[#allocation10 + $0x28] sm:$0xf] }
 0x2f9   :  { %3703 = vmatpush.bf16.msra.mxu3 %v9669_v29  ;;  %3731 = vmatpush.bf16.msrb.mxu1 %v9673_v30  ;;  %v2536_v10 = vpop.f32.mrf.mxu2  ;;  %v2566_v30 = vpop.f32.mrf.mxu0 }
 0x2fa   :  { %v2537_v9 = vadd.f32 %v2536_v10, %v2523_v59  ;;  %v12366_v10 = vld [vmem:[#allocation10 + $0x574] sm:$0xf] }
 0x2fc   :  { %v2551_v17 = vadd.f32 %v2550_v47, %v2537_v9  ;;  %v9926_v47 = vld [vmem:[#allocation10 + $0xbc8] sm:$0xf0]  ;;  %v9612_v9 = vld [vmem:[#allocation10 + $0x3f0] sm:$0xf] }
 0x2fd   :  { %3704 = vmatpush.bf16.msra.mxu3 %v9637_v38  ;;  %3732 = vmatpush.bf16.msrb.mxu1 %v9641_v39  ;;  %v9678_v38 = vld [vmem:[#allocation10 + $0x5d0] sm:$0xf0]  ;;  %v9445_v39 = vor.u32 %v12313_v33, %v9444_v32  ;;  %v9548_v32 = vld [vmem:[#allocation10 + $0x270] sm:$0xf] }
 0x2fe   :  { %v2565_v29 = vadd.f32 %v2564_v1, %v2551_v17  ;;  %v9681_v46 = vor.u32 %v12366_v10, %v9678_v38  ;;  %v12338_v33 = vld [vmem:[#allocation10 + $0x2cc] sm:$0xf0] }
 0x2ff   :  { %v2578_v11 = vpop.f32.mrf.mxu1  ;;  %v9549_v10 = vor.u32 %v12338_v33, %v9548_v32  ;;  %v12363_v32 = vld [vmem:[#allocation10 + $0x514] sm:$0xf0]  ;;  %v12359_v33 = vld [vmem:[#allocation10 + $0x4bc] sm:$0xf] }
 0x300   :  { %v2579_v35 = vadd.f32 %v2578_v11, %v2565_v29  ;;  %v12354_v11 = vld [vmem:[#allocation10 + $0x44c] sm:$0xf0]  ;;  %v12409_v29 = vld [vmem:[#allocation10 + $0x984] sm:$0xf0] }
 0x301   :  { %3705 = vmatpush.bf16.msra.mxu3 %v9605_v57  ;;  %3733 = vmatpush.bf16.msrb.mxu1 %v9609_v36  ;;  %v2538_v60 = vpop.f32.mrf.mxu2  ;;  %v12433_v57 = vld [vmem:[#allocation10 + $0xbc4] sm:$0xf0]  ;;  %v9613_v16 = vor.u32 %v12354_v11, %v9612_v9  ;;  %v9829_v34 = vor.u32 %v12409_v29, %v9828_v28  ;;  %v12314_v9 = vld [vmem:[#allocation10 + $0x8c] sm:$0xf0]  ;;  %v12310_v11 = vld [vmem:[#allocation10 + $0x34] sm:$0xf] }
 0x302   :  { %v2539_v12 = vadd.f32 %v2538_v60, %v2525_v5  ;;  %v9925_v60 = vor.u32 %v12433_v57, %v9924_v20  ;;  %v9894_v5 = vld [vmem:[#allocation10 + $0xb08] sm:$0xf0]  ;;  %v9764_v57 = vld [vmem:[#allocation10 + $0x7a8] sm:$0xf]  ;;  %v12434_v28 = vld [vmem:[#allocation10 + $0xbcc] sm:$0xf0] }
 0x303   :  { %v9897_v13 = vor.u32 %v12421_v63, %v9894_v5  ;;  %v9734_v63 = vld [vmem:[#allocation10 + $0x748] sm:$0xf0]  ;;  %v9452_v5 = vld [vmem:[#allocation10 + $0x30] sm:$0xf]  ;;  %v12430_v29 = vld [vmem:[#allocation10 + $0xb74] sm:$0xf] }
 0x304   :  { %v2553_v25 = vadd.f32 %v2552_v18, %v2539_v12  ;;  %v12350_v12 = vld [vmem:[#allocation10 + $0x3f4] sm:$0xf]  ;;  %v12413_v18 = vld [vmem:[#allocation10 + $0x9ec] sm:$0xf] }
 0x305   :  { %3706 = vmatpush.bf16.msra.mxu3 %v9573_v50  ;;  %3734 = vmatpush.bf16.msrb.mxu1 %v9577_v62  ;;  %v9929_v50 = vor.u32 %v12429_v42, %v9926_v47  ;;  %v9892_v62 = vld [vmem:[#allocation10 + $0xaa8] sm:$0xf] }
 0x306   :  { %v2567_v52 = vadd.f32 %v2566_v30, %v2553_v25  ;;  %v9862_v25 = vld [vmem:[#allocation10 + $0xa48] sm:$0xf0] }
 0x307   :  { %v2580_v55 = vpop.f32.mrf.mxu1  ;;  %v9865_v27 = vor.u32 %v12413_v18, %v9862_v25  ;;  %v9453_v18 = vor.u32 %v12314_v9, %v9452_v5  ;;  %v12339_v5 = vld [vmem:[#allocation10 + $0x2d4] sm:$0xf0]  ;;  %v12335_v9 = vld [vmem:[#allocation10 + $0x27c] sm:$0xf] }
 0x308   :  { %3655 = vmatmul.bf16.vlgmr.msrb.gmra.mxu3 %v13781_v21  ;;  %3683 = vmatmul.bf16.vlgmr.msra.gmra.mxu1 %v13781_v21  ;;  %v2581_v40 = vadd.f32 %v2580_v55, %v2567_v52  ;;  %v12334_v55 = vld [vmem:[#allocation10 + $0x274] sm:$0xf] }
 0x309   :  { %3707 = vmatpush.bf16.msra.mxu3 %v9541_v0  ;;  %3735 = vmatpush.bf16.msrb.mxu1 %v9545_v61  ;;  %v2592_v23 = vpop.f32.mrf.mxu2  ;;  %v9614_v0 = vld [vmem:[#allocation10 + $0x450] sm:$0xf0]  ;;  %v9893_v61 = vor.u32 %v12425_v49, %v9892_v62  ;;  %v9553_v38 = vor.u32 %v12334_v55, %v9550_v8  ;;  %v9732_v62 = vld [vmem:[#allocation10 + $0x6e8] sm:$0xf]  ;;  %v9654_v55 = vld [vmem:[#allocation10 + $0x518] sm:$0xf0] }
 0x30a   :  { %v2593_v43 = vadd.f32 %v2592_v23, %v2579_v35  ;;  %v9617_v17 = vor.u32 %v12350_v12, %v9614_v0  ;;  %v9582_v23 = vld [vmem:[#allocation10 + $0x390] sm:$0xf0]  ;;  %v9796_v35 = vld [vmem:[#allocation10 + $0x868] sm:$0xf]  ;;  %v9684_v0 = vld [vmem:[#allocation10 + $0x578] sm:$0xf] }
 0x30b   :  { %v9585_v52 = vor.u32 %v12342_v22, %v9582_v23  ;;  %v12385_v49 = vld [vmem:[#allocation10 + $0x744] sm:$0xf0]  ;;  %v9454_v12 = vld [vmem:[#allocation10 + $0x90] sm:$0xf0]  ;;  %v9702_v22 = vld [vmem:[#allocation10 + $0x688] sm:$0xf0] }
 0x30c   :  { %v2598_v58 = vmax.f32 %v2593_v43, 0.0  ;;  %v9516_v43 = vld [vmem:[#allocation10 + $0x1b0] sm:$0xf]  ;;  %v9733_v14 = vor.u32 %v12385_v49, %v9732_v62  ;;  %v9457_v25 = vor.u32 %v12310_v11, %v9454_v12  ;;  %v9558_v11 = vld [vmem:[#allocation10 + $0x2d8] sm:$0xf0] }
 0x30d   :  { %3708 = vmatpush.bf16.msra.mxu3 %v9509_v19  ;;  %3736 = vmatpush.bf16.msrb.mxu1 %v9513_v56  ;;  %v9580_v19 = vld [vmem:[#allocation10 + $0x330] sm:$0xf] }
 0x30e   :  { %v12346_v56 = vld [vmem:[#allocation10 + $0x38c] sm:$0xf0] }
 0x30f   :  { %v9581_v30 = vor.u32 %v12346_v56, %v9580_v19  ;;  %v12377_v19 = vld [vmem:[#allocation10 + $0x684] sm:$0xf0]  ;;  %v12373_v56 = vld [vmem:[#allocation10 + $0x62c] sm:$0xf]  ;;  %v12410_v62 = vld [vmem:[#allocation10 + $0x98c] sm:$0xf0] }
 0x311   :  { %3709 = vmatpush.bf16.msra.mxu3 %v9477_v6  ;;  %3737 = vmatpush.bf16.msrb.mxu1 %v9481_v31  ;;  %v2594_v3 = vpop.f32.mrf.mxu2  ;;  %v12405_v6 = vld [vmem:[#allocation10 + $0x92c] sm:$0xf] }
 0x312   :  { %v2595_v36 = vadd.f32 %v2594_v3, %v2581_v40  ;;  %v9830_v31 = vld [vmem:[#allocation10 + $0x988] sm:$0xf0]  ;;  %v12326_v3 = vld [vmem:[#allocation10 + $0x1b4] sm:$0xf] }
 0x313   :  { %v9833_v26 = vor.u32 %v12405_v6, %v9830_v31  ;;  %v9798_v40 = vld [vmem:[#allocation10 + $0x8c8] sm:$0xf0]  ;;  %v9705_v31 = vor.u32 %v12373_v56, %v9702_v22  ;;  %v9526_v56 = vld [vmem:[#allocation10 + $0x218] sm:$0xf0] }
 0x314   :  { %v2600_v59 = vmax.f32 %v2595_v36, 0.0  ;;  %v12393_v36 = vld [vmem:[#allocation10 + $0x804] sm:$0xf0] }
 0x315   :  { %3710 = vmatpush.bf16.msra.mxu3 %v9445_v39  ;;  %3738 = vmatpush.bf16.msrb.mxu1 %v9449_v44  ;;  %v12397_v39 = vld [vmem:[#allocation10 + $0x86c] sm:$0xf]  ;;  %v12330_v44 = vld [vmem:[#allocation10 + $0x20c] sm:$0xf0] }
 0x316   :  { %v2602_v1 = vpack.c.bf16 %v2600_v59, %v2598_v58  ;;  %v9801_v20 = vor.u32 %v12397_v39, %v9798_v40  ;;  %v9517_v42 = vor.u32 %v12330_v44, %v9516_v43  ;;  %v12318_v58 = vld [vmem:[#allocation10 + $0xf4] sm:$0xf]  ;;  %v9620_v40 = vld [vmem:[#allocation10 + $0x3f8] sm:$0xf]  ;;  %v12351_v44 = vld [vmem:[#allocation10 + $0x3fc] sm:$0xf] }
 0x317   :  { %v9486_v59 = vld [vmem:[#allocation10 + $0x150] sm:$0xf0]  ;;  %v12355_v43 = vld [vmem:[#allocation10 + $0x454] sm:$0xf0] }
 0x318   :  { %3711 = vmatmul.bf16.vlgmr.msra.gmra.mxu3 %v13781_v21  ;;  %3739 = vmatmul.bf16.vlgmr.msrb.gmra.mxu1 %v13781_v21  ;;  %v9902_v39 = vld [vmem:[#allocation10 + $0xb10] sm:$0xf0] }
 0x319   :  { %3759 = vmatpush.bf16.msrb.mxu3 %v9677_v45  ;;  %3787 = vmatpush.bf16.msra.mxu1 %v9681_v46  ;;  %v9518_v45 = vld [vmem:[#allocation10 + $0x210] sm:$0xf0]  ;;  %v9797_v46 = vor.u32 %v12401_v37, %v9796_v35  ;;  %v12426_v35 = vld [vmem:[#allocation10 + $0xb0c] sm:$0xf0] }
 0x31a   :  { %2823 = vmatmul.bf16.vlgmr.msrb.gmra.mxu0 %v2602_v1  ;;  %2851 = vmatmul.bf16.vlgmr.msrb.gmra.mxu2 %v2602_v1  ;;  %v9521_v47 = vor.u32 %v12326_v3, %v9518_v45  ;;  %v12381_v1 = vld [vmem:[#allocation10 + $0x6ec] sm:$0xf]  ;;  %v9622_v3 = vld [vmem:[#allocation10 + $0x458] sm:$0xf0] }
 0x31b   :  { %3717 = vmatpush.bf16.msrb.mxu0 %v9925_v60  ;;  %3745 = vmatpush.bf16.msrb.mxu2 %v9929_v50  ;;  %v9765_v60 = vor.u32 %v12393_v36, %v9764_v57  ;;  %v9769_v50 = vor.u32 %v12389_v51, %v9766_v48  ;;  %v12418_v57 = vld [vmem:[#allocation10 + $0xa4c] sm:$0xf0]  ;;  %v9621_v36 = vor.u32 %v12355_v43, %v9620_v40  ;;  %v9870_v51 = vld [vmem:[#allocation10 + $0xa50] sm:$0xf0]  ;;  %v9588_v48 = vld [vmem:[#allocation10 + $0x338] sm:$0xf] }
 0x31c   :  { %v12315_v40 = vld [vmem:[#allocation10 + $0x94] sm:$0xf0]  ;;  %v12311_v43 = vld [vmem:[#allocation10 + $0x3c] sm:$0xf] }
 0x31d   :  { %3760 = vmatpush.bf16.msrb.mxu3 %v9645_v2  ;;  %3788 = vmatpush.bf16.msra.mxu1 %v9649_v4  ;;  %v9485_v2 = vor.u32 %v12322_v54, %v9484_v53  ;;  %v9489_v4 = vor.u32 %v12318_v58, %v9486_v59  ;;  %v12347_v53 = vld [vmem:[#allocation10 + $0x394] sm:$0xf0]  ;;  %v12343_v54 = vld [vmem:[#allocation10 + $0x33c] sm:$0xf] }
 0x31e   :  { %v9590_v58 = vld [vmem:[#allocation10 + $0x398] sm:$0xf0]  ;;  %v9589_v49 = vor.u32 %v12347_v53, %v9588_v48  ;;  %v12435_v48 = vld [vmem:[#allocation10 + $0xbd4] sm:$0xf0] }
 0x31f   :  { %3718 = vmatpush.bf16.msrb.mxu0 %v9893_v61  ;;  %3746 = vmatpush.bf16.msrb.mxu2 %v9897_v13  ;;  %v12371_v61 = vld [vmem:[#allocation10 + $0x5d4] sm:$0xf0]  ;;  %v12367_v13 = vld [vmem:[#allocation10 + $0x57c] sm:$0xf] }
 0x320   :  { %v9685_v23 = vor.u32 %v12371_v61, %v9684_v0  ;;  %v9804_v61 = vld [vmem:[#allocation10 + $0x870] sm:$0xf]  ;;  %v12431_v53 = vld [vmem:[#allocation10 + $0xb7c] sm:$0xf] }
 0x321   :  { %3761 = vmatpush.bf16.msrb.mxu3 %v9613_v16  ;;  %3789 = vmatpush.bf16.msra.mxu1 %v9617_v17  ;;  %v9737_v16 = vor.u32 %v12381_v1, %v9734_v63  ;;  %v9700_v17 = vld [vmem:[#allocation10 + $0x628] sm:$0xf]  ;;  %v9593_v1 = vor.u32 %v12343_v54, %v9590_v58  ;;  %v9556_v63 = vld [vmem:[#allocation10 + $0x278] sm:$0xf]  ;;  %v9942_v54 = vld [vmem:[#allocation10 + $0xbd8] sm:$0xf0] }
 0x322   :  { %v9701_v6 = vor.u32 %v12377_v19, %v9700_v17  ;;  %v9806_v17 = vld [vmem:[#allocation10 + $0x8d0] sm:$0xf0]  ;;  %v12327_v19 = vld [vmem:[#allocation10 + $0x1bc] sm:$0xf] }
 0x323   :  { %3719 = vmatpush.bf16.msrb.mxu0 %v9861_v24  ;;  %3747 = vmatpush.bf16.msrb.mxu2 %v9865_v27  ;;  %v9689_v24 = vor.u32 %v12367_v13, %v9686_v7  ;;  %v9932_v27 = vld [vmem:[#allocation10 + $0xb70] sm:$0xf]  ;;  %v9557_v7 = vor.u32 %v12339_v5, %v9556_v63  ;;  %v9876_v5 = vld [vmem:[#allocation10 + $0x9f8] sm:$0xf] }
 0x324   :  { %v9933_v8 = vor.u32 %v12434_v28, %v9932_v27  ;;  %v12402_v13 = vld [vmem:[#allocation10 + $0x8cc] sm:$0xf0] }
 0x325   :  { %3762 = vmatpush.bf16.msrb.mxu3 %v9581_v30  ;;  %3790 = vmatpush.bf16.msra.mxu1 %v9585_v52  ;;  %v9934_v30 = vld [vmem:[#allocation10 + $0xbd0] sm:$0xf0]  ;;  %v9652_v52 = vld [vmem:[#allocation10 + $0x4b8] sm:$0xf]  ;;  %v9805_v22 = vor.u32 %v12402_v13, %v9804_v61  ;;  %v12394_v27 = vld [vmem:[#allocation10 + $0x80c] sm:$0xf0] }
 0x326   :  { %v9653_v37 = vor.u32 %v12363_v32, %v9652_v52  ;;  %v9774_v52 = vld [vmem:[#allocation10 + $0x810] sm:$0xf0]  ;;  %v12319_v32 = vld [vmem:[#allocation10 + $0xfc] sm:$0xf]  ;;  %v9844_v13 = vld [vmem:[#allocation10 + $0x938] sm:$0xf] }
 0x327   :  { %3720 = vmatpush.bf16.msrb.mxu0 %v9829_v34  ;;  %3748 = vmatpush.bf16.msrb.mxu2 %v9833_v26  ;;  %v9937_v34 = vor.u32 %v12430_v29, %v9934_v30  ;;  %v9900_v26 = vld [vmem:[#allocation10 + $0xab0] sm:$0xf]  ;;  %v9529_v29 = vor.u32 %v12327_v19, %v9526_v56  ;;  %v12390_v30 = vld [vmem:[#allocation10 + $0x7b4] sm:$0xf]  ;;  %v12403_v19 = vld [vmem:[#allocation10 + $0x8d4] sm:$0xf0] }
 0x328   :  { %v9901_v45 = vor.u32 %v12426_v35, %v9900_v26  ;;  %v12386_v26 = vld [vmem:[#allocation10 + $0x74c] sm:$0xf0]  ;;  %v12399_v56 = vld [vmem:[#allocation10 + $0x87c] sm:$0xf] }
 0x329   :  { %3763 = vmatpush.bf16.msrb.mxu3 %v9549_v10  ;;  %3791 = vmatpush.bf16.msra.mxu1 %v9553_v38  ;;  %v9657_v10 = vor.u32 %v12359_v33, %v9654_v55  ;;  %v12422_v38 = vld [vmem:[#allocation10 + $0xab4] sm:$0xf]  ;;  %v9494_v33 = vld [vmem:[#allocation10 + $0x158] sm:$0xf0] }
 0x32a   :  { %3669 = vmatmul.bf16.vlgmr.msra.gmra.mxu0 %v13785_v41  ;;  %3697 = vmatmul.bf16.vlgmr.msra.gmra.mxu2 %v13785_v41 }
 0x32b   :  { %3721 = vmatpush.bf16.msrb.mxu0 %v9797_v46  ;;  %3749 = vmatpush.bf16.msrb.mxu2 %v9801_v20  ;;  %v9905_v46 = vor.u32 %v12422_v38, %v9902_v39  ;;  %v9868_v20 = vld [vmem:[#allocation10 + $0x9f0] sm:$0xf]  ;;  %v9742_v38 = vld [vmem:[#allocation10 + $0x750] sm:$0xf0]  ;;  %v9460_v39 = vld [vmem:[#allocation10 + $0x38] sm:$0xf] }
 0x32c   :  { %v9869_v59 = vor.u32 %v12418_v57, %v9868_v20  ;;  %v9461_v20 = vor.u32 %v12315_v40, %v9460_v39  ;;  %v12375_v39 = vld [vmem:[#allocation10 + $0x63c] sm:$0xf] }
 0x32d   :  { %3764 = vmatpush.bf16.msrb.mxu3 %v9517_v42  ;;  %3792 = vmatpush.bf16.msra.mxu1 %v9521_v47  ;;  %v9625_v42 = vor.u32 %v12351_v44, %v9622_v3  ;;  %v12414_v47 = vld [vmem:[#allocation10 + $0x9f4] sm:$0xf]  ;;  %v9462_v44 = vld [vmem:[#allocation10 + $0x98] sm:$0xf0] }
 0x32e   :  { %v9465_v57 = vor.u32 %v12311_v43, %v9462_v44  ;;  %v9718_v40 = vld [vmem:[#allocation10 + $0x698] sm:$0xf0] }
 0x32f   :  { %3722 = vmatpush.bf16.msrb.mxu0 %v9765_v60  ;;  %3750 = vmatpush.bf16.msrb.mxu2 %v9769_v50  ;;  %v9873_v60 = vor.u32 %v12414_v47, %v9870_v51  ;;  %v9836_v50 = vld [vmem:[#allocation10 + $0x930] sm:$0xf]  ;;  %v9710_v47 = vld [vmem:[#allocation10 + $0x690] sm:$0xf0]  ;;  %v9940_v51 = vld [vmem:[#allocation10 + $0xb78] sm:$0xf]  ;;  %v9721_v44 = vor.u32 %v12375_v39, %v9718_v40 }
 0x330   :  { %v9837_v12 = vor.u32 %v12410_v62, %v9836_v50  ;;  %v9945_v50 = vor.u32 %v12431_v53, %v9942_v54  ;;  %v9908_v62 = vld [vmem:[#allocation10 + $0xab8] sm:$0xf]  ;;  %v12465_v53 = vld [vmem:[#allocation20 + $0xe4] sm:$0xf0]  ;;  %v10012_v39 = vld [vmem:[#allocation20 + $0x80] sm:$0xf] }
 0x331   :  { %3765 = vmatpush.bf16.msrb.mxu3 %v9485_v2  ;;  %3793 = vmatpush.bf16.msra.mxu1 %v9489_v4  ;;  %v12406_v2 = vld [vmem:[#allocation10 + $0x934] sm:$0xf]  ;;  %v12453_v40 = vld [vmem:[#allocation20 + $0x84] sm:$0xf0] }
 0x332   :  { %v9838_v4 = vld [vmem:[#allocation10 + $0x990] sm:$0xf0] }
 0x333   :  { %3723 = vmatpush.bf16.msrb.mxu0 %v9733_v14  ;;  %3751 = vmatpush.bf16.msrb.mxu2 %v9737_v16  ;;  %v9841_v0 = vor.u32 %v12406_v2, %v9838_v4  ;;  %v9561_v14 = vor.u32 %v12335_v9, %v9558_v11  ;;  %v12398_v16 = vld [vmem:[#allocation10 + $0x874] sm:$0xf]  ;;  %v9910_v2 = vld [vmem:[#allocation10 + $0xb18] sm:$0xf0]  ;;  %v12419_v9 = vld [vmem:[#allocation10 + $0xa54] sm:$0xf0] }
 0x334   :  { %v12415_v11 = vld [vmem:[#allocation10 + $0x9fc] sm:$0xf] }
 0x335   :  { %3766 = vmatpush.bf16.msrb.mxu3 %v9453_v18  ;;  %3794 = vmatpush.bf16.msra.mxu1 %v9457_v25  ;;  %v9524_v18 = vld [vmem:[#allocation10 + $0x1b8] sm:$0xf] }
 0x336   :  { %v12331_v25 = vld [vmem:[#allocation10 + $0x214] sm:$0xf0] }
 0x337   :  { %3724 = vmatpush.bf16.msrb.mxu0 %v9701_v6  ;;  %3752 = vmatpush.bf16.msrb.mxu2 %v9705_v31  ;;  %v9525_v28 = vor.u32 %v12331_v25, %v9524_v18  ;;  %v9492_v6 = vld [vmem:[#allocation10 + $0xf8] sm:$0xf] }
 0x338   :  { %3767 = vmatmul.bf16.vlgmr.msrb.gmra.mxu3 %v13781_v21  ;;  %3795 = vmatmul.bf16.vlgmr.msra.gmra.mxu1 %v13781_v21  ;;  %v12323_v31 = vld [vmem:[#allocation10 + $0x154] sm:$0xf0] }
 0x339   :  { %3815 = vmatpush.bf16.msra.mxu3 %v9685_v23  ;;  %3843 = vmatpush.bf16.msrb.mxu1 %v9689_v24  ;;  %v9809_v23 = vor.u32 %v12398_v16, %v9806_v17  ;;  %v9772_v24 = vld [vmem:[#allocation10 + $0x7b0] sm:$0xf]  ;;  %v9493_v35 = vor.u32 %v12323_v31, %v9492_v6  ;;  %v9846_v16 = vld [vmem:[#allocation10 + $0x998] sm:$0xf0]  ;;  %v9812_v25 = vld [vmem:[#allocation10 + $0x878] sm:$0xf] }
 0x33a   :  { %3725 = vmatmul.bf16.vlgmr.msrb.gmra.mxu0 %v13785_v41  ;;  %3753 = vmatmul.bf16.vlgmr.msrb.gmra.mxu2 %v13785_v41  ;;  %v9773_v55 = vor.u32 %v12394_v27, %v9772_v24  ;;  %v9780_v27 = vld [vmem:[#allocation10 + $0x7b8] sm:$0xf] }
 0x33b   :  { %3773 = vmatpush.bf16.msra.mxu0 %v9933_v8  ;;  %3801 = vmatpush.bf16.msra.mxu2 %v9937_v34  ;;  %v9777_v8 = vor.u32 %v12390_v30, %v9774_v52  ;;  %v9740_v34 = vld [vmem:[#allocation10 + $0x6f0] sm:$0xf]  ;;  %v9782_v30 = vld [vmem:[#allocation10 + $0x818] sm:$0xf0]  ;;  %v9748_v31 = vld [vmem:[#allocation10 + $0x6f8] sm:$0xf] }
 0x33c   :  { %v9741_v3 = vor.u32 %v12386_v26, %v9740_v34  ;;  %v9750_v34 = vld [vmem:[#allocation10 + $0x758] sm:$0xf0] }
 0x33d   :  { %3816 = vmatpush.bf16.msra.mxu3 %v9653_v37  ;;  %3844 = vmatpush.bf16.msrb.mxu1 %v9657_v10  ;;  %v9497_v37 = vor.u32 %v12319_v32, %v9494_v33  ;;  %v12382_v10 = vld [vmem:[#allocation10 + $0x6f4] sm:$0xf]  ;;  %v10004_v32 = vld [vmem:[#allocation20 + $0x70] sm:$0xf] }
 0x33e   :  { %v12451_v33 = vld [vmem:[#allocation20 + $0x74] sm:$0xf0] }
 0x33f   :  { %3774 = vmatpush.bf16.msra.mxu0 %v9901_v45  ;;  %3802 = vmatpush.bf16.msra.mxu2 %v9905_v46  ;;  %v9745_v45 = vor.u32 %v12382_v10, %v9742_v38  ;;  %v9708_v46 = vld [vmem:[#allocation10 + $0x630] sm:$0xf]  ;;  %v10005_v26 = vor.u32 %v12451_v33, %v10004_v32  ;;  %v9716_v10 = vld [vmem:[#allocation10 + $0x638] sm:$0xf]  ;;  %v12455_v32 = vld [vmem:[#allocation20 + $0x94] sm:$0xf0] }
 0x340   :  { %v12379_v38 = vld [vmem:[#allocation10 + $0x694] sm:$0xf0]  ;;  %v10124_v33 = vld [vmem:[#allocation20 + $0x160] sm:$0xf] }
 0x341   :  { %3817 = vmatpush.bf16.msra.mxu3 %v9621_v36  ;;  %3845 = vmatpush.bf16.msrb.mxu1 %v9625_v42  ;;  %v12378_v36 = vld [vmem:[#allocation10 + $0x68c] sm:$0xf0]  ;;  %v12374_v42 = vld [vmem:[#allocation10 + $0x634] sm:$0xf]  ;;  %v9717_v43 = vor.u32 %v12379_v38, %v9716_v10  ;;  %v12513_v38 = vld [vmem:[#allocation20 + $0x264] sm:$0xf0] }
 0x342   :  { %v9709_v58 = vor.u32 %v12378_v36, %v9708_v46  ;;  %v10068_v46 = vld [vmem:[#allocation20 + $0xf0] sm:$0xf] }
 0x343   :  { %3775 = vmatpush.bf16.msra.mxu0 %v9869_v59  ;;  %3803 = vmatpush.bf16.msra.mxu2 %v9873_v60  ;;  %v9713_v59 = vor.u32 %v12374_v42, %v9710_v47  ;;  %v9941_v60 = vor.u32 %v12435_v48, %v9940_v51  ;;  %v9988_v36 = vld [vmem:[#allocation20 + $0x50] sm:$0xf]  ;;  %v12447_v42 = vld [vmem:[#allocation20 + $0x54] sm:$0xf0]  ;;  %v10060_v48 = vld [vmem:[#allocation20 + $0xe0] sm:$0xf] }
 0x344   :  { %v9989_v51 = vor.u32 %v12447_v42, %v9988_v36  ;;  %v10061_v54 = vor.u32 %v12465_v53, %v10060_v48  ;;  %v12531_v42 = vld [vmem:[#allocation20 + $0x2f4] sm:$0xf0]  ;;  %v12497_v48 = vld [vmem:[#allocation20 + $0x1e4] sm:$0xf0]  ;;  %v10244_v53 = vld [vmem:[#allocation20 + $0x250] sm:$0xf] }
 0x345   :  { %3818 = vmatpush.bf16.msra.mxu3 %v9589_v49  ;;  %3846 = vmatpush.bf16.msrb.mxu1 %v9593_v1  ;;  %v12427_v49 = vld [vmem:[#allocation10 + $0xb14] sm:$0xf0]  ;;  %v12423_v1 = vld [vmem:[#allocation10 + $0xabc] sm:$0xf] }
 0x346   :  { %v9909_v4 = vor.u32 %v12427_v49, %v9908_v62  ;;  %v9913_v63 = vor.u32 %v12423_v1, %v9910_v2  ;;  %v12463_v62 = vld [vmem:[#allocation20 + $0xd4] sm:$0xf0]  ;;  %v9972_v49 = vld [vmem:[#allocation20 + $0x30] sm:$0xf] }
 0x347   :  { %3776 = vmatpush.bf16.msra.mxu0 %v9837_v12  ;;  %3804 = vmatpush.bf16.msra.mxu2 %v9841_v0  ;;  %v9878_v12 = vld [vmem:[#allocation10 + $0xa58] sm:$0xf0]  ;;  %v9877_v0 = vor.u32 %v12419_v9, %v9876_v5  ;;  %v12443_v2 = vld [vmem:[#allocation20 + $0x34] sm:$0xf0]  ;;  %v12461_v5 = vld [vmem:[#allocation20 + $0xc4] sm:$0xf0] }
 0x348   :  { %v9881_v61 = vor.u32 %v12415_v11, %v9878_v12  ;;  %v9964_v11 = vld [vmem:[#allocation20 + $0x20] sm:$0xf]  ;;  %v12441_v12 = vld [vmem:[#allocation20 + $0x24] sm:$0xf0] }
 0x349   :  { %3819 = vmatpush.bf16.msra.mxu3 %v9557_v7  ;;  %3847 = vmatpush.bf16.msrb.mxu1 %v9561_v14  ;;  %v12411_v7 = vld [vmem:[#allocation10 + $0x994] sm:$0xf0]  ;;  %v12407_v14 = vld [vmem:[#allocation10 + $0x93c] sm:$0xf] }
 0x34a   :  { %v9845_v17 = vor.u32 %v12411_v7, %v9844_v13  ;;  %v9849_v18 = vor.u32 %v12407_v14, %v9846_v16  ;;  %v12459_v13 = vld [vmem:[#allocation20 + $0xb4] sm:$0xf0]  ;;  %v9956_v14 = vld [vmem:[#allocation20 + $0x10] sm:$0xf] }
 0x34b   :  { %3777 = vmatpush.bf16.msra.mxu0 %v9805_v22  ;;  %3805 = vmatpush.bf16.msra.mxu2 %v9809_v23  ;;  %v9814_v22 = vld [vmem:[#allocation10 + $0x8d8] sm:$0xf0]  ;;  %v9813_v23 = vor.u32 %v12403_v19, %v9812_v25  ;;  %v12439_v16 = vld [vmem:[#allocation20 + $0x14] sm:$0xf0]  ;;  %v12457_v25 = vld [vmem:[#allocation20 + $0xa4] sm:$0xf0] }
 0x34c   :  { %v9817_v24 = vor.u32 %v12399_v56, %v9814_v22  ;;  %v10132_v56 = vld [vmem:[#allocation20 + $0x170] sm:$0xf]  ;;  %v12483_v22 = vld [vmem:[#allocation20 + $0x174] sm:$0xf0] }
 0x34d   :  { %3820 = vmatpush.bf16.msra.mxu3 %v9525_v28  ;;  %3848 = vmatpush.bf16.msrb.mxu1 %v9529_v29  ;;  %v12395_v28 = vld [vmem:[#allocation10 + $0x814] sm:$0xf0]  ;;  %v12391_v29 = vld [vmem:[#allocation10 + $0x7bc] sm:$0xf] }
 0x34e   :  { %v9781_v52 = vor.u32 %v12395_v28, %v9780_v27  ;;  %v9785_v6 = vor.u32 %v12391_v29, %v9782_v30  ;;  %v12437_v27 = vld [vmem:[#allocation20 + $0x4] sm:$0xf0]  ;;  %v10260_v30 = vld [vmem:[#allocation20 + $0x270] sm:$0xf] }
 0x34f   :  { %3778 = vmatpush.bf16.msra.mxu0 %v9773_v55  ;;  %3806 = vmatpush.bf16.msra.mxu2 %v9777_v8  ;;  %v12387_v55 = vld [vmem:[#allocation10 + $0x754] sm:$0xf0]  ;;  %v12383_v8 = vld [vmem:[#allocation10 + $0x6fc] sm:$0xf] }
 0x351   :  { %3821 = vmatpush.bf16.msra.mxu3 %v9493_v35  ;;  %3849 = vmatpush.bf16.msrb.mxu1 %v9497_v37  ;;  %v9749_v35 = vor.u32 %v12387_v55, %v9748_v31  ;;  %v9753_v37 = vor.u32 %v12383_v8, %v9750_v34  ;;  %v10020_v31 = vld [vmem:[#allocation20 + $0x90] sm:$0xf]  ;;  %v12481_v8 = vld [vmem:[#allocation20 + $0x164] sm:$0xf0] }
 0x352   :  { %v10021_v55 = vor.u32 %v12455_v32, %v10020_v31  ;;  %v10125_v34 = vor.u32 %v12481_v8, %v10124_v33  ;;  %v12473_v31 = vld [vmem:[#allocation20 + $0x124] sm:$0xf0] }
 0x353   :  { %3779 = vmatpush.bf16.msra.mxu0 %v9741_v3  ;;  %3807 = vmatpush.bf16.msra.mxu2 %v9745_v45  ;;  %v9996_v3 = vld [vmem:[#allocation20 + $0x60] sm:$0xf]  ;;  %v12449_v45 = vld [vmem:[#allocation20 + $0x64] sm:$0xf0] }
 0x354   :  { %v12525_v8 = vld [vmem:[#allocation20 + $0x2c4] sm:$0xf0] }
 0x355   :  { %3822 = vmatpush.bf16.msra.mxu3 %v9461_v20  ;;  %3850 = vmatpush.bf16.msrb.mxu1 %v9465_v57  ;;  %v9997_v20 = vor.u32 %v12449_v45, %v9996_v3  ;;  %v12467_v57 = vld [vmem:[#allocation20 + $0xf4] sm:$0xf0]  ;;  %v10013_v3 = vor.u32 %v12453_v40, %v10012_v39  ;;  %v10116_v45 = vld [vmem:[#allocation20 + $0x150] sm:$0xf] }
 0x356   :  { %v10069_v47 = vor.u32 %v12467_v57, %v10068_v46  ;;  %v12479_v46 = vld [vmem:[#allocation20 + $0x154] sm:$0xf0]  ;;  %v13883_v57 = vld [vmem:[#allocation19] sm:$0x3] }
 0x357   :  { %3780 = vmatpush.bf16.msra.mxu0 %v9709_v58  ;;  %3808 = vmatpush.bf16.msra.mxu2 %v9713_v59  ;;  %v9980_v58 = vld [vmem:[#allocation20 + $0x40] sm:$0xf]  ;;  %v12445_v59 = vld [vmem:[#allocation20 + $0x44] sm:$0xf0]  ;;  %v10117_v36 = vor.u32 %v12479_v46, %v10116_v45  ;;  %v10084_v45 = vld [vmem:[#allocation20 + $0x110] sm:$0xf] }
 0x358   :  { %3823 = vmatmul.bf16.vlgmr.msra.gmra.mxu3 %v13781_v21  ;;  %3851 = vmatmul.bf16.vlgmr.msrb.gmra.mxu1 %v13781_v21  ;;  %v12471_v46 = vld [vmem:[#allocation20 + $0x114] sm:$0xf0] }
 0x359   :  { %4669 = vmatpush.bf16.msrb.mxu3 %v10005_v26  ;;  %v10196_v26 = vld [vmem:[#allocation20 + $0x1f0] sm:$0xf] }
 0x35a   :  { %3781 = vmatmul.bf16.vlgmr.msra.gmra.mxu0 %v13785_v41  ;;  %3809 = vmatmul.bf16.vlgmr.msra.gmra.mxu2 %v13785_v41 }
 0x35b   :  { %3829 = vmatpush.bf16.msrb.mxu0 %v9941_v60  ;;  %3857 = vmatpush.bf16.msrb.mxu2 %v9945_v50  ;;  %v9981_v60 = vor.u32 %v12445_v59, %v9980_v58  ;;  %v10052_v50 = vld [vmem:[#allocation20 + $0xd0] sm:$0xf]  ;;  %v12511_v59 = vld [vmem:[#allocation20 + $0x254] sm:$0xf0] }
 0x35c   :  { %v10053_v1 = vor.u32 %v12463_v62, %v10052_v50  ;;  %v10245_v50 = vor.u32 %v12511_v59, %v10244_v53  ;;  %v10108_v62 = vld [vmem:[#allocation20 + $0x140] sm:$0xf]  ;;  %v10212_v53 = vld [vmem:[#allocation20 + $0x210] sm:$0xf]  ;;  %v12503_v59 = vld [vmem:[#allocation20 + $0x214] sm:$0xf0] }
 0x35d   :  { %4670 = vmatpush.bf16.msrb.mxu3 %v9997_v20  ;;  %v10324_v20 = vld [vmem:[#allocation20 + $0x2f0] sm:$0xf] }
 0x35f   :  { %3830 = vmatpush.bf16.msrb.mxu0 %v9909_v4  ;;  %3858 = vmatpush.bf16.msrb.mxu2 %v9913_v63  ;;  %v9973_v4 = vor.u32 %v12443_v2, %v9972_v49  ;;  %v10044_v63 = vld [vmem:[#allocation20 + $0xc0] sm:$0xf]  ;;  %v12477_v49 = vld [vmem:[#allocation20 + $0x144] sm:$0xf0] }
 0x360   :  { %v10045_v9 = vor.u32 %v12461_v5, %v10044_v63  ;;  %v10109_v2 = vor.u32 %v12477_v49, %v10108_v62  ;;  %v10180_v5 = vld [vmem:[#allocation20 + $0x1d0] sm:$0xf]  ;;  %v10213_v62 = vor.u32 %v12503_v59, %v10212_v53  ;;  %v10076_v49 = vld [vmem:[#allocation20 + $0x100] sm:$0xf] }
 0x361   :  { %4671 = vmatpush.bf16.msrb.mxu3 %v9989_v51  ;;  %v10188_v51 = vld [vmem:[#allocation20 + $0x1e0] sm:$0xf] }
 0x362   :  { %v10189_v58 = vor.u32 %v12497_v48, %v10188_v51  ;;  %v10156_v51 = vld [vmem:[#allocation20 + $0x1a0] sm:$0xf]  ;;  %v12489_v48 = vld [vmem:[#allocation20 + $0x1a4] sm:$0xf0] }
 0x363   :  { %3831 = vmatpush.bf16.msrb.mxu0 %v9877_v0  ;;  %3859 = vmatpush.bf16.msrb.mxu2 %v9881_v61  ;;  %v9965_v0 = vor.u32 %v12441_v12, %v9964_v11  ;;  %v10036_v61 = vld [vmem:[#allocation20 + $0xb0] sm:$0xf]  ;;  %v10236_v11 = vld [vmem:[#allocation20 + $0x240] sm:$0xf] }
 0x364   :  { %v10037_v7 = vor.u32 %v12459_v13, %v10036_v61  ;;  %v12509_v61 = vld [vmem:[#allocation20 + $0x244] sm:$0xf0]  ;;  %v10444_v53 = vld [vmem:[#allocation20 + $0x3e0] sm:$0xf] }
 0x365   :  { %4672 = vmatpush.bf16.msrb.mxu3 %v9981_v60 }
 0x367   :  { %3832 = vmatpush.bf16.msrb.mxu0 %v9845_v17  ;;  %3860 = vmatpush.bf16.msrb.mxu2 %v9849_v18  ;;  %v9957_v17 = vor.u32 %v12439_v16, %v9956_v14  ;;  %v10028_v18 = vld [vmem:[#allocation20 + $0xa0] sm:$0xf]  ;;  %v10100_v14 = vld [vmem:[#allocation20 + $0x130] sm:$0xf]  ;;  %v12475_v16 = vld [vmem:[#allocation20 + $0x134] sm:$0xf0] }
 0x368   :  { %v10029_v19 = vor.u32 %v12457_v25, %v10028_v18  ;;  %v2638_v18 = vperm.slane %v13883_v57, 1 }
 0x369   :  { %4673 = vmatpush.bf16.msrb.mxu3 %v9973_v4  ;;  %v12529_v4 = vld [vmem:[#allocation20 + $0x2e4] sm:$0xf0] }
 0x36b   :  { %3833 = vmatpush.bf16.msrb.mxu0 %v9813_v23  ;;  %3861 = vmatpush.bf16.msrb.mxu2 %v9817_v24  ;;  %v10133_v23 = vor.u32 %v12483_v22, %v10132_v56  ;;  %v9948_v24 = vld [vmem:[#allocation20] sm:$0xf]  ;;  %v12527_v56 = vld [vmem:[#allocation20 + $0x2d4] sm:$0xf0] }
 0x36c   :  { %v9949_v29 = vor.u32 %v12437_v27, %v9948_v24  ;;  %v10172_v24 = vld [vmem:[#allocation20 + $0x1c0] sm:$0xf]  ;;  %v12493_v27 = vld [vmem:[#allocation20 + $0x1c4] sm:$0xf0] }
 0x36d   :  { %4674 = vmatpush.bf16.msrb.mxu3 %v9965_v0  ;;  %4697 = vmatpush.bf16.msra.mxu1 %v10133_v23 }
 0x36f   :  { %3834 = vmatpush.bf16.msrb.mxu0 %v9781_v52  ;;  %3862 = vmatpush.bf16.msrb.mxu2 %v9785_v6  ;;  %v12515_v52 = vld [vmem:[#allocation20 + $0x274] sm:$0xf0] }
 0x370   :  { %v10261_v6 = vor.u32 %v12515_v52, %v10260_v30  ;;  %v12507_v30 = vld [vmem:[#allocation20 + $0x234] sm:$0xf0] }
 0x371   :  { %4675 = vmatpush.bf16.msrb.mxu3 %v9957_v17  ;;  %4698 = vmatpush.bf16.msra.mxu1 %v10125_v34  ;;  %v10308_v17 = vld [vmem:[#allocation20 + $0x2d0] sm:$0xf] }
 0x372   :  { %v10309_v23 = vor.u32 %v12527_v56, %v10308_v17 }
 0x373   :  { %3835 = vmatpush.bf16.msrb.mxu0 %v9749_v35  ;;  %3863 = vmatpush.bf16.msrb.mxu2 %v9753_v37  ;;  %v12499_v35 = vld [vmem:[#allocation20 + $0x1f4] sm:$0xf0]  ;;  %v10252_v37 = vld [vmem:[#allocation20 + $0x260] sm:$0xf] }
 0x374   :  { %v10197_v10 = vor.u32 %v12499_v35, %v10196_v26 }
 0x375   :  { %4676 = vmatpush.bf16.msrb.mxu3 %v9949_v29  ;;  %4699 = vmatpush.bf16.msra.mxu1 %v10117_v36  ;;  %v10173_v29 = vor.u32 %v12493_v27, %v10172_v24  ;;  %v10085_v36 = vor.u32 %v12471_v46, %v10084_v45  ;;  %v10276_v24 = vld [vmem:[#allocation20 + $0x290] sm:$0xf] }
 0x377   :  { %3836 = vmatpush.bf16.msrb.mxu0 %v9717_v43  ;;  %3864 = vmatpush.bf16.msrb.mxu2 %v9721_v44  ;;  %v2838_v43 = vpop.f32.mrf.mxu1  ;;  %v10253_v44 = vor.u32 %v12513_v38, %v10252_v37  ;;  %v10164_v37 = vld [vmem:[#allocation20 + $0x1b0] sm:$0xf]  ;;  %v10220_v38 = vld [vmem:[#allocation20 + $0x220] sm:$0xf] }
 0x378   :  { %v2839_v32 = vadd.f32 %v2838_v43, %v2638_v18 }
 0x379   :  { %4725 = vmatpush.bf16.msra.mxu3 %v10261_v6  ;;  %4700 = vmatpush.bf16.msra.mxu1 %v10109_v2  ;;  %v10092_v6 = vld [vmem:[#allocation20 + $0x120] sm:$0xf] }
 0x37a   :  { %3837 = vmatmul.bf16.vlgmr.msrb.gmra.mxu0 %v13785_v41  ;;  %3865 = vmatmul.bf16.vlgmr.msrb.gmra.mxu2 %v13785_v41  ;;  %v10093_v33 = vor.u32 %v12473_v31, %v10092_v6  ;;  %v10284_v2 = vld [vmem:[#allocation20 + $0x2a0] sm:$0xf] }
 0x37b   :  { %4683 = vmatpush.bf16.msra.mxu0 %v10069_v47  ;;  %v2810_v28 = vpop.f32.mrf.mxu3  ;;  %4711 = vmatpush.bf16.msra.mxu2 %v10197_v10  ;;  %v10325_v47 = vor.u32 %v12531_v42, %v10324_v20  ;;  %v12491_v10 = vld [vmem:[#allocation20 + $0x1b4] sm:$0xf0]  ;;  %v10292_v20 = vld [vmem:[#allocation20 + $0x2b0] sm:$0xf]  ;;  %v10380_v31 = vld [vmem:[#allocation20 + $0x360] sm:$0xf] }
 0x37c   :  { %v10165_v40 = vor.u32 %v12491_v10, %v10164_v37  ;;  %v12523_v42 = vld [vmem:[#allocation20 + $0x2b4] sm:$0xf0] }
 0x37d   :  { %4726 = vmatpush.bf16.msra.mxu3 %v10253_v44  ;;  %v12505_v44 = vld [vmem:[#allocation20 + $0x224] sm:$0xf0]  ;;  %v12563_v37 = vld [vmem:[#allocation20 + $0x3f4] sm:$0xf0] }
 0x37e   :  { %v10221_v43 = vor.u32 %v12505_v44, %v10220_v38 }
 0x37f   :  { %4684 = vmatpush.bf16.msra.mxu0 %v10061_v54  ;;  %v2637_v54 = vperm.slane %v13883_v57, 0  ;;  %4712 = vmatpush.bf16.msra.mxu2 %v10189_v58  ;;  %v13893_v22 = vpop.f32.mrf.mxu1  ;;  %v10157_v58 = vor.u32 %v12489_v48, %v10156_v51  ;;  %v10006_v48 = vld [vmem:[#allocation20 + $0x78] sm:$0xf0]  ;;  %v12944_v57 = vld [vmem:[#allocation32 + $0x160] sm:$0xff] }
 0x381   :  { %4727 = vmatpush.bf16.msra.mxu3 %v10245_v50  ;;  %v2811_v12 = vadd.f32 %v2810_v28, %v2637_v54  ;;  %v10228_v28 = vld [vmem:[#allocation20 + $0x230] sm:$0xf] }
 0x382   :  { %v10229_v52 = vor.u32 %v12507_v30, %v10228_v28  ;;  %v12519_v28 = vld [vmem:[#allocation20 + $0x294] sm:$0xf0]  ;;  %v10140_v30 = vld [vmem:[#allocation20 + $0x180] sm:$0xf] }
 0x383   :  { %4685 = vmatpush.bf16.msra.mxu0 %v10053_v1  ;;  %v13886_v60 = vpop.f32.mrf.mxu3  ;;  %v10316_v1 = vld [vmem:[#allocation20 + $0x2e0] sm:$0xf] }
 0x384   :  { %v10317_v63 = vor.u32 %v12529_v4, %v10316_v1  ;;  %v12469_v1 = vld [vmem:[#allocation20 + $0x104] sm:$0xf0] }
 0x385   :  { %v10077_v4 = vor.u32 %v12469_v1, %v10076_v49 }
 0x387   :  { %4686 = vmatpush.bf16.msra.mxu0 %v10045_v9  ;;  %v12495_v9 = vld [vmem:[#allocation20 + $0x1d4] sm:$0xf0]  ;;  %v13903_v50 = vpop.f32.mrf.mxu1 }
 0x388   :  { %v10181_v0 = vor.u32 %v12495_v9, %v10180_v5 }
 0x38a   :  { %4713 = vmatpush.bf16.msra.mxu2 %v10181_v0  ;;  %v10204_v0 = vld [vmem:[#allocation20 + $0x200] sm:$0xf] }
 0x38b   :  { %4687 = vmatpush.bf16.msra.mxu0 %v10037_v7  ;;  %v10237_v7 = vor.u32 %v12509_v61, %v10236_v11  ;;  %v13897_v34 = vpop.f32.mrf.mxu3  ;;  %v10148_v11 = vld [vmem:[#allocation20 + $0x190] sm:$0xf] }
 0x38d   :  { %4728 = vmatpush.bf16.msra.mxu3 %v10237_v7  ;;  %v10388_v7 = vld [vmem:[#allocation20 + $0x370] sm:$0xf] }
 0x38e   :  { %4714 = vmatpush.bf16.msra.mxu2 %v10173_v29  ;;  %v10277_v29 = vor.u32 %v12519_v28, %v10276_v24  ;;  %v10070_v24 = vld [vmem:[#allocation20 + $0xf8] sm:$0xf0]  ;;  %v12539_v28 = vld [vmem:[#allocation20 + $0x334] sm:$0xf0] }
 0x38f   :  { %4688 = vmatpush.bf16.msra.mxu0 %v10029_v19  ;;  %v10101_v19 = vor.u32 %v12475_v16, %v10100_v14  ;;  %v12547_v14 = vld [vmem:[#allocation20 + $0x374] sm:$0xf0]  ;;  %v13907_v16 = vld [vmem:[#allocation11 + $0x8] sm:$0xff]  ;;  %v3686_v10 = vpop.f32.mrf.mxu1 }
 0x390   :  { %v2991_v27 = vperm.slane %v13907_v16, 0  ;;  %v2992_v45 = vperm.slane %v13907_v16, 1 }
 0x391   :  { %4701 = vmatpush.bf16.msra.mxu1 %v10101_v19  ;;  %4729 = vmatpush.bf16.msra.mxu3 %v10229_v52  ;;  %v12485_v52 = vld [vmem:[#allocation20 + $0x184] sm:$0xf0] }
 0x392   :  { %4715 = vmatpush.bf16.msra.mxu2 %v10165_v40  ;;  %v10141_v6 = vor.u32 %v12485_v52, %v10140_v30  ;;  %v3685_v49 = vadd.f32 %v13903_v50, %v2992_v45  ;;  %v12446_v52 = vld [vmem:[#allocation20 + $0x54] sm:$0xf] }
 0x393   :  { %4689 = vmatpush.bf16.msra.mxu0 %v10021_v55  ;;  %v10300_v55 = vld [vmem:[#allocation20 + $0x2c0] sm:$0xf]  ;;  %v3658_v17 = vpop.f32.mrf.mxu3 }
 0x394   :  { %v10301_v35 = vor.u32 %v12525_v8, %v10300_v55  ;;  %v10268_v55 = vld [vmem:[#allocation20 + $0x280] sm:$0xf]  ;;  %v3657_v8 = vadd.f32 %v13897_v34, %v2991_v27  ;;  %v3659_v46 = vadd.f32 %v3658_v17, %v2991_v27  ;;  %v12559_v17 = vld [vmem:[#allocation20 + $0x3d4] sm:$0xf0]  ;;  %v10356_v27 = vld [vmem:[#allocation20 + $0x330] sm:$0xf] }
 0x395   :  { %4702 = vmatpush.bf16.msra.mxu1 %v10093_v33  ;;  %4730 = vmatpush.bf16.msra.mxu3 %v10221_v43  ;;  %v10372_v43 = vld [vmem:[#allocation20 + $0x350] sm:$0xf] }
 0x396   :  { %4716 = vmatpush.bf16.msra.mxu2 %v10157_v58  ;;  %v12561_v58 = vld [vmem:[#allocation20 + $0x3e4] sm:$0xf0] }
 0x397   :  { %4690 = vmatpush.bf16.msra.mxu0 %v10013_v3  ;;  %v2824_v13 = vpop.f32.mrf.mxu0 }
 0x398   :  { %v13891_v25 = vadd.f32 %v2824_v13, %v2811_v12  ;;  %v12487_v12 = vld [vmem:[#allocation20 + $0x194] sm:$0xf0]  ;;  %v12501_v13 = vld [vmem:[#allocation20 + $0x204] sm:$0xf0] }
 0x399   :  { %4703 = vmatpush.bf16.msra.mxu1 %v10085_v36  ;;  %4731 = vmatpush.bf16.msra.mxu3 %v10213_v62  ;;  %v10149_v61 = vor.u32 %v12487_v12, %v10148_v11  ;;  %v10205_v56 = vor.u32 %v12501_v13, %v10204_v0  ;;  %v12543_v36 = vld [vmem:[#allocation20 + $0x354] sm:$0xf0]  ;;  %v10445_v62 = vor.u32 %v12561_v58, %v10444_v53  ;;  %v12448_v11 = vld [vmem:[#allocation20 + $0x64] sm:$0xf] }
 0x39a   :  { %v10373_v34 = vor.u32 %v12543_v36, %v10372_v43  ;;  %v3687_v0 = vadd.f32 %v3686_v10, %v2992_v45  ;;  %v12464_v10 = vld [vmem:[#allocation20 + $0xe4] sm:$0xf]  ;;  %v10348_v43 = vld [vmem:[#allocation20 + $0x320] sm:$0xf]  ;;  %v12537_v45 = vld [vmem:[#allocation20 + $0x324] sm:$0xf0] }
 0x39b   :  { %4739 = vmatpush.bf16.msrb.mxu0 %v10325_v47  ;;  %v10293_v47 = vor.u32 %v12523_v42, %v10292_v20  ;;  %4717 = vmatpush.bf16.msra.mxu2 %v10149_v61  ;;  %v3712_v59 = vpop.f32.mrf.mxu3  ;;  %v12444_v36 = vld [vmem:[#allocation20 + $0x44] sm:$0xf] }
 0x39d   :  { %v2852_v26 = vpop.f32.mrf.mxu2  ;;  %4704 = vmatpush.bf16.msra.mxu1 %v10077_v4  ;;  %4732 = vmatpush.bf16.msra.mxu3 %v10205_v56  ;;  %v10364_v4 = vld [vmem:[#allocation20 + $0x340] sm:$0xf]  ;;  %v12466_v56 = vld [vmem:[#allocation20 + $0xf4] sm:$0xf] }
 0x39e   :  { %v13899_v39 = vadd.f32 %v2852_v26, %v2839_v32  ;;  %v12545_v32 = vld [vmem:[#allocation20 + $0x364] sm:$0xf0] }
 0x39f   :  { %4740 = vmatpush.bf16.msrb.mxu0 %v10317_v63  ;;  %v13901_v3 = vpop.f32.mrf.mxu0  ;;  %v12521_v63 = vld [vmem:[#allocation20 + $0x2a4] sm:$0xf0]  ;;  %v10381_v33 = vor.u32 %v12545_v32, %v10380_v31  ;;  %4718 = vmatpush.bf16.msra.mxu2 %v10141_v6  ;;  %v9990_v6 = vld [vmem:[#allocation20 + $0x58] sm:$0xf0]  ;;  %v10357_v31 = vor.u32 %v12539_v28, %v10356_v27 }
 0x3a0   :  { %v10285_v9 = vor.u32 %v12521_v63, %v10284_v2  ;;  %v12517_v26 = vld [vmem:[#allocation20 + $0x284] sm:$0xf0] }
 0x3a1   :  { %v10269_v40 = vor.u32 %v12517_v26, %v10268_v55  ;;  %v12541_v63 = vld [vmem:[#allocation20 + $0x344] sm:$0xf0] }
 0x3a2   :  { %v10365_v12 = vor.u32 %v12541_v63, %v10364_v4  ;;  %v12557_v26 = vld [vmem:[#allocation20 + $0x3c4] sm:$0xf0]  ;;  %v10054_v4 = vld [vmem:[#allocation20 + $0xd8] sm:$0xf0]  ;;  %v10340_v63 = vld [vmem:[#allocation20 + $0x310] sm:$0xf] }
 0x3a3   :  { %4741 = vmatpush.bf16.msrb.mxu0 %v10309_v23  ;;  %v10389_v23 = vor.u32 %v12547_v14, %v10388_v7  ;;  %v9998_v7 = vld [vmem:[#allocation20 + $0x68] sm:$0xf0]  ;;  %v10436_v14 = vld [vmem:[#allocation20 + $0x3d0] sm:$0xf] }
 0x3a4   :  { %v10001_v30 = vor.u32 %v12448_v11, %v9998_v7 }
 0x3a5   :  { %v13905_v5 = vpop.f32.mrf.mxu2  ;;  %4753 = vmatpush.bf16.msrb.mxu1 %v10389_v23  ;;  %v10437_v23 = vor.u32 %v12559_v17, %v10436_v14  ;;  %v9974_v14 = vld [vmem:[#allocation20 + $0x38] sm:$0xf0]  ;;  %v10412_v17 = vld [vmem:[#allocation20 + $0x3a0] sm:$0xf] }
 0x3a7   :  { %4742 = vmatpush.bf16.msrb.mxu0 %v10301_v35  ;;  %v3670_v19 = vpop.f32.mrf.mxu0  ;;  %v10452_v35 = vld [vmem:[#allocation20 + $0x3f0] sm:$0xf] }
 0x3a8   :  { %v10453_v44 = vor.u32 %v12563_v37, %v10452_v35  ;;  %v3671_v20 = vadd.f32 %v3670_v19, %v3657_v8  ;;  %v10428_v8 = vld [vmem:[#allocation20 + $0x3c0] sm:$0xf]  ;;  %v2993_v35 = vperm.slane %v13907_v16, 2  ;;  %v10073_v37 = vor.u32 %v12466_v56, %v10070_v24  ;;  %v10046_v24 = vld [vmem:[#allocation20 + $0xc8] sm:$0xf0] }
 0x3a9   :  { %4754 = vmatpush.bf16.msrb.mxu1 %v10381_v33 }
 0x3aa   :  { %4767 = vmatpush.bf16.msrb.mxu2 %v10453_v44  ;;  %v3871_v1 = vmax.f32 %v3671_v20, 0.0  ;;  %v10062_v44 = vld [vmem:[#allocation20 + $0xe8] sm:$0xf0]  ;;  %v9993_v20 = vor.u32 %v12446_v52, %v9990_v6  ;;  %v3713_v53 = vadd.f32 %v3712_v59, %v2993_v35  ;;  %v12553_v59 = vld [vmem:[#allocation20 + $0x3a4] sm:$0xf0] }
 0x3ab   :  { %4743 = vmatpush.bf16.msrb.mxu0 %v10293_v47  ;;  %v12450_v47 = vld [vmem:[#allocation20 + $0x74] sm:$0xf]  ;;  %v10065_v58 = vor.u32 %v12464_v10, %v10062_v44  ;;  %v10413_v27 = vor.u32 %v12553_v59, %v10412_v17  ;;  %v12533_v52 = vld [vmem:[#allocation20 + $0x304] sm:$0xf0]  ;;  %v10134_v10 = vld [vmem:[#allocation20 + $0x178] sm:$0xf0] }
 0x3ac   :  { %v12478_v59 = vld [vmem:[#allocation20 + $0x154] sm:$0xf] }
 0x3ad   :  { %v3698_v38 = vpop.f32.mrf.mxu2  ;;  %4755 = vmatpush.bf16.msrb.mxu1 %v10373_v34  ;;  %v10420_v34 = vld [vmem:[#allocation20 + $0x3b0] sm:$0xf] }
 0x3ae   :  { %4768 = vmatpush.bf16.msrb.mxu2 %v10445_v62  ;;  %v3699_v61 = vadd.f32 %v3698_v38, %v3685_v49  ;;  %v10429_v38 = vor.u32 %v12557_v26, %v10428_v8  ;;  %v12462_v62 = vld [vmem:[#allocation20 + $0xd4] sm:$0xf] }
 0x3af   :  { %4744 = vmatpush.bf16.msrb.mxu0 %v10285_v9  ;;  %v3672_v42 = vpop.f32.mrf.mxu0  ;;  %v10009_v9 = vor.u32 %v12450_v47, %v10006_v48  ;;  %v9982_v47 = vld [vmem:[#allocation20 + $0x48] sm:$0xf0]  ;;  %v2994_v48 = vperm.slane %v13907_v16, 3 }
 0x3b0   :  { %v3673_v51 = vadd.f32 %v3672_v42, %v3659_v46  ;;  %v3872_v32 = vmax.f32 %v3699_v61, 0.0  ;;  %v3714_v46 = vpop.f32.mrf.mxu3  ;;  %v10349_v42 = vor.u32 %v12537_v45, %v10348_v43  ;;  %v10404_v43 = vld [vmem:[#allocation20 + $0x390] sm:$0xf]  ;;  %v12551_v45 = vld [vmem:[#allocation20 + $0x394] sm:$0xf0] }
 0x3b1   :  { %4756 = vmatpush.bf16.msrb.mxu1 %v10365_v12  ;;  %v9985_v12 = vor.u32 %v12444_v36, %v9982_v47  ;;  %v10038_v36 = vld [vmem:[#allocation20 + $0xb8] sm:$0xf0] }
 0x3b2   :  { %v3879_v2 = vmax.f32 %v3673_v51, 0.0  ;;  %4769 = vmatpush.bf16.msrb.mxu2 %v10437_v23  ;;  %v12555_v51 = vld [vmem:[#allocation20 + $0x3b4] sm:$0xf0]  ;;  %v10057_v23 = vor.u32 %v12462_v62, %v10054_v4 }
 0x3b3   :  { %4745 = vmatpush.bf16.msrb.mxu0 %v10277_v29  ;;  %v3740_v29 = vpop.f32.mrf.mxu1  ;;  %v10421_v49 = vor.u32 %v12555_v51, %v10420_v34  ;;  %v12438_v51 = vld [vmem:[#allocation20 + $0x14] sm:$0xf] }
 0x3b4   :  { %v13913_v13 = vpack.c.bf16 %v3879_v2, %v3871_v1  ;;  %v3715_v1 = vadd.f32 %v3714_v46, %v2993_v35  ;;  %v3741_v28 = vadd.f32 %v3740_v29, %v2994_v48  ;;  %v12440_v35 = vld [vmem:[#allocation20 + $0x24] sm:$0xf] }
 0x3b5   :  { %v3700_v19 = vpop.f32.mrf.mxu2  ;;  %4757 = vmatpush.bf16.msrb.mxu1 %v10357_v31 }
 0x3b6   :  { %v3701_v50 = vadd.f32 %v3700_v19, %v3687_v0  ;;  %4677 = vmatmul.bf16.vlgmr.msrb.gmra.mxu3 %v13913_v13  ;;  %4770 = vmatpush.bf16.msrb.mxu2 %v10429_v38  ;;  %v12442_v0 = vld [vmem:[#allocation20 + $0x34] sm:$0xf] }
 0x3b7   :  { %4746 = vmatpush.bf16.msrb.mxu0 %v10269_v40  ;;  %4781 = vmatpush.bf16.msrb.mxu3 %v10009_v9  ;;  %v3726_v55 = vpop.f32.mrf.mxu0  ;;  %v12535_v9 = vld [vmem:[#allocation20 + $0x314] sm:$0xf0] }
 0x3b8   :  { %v3880_v33 = vmax.f32 %v3701_v50, 0.0  ;;  %v3727_v11 = vadd.f32 %v3726_v55, %v3713_v53  ;;  %v10341_v61 = vor.u32 %v12535_v9, %v10340_v63  ;;  %v12460_v50 = vld [vmem:[#allocation20 + $0xc4] sm:$0xf]  ;;  %v12482_v55 = vld [vmem:[#allocation20 + $0x174] sm:$0xf] }
 0x3b9   :  { %4758 = vmatpush.bf16.msrb.mxu1 %v10349_v42  ;;  %v10049_v26 = vor.u32 %v12460_v50, %v10046_v24  ;;  %v10137_v29 = vor.u32 %v12482_v55, %v10134_v10  ;;  %v10405_v42 = vor.u32 %v12551_v45, %v10404_v43  ;;  %v10126_v53 = vld [vmem:[#allocation20 + $0x168] sm:$0xf0]  ;;  %v12456_v9 = vld [vmem:[#allocation20 + $0xa4] sm:$0xf]  ;;  %v12474_v43 = vld [vmem:[#allocation20 + $0x134] sm:$0xf] }
 0x3ba   :  { %v13917_v40 = vpack.c.bf16 %v3880_v33, %v3872_v32  ;;  %4771 = vmatpush.bf16.msrb.mxu2 %v10421_v49  ;;  %v3873_v6 = vmax.f32 %v3727_v11, 0.0  ;;  %v9977_v32 = vor.u32 %v12442_v0, %v9974_v14  ;;  %v10396_v49 = vld [vmem:[#allocation20 + $0x380] sm:$0xf]  ;;  %v12498_v0 = vld [vmem:[#allocation20 + $0x1f4] sm:$0xf] }
 0x3bb   :  { %4782 = vmatpush.bf16.msrb.mxu3 %v10001_v30  ;;  %v3742_v19 = vpop.f32.mrf.mxu1  ;;  %v10332_v30 = vld [vmem:[#allocation20 + $0x300] sm:$0xf]  ;;  %v10110_v55 = vld [vmem:[#allocation20 + $0x148] sm:$0xf0]  ;;  %v12452_v10 = vld [vmem:[#allocation20 + $0x84] sm:$0xf] }
 0x3bc   :  { %4691 = vmatmul.bf16.vlgmr.msra.gmra.mxu0 %v13917_v40  ;;  %v10333_v33 = vor.u32 %v12533_v52, %v10332_v30  ;;  %v3743_v8 = vadd.f32 %v3742_v19, %v2994_v48  ;;  %v12480_v48 = vld [vmem:[#allocation20 + $0x164] sm:$0xf]  ;;  %v10118_v19 = vld [vmem:[#allocation20 + $0x158] sm:$0xf0]  ;;  %v12454_v30 = vld [vmem:[#allocation20 + $0x94] sm:$0xf] }
 0x3bd   :  { %4795 = vmatpush.bf16.msra.mxu0 %v10073_v37  ;;  %v3754_v2 = vpop.f32.mrf.mxu2  ;;  %4759 = vmatpush.bf16.msrb.mxu1 %v10341_v61  ;;  %v9966_v37 = vld [vmem:[#allocation20 + $0x28] sm:$0xf0]  ;;  %v10129_v62 = vor.u32 %v12480_v48, %v10126_v53  ;;  %v10198_v61 = vld [vmem:[#allocation20 + $0x1f8] sm:$0xf0]  ;;  %v10121_v50 = vor.u32 %v12478_v59, %v10118_v19  ;;  %v12472_v53 = vld [vmem:[#allocation20 + $0x124] sm:$0xf] }
 0x3be   :  { %4772 = vmatpush.bf16.msrb.mxu2 %v10413_v27  ;;  %v3755_v38 = vadd.f32 %v3754_v2, %v3741_v28  ;;  %v9969_v34 = vor.u32 %v12440_v35, %v9966_v37  ;;  %v10201_v17 = vor.u32 %v12498_v0, %v10198_v61  ;;  %v12496_v27 = vld [vmem:[#allocation20 + $0x1e4] sm:$0xf]  ;;  %v10190_v28 = vld [vmem:[#allocation20 + $0x1e8] sm:$0xf0]  ;;  %v10022_v52 = vld [vmem:[#allocation20 + $0x98] sm:$0xf0] }
 0x3bf   :  { %4783 = vmatpush.bf16.msrb.mxu3 %v9993_v20  ;;  %v3728_v7 = vpop.f32.mrf.mxu0  ;;  %v12458_v20 = vld [vmem:[#allocation20 + $0xb4] sm:$0xf]  ;;  %v10182_v37 = vld [vmem:[#allocation20 + $0x1d8] sm:$0xf0]  ;;  %v2996_v0 = vperm.slane %v13907_v16, 5 }
 0x3c0   :  { %v3729_v56 = vadd.f32 %v3728_v7, %v3715_v1  ;;  %v12549_v1 = vld [vmem:[#allocation20 + $0x384] sm:$0xf0]  ;;  %v3874_v2 = vmax.f32 %v3755_v38, 0.0  ;;  %v10041_v63 = vor.u32 %v12458_v20, %v10038_v36  ;;  %v12494_v35 = vld [vmem:[#allocation20 + $0x1d4] sm:$0xf] }
 0x3c1   :  { %4796 = vmatpush.bf16.msra.mxu0 %v10065_v58  ;;  %4760 = vmatpush.bf16.msrb.mxu1 %v10333_v33  ;;  %v9958_v58 = vld [vmem:[#allocation20 + $0x18] sm:$0xf0]  ;;  %v10397_v11 = vor.u32 %v12549_v1, %v10396_v49  ;;  %v12476_v33 = vld [vmem:[#allocation20 + $0x144] sm:$0xf]  ;;  %v10014_v38 = vld [vmem:[#allocation20 + $0x88] sm:$0xf0] }
 0x3c2   :  { %v3881_v31 = vmax.f32 %v3729_v56, 0.0  ;;  %4773 = vmatpush.bf16.msrb.mxu2 %v10405_v42  ;;  %v9961_v14 = vor.u32 %v12438_v51, %v9958_v58  ;;  %v12436_v56 = vld [vmem:[#allocation20 + $0x4] sm:$0xf]  ;;  %v10102_v45 = vld [vmem:[#allocation20 + $0x138] sm:$0xf0]  ;;  %v10017_v42 = vor.u32 %v12452_v10, %v10014_v38  ;;  %v2995_v51 = vperm.slane %v13907_v16, 4 }
 0x3c3   :  { %4784 = vmatpush.bf16.msrb.mxu3 %v9985_v12  ;;  %v10030_v12 = vld [vmem:[#allocation20 + $0xa8] sm:$0xf0]  ;;  %v3796_v20 = vpop.f32.mrf.mxu1  ;;  %v12490_v1 = vld [vmem:[#allocation20 + $0x1b4] sm:$0xf]  ;;  %v12488_v19 = vld [vmem:[#allocation20 + $0x1a4] sm:$0xf] }
 0x3c4   :  { %v13921_v44 = vpack.c.bf16 %v3881_v31, %v3873_v6  ;;  %v10033_v24 = vor.u32 %v12456_v9, %v10030_v12  ;;  %v10193_v6 = vor.u32 %v12496_v27, %v10190_v28  ;;  %v3768_v31 = vpop.f32.mrf.mxu3  ;;  %v10094_v58 = vld [vmem:[#allocation20 + $0x128] sm:$0xf0]  ;;  %v10086_v12 = vld [vmem:[#allocation20 + $0x118] sm:$0xf0]  ;;  %v12512_v38 = vld [vmem:[#allocation20 + $0x264] sm:$0xf] }
 0x3c5   :  { %4797 = vmatpush.bf16.msra.mxu0 %v10057_v23  ;;  %v3756_v46 = vpop.f32.mrf.mxu2  ;;  %v9950_v23 = vld [vmem:[#allocation20 + $0x8] sm:$0xf0] }
 0x3c6   :  { %v3757_v47 = vadd.f32 %v3756_v46, %v3743_v8  ;;  %4705 = vmatmul.bf16.vlgmr.msra.gmra.mxu1 %v13921_v44  ;;  %4774 = vmatpush.bf16.msrb.mxu2 %v10397_v11  ;;  %v10113_v8 = vor.u32 %v12476_v33, %v10110_v55  ;;  %v10105_v46 = vor.u32 %v12474_v43, %v10102_v45  ;;  %v12470_v11 = vld [vmem:[#allocation20 + $0x114] sm:$0xf] }
 0x3c7   :  { %4785 = vmatpush.bf16.msrb.mxu3 %v9977_v32  ;;  %4809 = vmatpush.bf16.msra.mxu1 %v10137_v29  ;;  %v9953_v32 = vor.u32 %v12436_v56, %v9950_v23  ;;  %v10185_v29 = vor.u32 %v12494_v35, %v10182_v37  ;;  %v10158_v56 = vld [vmem:[#allocation20 + $0x1a8] sm:$0xf0] }
 0x3c8   :  { %v3882_v4 = vmax.f32 %v3757_v47, 0.0  ;;  %v12492_v47 = vld [vmem:[#allocation20 + $0x1c4] sm:$0xf]  ;;  %v10161_v27 = vor.u32 %v12488_v19, %v10158_v56  ;;  %v10230_v19 = vld [vmem:[#allocation20 + $0x238] sm:$0xf0] }
 0x3c9   :  { %4798 = vmatpush.bf16.msra.mxu0 %v10049_v26  ;;  %v10025_v26 = vor.u32 %v12454_v30, %v10022_v52  ;;  %v12468_v30 = vld [vmem:[#allocation20 + $0x104] sm:$0xf]  ;;  %v10078_v52 = vld [vmem:[#allocation20 + $0x108] sm:$0xf0] }
 0x3ca   :  { %v13924_v7 = vpack.c.bf16 %v3882_v4, %v3874_v2  ;;  %v10166_v2 = vld [vmem:[#allocation20 + $0x1b8] sm:$0xf0]  ;;  %v3769_v4 = vadd.f32 %v3768_v31, %v2995_v51  ;;  %v10081_v33 = vor.u32 %v12468_v30, %v10078_v52 }
 0x3cb   :  { %4786 = vmatpush.bf16.msrb.mxu3 %v9969_v34  ;;  %4810 = vmatpush.bf16.msra.mxu1 %v10129_v62  ;;  %v10174_v34 = vld [vmem:[#allocation20 + $0x1c8] sm:$0xf0]  ;;  %v10097_v62 = vor.u32 %v12472_v53, %v10094_v58  ;;  %v3798_v28 = vpop.f32.mrf.mxu1  ;;  %v12510_v53 = vld [vmem:[#allocation20 + $0x254] sm:$0xf]  ;;  %v10246_v58 = vld [vmem:[#allocation20 + $0x258] sm:$0xf0] }
 0x3cc   :  { %4719 = vmatmul.bf16.vlgmr.msra.gmra.mxu2 %v13924_v7  ;;  %v10177_v48 = vor.u32 %v12492_v47, %v10174_v34  ;;  %v3770_v49 = vpop.f32.mrf.mxu3  ;;  %v3799_v35 = vadd.f32 %v3798_v28, %v2996_v0  ;;  %v12484_v47 = vld [vmem:[#allocation20 + $0x184] sm:$0xf]  ;;  %v10142_v34 = vld [vmem:[#allocation20 + $0x188] sm:$0xf0] }
 0x3cd   :  { %4799 = vmatpush.bf16.msra.mxu0 %v10041_v63  ;;  %4823 = vmatpush.bf16.msra.mxu2 %v10201_v17  ;;  %v10169_v63 = vor.u32 %v12490_v1, %v10166_v2  ;;  %v3771_v61 = vadd.f32 %v3770_v49, %v2995_v51  ;;  %v10089_v17 = vor.u32 %v12470_v11, %v10086_v12  ;;  %v12528_v2 = vld [vmem:[#allocation20 + $0x2e4] sm:$0xf]  ;;  %v10238_v11 = vld [vmem:[#allocation20 + $0x248] sm:$0xf0] }
 0x3ce   :  { %v10222_v28 = vld [vmem:[#allocation20 + $0x228] sm:$0xf0] }
 0x3cf   :  { %4787 = vmatpush.bf16.msrb.mxu3 %v9961_v14  ;;  %4811 = vmatpush.bf16.msra.mxu1 %v10121_v50  ;;  %v12514_v50 = vld [vmem:[#allocation20 + $0x274] sm:$0xf] }
 0x3d1   :  { %4800 = vmatpush.bf16.msra.mxu0 %v10033_v24  ;;  %4824 = vmatpush.bf16.msra.mxu2 %v10193_v6  ;;  %v10262_v24 = vld [vmem:[#allocation20 + $0x278] sm:$0xf0]  ;;  %v3797_v6 = vadd.f32 %v3796_v20, %v2996_v0  ;;  %v12530_v20 = vld [vmem:[#allocation20 + $0x2f4] sm:$0xf] }
 0x3d2   :  { %v10265_v55 = vor.u32 %v12514_v50, %v10262_v24  ;;  %v12526_v0 = vld [vmem:[#allocation20 + $0x2d4] sm:$0xf]  ;;  %v10302_v50 = vld [vmem:[#allocation20 + $0x2c8] sm:$0xf0] }
 0x3d3   :  { %4788 = vmatpush.bf16.msrb.mxu3 %v9953_v32  ;;  %4812 = vmatpush.bf16.msra.mxu1 %v10113_v8  ;;  %v12486_v8 = vld [vmem:[#allocation20 + $0x194] sm:$0xf] }
 0x3d5   :  { %4801 = vmatpush.bf16.msra.mxu0 %v10025_v26  ;;  %4825 = vmatpush.bf16.msra.mxu2 %v10185_v29  ;;  %v10150_v26 = vld [vmem:[#allocation20 + $0x198] sm:$0xf0]  ;;  %v10254_v29 = vld [vmem:[#allocation20 + $0x268] sm:$0xf0]  ;;  %v3852_v30 = vpop.f32.mrf.mxu1 }
 0x3d6   :  { %v10153_v43 = vor.u32 %v12486_v8, %v10150_v26  ;;  %v12502_v8 = vld [vmem:[#allocation20 + $0x214] sm:$0xf]  ;;  %v10214_v26 = vld [vmem:[#allocation20 + $0x218] sm:$0xf0] }
 0x3d7   :  { %v3782_v36 = vpop.f32.mrf.mxu0  ;;  %4813 = vmatpush.bf16.msra.mxu1 %v10105_v46 }
 0x3d8   :  { %v3783_v14 = vadd.f32 %v3782_v36, %v3769_v4  ;;  %v10326_v36 = vld [vmem:[#allocation20 + $0x2f8] sm:$0xf0]  ;;  %v10318_v4 = vld [vmem:[#allocation20 + $0x2e8] sm:$0xf0] }
 0x3d9   :  { %4802 = vmatpush.bf16.msra.mxu0 %v10017_v42  ;;  %4826 = vmatpush.bf16.msra.mxu2 %v10177_v48  ;;  %v10257_v42 = vor.u32 %v12512_v38, %v10254_v29  ;;  %v10329_v49 = vor.u32 %v12530_v20, %v10326_v36  ;;  %v10321_v12 = vor.u32 %v12528_v2, %v10318_v4  ;;  %v12520_v29 = vld [vmem:[#allocation20 + $0x2a4] sm:$0xf]  ;;  %v2998_v20 = vperm.slane %v13907_v16, 7 }
 0x3da   :  { %v3875_v31 = vmax.f32 %v3783_v14, 0.0 }
 0x3db   :  { %4814 = vmatpush.bf16.msra.mxu1 %v10097_v62  ;;  %v10145_v62 = vor.u32 %v12484_v47, %v10142_v34  ;;  %v3824_v14 = vpop.f32.mrf.mxu3  ;;  %v10206_v47 = vld [vmem:[#allocation20 + $0x208] sm:$0xf0] }
 0x3dd   :  { %v3810_v9 = vpop.f32.mrf.mxu2  ;;  %4827 = vmatpush.bf16.msra.mxu2 %v10169_v63  ;;  %v10249_v63 = vor.u32 %v12510_v53, %v10246_v58  ;;  %v10390_v58 = vld [vmem:[#allocation20 + $0x378] sm:$0xf0]  ;;  %v3854_v2 = vpop.f32.mrf.mxu1 }
 0x3de   :  { %v3811_v37 = vadd.f32 %v3810_v9, %v3797_v6  ;;  %v12508_v9 = vld [vmem:[#allocation20 + $0x244] sm:$0xf] }
 0x3df   :  { %v3784_v59 = vpop.f32.mrf.mxu0  ;;  %4815 = vmatpush.bf16.msra.mxu1 %v10089_v17  ;;  %v10241_v17 = vor.u32 %v12508_v9, %v10238_v11 }
 0x3e0   :  { %v3785_v23 = vadd.f32 %v3784_v59, %v3771_v61  ;;  %v3876_v51 = vmax.f32 %v3811_v37, 0.0  ;;  %v10310_v61 = vld [vmem:[#allocation20 + $0x2d8] sm:$0xf0]  ;;  %v12506_v59 = vld [vmem:[#allocation20 + $0x234] sm:$0xf] }
 0x3e1   :  { %4828 = vmatpush.bf16.msra.mxu2 %v10161_v27  ;;  %v10313_v56 = vor.u32 %v12526_v0, %v10310_v61  ;;  %v10233_v24 = vor.u32 %v12506_v59, %v10230_v19  ;;  %v12504_v27 = vld [vmem:[#allocation20 + $0x224] sm:$0xf]  ;;  %v3855_v0 = vadd.f32 %v3854_v2, %v2998_v20  ;;  %v10270_v19 = vld [vmem:[#allocation20 + $0x288] sm:$0xf0] }
 0x3e2   :  { %v3883_v32 = vmax.f32 %v3785_v23, 0.0  ;;  %v12524_v23 = vld [vmem:[#allocation20 + $0x2c4] sm:$0xf] }
 0x3e3   :  { %4816 = vmatpush.bf16.msra.mxu1 %v10081_v33  ;;  %v10305_v6 = vor.u32 %v12524_v23, %v10302_v50  ;;  %v10294_v33 = vld [vmem:[#allocation20 + $0x2b8] sm:$0xf0]  ;;  %v12516_v59 = vld [vmem:[#allocation20 + $0x284] sm:$0xf]  ;;  %v12562_v50 = vld [vmem:[#allocation20 + $0x3f4] sm:$0xf] }
 0x3e4   :  { %v13929_v10 = vpack.c.bf16 %v3883_v32, %v3875_v31  ;;  %v2997_v31 = vperm.slane %v13907_v16, 6  ;;  %v12522_v32 = vld [vmem:[#allocation20 + $0x2b4] sm:$0xf]  ;;  %v12552_v2 = vld [vmem:[#allocation20 + $0x3a4] sm:$0xf] }
 0x3e5   :  { %v3812_v45 = vpop.f32.mrf.mxu2  ;;  %4829 = vmatpush.bf16.msra.mxu2 %v10153_v43  ;;  %v10297_v37 = vor.u32 %v12522_v32, %v10294_v33  ;;  %v10286_v43 = vld [vmem:[#allocation20 + $0x2a8] sm:$0xf0] }
 0x3e6   :  { %v3813_v46 = vadd.f32 %v3812_v45, %v3799_v35  ;;  %4733 = vmatmul.bf16.vlgmr.msra.gmra.mxu3 %v13929_v10  ;;  %v3826_v35 = vpop.f32.mrf.mxu3  ;;  %v3825_v38 = vadd.f32 %v3824_v14, %v2997_v31 }
 0x3e7   :  { %4837 = vmatpush.bf16.msra.mxu3 %v10265_v55  ;;  %v10225_v55 = vor.u32 %v12504_v27, %v10222_v28  ;;  %v3827_v36 = vadd.f32 %v3826_v35, %v2997_v31  ;;  %v10273_v28 = vor.u32 %v12516_v59, %v10270_v19  ;;  %v10374_v31 = vld [vmem:[#allocation20 + $0x358] sm:$0xf0]  ;;  %v12540_v35 = vld [vmem:[#allocation20 + $0x344] sm:$0xf] }
 0x3e8   :  { %v3884_v48 = vmax.f32 %v3813_v46, 0.0  ;;  %v10217_v46 = vor.u32 %v12502_v8, %v10214_v26  ;;  %v10446_v8 = vld [vmem:[#allocation20 + $0x3e8] sm:$0xf0]  ;;  %v10518_v19 = vld [vmem:[#allocation23 + $0x78] sm:$0xf0] }
 0x3e9   :  { %4830 = vmatpush.bf16.msra.mxu2 %v10145_v62  ;;  %v12518_v62 = vld [vmem:[#allocation20 + $0x294] sm:$0xf] }
 0x3ea   :  { %v13932_v1 = vpack.c.bf16 %v3884_v48, %v3876_v51  ;;  %v10289_v51 = vor.u32 %v12520_v29, %v10286_v43  ;;  %v12546_v48 = vld [vmem:[#allocation20 + $0x374] sm:$0xf]  ;;  %v10438_v43 = vld [vmem:[#allocation20 + $0x3d8] sm:$0xf0] }
 0x3eb   :  { %4838 = vmatpush.bf16.msra.mxu3 %v10257_v42  ;;  %v10393_v11 = vor.u32 %v12546_v48, %v10390_v58  ;;  %v12558_v29 = vld [vmem:[#allocation20 + $0x3d4] sm:$0xf] }
 0x3ec   :  { %4747 = vmatmul.bf16.vlgmr.msrb.gmra.mxu0 %v13932_v1  ;;  %v12554_v48 = vld [vmem:[#allocation20 + $0x3b4] sm:$0xf] }
 0x3ed   :  { %4851 = vmatpush.bf16.msrb.mxu0 %v10329_v49  ;;  %v10278_v49 = vld [vmem:[#allocation20 + $0x298] sm:$0xf0]  ;;  %v12534_v58 = vld [vmem:[#allocation20 + $0x314] sm:$0xf] }
 0x3ef   :  { %4839 = vmatpush.bf16.msra.mxu3 %v10249_v63  ;;  %v3853_v63 = vadd.f32 %v3852_v30, %v2998_v20  ;;  %v10441_v20 = vor.u32 %v12558_v29, %v10438_v43  ;;  %v10516_v29 = vld [vmem:[#allocation23 + $0x70] sm:$0xf]  ;;  %v12579_v43 = vld [vmem:[#allocation23 + $0x74] sm:$0xf0] }
 0x3f1   :  { %4852 = vmatpush.bf16.msrb.mxu0 %v10321_v12  ;;  %v10281_v12 = vor.u32 %v12518_v62, %v10278_v49  ;;  %v10342_v62 = vld [vmem:[#allocation20 + $0x318] sm:$0xf0] }
 0x3f3   :  { %4840 = vmatpush.bf16.msra.mxu3 %v10241_v17  ;;  %v10382_v17 = vld [vmem:[#allocation20 + $0x368] sm:$0xf0] }
 0x3f5   :  { %4853 = vmatpush.bf16.msrb.mxu0 %v10313_v56 }
 0x3f6   :  { %4789 = vmatmul.bf16.vlgmr.msrb.gmra.mxu3 %v13913_v13  ;;  %v12500_v13 = vld [vmem:[#allocation20 + $0x204] sm:$0xf] }
 0x3f7   :  { %v3838_v52 = vpop.f32.mrf.mxu0  ;;  %4841 = vmatpush.bf16.msra.mxu3 %v10233_v24  ;;  %v10209_v4 = vor.u32 %v12500_v13, %v10206_v47  ;;  %v10454_v24 = vld [vmem:[#allocation20 + $0x3f8] sm:$0xf0]  ;;  %v12536_v47 = vld [vmem:[#allocation20 + $0x324] sm:$0xf] }
 0x3f8   :  { %v3839_v42 = vadd.f32 %v3838_v52, %v3825_v38  ;;  %v10457_v32 = vor.u32 %v12562_v50, %v10454_v24  ;;  %v10510_v50 = vld [vmem:[#allocation23 + $0x68] sm:$0xf0] }
 0x3f9   :  { %4854 = vmatpush.bf16.msrb.mxu0 %v10305_v6  ;;  %v12542_v6 = vld [vmem:[#allocation20 + $0x354] sm:$0xf] }
 0x3fa   :  { %v3877_v9 = vmax.f32 %v3839_v42, 0.0  ;;  %v10377_v26 = vor.u32 %v12542_v6, %v10374_v31  ;;  %v10430_v42 = vld [vmem:[#allocation20 + $0x3c8] sm:$0xf0] }
 0x3fb   :  { %4842 = vmatpush.bf16.msra.mxu3 %v10225_v55  ;;  %v12560_v55 = vld [vmem:[#allocation20 + $0x3e4] sm:$0xf]  ;;  %v10494_v6 = vld [vmem:[#allocation23 + $0x48] sm:$0xf0] }
 0x3fc   :  { %4803 = vmatmul.bf16.vlgmr.msra.gmra.mxu0 %v13917_v40  ;;  %v12544_v40 = vld [vmem:[#allocation20 + $0x364] sm:$0xf]  ;;  %v10449_v38 = vor.u32 %v12560_v55, %v10446_v8  ;;  %v10478_v8 = vld [vmem:[#allocation23 + $0x28] sm:$0xf0] }
 0x3fd   :  { %v3866_v45 = vpop.f32.mrf.mxu2  ;;  %4855 = vmatpush.bf16.msrb.mxu0 %v10297_v37  ;;  %v10385_v27 = vor.u32 %v12544_v40, %v10382_v17  ;;  %v10366_v37 = vld [vmem:[#allocation20 + $0x348] sm:$0xf0] }
 0x3fe   :  { %v3867_v61 = vadd.f32 %v3866_v45, %v3853_v63  ;;  %v12538_v45 = vld [vmem:[#allocation20 + $0x334] sm:$0xf]  ;;  %v10345_v63 = vor.u32 %v12534_v58, %v10342_v62  ;;  %v10398_v17 = vld [vmem:[#allocation20 + $0x388] sm:$0xf0]  ;;  %v10852_v58 = vld [vmem:[#allocation10 + $0x4c0] sm:$0xf] }
 0x3ff   :  { %v3840_v34 = vpop.f32.mrf.mxu0  ;;  %4843 = vmatpush.bf16.msra.mxu3 %v10217_v46  ;;  %v10358_v46 = vld [vmem:[#allocation20 + $0x338] sm:$0xf0]  ;;  %v12664_v62 = vld [vmem:[#allocation10 + $0x51c] sm:$0xf0] }
 0x400   :  { %v3841_v53 = vadd.f32 %v3840_v34, %v3827_v36  ;;  %v3878_v30 = vmax.f32 %v3867_v61, 0.0  ;;  %v12556_v36 = vld [vmem:[#allocation20 + $0x3c4] sm:$0xf]  ;;  %v10361_v13 = vor.u32 %v12538_v45, %v10358_v46  ;;  %v10350_v34 = vld [vmem:[#allocation20 + $0x328] sm:$0xf0] }
 0x401   :  { %4856 = vmatpush.bf16.msrb.mxu0 %v10289_v51  ;;  %v10433_v51 = vor.u32 %v12556_v36, %v10430_v42  ;;  %v12548_v61 = vld [vmem:[#allocation20 + $0x384] sm:$0xf]  ;;  %v10462_v46 = vld [vmem:[#allocation23 + $0x8] sm:$0xf0] }
 0x402   :  { %v3885_v16 = vmax.f32 %v3841_v53, 0.0  ;;  %v10353_v53 = vor.u32 %v12536_v47, %v10350_v34  ;;  %v10401_v59 = vor.u32 %v12548_v61, %v10398_v17  ;;  %v12564_v45 = vld [vmem:[#allocation23 + $0x4] sm:$0xf]  ;;  %v10508_v47 = vld [vmem:[#allocation23 + $0x60] sm:$0xf] }
 0x403   :  { %4844 = vmatpush.bf16.msra.mxu3 %v10209_v4  ;;  %v10414_v4 = vld [vmem:[#allocation20 + $0x3a8] sm:$0xf0]  ;;  %v10884_v36 = vld [vmem:[#allocation10 + $0x580] sm:$0xf] }
 0x404   :  { %v13939_v14 = vpack.c.bf16 %v3885_v16, %v3877_v9  ;;  %v12532_v9 = vld [vmem:[#allocation20 + $0x304] sm:$0xf]  ;;  %v10334_v16 = vld [vmem:[#allocation20 + $0x308] sm:$0xf0] }
 0x405   :  { %v3868_v56 = vpop.f32.mrf.mxu2  ;;  %4857 = vmatpush.bf16.msrb.mxu0 %v10281_v12  ;;  %v12550_v12 = vld [vmem:[#allocation20 + $0x394] sm:$0xf]  ;;  %v10337_v40 = vor.u32 %v12532_v9, %v10334_v16  ;;  %v12672_v42 = vld [vmem:[#allocation10 + $0x5dc] sm:$0xf0]  ;;  %v12577_v34 = vld [vmem:[#allocation23 + $0x64] sm:$0xf0] }
 0x406   :  { %v3869_v23 = vadd.f32 %v3868_v56, %v3855_v0  ;;  %4761 = vmatmul.bf16.vlgmr.msrb.gmra.mxu1 %v13939_v14  ;;  %4845 = vmatmul.bf16.vlgmr.msra.gmra.mxu3 %v13929_v10  ;;  %v10369_v10 = vor.u32 %v12540_v35, %v10366_v37  ;;  %v12576_v56 = vld [vmem:[#allocation23 + $0x64] sm:$0xf]  ;;  %v12566_v35 = vld [vmem:[#allocation23 + $0x14] sm:$0xf]  ;;  %v10470_v37 = vld [vmem:[#allocation23 + $0x18] sm:$0xf0] }
 0x407   :  { %4865 = vmatpush.bf16.msrb.mxu1 %v10393_v11  ;;  %v10417_v11 = vor.u32 %v12552_v2, %v10414_v4  ;;  %v10513_v24 = vor.u32 %v12576_v56, %v10510_v50  ;;  %v10500_v2 = vld [vmem:[#allocation23 + $0x50] sm:$0xf]  ;;  %v12575_v4 = vld [vmem:[#allocation23 + $0x54] sm:$0xf0]  ;;  %v12592_v9 = vld [vmem:[#allocation23 + $0xe4] sm:$0xf] }
 0x408   :  { %v3886_v52 = vmax.f32 %v3869_v23, 0.0  ;;  %v10574_v16 = vld [vmem:[#allocation23 + $0xe8] sm:$0xf0]  ;;  %v12573_v61 = vld [vmem:[#allocation23 + $0x44] sm:$0xf0] }
 0x409   :  { %4858 = vmatpush.bf16.msrb.mxu0 %v10273_v28  ;;  %v10502_v28 = vld [vmem:[#allocation23 + $0x58] sm:$0xf0]  ;;  %v12648_v50 = vld [vmem:[#allocation10 + $0x39c] sm:$0xf0] }
 0x40a   :  { %v3894_v33 = vpack.c.bf16 %v3886_v52, %v3878_v30  ;;  %v12572_v52 = vld [vmem:[#allocation23 + $0x44] sm:$0xf] }
 0x40b   :  { %4866 = vmatpush.bf16.msrb.mxu1 %v10385_v27  ;;  %v12574_v27 = vld [vmem:[#allocation23 + $0x54] sm:$0xf]  ;;  %v10497_v31 = vor.u32 %v12572_v52, %v10494_v6  ;;  %v12588_v6 = vld [vmem:[#allocation23 + $0xc4] sm:$0xf] }
 0x40c   :  { %4775 = vmatmul.bf16.vlgmr.msrb.gmra.mxu2 %v3894_v33  ;;  %4859 = vmatmul.bf16.vlgmr.msrb.gmra.mxu0 %v13932_v1  ;;  %v10422_v1 = vld [vmem:[#allocation20 + $0x3b8] sm:$0xf0]  ;;  %v10505_v30 = vor.u32 %v12574_v27, %v10502_v28  ;;  %v10484_v27 = vld [vmem:[#allocation23 + $0x30] sm:$0xf] }
 0x40d   :  { %4879 = vmatpush.bf16.msrb.mxu2 %v10457_v32  ;;  %v10425_v49 = vor.u32 %v12554_v48, %v10422_v1  ;;  %v12570_v32 = vld [vmem:[#allocation23 + $0x34] sm:$0xf]  ;;  %v10582_v1 = vld [vmem:[#allocation23 + $0xf8] sm:$0xf0]  ;;  %v12571_v28 = vld [vmem:[#allocation23 + $0x34] sm:$0xf0] }
 0x40e   :  { %v12594_v48 = vld [vmem:[#allocation23 + $0xf4] sm:$0xf]  ;;  %v10485_v52 = vor.u32 %v12571_v28, %v10484_v27  ;;  %v11140_v27 = vld [vmem:[#allocation10 + $0xb80] sm:$0xf] }
 0x40f   :  { %4867 = vmatpush.bf16.msrb.mxu1 %v10377_v26  ;;  %v12736_v28 = vld [vmem:[#allocation10 + $0xbdc] sm:$0xf0] }
 0x411   :  { %4880 = vmatpush.bf16.msrb.mxu2 %v10449_v38  ;;  %v10473_v38 = vor.u32 %v12566_v35, %v10470_v37 }
 0x413   :  { %4868 = vmatpush.bf16.msrb.mxu1 %v10369_v10  ;;  %v10517_v10 = vor.u32 %v12579_v43, %v10516_v29  ;;  %v10550_v29 = vld [vmem:[#allocation23 + $0xb8] sm:$0xf0] }
 0x415   :  { %4881 = vmatpush.bf16.msrb.mxu2 %v10441_v20  ;;  %v10465_v20 = vor.u32 %v12564_v45, %v10462_v46  ;;  %5097 = vmatpush.bf16.msrb.mxu3 %v10517_v10  ;;  %v10724_v10 = vld [vmem:[#allocation10 + $0x1c0] sm:$0xf] }
 0x416   :  { %4817 = vmatmul.bf16.vlgmr.msra.gmra.mxu1 %v13921_v44  ;;  %v10406_v44 = vld [vmem:[#allocation20 + $0x398] sm:$0xf0]  ;;  %v12632_v45 = vld [vmem:[#allocation10 + $0x21c] sm:$0xf0] }
 0x417   :  { %4869 = vmatpush.bf16.msrb.mxu1 %v10361_v13  ;;  %v10409_v0 = vor.u32 %v12550_v12, %v10406_v44  ;;  %v10885_v13 = vor.u32 %v12672_v42, %v10884_v36  ;;  %v10820_v12 = vld [vmem:[#allocation10 + $0x400] sm:$0xf]  ;;  %v10468_v36 = vld [vmem:[#allocation23 + $0x10] sm:$0xf]  ;;  %v12567_v42 = vld [vmem:[#allocation23 + $0x14] sm:$0xf0] }
 0x418   :  { %v12656_v44 = vld [vmem:[#allocation10 + $0x45c] sm:$0xf0] }
 0x419   :  { %4882 = vmatpush.bf16.msrb.mxu2 %v10433_v51  ;;  %v10509_v51 = vor.u32 %v12577_v34, %v10508_v47  ;;  %v12584_v47 = vld [vmem:[#allocation23 + $0xa4] sm:$0xf]  ;;  %v10542_v34 = vld [vmem:[#allocation23 + $0xa8] sm:$0xf0] }
 0x41b   :  { %4870 = vmatpush.bf16.msrb.mxu1 %v10353_v53  ;;  %v10585_v53 = vor.u32 %v12594_v48, %v10582_v1  ;;  %5098 = vmatpush.bf16.msrb.mxu3 %v10509_v51  ;;  %v10545_v51 = vor.u32 %v12584_v47, %v10542_v34  ;;  %v10692_v48 = vld [vmem:[#allocation10 + $0x100] sm:$0xf] }
 0x41c   :  { %4831 = vmatmul.bf16.vlgmr.msra.gmra.mxu2 %v13924_v7  ;;  %v12578_v7 = vld [vmem:[#allocation23 + $0x74] sm:$0xf]  ;;  %v12624_v1 = vld [vmem:[#allocation10 + $0x15c] sm:$0xf0] }
 0x41d   :  { %4883 = vmatpush.bf16.msrb.mxu2 %v10425_v49  ;;  %v10521_v23 = vor.u32 %v12578_v7, %v10518_v19  ;;  %v10853_v49 = vor.u32 %v12664_v62, %v10852_v58  ;;  %v12590_v7 = vld [vmem:[#allocation23 + $0xd4] sm:$0xf]  ;;  %v10566_v19 = vld [vmem:[#allocation23 + $0xd8] sm:$0xf0]  ;;  %v10693_v58 = vor.u32 %v12624_v1, %v10692_v48  ;;  %v10460_v62 = vld [vmem:[#allocation23] sm:$0xf] }
 0x41e   :  { %v10569_v56 = vor.u32 %v12590_v7, %v10566_v19  ;;  %v12595_v7 = vld [vmem:[#allocation23 + $0xf4] sm:$0xf0]  ;;  %v11076_v47 = vld [vmem:[#allocation10 + $0xa00] sm:$0xf] }
 0x41f   :  { %4871 = vmatpush.bf16.msrb.mxu1 %v10345_v63  ;;  %v10501_v63 = vor.u32 %v12575_v4, %v10500_v2  ;;  %v12582_v4 = vld [vmem:[#allocation23 + $0x94] sm:$0xf]  ;;  %v12720_v34 = vld [vmem:[#allocation10 + $0xa5c] sm:$0xf0] }
 0x420   :  { %v11077_v48 = vor.u32 %v12720_v34, %v11076_v47  ;;  %v12673_v34 = vld [vmem:[#allocation10 + $0x5e4] sm:$0xf0] }
 0x421   :  { %4884 = vmatpush.bf16.msrb.mxu2 %v10417_v11  ;;  %v10577_v11 = vor.u32 %v12592_v9, %v10574_v16  ;;  %5099 = vmatpush.bf16.msrb.mxu3 %v10501_v63  ;;  %v10534_v63 = vld [vmem:[#allocation23 + $0x98] sm:$0xf0]  ;;  %v10660_v16 = vld [vmem:[#allocation10 + $0x40] sm:$0xf] }
 0x422   :  { %v10537_v9 = vor.u32 %v12582_v4, %v10534_v63  ;;  %v12600_v4 = vld [vmem:[#allocation13 + $0x1c] sm:$0xf0] }
 0x423   :  { %4872 = vmatpush.bf16.msrb.mxu1 %v10337_v40  ;;  %v10821_v40 = vor.u32 %v12656_v44, %v10820_v12 }
 0x425   :  { %4885 = vmatpush.bf16.msrb.mxu2 %v10409_v0  ;;  %v10492_v0 = vld [vmem:[#allocation23 + $0x40] sm:$0xf] }
 0x426   :  { %4873 = vmatmul.bf16.vlgmr.msrb.gmra.mxu1 %v13939_v14  ;;  %v10486_v14 = vld [vmem:[#allocation23 + $0x38] sm:$0xf0] }
 0x427   :  { %5125 = vmatpush.bf16.msra.mxu1 %v10521_v23  ;;  %v10489_v55 = vor.u32 %v12570_v32, %v10486_v14  ;;  %v10788_v23 = vld [vmem:[#allocation10 + $0x340] sm:$0xf] }
 0x428   :  { %v10756_v14 = vld [vmem:[#allocation10 + $0x280] sm:$0xf] }
 0x429   :  { %4886 = vmatpush.bf16.msrb.mxu2 %v10401_v59  ;;  %v10493_v59 = vor.u32 %v12573_v61, %v10492_v0  ;;  %v13957_v0 = vld [vmem:[#allocation22] sm:$0x3] }
 0x42b   :  { %5126 = vmatpush.bf16.msra.mxu1 %v10513_v24  ;;  %5100 = vmatpush.bf16.msrb.mxu3 %v10493_v59  ;;  %v10789_v24 = vor.u32 %v12648_v50, %v10788_v23  ;;  %v10580_v59 = vld [vmem:[#allocation23 + $0xf0] sm:$0xf]  ;;  %v10526_v23 = vld [vmem:[#allocation23 + $0x88] sm:$0xf0] }
 0x42c   :  { %4887 = vmatmul.bf16.vlgmr.msrb.gmra.mxu2 %v3894_v33  ;;  %v12568_v33 = vld [vmem:[#allocation23 + $0x24] sm:$0xf]  ;;  %v10581_v19 = vor.u32 %v12595_v7, %v10580_v59  ;;  %v10548_v7 = vld [vmem:[#allocation23 + $0xb0] sm:$0xf] }
 0x42d   :  { %v10481_v26 = vor.u32 %v12568_v33, %v10478_v8  ;;  %5139 = vmatpush.bf16.msra.mxu2 %v10585_v53  ;;  %v10476_v8 = vld [vmem:[#allocation23 + $0x20] sm:$0xf] }
 0x42e   :  { %5111 = vmatpush.bf16.msra.mxu0 %v10581_v19  ;;  %v12587_v19 = vld [vmem:[#allocation23 + $0xb4] sm:$0xf0] }
 0x42f   :  { %5127 = vmatpush.bf16.msra.mxu1 %v10505_v30  ;;  %5101 = vmatpush.bf16.msrb.mxu3 %v10485_v52  ;;  %v4025_v52 = vperm.slane %v13957_v0, 0 }
 0x431   :  { %5140 = vmatpush.bf16.msra.mxu2 %v10577_v11  ;;  %v12616_v11 = vld [vmem:[#allocation10 + $0x9c] sm:$0xf0] }
 0x433   :  { %5128 = vmatpush.bf16.msra.mxu1 %v10497_v31  ;;  %v10558_v31 = vld [vmem:[#allocation23 + $0xc8] sm:$0xf0] }
 0x434   :  { %v10561_v32 = vor.u32 %v12588_v6, %v10558_v31  ;;  %v11141_v6 = vor.u32 %v12736_v28, %v11140_v27  ;;  %v10572_v31 = vld [vmem:[#allocation23 + $0xe0] sm:$0xf] }
 0x435   :  { %5141 = vmatpush.bf16.msra.mxu2 %v10569_v56  ;;  %v12580_v56 = vld [vmem:[#allocation23 + $0x84] sm:$0xf] }
 0x436   :  { %v11012_v27 = vld [vmem:[#allocation10 + $0x880] sm:$0xf] }
 0x437   :  { %5129 = vmatpush.bf16.msra.mxu1 %v10489_v55  ;;  %v12640_v55 = vld [vmem:[#allocation10 + $0x2dc] sm:$0xf0] }
 0x438   :  { %v10757_v33 = vor.u32 %v12640_v55, %v10756_v14  ;;  %v12704_v28 = vld [vmem:[#allocation10 + $0x8dc] sm:$0xf0] }
 0x439   :  { %v13947_v17 = vpop.f32.mrf.mxu3  ;;  %v13949_v30 = vpop.f32.mrf.mxu0  ;;  %5142 = vmatpush.bf16.msra.mxu2 %v10561_v32  ;;  %v12593_v32 = vld [vmem:[#allocation23 + $0xe4] sm:$0xf0] }
 0x43a   :  { %v10573_v14 = vor.u32 %v12593_v32, %v10572_v31 }
 0x43b   :  { %5130 = vmatpush.bf16.msra.mxu1 %v10481_v26  ;;  %v12569_v26 = vld [vmem:[#allocation23 + $0x24] sm:$0xf0] }
 0x43c   :  { %v10477_v37 = vor.u32 %v12569_v26, %v10476_v8  ;;  %v12728_v8 = vld [vmem:[#allocation10 + $0xb1c] sm:$0xf0]  ;;  %v4679_v26 = vadd.f32 %v13947_v17, %v4025_v52  ;;  %5112 = vmatpush.bf16.msra.mxu0 %v10573_v14 }
 0x43d   :  { %v10556_v17 = vld [vmem:[#allocation23 + $0xc0] sm:$0xf] }
 0x43e   :  { %5102 = vmatpush.bf16.msrb.mxu3 %v10477_v37 }
 0x43f   :  { %5131 = vmatpush.bf16.msra.mxu1 %v10473_v38  ;;  %v12586_v38 = vld [vmem:[#allocation23 + $0xb4] sm:$0xf] }
 0x440   :  { %v10553_v43 = vor.u32 %v12586_v38, %v10550_v29  ;;  %v10564_v29 = vld [vmem:[#allocation23 + $0xd0] sm:$0xf] }
 0x441   :  { %v4680_v46 = vpop.f32.mrf.mxu3  ;;  %v13953_v53 = vpop.f32.mrf.mxu0 }
 0x442   :  { %5143 = vmatpush.bf16.msra.mxu2 %v10553_v43  ;;  %v12591_v43 = vld [vmem:[#allocation23 + $0xd4] sm:$0xf0] }
 0x443   :  { %5132 = vmatpush.bf16.msra.mxu1 %v10465_v20  ;;  %v13951_v35 = vpop.f32.mrf.mxu1  ;;  %v10725_v20 = vor.u32 %v12632_v45, %v10724_v10  ;;  %v10620_v10 = vld [vmem:[#allocation13 + $0x40] sm:$0xf]  ;;  %v4681_v45 = vadd.f32 %v4680_v46, %v4025_v52 }
 0x446   :  { %5144 = vmatpush.bf16.msra.mxu2 %v10545_v51  ;;  %v4693_v51 = vadd.f32 %v13949_v30, %v4679_v26 }
 0x447   :  { %6151 = vmatpush.bf16.msrb.mxu1 %v10885_v13  ;;  %v10469_v13 = vor.u32 %v12567_v42, %v10468_v36  ;;  %v12608_v36 = vld [vmem:[#allocation13 + $0x5c] sm:$0xf0] }
 0x448   :  { %v4707_v46 = vadd.f32 %v13951_v35, %v4693_v51  ;;  %v10628_v51 = vld [vmem:[#allocation13 + $0x48] sm:$0xf] }
 0x449   :  { %5103 = vmatpush.bf16.msrb.mxu3 %v10469_v13  ;;  %v10621_v13 = vor.u32 %v12608_v36, %v10620_v10 }
 0x44a   :  { %5145 = vmatpush.bf16.msra.mxu2 %v10537_v9  ;;  %v11044_v9 = vld [vmem:[#allocation10 + $0x940] sm:$0xf] }
 0x44b   :  { %6152 = vmatpush.bf16.msrb.mxu1 %v10853_v49  ;;  %v12565_v49 = vld [vmem:[#allocation23 + $0x4] sm:$0xf0]  ;;  %v4708_v12 = vpop.f32.mrf.mxu1 }
 0x44c   :  { %v10461_v2 = vor.u32 %v12565_v49, %v10460_v62  ;;  %v10588_v62 = vld [vmem:[#allocation13] sm:$0xf]  ;;  %v4695_v49 = vadd.f32 %v13953_v53, %v4681_v45  ;;  %v10549_v53 = vor.u32 %v12587_v19, %v10548_v7  ;;  %v12601_v7 = vld [vmem:[#allocation13 + $0x24] sm:$0xf0] }
 0x44d   :  { %v10589_v63 = vor.u32 %v12600_v4, %v10588_v62  ;;  %v4026_v62 = vperm.slane %v13957_v0, 1 }
 0x44e   :  { %5104 = vmatpush.bf16.msrb.mxu3 %v10461_v2 }
 0x44f   :  { %6153 = vmatpush.bf16.msrb.mxu1 %v10821_v40  ;;  %v10661_v40 = vor.u32 %v12616_v11, %v10660_v16  ;;  %v4720_v61 = vpop.f32.mrf.mxu2  ;;  %v12712_v16 = vld [vmem:[#allocation10 + $0x99c] sm:$0xf0]  ;;  %v4709_v11 = vadd.f32 %v4708_v12, %v4695_v49  ;;  %v11013_v12 = vor.u32 %v12704_v28, %v11012_v27  ;;  %v10828_v27 = vld [vmem:[#allocation10 + $0x408] sm:$0xf] }
 0x450   :  { %v11045_v30 = vor.u32 %v12712_v16, %v11044_v9  ;;  %v10916_v16 = vld [vmem:[#allocation10 + $0x640] sm:$0xf]  ;;  %v12657_v28 = vld [vmem:[#allocation10 + $0x464] sm:$0xf0] }
 0x452   :  { %5259 = vmatpush.bf16.msra.mxu3 %v10621_v13  ;;  %v10948_v13 = vld [vmem:[#allocation10 + $0x700] sm:$0xf] }
 0x453   :  { %6154 = vmatpush.bf16.msrb.mxu1 %v10789_v24  ;;  %v10529_v24 = vor.u32 %v12580_v56, %v10526_v23 }
 0x455   :  { %5146 = vmatpush.bf16.msra.mxu2 %v10529_v24 }
 0x456   :  { %5260 = vmatpush.bf16.msra.mxu3 %v10589_v63  ;;  %v10860_v63 = vld [vmem:[#allocation10 + $0x4c8] sm:$0xf] }
 0x457   :  { %6155 = vmatpush.bf16.msrb.mxu1 %v10757_v33  ;;  %v11108_v33 = vld [vmem:[#allocation10 + $0xac0] sm:$0xf]  ;;  %v4722_v42 = vpop.f32.mrf.mxu2 }
 0x458   :  { %v11109_v37 = vor.u32 %v12728_v8, %v11108_v33  ;;  %v4723_v56 = vadd.f32 %v4722_v42, %v4709_v11  ;;  %v10980_v33 = vld [vmem:[#allocation10 + $0x7c0] sm:$0xf]  ;;  %v10892_v42 = vld [vmem:[#allocation10 + $0x588] sm:$0xf] }
 0x459   :  { %6165 = vmatpush.bf16.msrb.mxu2 %v11141_v6  ;;  %v12585_v6 = vld [vmem:[#allocation23 + $0xa4] sm:$0xf0]  ;;  %v12696_v8 = vld [vmem:[#allocation10 + $0x81c] sm:$0xf0]  ;;  %v10893_v4 = vor.u32 %v12673_v34, %v10892_v42  ;;  %v10590_v34 = vld [vmem:[#allocation13 + $0x20] sm:$0xf0] }
 0x45a   :  { %v12680_v11 = vld [vmem:[#allocation10 + $0x69c] sm:$0xf0]  ;;  %v12641_v42 = vld [vmem:[#allocation10 + $0x2e4] sm:$0xf0] }
 0x45b   :  { %6156 = vmatpush.bf16.msrb.mxu1 %v10725_v20  ;;  %v10565_v20 = vor.u32 %v12591_v43, %v10564_v29  ;;  %v10532_v29 = vld [vmem:[#allocation23 + $0x90] sm:$0xf]  ;;  %v12583_v43 = vld [vmem:[#allocation23 + $0x94] sm:$0xf0]  ;;  %v10917_v19 = vor.u32 %v12680_v11, %v10916_v16  ;;  %v10700_v11 = vld [vmem:[#allocation10 + $0x108] sm:$0xf] }
 0x45d   :  { %6166 = vmatpush.bf16.msrb.mxu2 %v11109_v37  ;;  %5113 = vmatpush.bf16.msra.mxu0 %v10565_v20  ;;  %v10981_v37 = vor.u32 %v12696_v8, %v10980_v33  ;;  %v12649_v33 = vld [vmem:[#allocation10 + $0x3a4] sm:$0xf0] }
 0x45f   :  { %6157 = vmatpush.bf16.msrb.mxu1 %v10693_v58  ;;  %v12589_v58 = vld [vmem:[#allocation23 + $0xc4] sm:$0xf0] }
 0x460   :  { %v10557_v2 = vor.u32 %v12589_v58, %v10556_v17  ;;  %v10524_v17 = vld [vmem:[#allocation23 + $0x80] sm:$0xf]  ;;  %v12581_v58 = vld [vmem:[#allocation23 + $0x84] sm:$0xf0] }
 0x461   :  { %6167 = vmatpush.bf16.msrb.mxu2 %v11077_v48  ;;  %v12609_v48 = vld [vmem:[#allocation13 + $0x64] sm:$0xf0] }
 0x462   :  { %5114 = vmatpush.bf16.msra.mxu0 %v10557_v2  ;;  %v10525_v2 = vor.u32 %v12581_v58, %v10524_v17  ;;  %v10629_v9 = vor.u32 %v12609_v48, %v10628_v51  ;;  %v10732_v48 = vld [vmem:[#allocation10 + $0x1c8] sm:$0xf] }
 0x463   :  { %6158 = vmatpush.bf16.msrb.mxu1 %v10661_v40  ;;  %v4721_v40 = vadd.f32 %v4720_v61, %v4707_v46  ;;  %v10540_v61 = vld [vmem:[#allocation23 + $0xa0] sm:$0xf]  ;;  %v12633_v58 = vld [vmem:[#allocation10 + $0x224] sm:$0xf0] }
 0x464   :  { %v10541_v32 = vor.u32 %v12585_v6, %v10540_v61  ;;  %v10829_v6 = vor.u32 %v12657_v28, %v10828_v27 }
 0x465   :  { %6168 = vmatpush.bf16.msrb.mxu2 %v11045_v30  ;;  %v12665_v30 = vld [vmem:[#allocation10 + $0x524] sm:$0xf0] }
 0x466   :  { %5115 = vmatpush.bf16.msra.mxu0 %v10549_v53 }
 0x469   :  { %v13955_v44 = vpop.f32.mrf.mxu3  ;;  %v13959_v50 = vpop.f32.mrf.mxu0  ;;  %6169 = vmatpush.bf16.msrb.mxu2 %v11013_v12 }
 0x46a   :  { %v4735_v23 = vadd.f32 %v13955_v44, %v4721_v40  ;;  %5116 = vmatpush.bf16.msra.mxu0 %v10541_v32  ;;  %v10796_v32 = vld [vmem:[#allocation10 + $0x348] sm:$0xf] }
 0x46c   :  { %v4749_v31 = vadd.f32 %v13959_v50, %v4735_v23  ;;  %v12688_v50 = vld [vmem:[#allocation10 + $0x75c] sm:$0xf0]  ;;  %v10861_v23 = vor.u32 %v12665_v30, %v10860_v63  ;;  %v10733_v63 = vor.u32 %v12633_v58, %v10732_v48  ;;  %v10598_v48 = vld [vmem:[#allocation13 + $0x28] sm:$0xf0]  ;;  %v12721_v58 = vld [vmem:[#allocation10 + $0xa64] sm:$0xf0] }
 0x46d   :  { %6170 = vmatpush.bf16.msrb.mxu2 %v10981_v37  ;;  %v10622_v37 = vld [vmem:[#allocation13 + $0x60] sm:$0xf0] }
 0x471   :  { %v4736_v38 = vpop.f32.mrf.mxu3  ;;  %v4750_v1 = vpop.f32.mrf.mxu0 }
 0x472   :  { %v4737_v52 = vadd.f32 %v4736_v38, %v4723_v56  ;;  %v10533_v38 = vor.u32 %v12583_v43, %v10532_v29 }
 0x474   :  { %v4751_v44 = vadd.f32 %v4750_v1, %v4737_v52  ;;  %5117 = vmatpush.bf16.msra.mxu0 %v10533_v38  ;;  %v10949_v1 = vor.u32 %v12688_v50, %v10948_v13  ;;  %v10636_v13 = vld [vmem:[#allocation13 + $0x50] sm:$0xf] }
 0x475   :  { %v12610_v50 = vld [vmem:[#allocation13 + $0x6c] sm:$0xf0] }
 0x476   :  { %6171 = vmatpush.bf16.msrb.mxu2 %v10949_v1  ;;  %v10637_v1 = vor.u32 %v12610_v50, %v10636_v13  ;;  %v10836_v13 = vld [vmem:[#allocation10 + $0x410] sm:$0xf] }
 0x477   :  { %v12658_v50 = vld [vmem:[#allocation10 + $0x46c] sm:$0xf0] }
 0x478   :  { %5118 = vmatpush.bf16.msra.mxu0 %v10525_v2 }
 0x479   :  { %v13967_v35 = vpop.f32.mrf.mxu3  ;;  %v4804_v14 = vpop.f32.mrf.mxu0 }
 0x47a   :  { %6172 = vmatpush.bf16.msrb.mxu2 %v10917_v19 }
 0x481   :  { %v4806_v56 = vpop.f32.mrf.mxu0 }
 0x483   :  { %v4762_v55 = vpop.f32.mrf.mxu1 }
 0x484   :  { %v4763_v26 = vadd.f32 %v4762_v55, %v4749_v31  ;;  %v4792_v55 = vpop.f32.mrf.mxu3 }
 0x485   :  { %v4793_v12 = vadd.f32 %v4792_v55, %v4026_v62 }
 0x487   :  { %v4807_v8 = vadd.f32 %v4806_v56, %v4793_v12  ;;  %v10668_v56 = vld [vmem:[#allocation10 + $0x48] sm:$0xf] }
 0x489   :  { %v4860_v29 = vpop.f32.mrf.mxu0 }
 0x48b   :  { %v4764_v59 = vpop.f32.mrf.mxu1 }
 0x48c   :  { %v4765_v10 = vadd.f32 %v4764_v59, %v4751_v44  ;;  %v10596_v59 = vld [vmem:[#allocation13 + $0x8] sm:$0xf]  ;;  %v4846_v61 = vpop.f32.mrf.mxu3 }
 0x48d   :  { %v10597_v53 = vor.u32 %v12601_v7, %v10596_v59 }
 0x48f   :  { %v4776_v24 = vpop.f32.mrf.mxu2 }
 0x490   :  { %v4777_v45 = vadd.f32 %v4776_v24, %v4763_v26  ;;  %v4791_v24 = vadd.f32 %v13967_v35, %v4026_v62  ;;  %v12604_v26 = vld [vmem:[#allocation13 + $0x44] sm:$0xf]  ;;  %v10797_v35 = vor.u32 %v12649_v33, %v10796_v32  ;;  %v10604_v62 = vld [vmem:[#allocation13 + $0x10] sm:$0xf]  ;;  %v10868_v33 = vld [vmem:[#allocation10 + $0x4d0] sm:$0xf] }
 0x491   :  { %v4862_v30 = vpop.f32.mrf.mxu0  ;;  %v12737_v32 = vld [vmem:[#allocation10 + $0xbe4] sm:$0xf0] }
 0x492   :  { %v4893_v49 = vmax.f32 %v4777_v45, 0.0  ;;  %v4805_v31 = vadd.f32 %v4804_v14, %v4791_v24  ;;  %v10625_v45 = vor.u32 %v12604_v26, %v10622_v37  ;;  %v12596_v14 = vld [vmem:[#allocation13 + $0x4] sm:$0xf]  ;;  %v12674_v24 = vld [vmem:[#allocation10 + $0x5ec] sm:$0xf0] }
 0x493   :  { %v4818_v20 = vpop.f32.mrf.mxu1  ;;  %v10593_v55 = vor.u32 %v12596_v14, %v10590_v34  ;;  %v12611_v26 = vld [vmem:[#allocation13 + $0x74] sm:$0xf0] }
 0x494   :  { %v4819_v44 = vadd.f32 %v4818_v20, %v4805_v31  ;;  %5273 = vmatpush.bf16.msrb.mxu0 %v10625_v45  ;;  %v11148_v31 = vld [vmem:[#allocation10 + $0xb88] sm:$0xf]  ;;  %v10612_v14 = vld [vmem:[#allocation13 + $0x18] sm:$0xf] }
 0x495   :  { %v11149_v45 = vor.u32 %v12737_v32, %v11148_v31  ;;  %v10606_v31 = vld [vmem:[#allocation13 + $0x30] sm:$0xf0] }
 0x497   :  { %v4778_v36 = vpop.f32.mrf.mxu2 }
 0x498   :  { %v4779_v47 = vadd.f32 %v4778_v36, %v4765_v10  ;;  %v10764_v10 = vld [vmem:[#allocation10 + $0x288] sm:$0xf]  ;;  %5274 = vmatpush.bf16.msrb.mxu0 %v10593_v55  ;;  %v10837_v55 = vor.u32 %v12658_v50, %v10836_v13  ;;  %v10676_v13 = vld [vmem:[#allocation10 + $0x50] sm:$0xf] }
 0x499   :  { %v10765_v20 = vor.u32 %v12641_v42, %v10764_v10  ;;  %v12729_v42 = vld [vmem:[#allocation10 + $0xb24] sm:$0xf0]  ;;  %v12618_v50 = vld [vmem:[#allocation10 + $0xac] sm:$0xf0] }
 0x49a   :  { %v4895_v46 = vmax.f32 %v4779_v47, 0.0 }
 0x49b   :  { %v4820_v52 = vpop.f32.mrf.mxu1 }
 0x49c   :  { %v4897_v40 = vpack.c.bf16 %v4895_v46, %v4893_v49  ;;  %v4821_v38 = vadd.f32 %v4820_v52, %v4807_v8  ;;  %v12602_v49 = vld [vmem:[#allocation13 + $0x2c] sm:$0xf0]  ;;  %v4848_v46 = vpop.f32.mrf.mxu3  ;;  %v12666_v8 = vld [vmem:[#allocation10 + $0x52c] sm:$0xf0] }
 0x49e   :  { %5105 = vmatmul.bf16.vlgmr.msrb.gmra.mxu3 %v4897_v40  ;;  %5133 = vmatmul.bf16.vlgmr.msra.gmra.mxu1 %v4897_v40  ;;  %v12625_v40 = vld [vmem:[#allocation10 + $0x164] sm:$0xf0] }
 0x49f   :  { %6207 = vmatpush.bf16.msra.mxu1 %v10893_v4  ;;  %v4832_v0 = vpop.f32.mrf.mxu2  ;;  %5287 = vmatpush.bf16.msrb.mxu3 %v10629_v9  ;;  %v10605_v9 = vor.u32 %v12602_v49, %v10604_v62  ;;  %v10701_v7 = vor.u32 %v12625_v40, %v10700_v11  ;;  %v10804_v62 = vld [vmem:[#allocation10 + $0x350] sm:$0xf] }
 0x4a0   :  { %v4833_v36 = vadd.f32 %v4832_v0, %v4819_v44  ;;  %v12617_v0 = vld [vmem:[#allocation10 + $0xa4] sm:$0xf0]  ;;  %v10644_v44 = vld [vmem:[#allocation13 + $0x58] sm:$0xf] }
 0x4a1   :  { %v10669_v12 = vor.u32 %v12617_v0, %v10668_v56  ;;  %v12650_v49 = vld [vmem:[#allocation10 + $0x3ac] sm:$0xf0]  ;;  %v10638_v56 = vld [vmem:[#allocation13 + $0x70] sm:$0xf0]  ;;  %v10886_v0 = vld [vmem:[#allocation10 + $0x5e0] sm:$0xf0] }
 0x4a2   :  { %v4847_v17 = vadd.f32 %v4846_v61, %v4833_v36  ;;  %v11116_v36 = vld [vmem:[#allocation10 + $0xac8] sm:$0xf]  ;;  %v10772_v11 = vld [vmem:[#allocation10 + $0x290] sm:$0xf] }
 0x4a3   :  { %6208 = vmatpush.bf16.msra.mxu1 %v10861_v23  ;;  %5288 = vmatpush.bf16.msrb.mxu3 %v10597_v53  ;;  %v4874_v51 = vpop.f32.mrf.mxu1  ;;  %v10900_v53 = vld [vmem:[#allocation10 + $0x590] sm:$0xf] }
 0x4a4   :  { %v4861_v16 = vadd.f32 %v4860_v29, %v4847_v17  ;;  %v11084_v17 = vld [vmem:[#allocation10 + $0xa08] sm:$0xf]  ;;  %v12642_v40 = vld [vmem:[#allocation10 + $0x2ec] sm:$0xf0] }
 0x4a6   :  { %v4875_v19 = vadd.f32 %v4874_v51, %v4861_v16  ;;  %v12603_v51 = vld [vmem:[#allocation13 + $0x34] sm:$0xf0]  ;;  %v12713_v16 = vld [vmem:[#allocation10 + $0x9a4] sm:$0xf0] }
 0x4a7   :  { %6209 = vmatpush.bf16.msra.mxu1 %v10829_v6  ;;  %v4834_v43 = vpop.f32.mrf.mxu2  ;;  %v10901_v6 = vor.u32 %v12674_v24, %v10900_v53  ;;  %v12705_v53 = vld [vmem:[#allocation10 + $0x8e4] sm:$0xf0]  ;;  %v10740_v24 = vld [vmem:[#allocation10 + $0x1d0] sm:$0xf] }
 0x4a8   :  { %v4835_v47 = vadd.f32 %v4834_v43, %v4821_v38  ;;  %v12605_v43 = vld [vmem:[#allocation13 + $0x4c] sm:$0xf]  ;;  %v10869_v38 = vor.u32 %v12666_v8, %v10868_v33  ;;  %v10988_v8 = vld [vmem:[#allocation10 + $0x7c8] sm:$0xf] }
 0x4a9   :  { %v10854_v33 = vld [vmem:[#allocation10 + $0x520] sm:$0xf0] }
 0x4aa   :  { %v4849_v2 = vadd.f32 %v4848_v46, %v4835_v47  ;;  %v10645_v47 = vor.u32 %v12611_v26, %v10644_v44  ;;  %v10613_v46 = vor.u32 %v12603_v51, %v10612_v14  ;;  %v12697_v44 = vld [vmem:[#allocation10 + $0x824] sm:$0xf0]  ;;  %v10708_v26 = vld [vmem:[#allocation10 + $0x110] sm:$0xf]  ;;  %v12675_v14 = vld [vmem:[#allocation10 + $0x5f4] sm:$0xf0] }
 0x4ab   :  { %6210 = vmatpush.bf16.msra.mxu1 %v10797_v35  ;;  %v4876_v23 = vpop.f32.mrf.mxu1  ;;  %v10630_v35 = vld [vmem:[#allocation13 + $0x68] sm:$0xf0] }
 0x4ac   :  { %v4863_v59 = vadd.f32 %v4862_v30, %v4849_v2  ;;  %v10633_v34 = vor.u32 %v12605_v43, %v10630_v35  ;;  %v10989_v35 = vor.u32 %v12697_v44, %v10988_v8 }
 0x4ae   :  { %10650 = vmatmul.msk.bf16.vlgmr.msra.gmra.mxu3 %vm404_vm0, %v13777_v15  ;;  %6159 = vmatmul.bf16.vlgmr.msrb.gmra.mxu1 %v13781_v21  ;;  %v4877_v27 = vadd.f32 %v4876_v23, %v4863_v59  ;;  %v10773_v59 = vor.u32 %v12642_v40, %v10772_v11  ;;  %v11020_v23 = vld [vmem:[#allocation10 + $0x888] sm:$0xf]  ;;  %v10758_v11 = vld [vmem:[#allocation10 + $0x2e0] sm:$0xf0]  ;;  %v12607_v40 = vld [vmem:[#allocation13 + $0x5c] sm:$0xf] }
 0x4af   :  { %6211 = vmatpush.bf16.msra.mxu1 %v10765_v20  ;;  %v4888_v4 = vpop.f32.mrf.mxu2  ;;  %5315 = vmatpush.bf16.msra.mxu3 %v10637_v1  ;;  %v12597_v20 = vld [vmem:[#allocation13 + $0xc] sm:$0xf]  ;;  %v11117_v1 = vor.u32 %v12729_v42, %v11116_v36  ;;  %v10956_v36 = vld [vmem:[#allocation10 + $0x708] sm:$0xf] }
 0x4b0   :  { %v4889_v28 = vadd.f32 %v4888_v4, %v4875_v19  ;;  %v10601_v2 = vor.u32 %v12597_v20, %v10598_v48  ;;  %v11085_v4 = vor.u32 %v12721_v58, %v11084_v17  ;;  %v12606_v19 = vld [vmem:[#allocation13 + $0x54] sm:$0xf]  ;;  %v12689_v42 = vld [vmem:[#allocation10 + $0x764] sm:$0xf0]  ;;  %v12644_v20 = vld [vmem:[#allocation10 + $0x344] sm:$0xf]  ;;  %v10677_v48 = vor.u32 %v12618_v50, %v10676_v13 }
 0x4b1   :  { %v10957_v51 = vor.u32 %v12689_v42, %v10956_v36  ;;  %v12681_v17 = vld [vmem:[#allocation10 + $0x6a4] sm:$0xf0]  ;;  %v12612_v13 = vld [vmem:[#allocation10 + $0x44] sm:$0xf] }
 0x4b2   :  { %v4894_v37 = vmax.f32 %v4889_v28, 0.0  ;;  %v10641_v28 = vor.u32 %v12606_v19, %v10638_v56  ;;  %v12730_v19 = vld [vmem:[#allocation10 + $0xb2c] sm:$0xf0]  ;;  %v10844_v56 = vld [vmem:[#allocation10 + $0x418] sm:$0xf] }
 0x4b3   :  { %6212 = vmatpush.bf16.msra.mxu1 %v10733_v63  ;;  %5316 = vmatpush.bf16.msra.mxu3 %v10605_v9  ;;  %v10805_v63 = vor.u32 %v12650_v49, %v10804_v62  ;;  %v11052_v9 = vld [vmem:[#allocation10 + $0x948] sm:$0xf]  ;;  %v11156_v62 = vld [vmem:[#allocation10 + $0xb90] sm:$0xf]  ;;  %v10662_v50 = vld [vmem:[#allocation10 + $0xa0] sm:$0xf0] }
 0x4b4   :  { %v11053_v30 = vor.u32 %v12713_v16, %v11052_v9  ;;  %v12738_v49 = vld [vmem:[#allocation10 + $0xbec] sm:$0xf0]  ;;  %v12636_v9 = vld [vmem:[#allocation10 + $0x284] sm:$0xf] }
 0x4b5   :  { %v11157_v16 = vor.u32 %v12738_v49, %v11156_v62 }
 0x4b7   :  { %6213 = vmatpush.bf16.msra.mxu1 %v10701_v7  ;;  %v4890_v52 = vpop.f32.mrf.mxu2  ;;  %v12668_v7 = vld [vmem:[#allocation10 + $0x584] sm:$0xf] }
 0x4b8   :  { %v4891_v61 = vadd.f32 %v4890_v52, %v4877_v27  ;;  %v12634_v27 = vld [vmem:[#allocation10 + $0x22c] sm:$0xf0]  ;;  %v10889_v52 = vor.u32 %v12668_v7, %v10886_v0  ;;  %v12659_v0 = vld [vmem:[#allocation10 + $0x474] sm:$0xf0] }
 0x4b9   :  { %v10741_v32 = vor.u32 %v12634_v27, %v10740_v24  ;;  %v11124_v7 = vld [vmem:[#allocation10 + $0xad0] sm:$0xf] }
 0x4ba   :  { %v4896_v29 = vmax.f32 %v4891_v61, 0.0  ;;  %v12660_v61 = vld [vmem:[#allocation10 + $0x4c4] sm:$0xf]  ;;  %v11125_v27 = vor.u32 %v12730_v19, %v11124_v7 }
 0x4bb   :  { %6214 = vmatpush.bf16.msra.mxu1 %v10669_v12  ;;  %v11021_v12 = vor.u32 %v12705_v53, %v11020_v23  ;;  %v10857_v43 = vor.u32 %v12660_v61, %v10854_v33  ;;  %v10761_v23 = vor.u32 %v12636_v9, %v10758_v11  ;;  %v12628_v53 = vld [vmem:[#allocation10 + $0x1c4] sm:$0xf]  ;;  %v10845_v61 = vor.u32 %v12659_v0, %v10844_v56  ;;  %v12651_v33 = vld [vmem:[#allocation10 + $0x3b4] sm:$0xf0]  ;;  %v12698_v9 = vld [vmem:[#allocation10 + $0x82c] sm:$0xf0] }
 0x4bc   :  { %v4898_v10 = vpack.c.bf16 %v4896_v29, %v4894_v37  ;;  %v12626_v37 = vld [vmem:[#allocation10 + $0x16c] sm:$0xf0]  ;;  %v10716_v11 = vld [vmem:[#allocation10 + $0x118] sm:$0xf]  ;;  %v12653_v56 = vld [vmem:[#allocation10 + $0x40c] sm:$0xf] }
 0x4be   :  { %5119 = vmatmul.bf16.vlgmr.msra.gmra.mxu0 %v4898_v10  ;;  %5147 = vmatmul.bf16.vlgmr.msra.gmra.mxu2 %v4898_v10  ;;  %v12652_v10 = vld [vmem:[#allocation10 + $0x404] sm:$0xf] }
 0x4bf   :  { %6263 = vmatpush.bf16.msrb.mxu1 %v10901_v6  ;;  %10652 = vmatmul.msk.bf16.vlgmr.msrb.gmra.mxu3 %vm404_vm0, %v13777_v15  ;;  %v12598_v6 = vld [vmem:[#allocation13 + $0x14] sm:$0xf] }
 0x4c0   :  { %6215 = vmatmul.bf16.vlgmr.msra.gmra.mxu1 %v13781_v21  ;;  %6221 = vmatpush.bf16.msra.mxu2 %v11149_v45  ;;  %v10609_v29 = vor.u32 %v12598_v6, %v10606_v31  ;;  %v10709_v45 = vor.u32 %v12626_v37, %v10708_v26  ;;  %v11092_v6 = vld [vmem:[#allocation10 + $0xa10] sm:$0xf]  ;;  %v12620_v37 = vld [vmem:[#allocation10 + $0x104] sm:$0xf] }
 0x4c1   :  { %5343 = vmatpush.bf16.msrb.mxu3 %v10645_v47  ;;  %5301 = vmatpush.bf16.msra.mxu0 %v10633_v34  ;;  %v10908_v47 = vld [vmem:[#allocation10 + $0x598] sm:$0xf]  ;;  %v12722_v31 = vld [vmem:[#allocation10 + $0xa6c] sm:$0xf0] }
 0x4c2   :  { %v10909_v58 = vor.u32 %v12675_v14, %v10908_v47  ;;  %v11093_v26 = vor.u32 %v12722_v31, %v11092_v6  ;;  %v12669_v47 = vld [vmem:[#allocation10 + $0x58c] sm:$0xf] }
 0x4c3   :  { %6264 = vmatpush.bf16.msrb.mxu1 %v10869_v38  ;;  %v10822_v38 = vld [vmem:[#allocation10 + $0x460] sm:$0xf0] }
 0x4c4   :  { %6222 = vmatpush.bf16.msra.mxu2 %v11117_v1  ;;  %v10825_v34 = vor.u32 %v12652_v10, %v10822_v38  ;;  %v10790_v1 = vld [vmem:[#allocation10 + $0x3a0] sm:$0xf0]  ;;  %v12714_v10 = vld [vmem:[#allocation10 + $0x9ac] sm:$0xf0]  ;;  %v12643_v38 = vld [vmem:[#allocation10 + $0x2f4] sm:$0xf0] }
 0x4c5   :  { %5344 = vmatpush.bf16.msrb.mxu3 %v10613_v46  ;;  %5302 = vmatpush.bf16.msra.mxu0 %v10601_v2  ;;  %v10876_v46 = vld [vmem:[#allocation10 + $0x4d8] sm:$0xf] }
 0x4c6   :  { %v12667_v2 = vld [vmem:[#allocation10 + $0x534] sm:$0xf0] }
 0x4c7   :  { %6265 = vmatpush.bf16.msrb.mxu1 %v10837_v55  ;;  %v10924_v55 = vld [vmem:[#allocation10 + $0x648] sm:$0xf] }
 0x4c8   :  { %6223 = vmatpush.bf16.msra.mxu2 %v11085_v4  ;;  %v10793_v4 = vor.u32 %v12644_v20, %v10790_v1  ;;  %v12706_v20 = vld [vmem:[#allocation10 + $0x8ec] sm:$0xf0]  ;;  %v12635_v1 = vld [vmem:[#allocation10 + $0x234] sm:$0xf0] }
 0x4cb   :  { %6266 = vmatpush.bf16.msrb.mxu1 %v10805_v63  ;;  %v10925_v63 = vor.u32 %v12681_v17, %v10924_v55  ;;  %v10665_v55 = vor.u32 %v12612_v13, %v10662_v50  ;;  %v12732_v17 = vld [vmem:[#allocation10 + $0xb84] sm:$0xf]  ;;  %v10766_v13 = vld [vmem:[#allocation10 + $0x2e8] sm:$0xf0] }
 0x4cc   :  { %6224 = vmatpush.bf16.msra.mxu2 %v11053_v30  ;;  %v10646_v30 = vld [vmem:[#allocation13 + $0x78] sm:$0xf0] }
 0x4cd   :  { %v10649_v24 = vor.u32 %v12607_v40, %v10646_v30  ;;  %v12627_v40 = vld [vmem:[#allocation10 + $0x174] sm:$0xf0]  ;;  %v12724_v30 = vld [vmem:[#allocation10 + $0xac4] sm:$0xf] }
 0x4ce   :  { %10651 = vmatmul.msk.bf16.vlgmr.msrb.gmra.mxu0 %vm404_vm0, %v13777_v15  ;;  %6173 = vmatmul.bf16.vlgmr.msrb.gmra.mxu2 %v13785_v41  ;;  %v10717_v0 = vor.u32 %v12627_v40, %v10716_v11  ;;  %v11068_v11 = vld [vmem:[#allocation10 + $0x958] sm:$0xf] }
 0x4cf   :  { %6267 = vmatpush.bf16.msrb.mxu1 %v10773_v59  ;;  %10654 = vmatmul.msk.bf16.vlgmr.msra.gmra.mxu3 %vm404_vm0, %v13777_v15  ;;  %v10877_v59 = vor.u32 %v12667_v2, %v10876_v46  ;;  %v12661_v46 = vld [vmem:[#allocation10 + $0x4cc] sm:$0xf]  ;;  %v12715_v40 = vld [vmem:[#allocation10 + $0x9b4] sm:$0xf0] }
 0x4d0   :  { %5329 = vmatpush.bf16.msrb.mxu0 %v10641_v28  ;;  %6179 = vmatpush.bf16.msra.mxu3 %v10889_v52  ;;  %v10726_v28 = vld [vmem:[#allocation10 + $0x220] sm:$0xf0]  ;;  %v12599_v52 = vld [vmem:[#allocation13 + $0x1c] sm:$0xf] }
 0x4d1   :  { %6225 = vmatpush.bf16.msra.mxu2 %v11021_v12  ;;  %v10614_v12 = vld [vmem:[#allocation13 + $0x38] sm:$0xf0]  ;;  %v10729_v8 = vor.u32 %v12628_v53, %v10726_v28  ;;  %v10964_v53 = vld [vmem:[#allocation10 + $0x710] sm:$0xf]  ;;  %v10684_v28 = vld [vmem:[#allocation10 + $0x58] sm:$0xf] }
 0x4d2   :  { %v10617_v44 = vor.u32 %v12599_v52, %v10614_v12  ;;  %v12619_v52 = vld [vmem:[#allocation10 + $0xb4] sm:$0xf0]  ;;  %v12716_v12 = vld [vmem:[#allocation10 + $0xa04] sm:$0xf] }
 0x4d3   :  { %6268 = vmatpush.bf16.msrb.mxu1 %v10741_v32  ;;  %v10812_v32 = vld [vmem:[#allocation10 + $0x358] sm:$0xf] }
 0x4d4   :  { %5330 = vmatpush.bf16.msrb.mxu0 %v10609_v29  ;;  %6180 = vmatpush.bf16.msra.mxu3 %v10857_v43  ;;  %v10694_v29 = vld [vmem:[#allocation10 + $0x160] sm:$0xf0]  ;;  %v10813_v43 = vor.u32 %v12651_v33, %v10812_v32  ;;  %v12645_v32 = vld [vmem:[#allocation10 + $0x34c] sm:$0xf]  ;;  %v10685_v33 = vor.u32 %v12619_v52, %v10684_v28 }
 0x4d5   :  { %6226 = vmatpush.bf16.msra.mxu2 %v10989_v35  ;;  %v11060_v35 = vld [vmem:[#allocation10 + $0x950] sm:$0xf]  ;;  %v10697_v36 = vor.u32 %v12620_v37, %v10694_v29  ;;  %v11164_v29 = vld [vmem:[#allocation10 + $0xb98] sm:$0xf]  ;;  %v12676_v28 = vld [vmem:[#allocation10 + $0x644] sm:$0xf] }
 0x4d6   :  { %v11061_v42 = vor.u32 %v12714_v10, %v11060_v35  ;;  %v12708_v35 = vld [vmem:[#allocation10 + $0x944] sm:$0xf] }
 0x4d7   :  { %6269 = vmatpush.bf16.msrb.mxu1 %v10709_v45  ;;  %v10780_v45 = vld [vmem:[#allocation10 + $0x298] sm:$0xf]  ;;  %v11046_v10 = vld [vmem:[#allocation10 + $0x9a0] sm:$0xf0] }
 0x4d8   :  { %6181 = vmatpush.bf16.msra.mxu3 %v10825_v34  ;;  %v10781_v14 = vor.u32 %v12643_v38, %v10780_v45  ;;  %v10894_v34 = vld [vmem:[#allocation10 + $0x5e8] sm:$0xf0]  ;;  %v11049_v50 = vor.u32 %v12708_v35, %v11046_v10  ;;  %v10918_v52 = vld [vmem:[#allocation10 + $0x6a0] sm:$0xf0] }
 0x4d9   :  { %6227 = vmatpush.bf16.msra.mxu2 %v10957_v51  ;;  %v11028_v51 = vld [vmem:[#allocation10 + $0x890] sm:$0xf]  ;;  %v10897_v62 = vor.u32 %v12669_v47, %v10894_v34  ;;  %v11132_v47 = vld [vmem:[#allocation10 + $0xad8] sm:$0xf]  ;;  %v12700_v34 = vld [vmem:[#allocation10 + $0x884] sm:$0xf] }
 0x4da   :  { %v11029_v49 = vor.u32 %v12706_v20, %v11028_v51  ;;  %v11014_v51 = vld [vmem:[#allocation10 + $0x8e0] sm:$0xf0]  ;;  %v11118_v35 = vld [vmem:[#allocation10 + $0xb28] sm:$0xf0] }
 0x4db   :  { %6270 = vmatpush.bf16.msrb.mxu1 %v10677_v48  ;;  %v10748_v48 = vld [vmem:[#allocation10 + $0x1d8] sm:$0xf] }
 0x4dc   :  { %6182 = vmatpush.bf16.msra.mxu3 %v10793_v4  ;;  %v10749_v2 = vor.u32 %v12635_v1, %v10748_v48  ;;  %v10862_v4 = vld [vmem:[#allocation10 + $0x528] sm:$0xf0] }
 0x4dd   :  { %6228 = vmatpush.bf16.msra.mxu2 %v10925_v63  ;;  %v10996_v63 = vld [vmem:[#allocation10 + $0x7d0] sm:$0xf]  ;;  %v10865_v7 = vor.u32 %v12661_v46, %v10862_v4  ;;  %v12629_v1 = vld [vmem:[#allocation10 + $0x1cc] sm:$0xf]  ;;  %v10982_v46 = vld [vmem:[#allocation10 + $0x820] sm:$0xf0] }
 0x4de   :  { %6271 = vmatmul.bf16.vlgmr.msrb.gmra.mxu1 %v13781_v21  ;;  %10653 = vmatmul.msk.bf16.vlgmr.msra.gmra.mxu0 %vm404_vm0, %v13777_v15  ;;  %v10997_v19 = vor.u32 %v12698_v9, %v10996_v63  ;;  %v12621_v63 = vld [vmem:[#allocation10 + $0x10c] sm:$0xf] }
 0x4df   :  { %6319 = vmatpush.bf16.msra.mxu1 %v10909_v58  ;;  %10656 = vmatmul.msk.bf16.vlgmr.msrb.gmra.mxu3 %vm404_vm0, %v13777_v15  ;;  %v11142_v58 = vld [vmem:[#allocation10 + $0xbe0] sm:$0xf0]  ;;  %v10702_v9 = vld [vmem:[#allocation10 + $0x168] sm:$0xf0] }
 0x4e0   :  { %6229 = vmatmul.bf16.vlgmr.msra.gmra.mxu2 %v13785_v41  ;;  %6183 = vmatpush.bf16.msra.mxu3 %v10761_v23  ;;  %v10830_v23 = vld [vmem:[#allocation10 + $0x468] sm:$0xf0] }
 0x4e1   :  { %6277 = vmatpush.bf16.msrb.mxu2 %v11157_v16  ;;  %5357 = vmatpush.bf16.msra.mxu0 %v10649_v24  ;;  %v11145_v16 = vor.u32 %v12732_v17, %v11142_v58  ;;  %v12690_v24 = vld [vmem:[#allocation10 + $0x76c] sm:$0xf0]  ;;  %v10833_v6 = vor.u32 %v12653_v56, %v10830_v23  ;;  %v11017_v17 = vor.u32 %v12700_v34, %v11014_v51  ;;  %v11100_v58 = vld [vmem:[#allocation10 + $0xa18] sm:$0xf]  ;;  %v12613_v56 = vld [vmem:[#allocation10 + $0x4c] sm:$0xf] }
 0x4e2   :  { %v10965_v31 = vor.u32 %v12690_v24, %v10964_v53  ;;  %v12670_v23 = vld [vmem:[#allocation10 + $0x594] sm:$0xf] }
 0x4e3   :  { %6320 = vmatpush.bf16.msra.mxu1 %v10877_v59  ;;  %v11110_v59 = vld [vmem:[#allocation10 + $0xb20] sm:$0xf0]  ;;  %v10902_v24 = vld [vmem:[#allocation10 + $0x5f0] sm:$0xf0] }
 0x4e4   :  { %6184 = vmatpush.bf16.msra.mxu3 %v10729_v8  ;;  %v10798_v8 = vld [vmem:[#allocation10 + $0x3a8] sm:$0xf0] }
 0x4e5   :  { %6278 = vmatpush.bf16.msrb.mxu2 %v11125_v27  ;;  %5358 = vmatpush.bf16.msra.mxu0 %v10617_v44  ;;  %v11113_v27 = vor.u32 %v12724_v30, %v11110_v59  ;;  %v10932_v44 = vld [vmem:[#allocation10 + $0x650] sm:$0xf]  ;;  %v10801_v45 = vor.u32 %v12645_v32, %v10798_v8  ;;  %v12684_v30 = vld [vmem:[#allocation10 + $0x704] sm:$0xf]  ;;  %v10921_v8 = vor.u32 %v12676_v28, %v10918_v52  ;;  %v11220_v28 = vld [vmem:[#allocation26 + $0x60] sm:$0xf] }
 0x4e6   :  { %v10950_v59 = vld [vmem:[#allocation10 + $0x760] sm:$0xf0]  ;;  %v12685_v52 = vld [vmem:[#allocation10 + $0x70c] sm:$0xf] }
 0x4e7   :  { %6321 = vmatpush.bf16.msra.mxu1 %v10845_v61  ;;  %v11078_v61 = vld [vmem:[#allocation10 + $0xa60] sm:$0xf0]  ;;  %v10953_v53 = vor.u32 %v12684_v30, %v10950_v59  ;;  %v10742_v30 = vld [vmem:[#allocation10 + $0x230] sm:$0xf0] }
 0x4e8   :  { %6185 = vmatpush.bf16.msra.mxu3 %v10697_v36  ;;  %v11081_v37 = vor.u32 %v12716_v12, %v11078_v61  ;;  %v12733_v61 = vld [vmem:[#allocation10 + $0xb8c] sm:$0xf] }
 0x4e9   :  { %6279 = vmatpush.bf16.msrb.mxu2 %v11093_v26  ;;  %v12682_v26 = vld [vmem:[#allocation10 + $0x6ac] sm:$0xf0] }
 0x4ea   :  { %v10933_v38 = vor.u32 %v12682_v26, %v10932_v44  ;;  %v10870_v44 = vld [vmem:[#allocation10 + $0x530] sm:$0xf0]  ;;  %v11004_v26 = vld [vmem:[#allocation10 + $0x7d8] sm:$0xf] }
 0x4eb   :  { %6322 = vmatpush.bf16.msra.mxu1 %v10813_v43  ;;  %v12739_v43 = vld [vmem:[#allocation10 + $0xbf4] sm:$0xf0] }
 0x4ec   :  { %6186 = vmatpush.bf16.msra.mxu3 %v10665_v55  ;;  %v11165_v36 = vor.u32 %v12739_v43, %v11164_v29  ;;  %v10734_v55 = vld [vmem:[#allocation10 + $0x228] sm:$0xf0] }
 0x4ed   :  { %6280 = vmatpush.bf16.msrb.mxu2 %v11061_v42  ;;  %v12637_v42 = vld [vmem:[#allocation10 + $0x28c] sm:$0xf] }
 0x4ee   :  { %10655 = vmatmul.msk.bf16.vlgmr.msrb.gmra.mxu0 %vm404_vm0, %v13777_v15  ;;  %v10769_v20 = vor.u32 %v12637_v42, %v10766_v13  ;;  %v12725_v43 = vld [vmem:[#allocation10 + $0xacc] sm:$0xf]  ;;  %v10972_v42 = vld [vmem:[#allocation10 + $0x718] sm:$0xf] }
 0x4ef   :  { %6323 = vmatpush.bf16.msra.mxu1 %v10781_v14  ;;  %6187 = vmatmul.bf16.vlgmr.msra.gmra.mxu3 %v13781_v21  ;;  %v12731_v14 = vld [vmem:[#allocation10 + $0xb34] sm:$0xf0] }
 0x4f0   :  { %6235 = vmatpush.bf16.msrb.mxu3 %v10897_v62  ;;  %6193 = vmatpush.bf16.msrb.mxu0 %v11145_v16  ;;  %v11133_v48 = vor.u32 %v12731_v14, %v11132_v47  ;;  %v12723_v62 = vld [vmem:[#allocation10 + $0xa74] sm:$0xf0]  ;;  %v12717_v47 = vld [vmem:[#allocation10 + $0xa0c] sm:$0xf] }
 0x4f1   :  { %6281 = vmatpush.bf16.msrb.mxu2 %v11029_v49  ;;  %v12692_v49 = vld [vmem:[#allocation10 + $0x7c4] sm:$0xf]  ;;  %v11101_v4 = vor.u32 %v12723_v62, %v11100_v58  ;;  %v12691_v13 = vld [vmem:[#allocation10 + $0x774] sm:$0xf0]  ;;  %v11086_v14 = vld [vmem:[#allocation10 + $0xa68] sm:$0xf0] }
 0x4f2   :  { %v10985_v16 = vor.u32 %v12692_v49, %v10982_v46  ;;  %v10973_v51 = vor.u32 %v12691_v13, %v10972_v42  ;;  %v12709_v58 = vld [vmem:[#allocation10 + $0x94c] sm:$0xf]  ;;  %v11158_v42 = vld [vmem:[#allocation10 + $0xbf0] sm:$0xf0] }
 0x4f3   :  { %6324 = vmatpush.bf16.msra.mxu1 %v10749_v2  ;;  %v10737_v2 = vor.u32 %v12629_v1, %v10734_v55  ;;  %v10940_v1 = vld [vmem:[#allocation10 + $0x658] sm:$0xf]  ;;  %v11054_v62 = vld [vmem:[#allocation10 + $0x9a8] sm:$0xf0] }
 0x4f4   :  { %6236 = vmatpush.bf16.msrb.mxu3 %v10865_v7  ;;  %6194 = vmatpush.bf16.msrb.mxu0 %v11113_v27  ;;  %v10705_v7 = vor.u32 %v12621_v63, %v10702_v9  ;;  %v12707_v27 = vld [vmem:[#allocation10 + $0x8f4] sm:$0xf0]  ;;  %v11057_v63 = vor.u32 %v12709_v58, %v11054_v62  ;;  %v12701_v9 = vld [vmem:[#allocation10 + $0x88c] sm:$0xf]  ;;  %v12655_v58 = vld [vmem:[#allocation10 + $0x41c] sm:$0xf] }
 0x4f5   :  { %6282 = vmatpush.bf16.msrb.mxu2 %v10997_v19  ;;  %v11069_v19 = vor.u32 %v12715_v40, %v11068_v11  ;;  %v12683_v55 = vld [vmem:[#allocation10 + $0x6b4] sm:$0xf0]  ;;  %v12630_v40 = vld [vmem:[#allocation10 + $0x1d4] sm:$0xf]  ;;  %v10846_v62 = vld [vmem:[#allocation10 + $0x478] sm:$0xf0] }
 0x4f6   :  { %v10941_v46 = vor.u32 %v12683_v55, %v10940_v1  ;;  %v11126_v1 = vld [vmem:[#allocation10 + $0xb30] sm:$0xf0] }
 0x4f7   :  { %6325 = vmatpush.bf16.msra.mxu1 %v10717_v0  ;;  %v10670_v0 = vld [vmem:[#allocation10 + $0xa8] sm:$0xf0] }
 0x4f8   :  { %6237 = vmatpush.bf16.msrb.mxu3 %v10833_v6  ;;  %6195 = vmatpush.bf16.msrb.mxu0 %v11081_v37  ;;  %v10673_v12 = vor.u32 %v12613_v56, %v10670_v0  ;;  %v11150_v6 = vld [vmem:[#allocation10 + $0xbe8] sm:$0xf0]  ;;  %v12699_v37 = vld [vmem:[#allocation10 + $0x834] sm:$0xf0] }
 0x4f9   :  { %6283 = vmatpush.bf16.msrb.mxu2 %v10965_v31  ;;  %v10905_v31 = vor.u32 %v12670_v23, %v10902_v24  ;;  %v11153_v29 = vor.u32 %v12733_v61, %v11150_v6  ;;  %v12693_v56 = vld [vmem:[#allocation10 + $0x7cc] sm:$0xf]  ;;  %v12622_v24 = vld [vmem:[#allocation10 + $0x114] sm:$0xf]  ;;  %v12753_v61 = vld [vmem:[#allocation26 + $0x64] sm:$0xf0] }
 0x4fa   :  { %v10990_v0 = vld [vmem:[#allocation10 + $0x828] sm:$0xf0] }
 0x4fb   :  { %6326 = vmatpush.bf16.msra.mxu1 %v10685_v33  ;;  %v12662_v33 = vld [vmem:[#allocation10 + $0x4d4] sm:$0xf] }
 0x4fc   :  { %6238 = vmatpush.bf16.msrb.mxu3 %v10801_v45  ;;  %6196 = vmatpush.bf16.msrb.mxu0 %v11049_v50  ;;  %v10873_v10 = vor.u32 %v12662_v33, %v10870_v44  ;;  %v11005_v45 = vor.u32 %v12699_v37, %v11004_v26  ;;  %v11121_v50 = vor.u32 %v12725_v43, %v11118_v35  ;;  %v10678_v33 = vld [vmem:[#allocation10 + $0xb0] sm:$0xf0]  ;;  %v10910_v26 = vld [vmem:[#allocation10 + $0x5f8] sm:$0xf0]  ;;  %v11212_v37 = vld [vmem:[#allocation26 + $0x50] sm:$0xf] }
 0x4fd   :  { %6284 = vmatpush.bf16.msrb.mxu2 %v10933_v38  ;;  %v12654_v38 = vld [vmem:[#allocation10 + $0x414] sm:$0xf]  ;;  %v12677_v43 = vld [vmem:[#allocation10 + $0x64c] sm:$0xf] }
 0x4fe   :  { %6327 = vmatmul.bf16.vlgmr.msra.gmra.mxu1 %v13781_v21  ;;  %10657 = vmatmul.msk.bf16.vlgmr.msra.gmra.mxu0 %vm404_vm0, %v13777_v15  ;;  %v11036_v15 = vld [vmem:[#allocation10 + $0x898] sm:$0xf]  ;;  %v10926_v35 = vld [vmem:[#allocation10 + $0x6a8] sm:$0xf0] }
 0x4ff   :  { %v11037_v32 = vor.u32 %v12707_v27, %v11036_v15  ;;  %v10710_v15 = vld [vmem:[#allocation10 + $0x170] sm:$0xf0]  ;;  %v10993_v27 = vor.u32 %v12693_v56, %v10990_v0 }
 0x500   :  { %6285 = vmatmul.bf16.vlgmr.msrb.gmra.mxu2 %v13785_v41  ;;  %6239 = vmatpush.bf16.msrb.mxu3 %v10769_v20  ;;  %v12646_v20 = vld [vmem:[#allocation10 + $0x354] sm:$0xf]  ;;  %v10713_v6 = vor.u32 %v12622_v24, %v10710_v15  ;;  %v12743_v24 = vld [vmem:[#allocation26 + $0x14] sm:$0xf0] }
 0x501   :  { %6333 = vmatpush.bf16.msra.mxu2 %v11165_v36  ;;  %6197 = vmatpush.bf16.msrb.mxu0 %v11017_v17  ;;  %v10838_v36 = vld [vmem:[#allocation10 + $0x470] sm:$0xf0]  ;;  %v11089_v17 = vor.u32 %v12717_v47, %v11086_v14  ;;  %v12663_v47 = vld [vmem:[#allocation10 + $0x4dc] sm:$0xf] }
 0x502   :  { %v10841_v34 = vor.u32 %v12654_v38, %v10838_v36  ;;  %v12734_v36 = vld [vmem:[#allocation10 + $0xb94] sm:$0xf]  ;;  %v10878_v14 = vld [vmem:[#allocation10 + $0x538] sm:$0xf0] }
 0x503   :  { %v12710_v56 = vld [vmem:[#allocation10 + $0x954] sm:$0xf] }
 0x504   :  { %6240 = vmatpush.bf16.msrb.mxu3 %v10737_v2  ;;  %v12638_v2 = vld [vmem:[#allocation10 + $0x294] sm:$0xf] }
 0x505   :  { %6334 = vmatpush.bf16.msra.mxu2 %v11133_v48  ;;  %6198 = vmatpush.bf16.msrb.mxu0 %v10985_v16  ;;  %v10806_v48 = vld [vmem:[#allocation10 + $0x3b0] sm:$0xf0]  ;;  %v11022_v16 = vld [vmem:[#allocation10 + $0x8e8] sm:$0xf0] }
 0x506   :  { %v10809_v49 = vor.u32 %v12646_v20, %v10806_v48  ;;  %v11025_v59 = vor.u32 %v12701_v9, %v11022_v16  ;;  %v12749_v20 = vld [vmem:[#allocation26 + $0x44] sm:$0xf0]  ;;  %v12726_v48 = vld [vmem:[#allocation10 + $0xad4] sm:$0xf]  ;;  %v10849_v16 = vor.u32 %v12655_v58, %v10846_v62 }
 0x507   :  { %v11094_v9 = vld [vmem:[#allocation10 + $0xa70] sm:$0xf0] }
 0x508   :  { %6241 = vmatpush.bf16.msrb.mxu3 %v10705_v7  ;;  %v11228_v7 = vld [vmem:[#allocation26 + $0x70] sm:$0xf] }
 0x509   :  { %6335 = vmatpush.bf16.msra.mxu2 %v11101_v4  ;;  %6199 = vmatpush.bf16.msrb.mxu0 %v10953_v53  ;;  %v10774_v4 = vld [vmem:[#allocation10 + $0x2f0] sm:$0xf0]  ;;  %v10745_v53 = vor.u32 %v12630_v40, %v10742_v30  ;;  %v10814_v30 = vld [vmem:[#allocation10 + $0x3b8] sm:$0xf0] }
 0x50a   :  { %v10777_v11 = vor.u32 %v12638_v2, %v10774_v4  ;;  %v11129_v2 = vor.u32 %v12726_v48, %v11126_v1  ;;  %v12686_v1 = vld [vmem:[#allocation10 + $0x714] sm:$0xf] }
 0x50c   :  { %6242 = vmatpush.bf16.msrb.mxu3 %v10673_v12  ;;  %v10958_v12 = vld [vmem:[#allocation10 + $0x768] sm:$0xf0] }
 0x50d   :  { %6336 = vmatpush.bf16.msra.mxu2 %v11069_v19  ;;  %6200 = vmatpush.bf16.msrb.mxu0 %v10921_v8  ;;  %v12755_v19 = vld [vmem:[#allocation26 + $0x74] sm:$0xf0]  ;;  %v12671_v8 = vld [vmem:[#allocation10 + $0x59c] sm:$0xf]  ;;  %v10961_v44 = vor.u32 %v12685_v52, %v10958_v12 }
 0x50e   :  { %v11229_v23 = vor.u32 %v12755_v19, %v11228_v7  ;;  %v10913_v13 = vor.u32 %v12671_v8, %v10910_v26  ;;  %v12745_v7 = vld [vmem:[#allocation26 + $0x24] sm:$0xf0]  ;;  %v10750_v8 = vld [vmem:[#allocation10 + $0x238] sm:$0xf0] }
 0x50f   :  { %6243 = vmatmul.bf16.vlgmr.msrb.gmra.mxu3 %v13781_v21  ;;  %v12741_v26 = vld [vmem:[#allocation26 + $0x4] sm:$0xf0] }
 0x510   :  { %6291 = vmatpush.bf16.msra.mxu3 %v10905_v31  ;;  %6201 = vmatmul.bf16.vlgmr.msrb.gmra.mxu0 %v13785_v41  ;;  %v11221_v31 = vor.u32 %v12753_v61, %v11220_v28  ;;  %v10782_v28 = vld [vmem:[#allocation10 + $0x2f8] sm:$0xf0]  ;;  %v12702_v61 = vld [vmem:[#allocation10 + $0x894] sm:$0xf] }
 0x511   :  { %6337 = vmatpush.bf16.msra.mxu2 %v11037_v32  ;;  %6249 = vmatpush.bf16.msra.mxu0 %v11153_v29  ;;  %v12614_v32 = vld [vmem:[#allocation10 + $0x54] sm:$0xf]  ;;  %v12751_v29 = vld [vmem:[#allocation26 + $0x54] sm:$0xf0] }
 0x512   :  { %7189 = vmatpush.bf16.msrb.mxu1 %v11229_v23  ;;  %v10681_v38 = vor.u32 %v12614_v32, %v10678_v33  ;;  %v11062_v23 = vld [vmem:[#allocation10 + $0x9b0] sm:$0xf0]  ;;  %v12631_v33 = vld [vmem:[#allocation10 + $0x1dc] sm:$0xf] }
 0x513   :  { %v11065_v12 = vor.u32 %v12710_v56, %v11062_v23  ;;  %v11166_v23 = vld [vmem:[#allocation10 + $0xbf8] sm:$0xf0] }
 0x514   :  { %6292 = vmatpush.bf16.msra.mxu3 %v10873_v10  ;;  %v11213_v10 = vor.u32 %v12751_v29, %v11212_v37 }
 0x515   :  { %6338 = vmatpush.bf16.msra.mxu2 %v11005_v45  ;;  %6250 = vmatpush.bf16.msra.mxu0 %v11121_v50  ;;  %v10929_v50 = vor.u32 %v12677_v43, %v10926_v35 }
 0x516   :  { %7190 = vmatpush.bf16.msrb.mxu1 %v11221_v31  ;;  %v14005_v31 = vld [vmem:[#allocation25] sm:$0x3] }
 0x517   :  { %v4933_v29 = vperm.slane %v14005_v31, 0 }
 0x518   :  { %6293 = vmatpush.bf16.msra.mxu3 %v10841_v34  ;;  %v11204_v34 = vld [vmem:[#allocation26 + $0x40] sm:$0xf] }
 0x519   :  { %6339 = vmatpush.bf16.msra.mxu2 %v10973_v51  ;;  %6251 = vmatpush.bf16.msra.mxu0 %v11089_v17  ;;  %v11161_v51 = vor.u32 %v12734_v36, %v11158_v42  ;;  %v11205_v55 = vor.u32 %v12749_v20, %v11204_v34  ;;  %v10881_v17 = vor.u32 %v12663_v47, %v10878_v14  ;;  %v12694_v36 = vld [vmem:[#allocation10 + $0x7d4] sm:$0xf]  ;;  %v12623_v14 = vld [vmem:[#allocation10 + $0x11c] sm:$0xf]  ;;  %v11476_v20 = vld [vmem:[#allocation26 + $0x260] sm:$0xf] }
 0x51a   :  { %7191 = vmatpush.bf16.msrb.mxu1 %v11213_v10  ;;  %v11484_v10 = vld [vmem:[#allocation26 + $0x270] sm:$0xf]  ;;  %v10998_v42 = vld [vmem:[#allocation10 + $0x830] sm:$0xf0]  ;;  %v10718_v34 = vld [vmem:[#allocation10 + $0x178] sm:$0xf0] }
 0x51b   :  { %v5134_v37 = vpop.f32.mrf.mxu1  ;;  %v10721_v62 = vor.u32 %v12623_v14, %v10718_v34  ;;  %v12719_v14 = vld [vmem:[#allocation10 + $0xa1c] sm:$0xf] }
 0x51c   :  { %6294 = vmatpush.bf16.msra.mxu3 %v10809_v49  ;;  %v11196_v49 = vld [vmem:[#allocation26 + $0x30] sm:$0xf]  ;;  %v11102_v34 = vld [vmem:[#allocation10 + $0xa78] sm:$0xf0] }
 0x51d   :  { %6340 = vmatpush.bf16.msra.mxu2 %v10941_v46  ;;  %6252 = vmatpush.bf16.msra.mxu0 %v11057_v63  ;;  %v12747_v46 = vld [vmem:[#allocation26 + $0x34] sm:$0xf0]  ;;  %v12718_v63 = vld [vmem:[#allocation10 + $0xa14] sm:$0xf] }
 0x51e   :  { %7192 = vmatpush.bf16.msrb.mxu1 %v11205_v55  ;;  %v11197_v4 = vor.u32 %v12747_v46, %v11196_v49  ;;  %v11097_v19 = vor.u32 %v12718_v63, %v11094_v9  ;;  %v10966_v55 = vld [vmem:[#allocation10 + $0x770] sm:$0xf0]  ;;  %v4934_v46 = vperm.slane %v14005_v31, 1  ;;  %v10686_v63 = vld [vmem:[#allocation10 + $0xb8] sm:$0xf0] }
 0x51f   :  { %v10969_v9 = vor.u32 %v12686_v1, %v10966_v55 }
 0x520   :  { %6341 = vmatmul.bf16.vlgmr.msra.gmra.mxu2 %v13785_v41  ;;  %6295 = vmatpush.bf16.msra.mxu3 %v10777_v11  ;;  %v12647_v11 = vld [vmem:[#allocation10 + $0x35c] sm:$0xf] }
 0x521   :  { %6253 = vmatpush.bf16.msra.mxu0 %v11025_v59  ;;  %v13999_v45 = vpop.f32.mrf.mxu3  ;;  %v11188_v59 = vld [vmem:[#allocation26 + $0x20] sm:$0xf]  ;;  %v10817_v15 = vor.u32 %v12647_v11, %v10814_v30  ;;  %v12787_v11 = vld [vmem:[#allocation26 + $0x174] sm:$0xf0]  ;;  %v11468_v30 = vld [vmem:[#allocation26 + $0x250] sm:$0xf] }
 0x522   :  { %7193 = vmatpush.bf16.msrb.mxu1 %v11197_v4  ;;  %v11189_v0 = vor.u32 %v12745_v7, %v11188_v59  ;;  %v5107_v48 = vadd.f32 %v13999_v45, %v4933_v29  ;;  %v12615_v4 = vld [vmem:[#allocation10 + $0x5c] sm:$0xf]  ;;  %v12678_v45 = vld [vmem:[#allocation10 + $0x654] sm:$0xf]  ;;  %v12815_v7 = vld [vmem:[#allocation26 + $0x254] sm:$0xf0] }
 0x523   :  { %v10934_v59 = vld [vmem:[#allocation10 + $0x6b0] sm:$0xf0]  ;;  %v10689_v56 = vor.u32 %v12615_v4, %v10686_v63  ;;  %v11105_v4 = vor.u32 %v12719_v14, %v11102_v34  ;;  %v12775_v14 = vld [vmem:[#allocation26 + $0x114] sm:$0xf0] }
 0x524   :  { %6296 = vmatpush.bf16.msra.mxu3 %v10745_v53  ;;  %v11180_v53 = vld [vmem:[#allocation26 + $0x10] sm:$0xf] }
 0x525   :  { %6254 = vmatpush.bf16.msra.mxu0 %v10993_v27  ;;  %v12639_v27 = vld [vmem:[#allocation10 + $0x29c] sm:$0xf]  ;;  %v11181_v52 = vor.u32 %v12743_v24, %v11180_v53  ;;  %v11469_v53 = vor.u32 %v12815_v7, %v11468_v30  ;;  %v5135_v24 = vadd.f32 %v5134_v37, %v4934_v46  ;;  %v11324_v7 = vld [vmem:[#allocation26 + $0x130] sm:$0xf] }
 0x526   :  { %7194 = vmatpush.bf16.msrb.mxu1 %v11189_v0  ;;  %v10785_v32 = vor.u32 %v12639_v27, %v10782_v28  ;;  %v12735_v0 = vld [vmem:[#allocation10 + $0xb9c] sm:$0xf] }
 0x528   :  { %6297 = vmatpush.bf16.msra.mxu3 %v10713_v6  ;;  %v11030_v6 = vld [vmem:[#allocation10 + $0x8f0] sm:$0xf0] }
 0x529   :  { %6255 = vmatpush.bf16.msra.mxu0 %v10961_v44  ;;  %v14003_v40 = vpop.f32.mrf.mxu3  ;;  %v11172_v44 = vld [vmem:[#allocation26] sm:$0xf]  ;;  %v11033_v43 = vor.u32 %v12702_v61, %v11030_v6  ;;  %v12785_v61 = vld [vmem:[#allocation26 + $0x164] sm:$0xf0] }
 0x52a   :  { %7195 = vmatpush.bf16.msrb.mxu1 %v11181_v52  ;;  %v11173_v35 = vor.u32 %v12741_v26, %v11172_v44  ;;  %v10937_v52 = vor.u32 %v12678_v45, %v10934_v59  ;;  %v11460_v6 = vld [vmem:[#allocation26 + $0x240] sm:$0xf]  ;;  %v12727_v26 = vld [vmem:[#allocation10 + $0xadc] sm:$0xf] }
 0x52c   :  { %6298 = vmatpush.bf16.msra.mxu3 %v10681_v38 }
 0x52d   :  { %6256 = vmatpush.bf16.msra.mxu0 %v10929_v50  ;;  %v10753_v50 = vor.u32 %v12631_v33, %v10750_v8  ;;  %v11169_v33 = vor.u32 %v12735_v0, %v11166_v23  ;;  %v12813_v8 = vld [vmem:[#allocation26 + $0x244] sm:$0xf0]  ;;  %v12807_v0 = vld [vmem:[#allocation26 + $0x214] sm:$0xf0] }
 0x52e   :  { %7196 = vmatpush.bf16.msrb.mxu1 %v11173_v35  ;;  %v11461_v35 = vor.u32 %v12813_v8, %v11460_v6  ;;  %v12805_v8 = vld [vmem:[#allocation26 + $0x204] sm:$0xf0] }
 0x52f   :  { %6299 = vmatmul.bf16.vlgmr.msra.gmra.mxu3 %v13781_v21 }
 0x530   :  { %6347 = vmatpush.bf16.msrb.mxu3 %v10913_v13  ;;  %6257 = vmatmul.bf16.vlgmr.msra.gmra.mxu0 %v13785_v41  ;;  %v12819_v13 = vld [vmem:[#allocation26 + $0x274] sm:$0xf0] }
 0x531   :  { %6305 = vmatpush.bf16.msrb.mxu0 %v11161_v51  ;;  %v14008_v38 = vpop.f32.mrf.mxu3  ;;  %v11485_v47 = vor.u32 %v12819_v13, %v11484_v10  ;;  %v11001_v51 = vor.u32 %v12694_v36, %v10998_v42  ;;  %v11340_v10 = vld [vmem:[#allocation26 + $0x150] sm:$0xf]  ;;  %v12783_v36 = vld [vmem:[#allocation26 + $0x154] sm:$0xf0] }
 0x532   :  { %v11452_v42 = vld [vmem:[#allocation26 + $0x230] sm:$0xf]  ;;  %v12811_v13 = vld [vmem:[#allocation26 + $0x234] sm:$0xf0] }
 0x533   :  { %7245 = vmatpush.bf16.msra.mxu1 %v11485_v47  ;;  %v11453_v47 = vor.u32 %v12811_v13, %v11452_v42 }
 0x534   :  { %6348 = vmatpush.bf16.msrb.mxu3 %v10881_v17  ;;  %v12817_v17 = vld [vmem:[#allocation26 + $0x264] sm:$0xf0] }
 0x535   :  { %6306 = vmatpush.bf16.msrb.mxu0 %v11129_v2  ;;  %v11477_v49 = vor.u32 %v12817_v17, %v11476_v20  ;;  %v11341_v20 = vor.u32 %v12783_v36, %v11340_v10  ;;  %v12781_v17 = vld [vmem:[#allocation26 + $0x144] sm:$0xf0]  ;;  %v12695_v10 = vld [vmem:[#allocation10 + $0x7dc] sm:$0xf] }
 0x536   :  { %v11006_v36 = vld [vmem:[#allocation10 + $0x838] sm:$0xf0] }
 0x537   :  { %7246 = vmatpush.bf16.msra.mxu1 %v11477_v49 }
 0x538   :  { %6349 = vmatpush.bf16.msrb.mxu3 %v10849_v16  ;;  %v11356_v16 = vld [vmem:[#allocation26 + $0x170] sm:$0xf] }
 0x539   :  { %6307 = vmatpush.bf16.msrb.mxu0 %v11097_v19  ;;  %v5136_v19 = vpop.f32.mrf.mxu1  ;;  %v11357_v27 = vor.u32 %v12787_v11, %v11356_v16  ;;  %v11070_v16 = vld [vmem:[#allocation10 + $0x9b8] sm:$0xf0]  ;;  %v14026_v11 = vld [vmem:[#allocation11 + $0x10] sm:$0xff] }
 0x53b   :  { %v5120_v58 = vpop.f32.mrf.mxu0  ;;  %7247 = vmatpush.bf16.msra.mxu1 %v11469_v53 }
 0x53c   :  { %6350 = vmatpush.bf16.msrb.mxu3 %v10817_v15  ;;  %v14014_v2 = vadd.f32 %v5120_v58, %v5107_v48  ;;  %v14016_v15 = vpop.f32.mrf.mxu3  ;;  %v11332_v48 = vld [vmem:[#allocation26 + $0x140] sm:$0xf] }
 0x53d   :  { %6308 = vmatpush.bf16.msrb.mxu0 %v11065_v12  ;;  %v11348_v12 = vld [vmem:[#allocation26 + $0x160] sm:$0xf]  ;;  %v11333_v59 = vor.u32 %v12781_v17, %v11332_v48  ;;  %v10974_v48 = vld [vmem:[#allocation10 + $0x778] sm:$0xf0] }
 0x53e   :  { %v11349_v37 = vor.u32 %v12785_v61, %v11348_v12  ;;  %v11444_v58 = vld [vmem:[#allocation26 + $0x220] sm:$0xf] }
 0x53f   :  { %7248 = vmatpush.bf16.msra.mxu1 %v11461_v35  ;;  %v11316_v61 = vld [vmem:[#allocation26 + $0x120] sm:$0xf] }
 0x540   :  { %6351 = vmatpush.bf16.msrb.mxu3 %v10785_v32 }
 0x541   :  { %6309 = vmatpush.bf16.msrb.mxu0 %v11033_v43  ;;  %v5148_v28 = vpop.f32.mrf.mxu2  ;;  %v11134_v43 = vld [vmem:[#allocation10 + $0xb38] sm:$0xf0]  ;;  %v6160_v1 = vpop.f32.mrf.mxu1 }
 0x542   :  { %v5149_v32 = vadd.f32 %v5148_v28, %v5135_v24  ;;  %v11038_v28 = vld [vmem:[#allocation10 + $0x8f8] sm:$0xf0] }
 0x543   :  { %v14018_v44 = vpop.f32.mrf.mxu0  ;;  %7249 = vmatpush.bf16.msra.mxu1 %v11453_v47  ;;  %v11308_v47 = vld [vmem:[#allocation26 + $0x110] sm:$0xf] }
 0x544   :  { %6352 = vmatpush.bf16.msrb.mxu3 %v10753_v50  ;;  %v11137_v50 = vor.u32 %v12727_v26, %v11134_v43  ;;  %v14022_v49 = vpop.f32.mrf.mxu3  ;;  %v5154_v30 = vmax.f32 %v5149_v32, 0.0  ;;  %v12777_v32 = vld [vmem:[#allocation26 + $0x124] sm:$0xf0]  ;;  %v11309_v17 = vor.u32 %v12775_v14, %v11308_v47  ;;  %v12847_v47 = vld [vmem:[#allocation26 + $0x354] sm:$0xf0] }
 0x545   :  { %6310 = vmatpush.bf16.msrb.mxu0 %v11001_v51  ;;  %v5137_v51 = vadd.f32 %v5136_v19, %v4934_v46  ;;  %v12711_v46 = vld [vmem:[#allocation10 + $0x95c] sm:$0xf]  ;;  %v12779_v19 = vld [vmem:[#allocation26 + $0x134] sm:$0xf0] }
 0x546   :  { %v11073_v53 = vor.u32 %v12711_v46, %v11070_v16  ;;  %v11325_v12 = vor.u32 %v12779_v19, %v11324_v7  ;;  %v11612_v46 = vld [vmem:[#allocation26 + $0x370] sm:$0xf]  ;;  %v12851_v16 = vld [vmem:[#allocation26 + $0x374] sm:$0xf0] }
 0x548   :  { %6353 = vmatpush.bf16.msrb.mxu3 %v10721_v62  ;;  %v12809_v62 = vld [vmem:[#allocation26 + $0x224] sm:$0xf0] }
 0x549   :  { %6311 = vmatpush.bf16.msrb.mxu0 %v10969_v9  ;;  %v5150_v55 = vpop.f32.mrf.mxu2  ;;  %v11445_v63 = vor.u32 %v12809_v62, %v11444_v58  ;;  %v6162_v35 = vpop.f32.mrf.mxu1  ;;  %v11300_v62 = vld [vmem:[#allocation26 + $0x100] sm:$0xf] }
 0x54b   :  { %v14024_v9 = vpop.f32.mrf.mxu0  ;;  %7250 = vmatpush.bf16.msra.mxu1 %v11445_v63 }
 0x54c   :  { %6354 = vmatpush.bf16.msrb.mxu3 %v10689_v56  ;;  %v11436_v56 = vld [vmem:[#allocation26 + $0x210] sm:$0xf]  ;;  %v14033_v13 = vpop.f32.mrf.mxu3 }
 0x54d   :  { %6312 = vmatpush.bf16.msrb.mxu0 %v10937_v52  ;;  %v11437_v24 = vor.u32 %v12807_v0, %v11436_v56  ;;  %v5495_v52 = vperm.slane %v14026_v11, 0  ;;  %v12754_v56 = vld [vmem:[#allocation26 + $0x74] sm:$0xf]  ;;  %v11230_v0 = vld [vmem:[#allocation26 + $0x78] sm:$0xf0] }
 0x54f   :  { %6355 = vmatmul.bf16.vlgmr.msrb.gmra.mxu3 %v13781_v21  ;;  %v5151_v21 = vadd.f32 %v5150_v55, %v5137_v51  ;;  %7251 = vmatpush.bf16.msra.mxu1 %v11437_v24  ;;  %v6161_v42 = vadd.f32 %v6160_v1, %v5495_v52  ;;  %v11009_v51 = vor.u32 %v12695_v10, %v11006_v36  ;;  %v11284_v10 = vld [vmem:[#allocation26 + $0xe0] sm:$0xf]  ;;  %v12769_v36 = vld [vmem:[#allocation26 + $0xe4] sm:$0xf0] }
 0x550   :  { %7217 = vmatpush.bf16.msra.mxu3 %v11357_v27  ;;  %6313 = vmatmul.bf16.vlgmr.msrb.gmra.mxu0 %v13785_v41  ;;  %v12703_v27 = vld [vmem:[#allocation10 + $0x89c] sm:$0xf]  ;;  %v6163_v55 = vadd.f32 %v6162_v35, %v5495_v52  ;;  %v11613_v24 = vor.u32 %v12851_v16, %v11612_v46  ;;  %v11285_v14 = vor.u32 %v12769_v36, %v11284_v10  ;;  %v11572_v36 = vld [vmem:[#allocation26 + $0x320] sm:$0xf] }
 0x551   :  { %6361 = vmatpush.bf16.msra.mxu0 %v11169_v33  ;;  %v5156_v45 = vmax.f32 %v5151_v21, 0.0  ;;  %v6174_v6 = vpop.f32.mrf.mxu2  ;;  %v11428_v33 = vld [vmem:[#allocation26 + $0x200] sm:$0xf]  ;;  %v11041_v26 = vor.u32 %v12703_v27, %v11038_v28  ;;  %v12773_v21 = vld [vmem:[#allocation26 + $0x104] sm:$0xf0] }
 0x552   :  { %v11429_v43 = vor.u32 %v12805_v8, %v11428_v33  ;;  %v6175_v34 = vadd.f32 %v6174_v6, %v6161_v42  ;;  %v11301_v19 = vor.u32 %v12773_v21, %v11300_v62  ;;  %v11292_v27 = vld [vmem:[#allocation26 + $0xf0] sm:$0xf]  ;;  %v12771_v28 = vld [vmem:[#allocation26 + $0xf4] sm:$0xf0]  ;;  %v11604_v6 = vld [vmem:[#allocation26 + $0x360] sm:$0xf]  ;;  %v11233_v8 = vor.u32 %v12754_v56, %v11230_v0 }
 0x553   :  { %v14028_v23 = vpack.c.bf16 %v5156_v45, %v5154_v30  ;;  %v12679_v45 = vld [vmem:[#allocation10 + $0x65c] sm:$0xf]  ;;  %v11293_v33 = vor.u32 %v12771_v28, %v11292_v27  ;;  %v5497_v42 = vperm.slane %v14026_v11, 2  ;;  %v12767_v62 = vld [vmem:[#allocation26 + $0xd4] sm:$0xf0] }
 0x554   :  { %7218 = vmatpush.bf16.msra.mxu3 %v11349_v37  ;;  %v14031_v37 = vpop.f32.mrf.mxu0  ;;  %7252 = vmatpush.bf16.msra.mxu1 %v11429_v43  ;;  %v6375_v1 = vadd.f32 %v6175_v34, %v14008_v38  ;;  %v14039_v38 = vpop.f32.mrf.mxu3  ;;  %v11222_v43 = vld [vmem:[#allocation26 + $0x68] sm:$0xf0]  ;;  %v12765_v0 = vld [vmem:[#allocation26 + $0xc4] sm:$0xf0]  ;;  %v11580_v27 = vld [vmem:[#allocation26 + $0x330] sm:$0xf] }
 0x555   :  { %6362 = vmatpush.bf16.msra.mxu0 %v11137_v50  ;;  %v11317_v50 = vor.u32 %v12777_v32, %v11316_v61  ;;  %v12849_v32 = vld [vmem:[#allocation26 + $0x364] sm:$0xf0]  ;;  %7203 = vmatpush.bf16.msrb.mxu2 %v11293_v33  ;;  %v12843_v28 = vld [vmem:[#allocation26 + $0x334] sm:$0xf0]  ;;  %v12746_v33 = vld [vmem:[#allocation26 + $0x34] sm:$0xf] }
 0x556   :  { %v6391_v52 = vmax.f32 %v6375_v1, 0.0  ;;  %v11605_v35 = vor.u32 %v12849_v32, %v11604_v6  ;;  %v11588_v1 = vld [vmem:[#allocation26 + $0x340] sm:$0xf] }
 0x558   :  { %7219 = vmatpush.bf16.msra.mxu3 %v11341_v20  ;;  %v12687_v20 = vld [vmem:[#allocation10 + $0x71c] sm:$0xf] }
 0x559   :  { %6363 = vmatpush.bf16.msra.mxu0 %v11105_v4  ;;  %v6176_v58 = vpop.f32.mrf.mxu2  ;;  %v10977_v63 = vor.u32 %v12687_v20, %v10974_v48  ;;  %v12750_v48 = vld [vmem:[#allocation26 + $0x54] sm:$0xf]  ;;  %7204 = vmatpush.bf16.msrb.mxu2 %v11285_v14 }
 0x55a   :  { %v6177_v4 = vadd.f32 %v6176_v58, %v6163_v55  ;;  %v11214_v55 = vld [vmem:[#allocation26 + $0x58] sm:$0xf0]  ;;  %v11276_v58 = vld [vmem:[#allocation26 + $0xd0] sm:$0xf] }
 0x55b   :  { %v11217_v16 = vor.u32 %v12750_v48, %v11214_v55  ;;  %v11190_v48 = vld [vmem:[#allocation26 + $0x28] sm:$0xf0]  ;;  %v11252_v55 = vld [vmem:[#allocation26 + $0xa0] sm:$0xf] }
 0x55c   :  { %7220 = vmatpush.bf16.msra.mxu3 %v11333_v59  ;;  %v14036_v30 = vpop.f32.mrf.mxu0  ;;  %v10942_v59 = vld [vmem:[#allocation10 + $0x6b8] sm:$0xf0]  ;;  %v6383_v7 = vadd.f32 %v6177_v4, %v14016_v15  ;;  %v12752_v15 = vld [vmem:[#allocation26 + $0x64] sm:$0xf]  ;;  %v12845_v4 = vld [vmem:[#allocation26 + $0x344] sm:$0xf0] }
 0x55d   :  { %6364 = vmatpush.bf16.msra.mxu0 %v11073_v53  ;;  %v6216_v53 = vpop.f32.mrf.mxu1  ;;  %v10945_v61 = vor.u32 %v12679_v45, %v10942_v59  ;;  %v11225_v20 = vor.u32 %v12752_v15, %v11222_v43  ;;  %v14048_v45 = vpop.f32.mrf.mxu3  ;;  %v11589_v56 = vor.u32 %v12845_v4, %v11588_v1  ;;  %v11581_v15 = vor.u32 %v12843_v28, %v11580_v27  ;;  %v11260_v43 = vld [vmem:[#allocation26 + $0xb0] sm:$0xf]  ;;  %v12786_v27 = vld [vmem:[#allocation26 + $0x174] sm:$0xf]  ;;  %v11358_v28 = vld [vmem:[#allocation26 + $0x178] sm:$0xf0] }
 0x55e   :  { %v6217_v21 = vadd.f32 %v6216_v53, %v5497_v42 }
 0x560   :  { %7221 = vmatpush.bf16.msra.mxu3 %v11325_v12  ;;  %v6399_v12 = vmax.f32 %v6383_v7, 0.0  ;;  %v12748_v7 = vld [vmem:[#allocation26 + $0x44] sm:$0xf] }
 0x561   :  { %6365 = vmatpush.bf16.msra.mxu0 %v11041_v26 }
 0x562   :  { %v14041_v26 = vpack.c.bf16 %v6399_v12, %v6391_v52 }
 0x563   :  { %v6230_v34 = vpop.f32.mrf.mxu2 }
 0x564   :  { %7222 = vmatpush.bf16.msra.mxu3 %v11317_v50  ;;  %7197 = vmatmul.bf16.vlgmr.msrb.gmra.mxu1 %v14041_v26  ;;  %v11596_v50 = vld [vmem:[#allocation26 + $0x350] sm:$0xf]  ;;  %v6231_v59 = vadd.f32 %v6230_v34, %v6217_v21 }
 0x565   :  { %6366 = vmatpush.bf16.msra.mxu0 %v11009_v51  ;;  %v14045_v51 = vpop.f32.mrf.mxu0  ;;  %7301 = vmatpush.bf16.msrb.mxu1 %v11233_v8  ;;  %v6218_v46 = vpop.f32.mrf.mxu1  ;;  %v11198_v8 = vld [vmem:[#allocation26 + $0x38] sm:$0xf0]  ;;  %v11564_v21 = vld [vmem:[#allocation26 + $0x310] sm:$0xf] }
 0x566   :  { %v6377_v6 = vadd.f32 %v6231_v59, %v14022_v49 }
 0x568   :  { %7223 = vmatpush.bf16.msra.mxu3 %v11309_v17  ;;  %v11597_v17 = vor.u32 %v12847_v47, %v11596_v50  ;;  %v11201_v47 = vor.u32 %v12746_v33, %v11198_v8  ;;  %v6393_v14 = vmax.f32 %v6377_v6, 0.0  ;;  %v12757_v33 = vld [vmem:[#allocation26 + $0x84] sm:$0xf0]  ;;  %v11420_v8 = vld [vmem:[#allocation26 + $0x1f0] sm:$0xf] }
 0x569   :  { %6367 = vmatpush.bf16.msra.mxu0 %v10977_v63  ;;  %v11277_v63 = vor.u32 %v12767_v62, %v11276_v58  ;;  %7302 = vmatpush.bf16.msrb.mxu1 %v11225_v20  ;;  %v12744_v20 = vld [vmem:[#allocation26 + $0x24] sm:$0xf]  ;;  %v14054_v58 = vpop.f32.mrf.mxu3 }
 0x56b   :  { %7205 = vmatpush.bf16.msrb.mxu2 %v11277_v63  ;;  %v6232_v52 = vpop.f32.mrf.mxu2  ;;  %v11193_v63 = vor.u32 %v12744_v20, %v11190_v48  ;;  %v12835_v20 = vld [vmem:[#allocation26 + $0x2f4] sm:$0xf0] }
 0x56c   :  { %7224 = vmatpush.bf16.msra.mxu3 %v11301_v19  ;;  %v11206_v19 = vld [vmem:[#allocation26 + $0x48] sm:$0xf0] }
 0x56d   :  { %6368 = vmatpush.bf16.msra.mxu0 %v10945_v61  ;;  %v14050_v12 = vpop.f32.mrf.mxu0  ;;  %7303 = vmatpush.bf16.msrb.mxu1 %v11217_v16  ;;  %v11209_v61 = vor.u32 %v12748_v7, %v11206_v19  ;;  %v11182_v16 = vld [vmem:[#allocation26 + $0x18] sm:$0xf0]  ;;  %v11244_v7 = vld [vmem:[#allocation26 + $0x90] sm:$0xf]  ;;  %v12759_v19 = vld [vmem:[#allocation26 + $0x94] sm:$0xf0] }
 0x570   :  { %7273 = vmatpush.bf16.msrb.mxu3 %v11613_v24  ;;  %6369 = vmatmul.bf16.vlgmr.msra.gmra.mxu0 %v13785_v41  ;;  %v11268_v41 = vld [vmem:[#allocation26 + $0xc0] sm:$0xf]  ;;  %v6219_v24 = vadd.f32 %v6218_v46, %v5497_v42  ;;  %v12841_v42 = vld [vmem:[#allocation26 + $0x324] sm:$0xf0]  ;;  %v12742_v46 = vld [vmem:[#allocation26 + $0x14] sm:$0xf] }
 0x571   :  { %v11269_v53 = vor.u32 %v12765_v0, %v11268_v41  ;;  %7304 = vmatpush.bf16.msrb.mxu1 %v11209_v61  ;;  %v11573_v49 = vor.u32 %v12841_v42, %v11572_v36  ;;  %v12837_v41 = vld [vmem:[#allocation26 + $0x304] sm:$0xf0]  ;;  %v11245_v0 = vor.u32 %v12759_v19, %v11244_v7  ;;  %v6272_v61 = vpop.f32.mrf.mxu1  ;;  %v12784_v42 = vld [vmem:[#allocation26 + $0x164] sm:$0xf]  ;;  %v11404_v19 = vld [vmem:[#allocation26 + $0x1d0] sm:$0xf] }
 0x572   :  { %v6233_v32 = vadd.f32 %v6232_v52, %v6219_v24  ;;  %v11185_v24 = vor.u32 %v12742_v46, %v11182_v16  ;;  %v11174_v52 = vld [vmem:[#allocation26 + $0x8] sm:$0xf0]  ;;  %v11342_v46 = vld [vmem:[#allocation26 + $0x158] sm:$0xf0]  ;;  %v11540_v16 = vld [vmem:[#allocation26 + $0x2e0] sm:$0xf] }
 0x573   :  { %7206 = vmatpush.bf16.msrb.mxu2 %v11269_v53  ;;  %v12740_v53 = vld [vmem:[#allocation26 + $0x4] sm:$0xf] }
 0x574   :  { %7274 = vmatpush.bf16.msrb.mxu3 %v11605_v35  ;;  %v12763_v35 = vld [vmem:[#allocation26 + $0xb4] sm:$0xf0]  ;;  %v6385_v10 = vadd.f32 %v6233_v32, %v14033_v13  ;;  %v11236_v32 = vld [vmem:[#allocation26 + $0x80] sm:$0xf]  ;;  %v11177_v36 = vor.u32 %v12740_v53, %v11174_v52  ;;  %v12780_v53 = vld [vmem:[#allocation26 + $0x144] sm:$0xf] }
 0x575   :  { %v11261_v50 = vor.u32 %v12763_v35, %v11260_v43  ;;  %v12839_v13 = vld [vmem:[#allocation26 + $0x314] sm:$0xf0]  ;;  %v14058_v4 = vpop.f32.mrf.mxu0  ;;  %7305 = vmatpush.bf16.msrb.mxu1 %v11201_v47  ;;  %v11237_v43 = vor.u32 %v12757_v33, %v11236_v32  ;;  %v11334_v52 = vld [vmem:[#allocation26 + $0x148] sm:$0xf0]  ;;  %v11532_v32 = vld [vmem:[#allocation26 + $0x2d0] sm:$0xf] }
 0x576   :  { %v6401_v34 = vmax.f32 %v6385_v10, 0.0  ;;  %v11565_v59 = vor.u32 %v12839_v13, %v11564_v21  ;;  %v12803_v35 = vld [vmem:[#allocation26 + $0x1f4] sm:$0xf0] }
 0x577   :  { %7207 = vmatpush.bf16.msrb.mxu2 %v11261_v50  ;;  %v11350_v50 = vld [vmem:[#allocation26 + $0x168] sm:$0xf0]  ;;  %v11421_v47 = vor.u32 %v12803_v35, %v11420_v8  ;;  %v12831_v33 = vld [vmem:[#allocation26 + $0x2d4] sm:$0xf0]  ;;  %v11396_v8 = vld [vmem:[#allocation26 + $0x1c0] sm:$0xf] }
 0x578   :  { %7275 = vmatpush.bf16.msrb.mxu3 %v11597_v17  ;;  %v12761_v17 = vld [vmem:[#allocation26 + $0xa4] sm:$0xf0]  ;;  %v14056_v62 = vpack.c.bf16 %v6401_v34, %v6393_v14  ;;  %v14063_v14 = vpop.f32.mrf.mxu3  ;;  %v11548_v34 = vld [vmem:[#allocation26 + $0x2f0] sm:$0xf]  ;;  %v11353_v21 = vor.u32 %v12784_v42, %v11350_v50 }
 0x579   :  { %v11253_v1 = vor.u32 %v12761_v17, %v11252_v55  ;;  %7306 = vmatpush.bf16.msrb.mxu1 %v11193_v63  ;;  %7231 = vmatpush.bf16.msrb.mxu0 %v11421_v47  ;;  %v11549_v48 = vor.u32 %v12835_v20, %v11548_v34  ;;  %v12801_v55 = vld [vmem:[#allocation26 + $0x1e4] sm:$0xf0]  ;;  %v5499_v17 = vperm.slane %v14026_v11, 4  ;;  %v12782_v63 = vld [vmem:[#allocation26 + $0x154] sm:$0xf] }
 0x57a   :  { %7225 = vmatmul.bf16.vlgmr.msra.gmra.mxu3 %v14056_v62  ;;  %v12778_v47 = vld [vmem:[#allocation26 + $0x134] sm:$0xf]  ;;  %v11326_v34 = vld [vmem:[#allocation26 + $0x138] sm:$0xf0] }
 0x57b   :  { %7208 = vmatpush.bf16.msrb.mxu2 %v11253_v1 }
 0x57c   :  { %7276 = vmatpush.bf16.msrb.mxu3 %v11589_v56  ;;  %v11556_v56 = vld [vmem:[#allocation26 + $0x300] sm:$0xf] }
 0x57d   :  { %v11557_v6 = vor.u32 %v12837_v41, %v11556_v56  ;;  %v14061_v10 = vpop.f32.mrf.mxu0  ;;  %7307 = vmatpush.bf16.msrb.mxu1 %v11185_v24  ;;  %v12799_v56 = vld [vmem:[#allocation26 + $0x1d4] sm:$0xf0]  ;;  %v6273_v41 = vadd.f32 %v6272_v61, %v5499_v17  ;;  %v11533_v61 = vor.u32 %v12831_v33, %v11532_v32 }
 0x57e   :  { %v11405_v24 = vor.u32 %v12799_v56, %v11404_v19  ;;  %v12776_v19 = vld [vmem:[#allocation26 + $0x124] sm:$0xf]  ;;  %v11318_v56 = vld [vmem:[#allocation26 + $0x128] sm:$0xf0] }
 0x57f   :  { %7209 = vmatpush.bf16.msrb.mxu2 %v11245_v0  ;;  %v11345_v0 = vor.u32 %v12782_v63, %v11342_v46  ;;  %v12818_v63 = vld [vmem:[#allocation26 + $0x274] sm:$0xf]  ;;  %v11486_v46 = vld [vmem:[#allocation26 + $0x278] sm:$0xf0]  ;;  %v11321_v32 = vor.u32 %v12776_v19, %v11318_v56  ;;  %v11500_v56 = vld [vmem:[#allocation26 + $0x290] sm:$0xf] }
 0x580   :  { %7277 = vmatpush.bf16.msrb.mxu3 %v11581_v15  ;;  %v11361_v15 = vor.u32 %v12786_v27, %v11358_v28  ;;  %v6274_v27 = vpop.f32.mrf.mxu1  ;;  %v6188_v35 = vpop.f32.mrf.mxu3 }
 0x581   :  { %7308 = vmatpush.bf16.msrb.mxu1 %v11177_v36  ;;  %v11337_v36 = vor.u32 %v12780_v53, %v11334_v52  ;;  %v12816_v53 = vld [vmem:[#allocation26 + $0x264] sm:$0xf]  ;;  %v12827_v52 = vld [vmem:[#allocation26 + $0x2b4] sm:$0xf0] }
 0x583   :  { %7210 = vmatpush.bf16.msrb.mxu2 %v11237_v43  ;;  %v6286_v1 = vpop.f32.mrf.mxu2  ;;  %v6275_v43 = vadd.f32 %v6274_v27, %v5499_v17  ;;  %v11489_v27 = vor.u32 %v12818_v63, %v11486_v46  ;;  %v12772_v63 = vld [vmem:[#allocation26 + $0x104] sm:$0xf]  ;;  %v11302_v46 = vld [vmem:[#allocation26 + $0x108] sm:$0xf0] }
 0x584   :  { %7278 = vmatpush.bf16.msrb.mxu3 %v11573_v49  ;;  %v11412_v49 = vld [vmem:[#allocation26 + $0x1e0] sm:$0xf] }
 0x585   :  { %v11413_v13 = vor.u32 %v12801_v55, %v11412_v49  ;;  %v14066_v28 = vpop.f32.mrf.mxu0  ;;  %v11524_v49 = vld [vmem:[#allocation26 + $0x2c0] sm:$0xf]  ;;  %v12829_v55 = vld [vmem:[#allocation26 + $0x2c4] sm:$0xf0] }
 0x587   :  { %7259 = vmatpush.bf16.msra.mxu2 %v11549_v48  ;;  %7232 = vmatpush.bf16.msrb.mxu0 %v11413_v13  ;;  %v11388_v13 = vld [vmem:[#allocation26 + $0x1b0] sm:$0xf] }
 0x588   :  { %7279 = vmatpush.bf16.msrb.mxu3 %v11565_v59  ;;  %v12833_v59 = vld [vmem:[#allocation26 + $0x2e4] sm:$0xf0] }
 0x589   :  { %v11541_v7 = vor.u32 %v12833_v59, %v11540_v16  ;;  %v11329_v16 = vor.u32 %v12778_v47, %v11326_v34  ;;  %v11508_v47 = vld [vmem:[#allocation26 + $0x2a0] sm:$0xf]  ;;  %v12825_v34 = vld [vmem:[#allocation26 + $0x2a4] sm:$0xf0] }
 0x58b   :  { %7260 = vmatpush.bf16.msra.mxu2 %v11541_v7  ;;  %7233 = vmatpush.bf16.msrb.mxu0 %v11405_v24  ;;  %v6288_v50 = vpop.f32.mrf.mxu2  ;;  %v5496_v7 = vperm.slane %v14026_v11, 1  ;;  %v11516_v24 = vld [vmem:[#allocation26 + $0x2b0] sm:$0xf] }
 0x58c   :  { %7280 = vmatpush.bf16.msrb.mxu3 %v11557_v6  ;;  %v6287_v6 = vadd.f32 %v6286_v1, %v6273_v41  ;;  %v6289_v48 = vadd.f32 %v6288_v50, %v6275_v43  ;;  %v12795_v1 = vld [vmem:[#allocation26 + $0x1b4] sm:$0xf0]  ;;  %v11517_v33 = vor.u32 %v12827_v52, %v11516_v24  ;;  %v6190_v50 = vpop.f32.mrf.mxu3  ;;  %v6328_v52 = vpop.f32.mrf.mxu1 }
 0x58d   :  { %v11389_v59 = vor.u32 %v12795_v1, %v11388_v13  ;;  %v6189_v43 = vadd.f32 %v6188_v35, %v5496_v7  ;;  %v11372_v13 = vld [vmem:[#allocation26 + $0x190] sm:$0xf]  ;;  %v12791_v35 = vld [vmem:[#allocation26 + $0x194] sm:$0xf0] }
 0x58e   :  { %v6379_v20 = vadd.f32 %v6287_v6, %v14039_v38  ;;  %v6387_v17 = vadd.f32 %v6289_v48, %v14048_v45  ;;  %v11478_v45 = vld [vmem:[#allocation26 + $0x268] sm:$0xf0] }
 0x58f   :  { %7261 = vmatpush.bf16.msra.mxu2 %v11533_v61  ;;  %v11310_v61 = vld [vmem:[#allocation26 + $0x118] sm:$0xf0]  ;;  %v11481_v48 = vor.u32 %v12816_v53, %v11478_v45  ;;  %v12789_v53 = vld [vmem:[#allocation26 + $0x184] sm:$0xf0]  ;;  %v12812_v45 = vld [vmem:[#allocation26 + $0x244] sm:$0xf] }
 0x590   :  { %7329 = vmatpush.bf16.msra.mxu3 %v11361_v15  ;;  %v12797_v15 = vld [vmem:[#allocation26 + $0x1c4] sm:$0xf0]  ;;  %v6395_v38 = vmax.f32 %v6379_v20, 0.0  ;;  %v6403_v41 = vmax.f32 %v6387_v17, 0.0  ;;  %v6191_v17 = vadd.f32 %v6190_v50, %v5496_v7  ;;  %v11305_v7 = vor.u32 %v12772_v63, %v11302_v46  ;;  %v11454_v50 = vld [vmem:[#allocation26 + $0x238] sm:$0xf0] }
 0x591   :  { %v11397_v42 = vor.u32 %v12797_v15, %v11396_v8  ;;  %v11380_v8 = vld [vmem:[#allocation26 + $0x1a0] sm:$0xf]  ;;  %v12793_v15 = vld [vmem:[#allocation26 + $0x1a4] sm:$0xf0]  ;;  %v12768_v46 = vld [vmem:[#allocation26 + $0xe4] sm:$0xf] }
 0x592   :  { %v14071_v6 = vpack.c.bf16 %v6403_v41, %v6395_v38  ;;  %v12823_v38 = vld [vmem:[#allocation26 + $0x294] sm:$0xf0]  ;;  %v12865_v63 = vld [vmem:[#allocation26 + $0x3e4] sm:$0xf0] }
 0x593   :  { %7234 = vmatpush.bf16.msrb.mxu0 %v11397_v42  ;;  %v11381_v42 = vor.u32 %v12793_v15, %v11380_v8  ;;  %v11501_v24 = vor.u32 %v12823_v38, %v11500_v56  ;;  %v12810_v15 = vld [vmem:[#allocation26 + $0x234] sm:$0xf]  ;;  %v11286_v56 = vld [vmem:[#allocation26 + $0xe8] sm:$0xf0] }
 0x594   :  { %7330 = vmatpush.bf16.msra.mxu3 %v11353_v21  ;;  %v11525_v21 = vor.u32 %v12829_v55, %v11524_v49  ;;  %7253 = vmatmul.bf16.vlgmr.msra.gmra.mxu1 %v14071_v6  ;;  %v12814_v49 = vld [vmem:[#allocation26 + $0x254] sm:$0xf]  ;;  %v11470_v55 = vld [vmem:[#allocation26 + $0x258] sm:$0xf0] }
 0x595   :  { %7357 = vmatpush.bf16.msra.mxu1 %v11489_v27  ;;  %v11473_v19 = vor.u32 %v12814_v49, %v11470_v55  ;;  %v11364_v27 = vld [vmem:[#allocation26 + $0x180] sm:$0xf]  ;;  %v11294_v49 = vld [vmem:[#allocation26 + $0xf8] sm:$0xf0]  ;;  %v5501_v55 = vperm.slane %v14026_v11, 6 }
 0x596   :  { %7262 = vmatpush.bf16.msra.mxu2 %v11525_v21  ;;  %v11509_v21 = vor.u32 %v12825_v34, %v11508_v47  ;;  %v11676_v34 = vld [vmem:[#allocation26 + $0x3f0] sm:$0xf] }
 0x597   :  { %7235 = vmatpush.bf16.msrb.mxu0 %v11389_v59  ;;  %v6329_v38 = vadd.f32 %v6328_v52, %v5501_v55 }
 0x598   :  { %7331 = vmatpush.bf16.msra.mxu3 %v11345_v0  ;;  %v6202_v0 = vpop.f32.mrf.mxu0 }
 0x599   :  { %v6203_v20 = vadd.f32 %v6202_v0, %v6189_v43  ;;  %7358 = vmatpush.bf16.msra.mxu1 %v11481_v48  ;;  %v11492_v43 = vld [vmem:[#allocation26 + $0x280] sm:$0xf]  ;;  %v12770_v48 = vld [vmem:[#allocation26 + $0xf4] sm:$0xf] }
 0x59a   :  { %7263 = vmatpush.bf16.msra.mxu2 %v11517_v33  ;;  %v11365_v33 = vor.u32 %v12789_v53, %v11364_v27  ;;  %v12806_v53 = vld [vmem:[#allocation26 + $0x214] sm:$0xf] }
 0x59b   :  { %7236 = vmatpush.bf16.msrb.mxu0 %v11381_v42  ;;  %v6376_v41 = vadd.f32 %v6203_v20, %v14024_v9  ;;  %v12867_v20 = vld [vmem:[#allocation26 + $0x3f4] sm:$0xf0] }
 0x59c   :  { %7332 = vmatpush.bf16.msra.mxu3 %v11337_v36  ;;  %v12774_v36 = vld [vmem:[#allocation26 + $0x114] sm:$0xf] }
 0x59d   :  { %v11313_v1 = vor.u32 %v12774_v36, %v11310_v61  ;;  %v12821_v36 = vld [vmem:[#allocation26 + $0x284] sm:$0xf0]  ;;  %v6392_v61 = vmax.f32 %v6376_v41, 0.0  ;;  %7359 = vmatpush.bf16.msra.mxu1 %v11473_v19  ;;  %v11289_v41 = vor.u32 %v12768_v46, %v11286_v56 }
 0x59e   :  { %7264 = vmatpush.bf16.msra.mxu2 %v11509_v21  ;;  %v11493_v47 = vor.u32 %v12821_v36, %v11492_v43  ;;  %v11278_v43 = vld [vmem:[#allocation26 + $0xd8] sm:$0xf0] }
 0x5a0   :  { %7333 = vmatpush.bf16.msra.mxu3 %v11329_v16  ;;  %v11373_v16 = vor.u32 %v12791_v35, %v11372_v13  ;;  %v6204_v59 = vpop.f32.mrf.mxu0  ;;  %v11297_v13 = vor.u32 %v12770_v48, %v11294_v49  ;;  %v11457_v35 = vor.u32 %v12810_v15, %v11454_v50  ;;  %v12766_v15 = vld [vmem:[#allocation26 + $0xd4] sm:$0xf]  ;;  %v11652_v50 = vld [vmem:[#allocation26 + $0x3c0] sm:$0xf]  ;;  %v11430_v48 = vld [vmem:[#allocation26 + $0x208] sm:$0xf0] }
 0x5a1   :  { %v6205_v0 = vadd.f32 %v6204_v59, %v6191_v17  ;;  %v11668_v17 = vld [vmem:[#allocation26 + $0x3e0] sm:$0xf]  ;;  %v11446_v59 = vld [vmem:[#allocation26 + $0x228] sm:$0xf0] }
 0x5a2   :  { %7237 = vmatpush.bf16.msrb.mxu0 %v11373_v16  ;;  %7265 = vmatpush.bf16.msra.mxu2 %v11501_v24  ;;  %v12808_v16 = vld [vmem:[#allocation26 + $0x224] sm:$0xf]  ;;  %v11669_v19 = vor.u32 %v12865_v63, %v11668_v17 }
 0x5a3   :  { %v6384_v8 = vadd.f32 %v6205_v0, %v14031_v37  ;;  %v11677_v37 = vor.u32 %v12867_v20, %v11676_v34  ;;  %v6330_v0 = vpop.f32.mrf.mxu1  ;;  %v11449_v27 = vor.u32 %v12808_v16, %v11446_v59  ;;  %v12764_v34 = vld [vmem:[#allocation26 + $0xc4] sm:$0xf]  ;;  %v11644_v59 = vld [vmem:[#allocation26 + $0x3b0] sm:$0xf] }
 0x5a4   :  { %7334 = vmatpush.bf16.msra.mxu3 %v11321_v32  ;;  %v11462_v32 = vld [vmem:[#allocation26 + $0x248] sm:$0xf0]  ;;  %7309 = vmatmul.bf16.vlgmr.msrb.gmra.mxu1 %v14041_v26  ;;  %v6331_v36 = vadd.f32 %v6330_v0, %v5501_v55  ;;  %v12804_v20 = vld [vmem:[#allocation26 + $0x204] sm:$0xf]  ;;  %v11262_v0 = vld [vmem:[#allocation26 + $0xb8] sm:$0xf0] }
 0x5a5   :  { %v6400_v9 = vmax.f32 %v6384_v8, 0.0  ;;  %v11465_v42 = vor.u32 %v12812_v45, %v11462_v32  ;;  %v11660_v45 = vld [vmem:[#allocation26 + $0x3d0] sm:$0xf]  ;;  %v12863_v32 = vld [vmem:[#allocation26 + $0x3d4] sm:$0xf0]  ;;  %v11433_v16 = vor.u32 %v12804_v20, %v11430_v48 }
 0x5a6   :  { %7238 = vmatpush.bf16.msrb.mxu0 %v11365_v33  ;;  %7266 = vmatpush.bf16.msra.mxu2 %v11493_v47  ;;  %v11438_v33 = vld [vmem:[#allocation26 + $0x218] sm:$0xf0]  ;;  %v11661_v8 = vor.u32 %v12863_v32, %v11660_v45  ;;  %v12861_v47 = vld [vmem:[#allocation26 + $0x3c4] sm:$0xf0]  ;;  %v11628_v20 = vld [vmem:[#allocation26 + $0x390] sm:$0xf] }
 0x5a7   :  { %v14077_v21 = vpack.c.bf16 %v6400_v9, %v6392_v61  ;;  %7360 = vmatpush.bf16.msra.mxu1 %v11465_v42  ;;  %v11281_v61 = vor.u32 %v12766_v15, %v11278_v43  ;;  %v11441_v26 = vor.u32 %v12806_v53, %v11438_v33  ;;  %v11653_v49 = vor.u32 %v12861_v47, %v11652_v50  ;;  %v11606_v53 = vld [vmem:[#allocation26 + $0x368] sm:$0xf0]  ;;  %v12857_v15 = vld [vmem:[#allocation26 + $0x3a4] sm:$0xf0]  ;;  %v12855_v48 = vld [vmem:[#allocation26 + $0x394] sm:$0xf0] }
 0x5a8   :  { %7335 = vmatpush.bf16.msra.mxu3 %v11313_v1  ;;  %v6342_v1 = vpop.f32.mrf.mxu2 }
 0x5a9   :  { %7211 = vmatmul.bf16.vlgmr.msrb.gmra.mxu2 %v14077_v21  ;;  %v6343_v24 = vadd.f32 %v6342_v1, %v6329_v38  ;;  %v12850_v1 = vld [vmem:[#allocation26 + $0x374] sm:$0xf] }
 0x5aa   :  { %7287 = vmatpush.bf16.msra.mxu0 %v11677_v37  ;;  %7315 = vmatpush.bf16.msrb.mxu2 %v11297_v13  ;;  %v11270_v37 = vld [vmem:[#allocation26 + $0xc8] sm:$0xf0]  ;;  %v5498_v13 = vperm.slane %v14026_v11, 3 }
 0x5ab   :  { %7361 = vmatpush.bf16.msra.mxu1 %v11457_v35  ;;  %v6381_v9 = vadd.f32 %v6343_v24, %v14054_v58  ;;  %v11614_v35 = vld [vmem:[#allocation26 + $0x378] sm:$0xf0]  ;;  %v11273_v17 = vor.u32 %v12764_v34, %v11270_v37 }
 0x5ac   :  { %7336 = vmatpush.bf16.msra.mxu3 %v11305_v7  ;;  %v6244_v7 = vpop.f32.mrf.mxu3  ;;  %v11617_v56 = vor.u32 %v12850_v1, %v11614_v35  ;;  %v11246_v1 = vld [vmem:[#allocation26 + $0x98] sm:$0xf0]  ;;  %v12844_v35 = vld [vmem:[#allocation26 + $0x344] sm:$0xf] }
 0x5ad   :  { %v6258_v58 = vpop.f32.mrf.mxu0  ;;  %v6397_v63 = vmax.f32 %v6381_v9, 0.0  ;;  %v6245_v24 = vadd.f32 %v6244_v7, %v5498_v13  ;;  %v12846_v7 = vld [vmem:[#allocation26 + $0x354] sm:$0xf] }
 0x5ae   :  { %7288 = vmatpush.bf16.msra.mxu0 %v11669_v19  ;;  %7316 = vmatpush.bf16.msrb.mxu2 %v11289_v41  ;;  %v12859_v19 = vld [vmem:[#allocation26 + $0x3b4] sm:$0xf0]  ;;  %v12762_v41 = vld [vmem:[#allocation26 + $0xb4] sm:$0xf] }
 0x5af   :  { %7362 = vmatpush.bf16.msra.mxu1 %v11449_v27  ;;  %v11645_v38 = vor.u32 %v12859_v19, %v11644_v59  ;;  %v11265_v45 = vor.u32 %v12762_v41, %v11262_v0  ;;  %v6259_v33 = vadd.f32 %v6258_v58, %v6245_v24  ;;  %v12756_v19 = vld [vmem:[#allocation26 + $0x84] sm:$0xf]  ;;  %v12842_v0 = vld [vmem:[#allocation26 + $0x334] sm:$0xf]  ;;  %v11582_v24 = vld [vmem:[#allocation26 + $0x338] sm:$0xf0] }
 0x5b0   :  { %v6344_v52 = vpop.f32.mrf.mxu2 }
 0x5b1   :  { %v6345_v42 = vadd.f32 %v6344_v52, %v6331_v36  ;;  %v11254_v52 = vld [vmem:[#allocation26 + $0xa8] sm:$0xf0]  ;;  %v6378_v47 = vadd.f32 %v6259_v33, %v14036_v30  ;;  %v11585_v33 = vor.u32 %v12842_v0, %v11582_v24 }
 0x5b2   :  { %7289 = vmatpush.bf16.msra.mxu0 %v11661_v8  ;;  %7317 = vmatpush.bf16.msrb.mxu2 %v11281_v61  ;;  %v11636_v8 = vld [vmem:[#allocation26 + $0x3a0] sm:$0xf]  ;;  %v12760_v61 = vld [vmem:[#allocation26 + $0xa4] sm:$0xf] }
 0x5b3   :  { %v6389_v55 = vadd.f32 %v6345_v42, %v14063_v14  ;;  %7363 = vmatpush.bf16.msra.mxu1 %v11441_v26  ;;  %v12848_v14 = vld [vmem:[#allocation26 + $0x364] sm:$0xf]  ;;  %v11637_v36 = vor.u32 %v12857_v15, %v11636_v8  ;;  %v11598_v42 = vld [vmem:[#allocation26 + $0x358] sm:$0xf0]  ;;  %v11257_v26 = vor.u32 %v12760_v61, %v11254_v52  ;;  %v11574_v15 = vld [vmem:[#allocation26 + $0x328] sm:$0xf0] }
 0x5b4   :  { %v6246_v32 = vpop.f32.mrf.mxu3  ;;  %v11609_v43 = vor.u32 %v12848_v14, %v11606_v53  ;;  %v11601_v37 = vor.u32 %v12846_v7, %v11598_v42  ;;  %v11422_v14 = vld [vmem:[#allocation26 + $0x1f8] sm:$0xf0]  ;;  %v12840_v8 = vld [vmem:[#allocation26 + $0x324] sm:$0xf]  ;;  %v12838_v7 = vld [vmem:[#allocation26 + $0x314] sm:$0xf] }
 0x5b5   :  { %v6405_v46 = vmax.f32 %v6389_v55, 0.0  ;;  %v6247_v9 = vadd.f32 %v6246_v32, %v5498_v13  ;;  %v6260_v50 = vpop.f32.mrf.mxu0  ;;  %v11629_v55 = vor.u32 %v12855_v48, %v11628_v20  ;;  %v11414_v32 = vld [vmem:[#allocation26 + $0x1e8] sm:$0xf0]  ;;  %v11406_v61 = vld [vmem:[#allocation26 + $0x1d8] sm:$0xf0]  ;;  %v11577_v52 = vor.u32 %v12840_v8, %v11574_v15 }
 0x5b6   :  { %7290 = vmatpush.bf16.msra.mxu0 %v11653_v49  ;;  %7318 = vmatpush.bf16.msrb.mxu2 %v11273_v17  ;;  %v12758_v49 = vld [vmem:[#allocation26 + $0x94] sm:$0xf]  ;;  %v11590_v17 = vld [vmem:[#allocation26 + $0x348] sm:$0xf0]  ;;  %v11566_v42 = vld [vmem:[#allocation26 + $0x318] sm:$0xf0] }
 0x5b7   :  { %v14084_v27 = vpack.c.bf16 %v6405_v46, %v6397_v63  ;;  %7364 = vmatpush.bf16.msra.mxu1 %v11433_v16  ;;  %v6261_v34 = vadd.f32 %v6260_v50, %v6247_v9  ;;  %v11249_v58 = vor.u32 %v12758_v49, %v11246_v1  ;;  %v6394_v63 = vmax.f32 %v6378_v47, 0.0  ;;  %v11620_v46 = vld [vmem:[#allocation26 + $0x380] sm:$0xf]  ;;  %v12853_v16 = vld [vmem:[#allocation26 + $0x384] sm:$0xf0] }
 0x5b8   :  { %v11593_v30 = vor.u32 %v12844_v35, %v11590_v17  ;;  %v11621_v59 = vor.u32 %v12853_v16, %v11620_v46  ;;  %v11569_v50 = vor.u32 %v12838_v7, %v11566_v42  ;;  %v12796_v47 = vld [vmem:[#allocation26 + $0x1c4] sm:$0xf]  ;;  %v11558_v48 = vld [vmem:[#allocation26 + $0x308] sm:$0xf0]  ;;  %v12794_v1 = vld [vmem:[#allocation26 + $0x1b4] sm:$0xf] }
 0x5b9   :  { %7281 = vmatmul.bf16.vlgmr.msrb.gmra.mxu3 %v14084_v27  ;;  %v6386_v13 = vadd.f32 %v6261_v34, %v14045_v51  ;;  %v11398_v34 = vld [vmem:[#allocation26 + $0x1c8] sm:$0xf0]  ;;  %v12836_v20 = vld [vmem:[#allocation26 + $0x304] sm:$0xf] }
 0x5ba   :  { %7385 = vmatpush.bf16.msrb.mxu3 %v11617_v56  ;;  %7291 = vmatpush.bf16.msra.mxu0 %v11645_v38  ;;  %v11238_v56 = vld [vmem:[#allocation26 + $0x88] sm:$0xf0]  ;;  %v12802_v38 = vld [vmem:[#allocation26 + $0x1f4] sm:$0xf]  ;;  %v11401_v49 = vor.u32 %v12796_v47, %v11398_v34  ;;  %v12828_v7 = vld [vmem:[#allocation26 + $0x2c4] sm:$0xf] }
 0x5bb   :  { %7319 = vmatpush.bf16.msrb.mxu2 %v11265_v45  ;;  %7365 = vmatmul.bf16.vlgmr.msra.gmra.mxu1 %v14071_v6  ;;  %v6402_v6 = vmax.f32 %v6386_v13, 0.0  ;;  %v11241_v51 = vor.u32 %v12756_v19, %v11238_v56  ;;  %v11425_v53 = vor.u32 %v12802_v38, %v11422_v14  ;;  %v12800_v45 = vld [vmem:[#allocation26 + $0x1e4] sm:$0xf]  ;;  %v11390_v13 = vld [vmem:[#allocation26 + $0x1b8] sm:$0xf0]  ;;  %v12982_v34 = vld [vmem:[#allocation11 + $0x10] sm:$0xff] }
 0x5bc   :  { %v6300_v9 = vpop.f32.mrf.mxu3  ;;  %v11393_v35 = vor.u32 %v12794_v1, %v11390_v13  ;;  %v11382_v46 = vld [vmem:[#allocation26 + $0x1a8] sm:$0xf0]  ;;  %v12790_v56 = vld [vmem:[#allocation26 + $0x194] sm:$0xf]  ;;  %v11374_v38 = vld [vmem:[#allocation26 + $0x198] sm:$0xf0] }
 0x5bd   :  { %v14090_v41 = vpack.c.bf16 %v6402_v6, %v6394_v63  ;;  %v12792_v6 = vld [vmem:[#allocation26 + $0x1a4] sm:$0xf]  ;;  %v11377_v0 = vor.u32 %v12790_v56, %v11374_v38  ;;  %v11550_v14 = vld [vmem:[#allocation26 + $0x2f8] sm:$0xf0]  ;;  %v11526_v42 = vld [vmem:[#allocation26 + $0x2c8] sm:$0xf0] }
 0x5be   :  { %7386 = vmatpush.bf16.msrb.mxu3 %v11609_v43  ;;  %7292 = vmatpush.bf16.msra.mxu0 %v11637_v36  ;;  %v11417_v43 = vor.u32 %v12800_v45, %v11414_v32  ;;  %v12798_v36 = vld [vmem:[#allocation26 + $0x1d4] sm:$0xf]  ;;  %v11385_v16 = vor.u32 %v12792_v6, %v11382_v46  ;;  %v12788_v32 = vld [vmem:[#allocation26 + $0x184] sm:$0xf]  ;;  %v11518_v47 = vld [vmem:[#allocation26 + $0x2b8] sm:$0xf0] }
 0x5bf   :  { %7320 = vmatpush.bf16.msrb.mxu2 %v11257_v26  ;;  %7239 = vmatmul.bf16.vlgmr.msrb.gmra.mxu0 %v14090_v41  ;;  %v11409_v26 = vor.u32 %v12798_v36, %v11406_v61  ;;  %v11542_v36 = vld [vmem:[#allocation26 + $0x2e8] sm:$0xf0]  ;;  %v12830_v61 = vld [vmem:[#allocation26 + $0x2d4] sm:$0xf]  ;;  %v11678_v38 = vld [vmem:[#allocation26 + $0x3f8] sm:$0xf0] }
 0x5c0   :  { %v12866_v56 = vld [vmem:[#allocation26 + $0x3f4] sm:$0xf] }
 0x5c2   :  { %7387 = vmatpush.bf16.msrb.mxu3 %v11601_v37  ;;  %7293 = vmatpush.bf16.msra.mxu0 %v11629_v55  ;;  %v5500_v37 = vperm.slane %v14026_v11, 5 }
 0x5c3   :  { %7321 = vmatpush.bf16.msrb.mxu2 %v11249_v58 }
 0x5c4   :  { %v6301_v17 = vadd.f32 %v6300_v9, %v5500_v37  ;;  %v6302_v58 = vpop.f32.mrf.mxu3 }
 0x5c6   :  { %7388 = vmatpush.bf16.msrb.mxu3 %v11593_v30  ;;  %7294 = vmatpush.bf16.msra.mxu0 %v11621_v59  ;;  %v6303_v30 = vadd.f32 %v6302_v58, %v5500_v37  ;;  %v12824_v37 = vld [vmem:[#allocation26 + $0x2a4] sm:$0xf]  ;;  %v11502_v58 = vld [vmem:[#allocation26 + $0x298] sm:$0xf0] }
 0x5c7   :  { %7322 = vmatpush.bf16.msrb.mxu2 %v11241_v51  ;;  %v12834_v51 = vld [vmem:[#allocation26 + $0x2f4] sm:$0xf] }
 0x5c8   :  { %v11553_v8 = vor.u32 %v12834_v51, %v11550_v14  ;;  %v11681_v51 = vor.u32 %v12866_v56, %v11678_v38  ;;  %v11718_v56 = vld [vmem:[#allocation29 + $0x48] sm:$0xf0] }
 0x5c9   :  { %7337 = vmatmul.bf16.vlgmr.msra.gmra.mxu3 %v14056_v62  ;;  %v11561_v62 = vor.u32 %v12836_v20, %v11558_v48  ;;  %v5502_v20 = vperm.slane %v12982_v34, 7  ;;  %v11740_v34 = vld [vmem:[#allocation29 + $0x70] sm:$0xf] }
 0x5ca   :  { %7343 = vmatpush.bf16.msrb.mxu0 %v11425_v53  ;;  %7389 = vmatpush.bf16.msrb.mxu3 %v11585_v33  ;;  %v11366_v33 = vld [vmem:[#allocation26 + $0x188] sm:$0xf0] }
 0x5cb   :  { %v11369_v15 = vor.u32 %v12788_v32, %v11366_v33  ;;  %v12862_v32 = vld [vmem:[#allocation26 + $0x3d4] sm:$0xf]  ;;  %v11662_v33 = vld [vmem:[#allocation26 + $0x3d8] sm:$0xf0] }
 0x5cd   :  { %v6314_v55 = vpop.f32.mrf.mxu0 }
 0x5ce   :  { %7344 = vmatpush.bf16.msrb.mxu0 %v11417_v43  ;;  %7390 = vmatpush.bf16.msrb.mxu3 %v11577_v52  ;;  %v6315_v63 = vadd.f32 %v6314_v55, %v6301_v17  ;;  %v12832_v43 = vld [vmem:[#allocation26 + $0x2e4] sm:$0xf]  ;;  %v11534_v52 = vld [vmem:[#allocation26 + $0x2d8] sm:$0xf0]  ;;  %v11510_v55 = vld [vmem:[#allocation26 + $0x2a8] sm:$0xf0] }
 0x5cf   :  { %v12822_v17 = vld [vmem:[#allocation26 + $0x294] sm:$0xf] }
 0x5d0   :  { %v6380_v11 = vadd.f32 %v6315_v63, %v14050_v12  ;;  %v11545_v12 = vor.u32 %v12832_v43, %v11542_v36  ;;  %v12858_v36 = vld [vmem:[#allocation26 + $0x3b4] sm:$0xf] }
 0x5d2   :  { %7345 = vmatpush.bf16.msrb.mxu0 %v11409_v26  ;;  %7391 = vmatpush.bf16.msrb.mxu3 %v11569_v50  ;;  %v6396_v53 = vmax.f32 %v6380_v11, 0.0  ;;  %v6356_v9 = vpop.f32.mrf.mxu3  ;;  %v11529_v26 = vor.u32 %v12828_v7, %v11526_v42  ;;  %v12826_v50 = vld [vmem:[#allocation26 + $0x2b4] sm:$0xf]  ;;  %v11494_v11 = vld [vmem:[#allocation26 + $0x288] sm:$0xf0] }
 0x5d3   :  { %v12854_v7 = vld [vmem:[#allocation26 + $0x394] sm:$0xf]  ;;  %v11630_v42 = vld [vmem:[#allocation26 + $0x398] sm:$0xf0] }
 0x5d5   :  { %v6316_v59 = vpop.f32.mrf.mxu0 }
 0x5d6   :  { %7346 = vmatpush.bf16.msrb.mxu0 %v11401_v49  ;;  %7392 = vmatpush.bf16.msrb.mxu3 %v11561_v62  ;;  %v6317_v19 = vadd.f32 %v6316_v59, %v6303_v30  ;;  %v11521_v49 = vor.u32 %v12826_v50, %v11518_v47  ;;  %v6357_v62 = vadd.f32 %v6356_v9, %v5502_v20  ;;  %v12820_v59 = vld [vmem:[#allocation26 + $0x284] sm:$0xf]  ;;  %v11622_v50 = vld [vmem:[#allocation26 + $0x388] sm:$0xf0] }
 0x5d7   :  { %v11505_v30 = vor.u32 %v12822_v17, %v11502_v58  ;;  %v11724_v58 = vld [vmem:[#allocation29 + $0x50] sm:$0xf] }
 0x5d8   :  { %v6388_v24 = vadd.f32 %v6317_v19, %v14058_v4  ;;  %v11537_v4 = vor.u32 %v12830_v61, %v11534_v52  ;;  %v12856_v52 = vld [vmem:[#allocation26 + $0x3a4] sm:$0xf] }
 0x5d9   :  { %7393 = vmatmul.bf16.vlgmr.msrb.gmra.mxu3 %v14084_v27 }
 0x5da   :  { %7347 = vmatpush.bf16.msrb.mxu0 %v11393_v35  ;;  %v6404_v45 = vmax.f32 %v6388_v24, 0.0  ;;  %v6358_v1 = vpop.f32.mrf.mxu3  ;;  %v11513_v35 = vor.u32 %v12824_v37, %v11510_v55  ;;  %v11497_v24 = vor.u32 %v12820_v59, %v11494_v11  ;;  %v11742_v37 = vld [vmem:[#allocation29 + $0x78] sm:$0xf0]  ;;  %v12877_v59 = vld [vmem:[#allocation29 + $0x44] sm:$0xf0] }
 0x5db   :  { %v6359_v63 = vadd.f32 %v6358_v1, %v5502_v20  ;;  %v12883_v20 = vld [vmem:[#allocation29 + $0x74] sm:$0xf0]  ;;  %v12880_v1 = vld [vmem:[#allocation29 + $0x64] sm:$0xf] }
 0x5dc   :  { %v6412_v27 = vpack.c.bf16 %v6404_v45, %v6396_v53  ;;  %v12864_v53 = vld [vmem:[#allocation26 + $0x3e4] sm:$0xf]  ;;  %v11670_v45 = vld [vmem:[#allocation26 + $0x3e8] sm:$0xf0] }
 0x5de   :  { %7348 = vmatpush.bf16.msrb.mxu0 %v11385_v16  ;;  %7267 = vmatmul.bf16.vlgmr.msra.gmra.mxu2 %v6412_v27 }
 0x5df   :  { %7371 = vmatpush.bf16.msra.mxu2 %v11553_v8  ;;  %v11665_v8 = vor.u32 %v12862_v32, %v11662_v33  ;;  %v12872_v33 = vld [vmem:[#allocation29 + $0x24] sm:$0xf] }
 0x5e2   :  { %7349 = vmatpush.bf16.msrb.mxu0 %v11377_v0 }
 0x5e3   :  { %7372 = vmatpush.bf16.msra.mxu2 %v11545_v12  ;;  %v11646_v12 = vld [vmem:[#allocation26 + $0x3b8] sm:$0xf0] }
 0x5e4   :  { %v11649_v61 = vor.u32 %v12858_v36, %v11646_v12  ;;  %v11692_v36 = vld [vmem:[#allocation29 + $0x10] sm:$0xf]  ;;  %v12871_v12 = vld [vmem:[#allocation29 + $0x14] sm:$0xf0] }
 0x5e6   :  { %7350 = vmatpush.bf16.msrb.mxu0 %v11369_v15  ;;  %v11654_v15 = vld [vmem:[#allocation26 + $0x3c8] sm:$0xf0] }
 0x5e7   :  { %7373 = vmatpush.bf16.msra.mxu2 %v11537_v4  ;;  %v11638_v4 = vld [vmem:[#allocation26 + $0x3a8] sm:$0xf0] }
 0x5e8   :  { %v11641_v9 = vor.u32 %v12856_v52, %v11638_v4  ;;  %v11693_v52 = vor.u32 %v12871_v12, %v11692_v36  ;;  %v11694_v4 = vld [vmem:[#allocation29 + $0x18] sm:$0xf0]  ;;  %v12892_v36 = vld [vmem:[#allocation29 + $0xc4] sm:$0xf] }
 0x5eb   :  { %7374 = vmatpush.bf16.msra.mxu2 %v11529_v26  ;;  %v12852_v26 = vld [vmem:[#allocation26 + $0x384] sm:$0xf] }
 0x5ec   :  { %v11625_v47 = vor.u32 %v12852_v26, %v11622_v50  ;;  %v11686_v26 = vld [vmem:[#allocation29 + $0x8] sm:$0xf0] }
 0x5ed   :  { %v6370_v48 = vpop.f32.mrf.mxu0 }
 0x5ee   :  { %7323 = vmatmul.bf16.vlgmr.msrb.gmra.mxu2 %v14077_v21  ;;  %v6371_v13 = vadd.f32 %v6370_v48, %v6357_v62  ;;  %v12882_v48 = vld [vmem:[#allocation29 + $0x74] sm:$0xf]  ;;  %v12881_v62 = vld [vmem:[#allocation29 + $0x64] sm:$0xf0] }
 0x5ef   :  { %7375 = vmatpush.bf16.msra.mxu2 %v11521_v49  ;;  %v11741_v49 = vor.u32 %v12883_v20, %v11740_v34  ;;  %v11745_v55 = vor.u32 %v12882_v48, %v11742_v37  ;;  %v12907_v20 = vld [vmem:[#allocation32 + $0x38] sm:$0xff]  ;;  %v11804_v37 = vld [vmem:[#allocation29 + $0xf0] sm:$0xf] }
 0x5f0   :  { %v6382_v46 = vadd.f32 %v6371_v13, %v14061_v10  ;;  %v11673_v10 = vor.u32 %v12864_v53, %v11670_v45  ;;  %v11710_v53 = vld [vmem:[#allocation29 + $0x38] sm:$0xf0]  ;;  %v11700_v45 = vld [vmem:[#allocation29 + $0x20] sm:$0xf] }
 0x5f1   :  { %7617 = vmatpush.bf16.msrb.mxu1 %v11741_v49  ;;  %7645 = vmatpush.bf16.msra.mxu3 %v11745_v55  ;;  %v12923_v48 = vld [vmem:[#allocation32 + $0xb8] sm:$0xff] }
 0x5f2   :  { %v6398_v0 = vmax.f32 %v6382_v46, 0.0  ;;  %v12899_v55 = vld [vmem:[#allocation29 + $0xf4] sm:$0xf0] }
 0x5f3   :  { %7376 = vmatpush.bf16.msra.mxu2 %v11513_v35  ;;  %v11734_v35 = vld [vmem:[#allocation29 + $0x68] sm:$0xf0] }
 0x5f4   :  { %v11737_v17 = vor.u32 %v12880_v1, %v11734_v35  ;;  %v11806_v1 = vld [vmem:[#allocation29 + $0xf8] sm:$0xf0]  ;;  %v12922_v35 = vld [vmem:[#allocation32 + $0xb0] sm:$0xff] }
 0x5f5   :  { %v6372_v6 = vpop.f32.mrf.mxu0 }
 0x5f6   :  { %v6373_v16 = vadd.f32 %v6372_v6, %v6359_v63  ;;  %7646 = vmatpush.bf16.msra.mxu3 %v11737_v17  ;;  %v12879_v63 = vld [vmem:[#allocation29 + $0x54] sm:$0xf0]  ;;  %v12878_v6 = vld [vmem:[#allocation29 + $0x54] sm:$0xf] }
 0x5f7   :  { %7377 = vmatpush.bf16.msra.mxu2 %v11505_v30  ;;  %v11725_v46 = vor.u32 %v12879_v63, %v11724_v58  ;;  %v11716_v30 = vld [vmem:[#allocation29 + $0x40] sm:$0xf] }
 0x5f8   :  { %v6390_v19 = vadd.f32 %v6373_v16, %v14066_v28  ;;  %v12860_v28 = vld [vmem:[#allocation26 + $0x3c4] sm:$0xf]  ;;  %v11726_v16 = vld [vmem:[#allocation29 + $0x58] sm:$0xf0]  ;;  %v11717_v38 = vor.u32 %v12877_v59, %v11716_v30  ;;  %v11798_v30 = vld [vmem:[#allocation29 + $0xe8] sm:$0xf0] }
 0x5f9   :  { %v11657_v43 = vor.u32 %v12860_v28, %v11654_v15  ;;  %v11729_v11 = vor.u32 %v12878_v6, %v11726_v16  ;;  %v11796_v63 = vld [vmem:[#allocation29 + $0xe0] sm:$0xf]  ;;  %v12897_v6 = vld [vmem:[#allocation29 + $0xe4] sm:$0xf0] }
 0x5fa   :  { %v6406_v21 = vmax.f32 %v6390_v19, 0.0  ;;  %v12876_v19 = vld [vmem:[#allocation29 + $0x44] sm:$0xf]  ;;  %v11797_v16 = vor.u32 %v12897_v6, %v11796_v63 }
 0x5fb   :  { %7378 = vmatpush.bf16.msra.mxu2 %v11497_v24  ;;  %7647 = vmatpush.bf16.msra.mxu3 %v11729_v11  ;;  %v12875_v24 = vld [vmem:[#allocation29 + $0x34] sm:$0xf0] }
 0x5fc   :  { %v6414_v14 = vpack.c.bf16 %v6406_v21, %v6398_v0  ;;  %v11721_v0 = vor.u32 %v12876_v19, %v11718_v56  ;;  %v11708_v21 = vld [vmem:[#allocation29 + $0x30] sm:$0xf] }
 0x5fd   :  { %v14106_v49 = vpop.f32.mrf.mxu3  ;;  %v12905_v19 = vld [vmem:[#allocation32 + $0x28] sm:$0xff] }
 0x5fe   :  { %7295 = vmatmul.bf16.vlgmr.msra.gmra.mxu0 %v6414_v14  ;;  %7379 = vmatmul.bf16.vlgmr.msra.gmra.mxu2 %v6412_v27  ;;  %v11633_v27 = vor.u32 %v12854_v7, %v11630_v42  ;;  %v12869_v7 = vld [vmem:[#allocation29 + $0x4] sm:$0xf0] }
 0x5ff   :  { %7399 = vmatpush.bf16.msra.mxu0 %v11681_v51  ;;  %7648 = vmatpush.bf16.msra.mxu3 %v11721_v0  ;;  %v12874_v51 = vld [vmem:[#allocation29 + $0x34] sm:$0xf]  ;;  %v12921_v56 = vld [vmem:[#allocation32 + $0xa8] sm:$0xff]  ;;  %v12895_v0 = vld [vmem:[#allocation29 + $0xd4] sm:$0xf0] }
 0x600   :  { %v11713_v32 = vor.u32 %v12874_v51, %v11710_v53  ;;  %v11790_v51 = vld [vmem:[#allocation29 + $0xd8] sm:$0xf0] }
 0x603   :  { %7400 = vmatpush.bf16.msra.mxu0 %v11673_v10  ;;  %v12873_v10 = vld [vmem:[#allocation29 + $0x24] sm:$0xf0]  ;;  %7649 = vmatpush.bf16.msra.mxu3 %v11713_v32 }
 0x604   :  { %v11701_v28 = vor.u32 %v12873_v10, %v11700_v45  ;;  %v12904_v32 = vld [vmem:[#allocation32 + $0x20] sm:$0xff] }
 0x605   :  { %v7228_v53 = vpop.f32.mrf.mxu3 }
 0x607   :  { %7401 = vmatpush.bf16.msra.mxu0 %v11665_v8  ;;  %v11702_v8 = vld [vmem:[#allocation29 + $0x28] sm:$0xf0] }
 0x608   :  { %v11705_v15 = vor.u32 %v12872_v33, %v11702_v8  ;;  %v12920_v33 = vld [vmem:[#allocation32 + $0xa0] sm:$0xff] }
 0x60a   :  { %7650 = vmatpush.bf16.msra.mxu3 %v11705_v15  ;;  %v12893_v15 = vld [vmem:[#allocation29 + $0xc4] sm:$0xf0] }
 0x60b   :  { %7402 = vmatpush.bf16.msra.mxu0 %v11657_v43  ;;  %v14102_v43 = vpop.f32.mrf.mxu1 }
 0x60e   :  { %7351 = vmatmul.bf16.vlgmr.msrb.gmra.mxu0 %v14090_v41  ;;  %v11732_v41 = vld [vmem:[#allocation29 + $0x60] sm:$0xf] }
 0x60f   :  { %7403 = vmatpush.bf16.msra.mxu0 %v11649_v61  ;;  %v11733_v13 = vor.u32 %v12881_v62, %v11732_v41  ;;  %v12870_v61 = vld [vmem:[#allocation29 + $0x14] sm:$0xf]  ;;  %v11805_v62 = vor.u32 %v12899_v55, %v11804_v37 }
 0x610   :  { %v11697_v42 = vor.u32 %v12870_v61, %v11694_v4  ;;  %v12898_v41 = vld [vmem:[#allocation29 + $0xf4] sm:$0xf] }
 0x611   :  { %7618 = vmatpush.bf16.msrb.mxu1 %v11733_v13  ;;  %v12906_v13 = vld [vmem:[#allocation32 + $0x30] sm:$0xff]  ;;  %v11809_v58 = vor.u32 %v12898_v41, %v11806_v1  ;;  %7631 = vmatpush.bf16.msrb.mxu2 %v11805_v62  ;;  %v11764_v1 = vld [vmem:[#allocation29 + $0xa0] sm:$0xf] }
 0x612   :  { %7651 = vmatpush.bf16.msra.mxu3 %v11697_v42  ;;  %v12919_v42 = vld [vmem:[#allocation32 + $0x98] sm:$0xff]  ;;  %v12902_v37 = vld [vmem:[#allocation32 + $0x10] sm:$0xff] }
 0x613   :  { %7404 = vmatpush.bf16.msra.mxu0 %v11641_v9  ;;  %v11684_v9 = vld [vmem:[#allocation29] sm:$0xf]  ;;  %v7200_v17 = vpop.f32.mrf.mxu1  ;;  %v12918_v55 = vld [vmem:[#allocation32 + $0x90] sm:$0xff] }
 0x614   :  { %v11685_v50 = vor.u32 %v12869_v7, %v11684_v9  ;;  %v12903_v7 = vld [vmem:[#allocation32 + $0x18] sm:$0xff] }
 0x615   :  { %7619 = vmatpush.bf16.msrb.mxu1 %v11725_v46  ;;  %v12896_v46 = vld [vmem:[#allocation29 + $0xe4] sm:$0xf]  ;;  %7632 = vmatpush.bf16.msrb.mxu2 %v11797_v16 }
 0x616   :  { %v11801_v59 = vor.u32 %v12896_v46, %v11798_v30  ;;  %v11766_v46 = vld [vmem:[#allocation29 + $0xa8] sm:$0xf0] }
 0x617   :  { %7405 = vmatpush.bf16.msra.mxu0 %v11633_v27  ;;  %v12868_v27 = vld [vmem:[#allocation29 + $0x4] sm:$0xf] }
 0x618   :  { %v11689_v34 = vor.u32 %v12868_v27, %v11686_v26  ;;  %v11772_v27 = vld [vmem:[#allocation29 + $0xb0] sm:$0xf]  ;;  %v12891_v26 = vld [vmem:[#allocation29 + $0xb4] sm:$0xf0] }
 0x619   :  { %7620 = vmatpush.bf16.msrb.mxu1 %v11717_v38  ;;  %v11788_v38 = vld [vmem:[#allocation29 + $0xd0] sm:$0xf] }
 0x61a   :  { %7652 = vmatpush.bf16.msra.mxu3 %v11689_v34 }
 0x61b   :  { %7406 = vmatpush.bf16.msra.mxu0 %v11625_v47  ;;  %v14110_v45 = vpop.f32.mrf.mxu1 }
 0x61e   :  { %7407 = vmatmul.bf16.vlgmr.msra.gmra.mxu0 %v6414_v14  ;;  %v11709_v14 = vor.u32 %v12875_v24, %v11708_v21  ;;  %8095 = vmatpush.bf16.msrb.mxu3 %v12923_v48  ;;  %v12894_v21 = vld [vmem:[#allocation29 + $0xd4] sm:$0xf]  ;;  %v11789_v24 = vor.u32 %v12895_v0, %v11788_v38  ;;  %v11774_v48 = vld [vmem:[#allocation29 + $0xb8] sm:$0xf0] }
 0x61f   :  { %7659 = vmatpush.bf16.msrb.mxu0 %v11809_v58  ;;  %v11793_v10 = vor.u32 %v12894_v21, %v11790_v51  ;;  %v12886_v21 = vld [vmem:[#allocation29 + $0x94] sm:$0xf] }
 0x620   :  { %7621 = vmatpush.bf16.msrb.mxu1 %v11709_v14  ;;  %v14108_v14 = vld [vmem:[#allocation28] sm:$0x3]  ;;  %7633 = vmatpush.bf16.msrb.mxu2 %v11789_v24 }
 0x621   :  { %v6545_v12 = vperm.slane %v14108_v14, 0 }
 0x622   :  { %8096 = vmatpush.bf16.msrb.mxu3 %v12922_v35  ;;  %v12888_v35 = vld [vmem:[#allocation29 + $0xa4] sm:$0xf] }
 0x623   :  { %7660 = vmatpush.bf16.msrb.mxu0 %v11801_v59  ;;  %v7199_v34 = vadd.f32 %v14102_v43, %v6545_v12  ;;  %v7201_v58 = vadd.f32 %v7200_v17, %v6545_v12  ;;  %v7256_v16 = vpop.f32.mrf.mxu1  ;;  %v11769_v43 = vor.u32 %v12888_v35, %v11766_v46  ;;  %v11756_v17 = vld [vmem:[#allocation29 + $0x90] sm:$0xf]  ;;  %v12884_v12 = vld [vmem:[#allocation29 + $0x84] sm:$0xf] }
 0x624   :  { %7622 = vmatpush.bf16.msrb.mxu1 %v11701_v28  ;;  %v11780_v28 = vld [vmem:[#allocation29 + $0xc0] sm:$0xf] }
 0x625   :  { %v11781_v61 = vor.u32 %v12893_v15, %v11780_v28  ;;  %v11748_v15 = vld [vmem:[#allocation29 + $0x80] sm:$0xf] }
 0x626   :  { %8097 = vmatpush.bf16.msrb.mxu3 %v12921_v56  ;;  %v12917_v56 = vld [vmem:[#allocation32 + $0x88] sm:$0xff] }
 0x627   :  { %7661 = vmatpush.bf16.msrb.mxu0 %v11793_v10  ;;  %7634 = vmatpush.bf16.msrb.mxu2 %v11781_v61 }
 0x628   :  { %7623 = vmatpush.bf16.msrb.mxu1 %v11693_v52  ;;  %v11782_v52 = vld [vmem:[#allocation29 + $0xc8] sm:$0xf0] }
 0x629   :  { %v11785_v9 = vor.u32 %v12892_v36, %v11782_v52  ;;  %v12885_v36 = vld [vmem:[#allocation29 + $0x84] sm:$0xf0]  ;;  %v11750_v52 = vld [vmem:[#allocation29 + $0x88] sm:$0xf0] }
 0x62a   :  { %8098 = vmatpush.bf16.msrb.mxu3 %v12920_v33  ;;  %v12900_v33 = vld [vmem:[#allocation32] sm:$0xff] }
 0x62b   :  { %7662 = vmatpush.bf16.msrb.mxu0 %v11785_v9 }
 0x62c   :  { %v14104_v47 = vpop.f32.mrf.mxu2  ;;  %7624 = vmatpush.bf16.msrb.mxu1 %v11685_v50  ;;  %v12890_v50 = vld [vmem:[#allocation29 + $0xb4] sm:$0xf] }
 0x62d   :  { %v11777_v62 = vor.u32 %v12890_v50, %v11774_v48  ;;  %v7213_v63 = vadd.f32 %v14104_v47, %v7199_v34  ;;  %v12887_v47 = vld [vmem:[#allocation29 + $0x94] sm:$0xf0] }
 0x62e   :  { %8099 = vmatpush.bf16.msrb.mxu3 %v12919_v42  ;;  %v11757_v10 = vor.u32 %v12887_v47, %v11756_v17  ;;  %v12914_v48 = vld [vmem:[#allocation32 + $0x70] sm:$0xff] }
 0x62f   :  { %7663 = vmatpush.bf16.msrb.mxu0 %v11777_v62  ;;  %v7227_v38 = vadd.f32 %v14106_v49, %v7213_v63  ;;  %v11749_v49 = vor.u32 %v12885_v36, %v11748_v15  ;;  %v12929_v63 = vld [vmem:[#allocation32 + $0xe8] sm:$0xff] }
 0x630   :  { %8067 = vmatpush.bf16.msra.mxu1 %v12907_v20  ;;  %v11773_v20 = vor.u32 %v12891_v26, %v11772_v27  ;;  %v12915_v27 = vld [vmem:[#allocation32 + $0x78] sm:$0xff]  ;;  %v12909_v36 = vld [vmem:[#allocation32 + $0x48] sm:$0xff] }
 0x631   :  { %v12931_v26 = vld [vmem:[#allocation32 + $0xf8] sm:$0xff] }
 0x632   :  { %7635 = vmatpush.bf16.msrb.mxu2 %v11773_v20  ;;  %8100 = vmatpush.bf16.msrb.mxu3 %v12918_v55 }
 0x633   :  { %7664 = vmatpush.bf16.msrb.mxu0 %v11769_v43  ;;  %v12912_v43 = vld [vmem:[#allocation32 + $0x60] sm:$0xff] }
 0x634   :  { %8068 = vmatpush.bf16.msra.mxu1 %v12906_v13  ;;  %v7214_v11 = vpop.f32.mrf.mxu2  ;;  %v12889_v13 = vld [vmem:[#allocation29 + $0xa4] sm:$0xf0] }
 0x635   :  { %v11765_v6 = vor.u32 %v12889_v13, %v11764_v1  ;;  %v7215_v30 = vadd.f32 %v7214_v11, %v7201_v58  ;;  %v12916_v11 = vld [vmem:[#allocation32 + $0x80] sm:$0xff]  ;;  %v12913_v58 = vld [vmem:[#allocation32 + $0x68] sm:$0xff] }
 0x636   :  { %8101 = vmatpush.bf16.msrb.mxu3 %v12917_v56  ;;  %v12911_v56 = vld [vmem:[#allocation32 + $0x58] sm:$0xff] }
 0x637   :  { %7636 = vmatpush.bf16.msrb.mxu2 %v11765_v6  ;;  %v7229_v51 = vadd.f32 %v7228_v53, %v7215_v30  ;;  %v7310_v53 = vpop.f32.mrf.mxu1  ;;  %v12928_v30 = vld [vmem:[#allocation32 + $0xe0] sm:$0xff] }
 0x638   :  { %8069 = vmatpush.bf16.msra.mxu1 %v12905_v19  ;;  %v12901_v19 = vld [vmem:[#allocation32 + $0x8] sm:$0xff] }
 0x63a   :  { %8102 = vmatpush.bf16.msrb.mxu3 %v12916_v11 }
 0x63b   :  { %7637 = vmatpush.bf16.msrb.mxu2 %v11757_v10 }
 0x63c   :  { %v7240_v8 = vpop.f32.mrf.mxu0  ;;  %8070 = vmatpush.bf16.msra.mxu1 %v12904_v32  ;;  %v7282_v41 = vpop.f32.mrf.mxu3  ;;  %v11758_v32 = vld [vmem:[#allocation29 + $0x98] sm:$0xf0] }
 0x63d   :  { %v7241_v24 = vadd.f32 %v7240_v8, %v7227_v38  ;;  %v11761_v28 = vor.u32 %v12886_v21, %v11758_v32  ;;  %v12910_v21 = vld [vmem:[#allocation32 + $0x50] sm:$0xff] }
 0x63f   :  { %7665 = vmatpush.bf16.msrb.mxu0 %v11761_v28  ;;  %v7255_v8 = vadd.f32 %v14110_v45, %v7241_v24  ;;  %7638 = vmatpush.bf16.msrb.mxu2 %v11749_v49  ;;  %v2813_v24 = vadd.f32 %v13886_v60, %v2637_v54  ;;  %v12925_v54 = vld [vmem:[#allocation32 + $0xc8] sm:$0xff] }
 0x640   :  { %8071 = vmatpush.bf16.msra.mxu1 %v12903_v7  ;;  %v11753_v7 = vor.u32 %v12884_v12, %v11750_v52  ;;  %v12908_v52 = vld [vmem:[#allocation32 + $0x40] sm:$0xff] }
 0x641   :  { %v2827_v11 = vadd.f32 %v13901_v3, %v2813_v24  ;;  %v5153_v3 = vmax.f32 %v14014_v2, 0.0  ;;  %v7451_v24 = vld [vmem:[#allocation31] sm:$0x3] }
 0x643   :  { %7666 = vmatpush.bf16.msrb.mxu0 %v11753_v7  ;;  %8081 = vmatpush.bf16.msra.mxu2 %v12915_v27  ;;  %v2859_v60 = vmax.f32 %v2827_v11, 0.0 }
 0x644   :  { %8072 = vmatpush.bf16.msra.mxu1 %v12902_v37  ;;  %v7242_v59 = vpop.f32.mrf.mxu0  ;;  %v7284_v9 = vpop.f32.mrf.mxu3  ;;  %v12930_v37 = vld [vmem:[#allocation32 + $0xf0] sm:$0xff] }
 0x645   :  { %v7243_v61 = vadd.f32 %v7242_v59, %v7229_v51  ;;  %v6546_v59 = vperm.slane %v14108_v14, 1  ;;  %v5109_v14 = vadd.f32 %v14003_v40, %v4933_v29 }
 0x647   :  { %v7257_v34 = vadd.f32 %v7256_v16, %v7243_v61  ;;  %8109 = vmatpush.bf16.msra.mxu0 %v12931_v26  ;;  %8082 = vmatpush.bf16.msra.mxu2 %v12914_v48  ;;  %v7311_v17 = vadd.f32 %v7310_v53, %v6546_v59  ;;  %v5123_v28 = vadd.f32 %v14018_v44, %v5109_v14 }
 0x648   :  { %8073 = vmatpush.bf16.msra.mxu1 %v12901_v19 }
 0x649   :  { %v5155_v31 = vmax.f32 %v5123_v28, 0.0  ;;  %v7453_v28 = vperm.slane %v7451_v24, 0 }
 0x64b   :  { %8110 = vmatpush.bf16.msra.mxu0 %v12930_v37  ;;  %8083 = vmatpush.bf16.msra.mxu2 %v12913_v58 }
 0x64c   :  { %8074 = vmatpush.bf16.msra.mxu1 %v12900_v33  ;;  %v7338_v13 = vpop.f32.mrf.mxu3  ;;  %v12926_v33 = vld [vmem:[#allocation32 + $0xd0] sm:$0xff] }
 0x64f   :  { %8111 = vmatpush.bf16.msra.mxu0 %v12929_v63  ;;  %8084 = vmatpush.bf16.msra.mxu2 %v12912_v43  ;;  %v2841_v63 = vadd.f32 %v13893_v22, %v2638_v18  ;;  %v12947_v43 = vld [vmem:[#allocation32 + $0x178] sm:$0xff]  ;;  %v12937_v18 = vld [vmem:[#allocation32 + $0x128] sm:$0xff] }
 0x650   :  { %v12943_v22 = vld [vmem:[#allocation32 + $0x158] sm:$0xff] }
 0x653   :  { %8112 = vmatpush.bf16.msra.mxu0 %v12928_v30  ;;  %8085 = vmatpush.bf16.msra.mxu2 %v12911_v56  ;;  %v12946_v30 = vld [vmem:[#allocation32 + $0x170] sm:$0xff]  ;;  %v12941_v56 = vld [vmem:[#allocation32 + $0x148] sm:$0xff] }
 0x654   :  { %v7340_v47 = vpop.f32.mrf.mxu3 }
 0x657   :  { %8086 = vmatpush.bf16.msra.mxu2 %v12910_v21 }
 0x65b   :  { %8087 = vmatpush.bf16.msra.mxu2 %v12909_v36 }
 0x65c   :  { %v7394_v44 = vpop.f32.mrf.mxu3 }
 0x65f   :  { %8088 = vmatpush.bf16.msra.mxu2 %v12908_v52 }
 0x661   :  { %v14113_v4 = vpop.f32.mrf.mxu2 }
 0x662   :  { %v7269_v50 = vadd.f32 %v14113_v4, %v7255_v8  ;;  %v7312_v4 = vpop.f32.mrf.mxu1  ;;  %v12924_v8 = vld [vmem:[#allocation32 + $0xc0] sm:$0xff] }
 0x663   :  { %v7313_v51 = vadd.f32 %v7312_v4, %v6546_v59  ;;  %v12939_v59 = vld [vmem:[#allocation32 + $0x138] sm:$0xff] }
 0x664   :  { %v7283_v62 = vadd.f32 %v7282_v41, %v7269_v50 }
 0x669   :  { %v7270_v0 = vpop.f32.mrf.mxu2 }
 0x66a   :  { %v7271_v20 = vadd.f32 %v7270_v0, %v7257_v34  ;;  %v12927_v0 = vld [vmem:[#allocation32 + $0xd8] sm:$0xff]  ;;  %v7366_v32 = vpop.f32.mrf.mxu1 }
 0x66b   :  { %8113 = vmatpush.bf16.msra.mxu0 %v12927_v0  ;;  %v12940_v0 = vld [vmem:[#allocation32 + $0x140] sm:$0xff] }
 0x66c   :  { %v7285_v45 = vadd.f32 %v7284_v9, %v7271_v20  ;;  %v2857_v9 = vmax.f32 %v13891_v25, 0.0 }
 0x66e   :  { %v7677_v53 = vpack.c.bf16 %v2859_v60, %v2857_v9 }
 0x66f   :  { %8114 = vmatpush.bf16.msra.mxu0 %v12926_v33 }
 0x671   :  { %v7324_v55 = vpop.f32.mrf.mxu2 }
 0x672   :  { %v7325_v10 = vadd.f32 %v7324_v55, %v7311_v17  ;;  %v7368_v26 = vpop.f32.mrf.mxu1  ;;  %v7396_v55 = vpop.f32.mrf.mxu3  ;;  %v12933_v17 = vld [vmem:[#allocation32 + $0x108] sm:$0xff] }
 0x673   :  { %8115 = vmatpush.bf16.msra.mxu0 %v12925_v54 }
 0x674   :  { %v7339_v12 = vadd.f32 %v7338_v13, %v7325_v10  ;;  %v7454_v10 = vperm.slane %v7451_v24, 1 }
 0x677   :  { %8116 = vmatpush.bf16.msra.mxu0 %v12924_v8 }
 0x679   :  { %v7326_v41 = vpop.f32.mrf.mxu2 }
 0x67a   :  { %v7327_v15 = vadd.f32 %v7326_v41, %v7313_v51  ;;  %v12938_v41 = vld [vmem:[#allocation32 + $0x130] sm:$0xff] }
 0x67b   :  { %v7296_v42 = vpop.f32.mrf.mxu0 }
 0x67c   :  { %v7297_v1 = vadd.f32 %v7296_v42, %v7283_v62  ;;  %v7341_v29 = vadd.f32 %v7340_v47, %v7327_v15  ;;  %v7679_v42 = vpack.c.bf16 %v5155_v31, %v5153_v3  ;;  %v12932_v47 = vld [vmem:[#allocation32 + $0x100] sm:$0xff] }
 0x67e   :  { %v7413_v46 = vmax.f32 %v7297_v1, 0.0 }
 0x681   :  { %v7380_v61 = vpop.f32.mrf.mxu2 }
 0x683   :  { %v7298_v35 = vpop.f32.mrf.mxu0 }
 0x684   :  { %v7299_v6 = vadd.f32 %v7298_v35, %v7285_v45 }
 0x686   :  { %v7415_v16 = vmax.f32 %v7299_v6, 0.0  ;;  %v2855_v6 = vadd.f32 %v13905_v5, %v2841_v63  ;;  %v12942_v5 = vld [vmem:[#allocation32 + $0x150] sm:$0xff] }
 0x688   :  { %v7417_v19 = vpack.c.bf16 %v7415_v16, %v7413_v46  ;;  %v2860_v4 = vmax.f32 %v2855_v6, 0.0  ;;  %v2858_v46 = vmax.f32 %v13899_v39, 0.0  ;;  %v12936_v39 = vld [vmem:[#allocation32 + $0x120] sm:$0xff] }
 0x689   :  { %v7382_v48 = vpop.f32.mrf.mxu2 }
 0x68a   :  { %7625 = vmatmul.bf16.vlgmr.msrb.gmra.mxu1 %v7417_v19  ;;  %7653 = vmatmul.bf16.vlgmr.msra.gmra.mxu3 %v7417_v19  ;;  %v7678_v16 = vpack.c.bf16 %v2860_v4, %v2858_v46  ;;  %v12945_v19 = vld [vmem:[#allocation32 + $0x168] sm:$0xff] }
 0x68b   :  { %v7352_v38 = vpop.f32.mrf.mxu0  ;;  %8123 = vmatpush.bf16.msrb.mxu1 %v12939_v59 }
 0x68c   :  { %v7353_v40 = vadd.f32 %v7352_v38, %v7339_v12  ;;  %v12934_v38 = vld [vmem:[#allocation32 + $0x110] sm:$0xff] }
 0x68e   :  { %v7367_v27 = vadd.f32 %v7366_v32, %v7353_v40 }
 0x68f   :  { %8124 = vmatpush.bf16.msrb.mxu1 %v12938_v41 }
 0x690   :  { %v7381_v20 = vadd.f32 %v7380_v61, %v7367_v27 }
 0x692   :  { %v7395_v25 = vadd.f32 %v7394_v44, %v7381_v20 }
 0x693   :  { %v7354_v49 = vpop.f32.mrf.mxu0  ;;  %8125 = vmatpush.bf16.msrb.mxu1 %v12937_v18 }
 0x694   :  { %v7355_v7 = vadd.f32 %v7354_v49, %v7341_v29 }
 0x696   :  { %v7369_v50 = vadd.f32 %v7368_v26, %v7355_v7 }
 0x697   :  { %8126 = vmatpush.bf16.msrb.mxu1 %v12936_v39 }
 0x698   :  { %v7383_v37 = vadd.f32 %v7382_v48, %v7369_v50 }
 0x69a   :  { %8075 = vmatmul.bf16.vlgmr.msra.gmra.mxu1 %v7677_v53  ;;  %8103 = vmatmul.bf16.vlgmr.msrb.gmra.mxu3 %v7679_v42  ;;  %v7397_v62 = vadd.f32 %v7396_v55, %v7383_v37 }
 0x69b   :  { %v7408_v34 = vpop.f32.mrf.mxu0 }
 0x69c   :  { %v7409_v2 = vadd.f32 %v7408_v34, %v7395_v25 }
 0x69e   :  { %v7414_v13 = vmax.f32 %v7409_v2, 0.0 }
 0x6a3   :  { %v7410_v1 = vpop.f32.mrf.mxu0 }
 0x6a4   :  { %v7411_v45 = vadd.f32 %v7410_v1, %v7397_v62 }
 0x6a6   :  { %v7416_v35 = vmax.f32 %v7411_v45, 0.0 }
 0x6a8   :  { %v7418_v58 = vpack.c.bf16 %v7416_v35, %v7414_v13 }
 0x6aa   :  { %7639 = vmatmul.bf16.vlgmr.msrb.gmra.mxu2 %v7418_v58  ;;  %7667 = vmatmul.bf16.vlgmr.msrb.gmra.mxu0 %v7418_v58 }
 0x6ab   :  { %8137 = vmatpush.bf16.msrb.mxu2 %v12947_v43 }
 0x6af   :  { %8138 = vmatpush.bf16.msrb.mxu2 %v12946_v30 }
 0x6b3   :  { %8139 = vmatpush.bf16.msrb.mxu2 %v12945_v19 }
 0x6b7   :  { %8140 = vmatpush.bf16.msrb.mxu2 %v12944_v57 }
 0x6ba   :  { %8089 = vmatmul.bf16.vlgmr.msra.gmra.mxu2 %v7678_v16  ;;  %8117 = vmatmul.bf16.vlgmr.msra.gmra.mxu0 %v14028_v23  ;;  %v12935_v23 = vld [vmem:[#allocation32 + $0x118] sm:$0xff] }
 0x6bb   :  { %8141 = vmatpush.bf16.msrb.mxu2 %v12943_v22  ;;  %8127 = vmatpush.bf16.msrb.mxu1 %v12935_v23  ;;  %v12981_v23 = vld [vmem:[#allocation34] ss:$0 sm:$0xff] }
 0x6bf   :  { %8142 = vmatpush.bf16.msrb.mxu2 %v12942_v5  ;;  %8128 = vmatpush.bf16.msrb.mxu1 %v12934_v38 }
 0x6c3   :  { %8143 = vmatpush.bf16.msrb.mxu2 %v12941_v56  ;;  %8129 = vmatpush.bf16.msrb.mxu1 %v12933_v17 }
 0x6c7   :  { %8144 = vmatpush.bf16.msrb.mxu2 %v12940_v0  ;;  %8130 = vmatpush.bf16.msrb.mxu1 %v12932_v47 }
 0x707   :  { %v7626_v14 = vpop.f32.mrf.mxu1 }
 0x708   :  { %v7627_v54 = vadd.f32 %v7626_v14, %v7453_v28 }
 0x70d   :  { %v7654_v21 = vpop.f32.mrf.mxu3 }
 0x70e   :  { %v7655_v33 = vadd.f32 %v7654_v21, %v7454_v10 }
 0x70f   :  { %v7628_v49 = vpop.f32.mrf.mxu1 }
 0x710   :  { %v7629_v40 = vadd.f32 %v7628_v49, %v7453_v28 }
 0x715   :  { %v7656_v32 = vpop.f32.mrf.mxu3 }
 0x716   :  { %v7657_v15 = vadd.f32 %v7656_v32, %v7454_v10 }
 0x717   :  { %v8076_v53 = vpop.f32.mrf.mxu1 }
 0x71d   :  { %v8104_v27 = vpop.f32.mrf.mxu3 }
 0x71f   :  { %v8078_v50 = vpop.f32.mrf.mxu1 }
 0x725   :  { %v8106_v1 = vpop.f32.mrf.mxu3 }
 0x727   :  { %v7668_v51 = vpop.f32.mrf.mxu0 }
 0x728   :  { %v7669_v36 = vadd.f32 %v7668_v51, %v7655_v33 }
 0x72a   :  { %v7674_v60 = vmax.f32 %v7669_v36, 0.0 }
 0x72d   :  { %v7640_v11 = vpop.f32.mrf.mxu2 }
 0x72e   :  { %v7641_v29 = vadd.f32 %v7640_v11, %v7627_v54 }
 0x72f   :  { %v7670_v12 = vpop.f32.mrf.mxu0 }
 0x730   :  { %v7671_v61 = vadd.f32 %v7670_v12, %v7657_v15  ;;  %v7673_v7 = vmax.f32 %v7641_v29, 0.0 }
 0x732   :  { %v7676_v31 = vmax.f32 %v7671_v61, 0.0 }
 0x734   :  { %v7682_v52 = vpack.c.bf16 %v7676_v31, %v7674_v60 }
 0x735   :  { %v7642_v9 = vpop.f32.mrf.mxu2 }
 0x736   :  { %v7643_v3 = vadd.f32 %v7642_v9, %v7629_v40  ;;  %8145 = vmatmul.bf16.vlgmr.msrb.gmra.mxu2 %v7682_v52 }
 0x737   :  { %v8118_v48 = vpop.f32.mrf.mxu0 }
 0x738   :  { %v7675_v44 = vmax.f32 %v7643_v3, 0.0 }
 0x73a   :  { %v7681_v8 = vpack.c.bf16 %v7675_v44, %v7673_v7 }
 0x73c   :  { %8131 = vmatmul.bf16.vlgmr.msrb.gmra.mxu1 %v7681_v8 }
 0x73d   :  { %v8090_v42 = vpop.f32.mrf.mxu2 }
 0x73e   :  { %v8091_v26 = vadd.f32 %v8090_v42, %v8076_v53 }
 0x73f   :  { %v8120_v58 = vpop.f32.mrf.mxu0 }
 0x740   :  { %v8105_v20 = vadd.f32 %v8104_v27, %v8091_v26 }
 0x742   :  { %v8119_v25 = vadd.f32 %v8118_v48, %v8105_v20 }
 0x745   :  { %v8092_v34 = vpop.f32.mrf.mxu2 }
 0x746   :  { %v8093_v37 = vadd.f32 %v8092_v34, %v8078_v50 }
 0x748   :  { %v8107_v45 = vadd.f32 %v8106_v1, %v8093_v37 }
 0x74a   :  { %v8121_v6 = vadd.f32 %v8120_v58, %v8107_v45 }
 0x7b9   :  { %v8132_v55 = vpop.f32.mrf.mxu1  ;;  %v8146_v2 = vpop.f32.mrf.mxu2 }
 0x7ba   :  { %v8133_v62 = vadd.f32 %v8132_v55, %v8119_v25 }
 0x7bc   :  { %v8147_v13 = vadd.f32 %v8146_v2, %v8133_v62 }
 0x7be   :  { %v8151_v35 = vrot.slane %v8147_v13, 4 }
 0x7c0   :  { %v8152_v63 = vmax.f32 %v8147_v13, %v8151_v35 }
 0x7c1   :  { %v8134_v4 = vpop.f32.mrf.mxu1  ;;  %v8148_v16 = vpop.f32.mrf.mxu2 }
 0x7c2   :  { %v8135_v46 = vadd.f32 %v8134_v4, %v8121_v6  ;;  %v8153_v43 = vrot.slane %v8152_v63, 2 }
 0x7c4   :  { %v8149_v30 = vadd.f32 %v8148_v16, %v8135_v46  ;;  %v8154_v19 = vmax.f32 %v8152_v63, %v8153_v43 }
 0x7c6   :  { %v8157_v59 = vrot.slane %v8149_v30, 4  ;;  %v8155_v18 = vrot.slane %v8154_v19, 1 }
 0x7c8   :  { %v8158_v41 = vmax.f32 %v8149_v30, %v8157_v59  ;;  %v8156_v5 = vmax.f32 %v8154_v19, %v8155_v18 }
 0x7ca   :  { %v8159_v57 = vrot.slane %v8158_v41, 2  ;;  %v8167_v0 = vadd.f32 %v12981_v23, %v8156_v5 }
 0x7cc   :  { %v8160_v22 = vmax.f32 %v8158_v41, %v8159_v57 }
 0x7ce   :  { %v8161_v39 = vrot.slane %v8160_v22, 1 }
 0x7d0   :  { %v8162_v56 = vmax.f32 %v8160_v22, %v8161_v39 }
 0x7d2   :  { %v8168_v38 = vadd.f32 %v12981_v23, %v8162_v56 }
 0x7d4   :  { %v8171_v17 = vrot.slane %v8168_v38, 7 }
 0x7d6   :  { %v8173_v47 = vsel %vm8172_vm1, %v8171_v17, %v8167_v0 }
 0x7d7   :  { %8175 = vst [vmem:[%s14187_s4] sm:$0x3] %v8173_v47 }
 0x7d8   :  { %13533 = dma.done.wait [#allocation4], 512  }
 0x7d9   :  { %13534 = vsyncadd [#allocation4], 4294966784 }
 0x7da   :  { %8197 = vsyncpa [#allocation3], 1 }
 0x7db   :  { %8198 = vsyncpa [#allocation6], 1 }
 0x7dc   :  { %8199 = vsyncpa [#allocation9], 1 }
 0x7dd   :  { %8200 = vsyncpa [#allocation12], 1 }
 0x7de   :  { %8201 = vsyncpa [#allocation15], 1 }
 0x7df   :  { %8202 = vsyncpa [#allocation18], 1 }
 0x7e0   :  { %8203 = vsyncpa [#allocation21], 1 }
 0x7e1   :  { %8204 = vsyncpa [#allocation24], 1 }
 0x7e2   :  { %8205 = vsyncpa [#allocation27], 1 }
 0x7e3   :  { %8206 = vsyncpa [#allocation30], 1 }
 0x7e4   :  { %8207 = vsyncpa [#allocation33], 1 }
 0x7e5   :  { %8208 = vsyncpa [#allocation4], 1 }

</bundles_post_ra>
